<compile_context>
chip_gen: v7x
topology: tpu7x:2x2x1
jax: 0.10.0
libtpu: 0.0.40
codegen_flags: <defaults>
</compile_context>

<pallas_src>
import math

import jax
import jax.numpy as jnp
from jax import lax
from jax.experimental import pallas as pl
from jax.experimental.pallas import tpu as pltpu  # noqa: F401

N_VEC = 25  # number of (1, IH) vector parameters stacked into the `vecs` operand


# ----------------------------------------------------------------------------
# Fused kernel: bidirectional T-LSTM scan + F_alpha projection + head
# ----------------------------------------------------------------------------
def make_fused_kernel(S, B, I, H, OUT):
    IH = I * H
    B2 = 2 * B          # forward direction rows [0, B), backward rows [B, 2B)

    def kernel(feats_ref, vecs_ref, Wdd_ref, Wg_ref, P_ref, G_ref, Fab_ref,
               ln1w_ref, ln1b_ref, Wfb_ref, Fbb_ref, ln2w_ref, ln2b_ref,
               Wphi_ref, Phib_ref, out_ref):
        f32 = jnp.float32

        def mm(a, w):
            # MXU matmul: bf16 operands, f32 accumulate.
            return jnp.dot(a.astype(jnp.bfloat16), w, preferred_element_type=f32)

        def sigmoid(z):
            # EUP approx-reciprocal path; set approx=False for tighter torch parity.
            return pl.reciprocal(1.0 + jnp.exp(-z), approx=True)

        def elu(z):
            return jnp.where(z > 0.0, z, jnp.exp(jnp.minimum(z, 0.0)) - 1.0)

        def feat(k, s):
            return feats_ref[k * S + s]           # (2B, IH)

        # ---- loop-invariant parameter loads (hoisted out of the unrolled loop) ----
        (U_j, U_i, U_f, U_o, U_c, U_last, U_time,
         W_cell_i, W_cell_f, W_cell_o,
         b_j, b_i, b_f, b_o, b_c, b_last, b_time,
         b_j_mask, b_j_last,
         W_ht_mask, W_ct_mask, W_ht_last, W_ct_last,
         Fa_f, Fa_b) = [vecs_ref[k] for k in range(N_VEC)]
        P = P_ref[...]                             # (IH, IH) bf16: per-feature sum+broadcast
        Fab = Fab_ref[...]                         # (1, I)

        h = jnp.zeros((B2, IH), f32)
        c = jnp.zeros((B2, IH), f32)
        q_steps = []

        # S is small & static -> fully unrolled recurrence (LLO gets full visibility).
        for s in range(S):
            T = feat(0, s)        # 1/log(t+e), lane-expanded over hidden
            sT = feat(1, s)       # sigmoid(T)
            Afd = feat(2, s)      # sum_i exp(-a*freq) * Dw + b_d   (freq_decay offset)
            cx = feat(3, s)       # isnan(x) ? chooser : 0
            hx0 = feat(4, s)      # isnan(x) ? 0 : H*x
            cl = feat(5, s)       # same pair for last_values
            hl0 = feat(6, s)

            # (1) one matmul for h @ W_d  and  c @ W_decomp
            r1 = mm(jnp.concatenate([h, c], axis=0), Wdd_ref[...])   # (2*B2, 2*IH)
            fd_h = sigmoid(Afd + r1[:B2, :IH])                       # freq_decay(freq, h)
            D_ST = jnp.tanh(r1[B2:, IH:])                            # tanh(c @ W_decomp)
            D_dec = D_ST * (T * fd_h)
            c_t = c - D_ST + 2.0 * D_dec                             # D_ST_decayed + LTM

            # (2) freq_decay(freq, c_t)
            fd_c = sigmoid(Afd + mm(c_t, Wdd_ref[:, :IH]))

            # (3) per-feature hidden reductions, sublane-stacked (one matmul each)
            r3 = mm(jnp.concatenate([fd_h * W_ht_last + fd_c * W_ct_last,
                                     fd_h * W_ht_mask + fd_c * W_ct_mask], axis=0), P)
            xlh = jnp.tanh(r3[:B2] + b_j_last)
            imp = jnp.tanh(r3[B2:] + b_j_mask)
            r4 = mm(jnp.concatenate([xlh, imp], axis=0), P)
            s_last = cl * r4[:B2] + hl0          # sum_h of imputed last_values
            sx = cx * r4[B2:] + hx0              # sum_h of imputed inputs

            last_t = elu(s_last * U_last + b_last)
            h2 = h + last_t

            # (4) all five gate projections in one 640-wide MXU matmul
            g = mm(h2, Wg_ref[...])                                  # (B2, 5*IH)
            gj = g[:, 0 * IH:1 * IH]
            gi = g[:, 1 * IH:2 * IH]
            gf = g[:, 2 * IH:3 * IH]
            go = g[:, 3 * IH:4 * IH]
            gc = g[:, 4 * IH:5 * IH]

            j_t = jnp.tanh(gj + sx * U_j + b_j)
            t_g = sigmoid(sx * U_time + sT + b_time)
            fd_j = sigmoid(Afd + mm(j_t, Wdd_ref[:, :IH]))           # freq_decay(freq, j_t)
            i_g = sigmoid(sx * U_i + gi + c_t * W_cell_i + b_i * fd_j)
            f_g = sigmoid(sx * U_f + gf + c_t * W_cell_f + b_f + j_t)
            f_new = f_g * T + (1.0 - f_g) * fd_j
            C_c = jnp.tanh(sx * U_c + gc + b_c)
            Ct = (f_new + t_g) * c_t + i_g * j_t * t_g * C_c
            o_g = sigmoid(sx * U_o + go + t_g + last_t + Ct * W_cell_o + b_o)
            h_new = o_g * jnp.tanh(Ct + last_t)

            # F_alpha combine (the reduction matmul is deferred until after the loop)
            q_steps.append(h_new[:B] * Fa_f + h_new[B:] * Fa_b)      # (B, IH)

            h, c = h_new, Ct

        # ---- deferred F_alpha attention projection: one matmul for all steps ----
        pre = mm(jnp.concatenate(q_steps, axis=0), G_ref[...])       # (S*B, I)
        alp = jnp.tanh(pre + Fab)
        # flat lane order f = s*I + i  ==  torch's raw reshape (B,S,I,1) -> (B,I,S)
        a = jnp.concatenate([alp[s * B:(s + 1) * B] for s in range(S)], axis=-1)  # (B, S*I)

        # ---- fused head: LayerNorm([I,S]) -> F_beta -> LayerNorm([I,4H]) -> Phi -> max ----
        eps = 1e-5
        mean1 = jnp.mean(a, axis=-1, keepdims=True)
        d1 = a - mean1
        var1 = jnp.mean(d1 * d1, axis=-1, keepdims=True)
        y = d1 * lax.rsqrt(var1 + eps) * ln1w_ref[...] + ln1b_ref[...]

        z = mm(y, Wfb_ref[...]) + Fbb_ref[...]                       # (B, I*4H)
        mean2 = jnp.mean(z, axis=-1, keepdims=True)
        d2 = z - mean2
        var2 = jnp.mean(d2 * d2, axis=-1, keepdims=True)
        zn = d2 * lax.rsqrt(var2 + eps) * ln2w_ref[...] + ln2b_ref[...]

        m = mm(zn, Wphi_ref[...]) + Phib_ref[...]                    # (B, I*OUT)
        out = m[:, 0:OUT]
        for p in range(1, I):
            out = jnp.maximum(out, m[:, p * OUT:(p + 1) * OUT])
        out_ref[...] = out

    return kernel


# ----------------------------------------------------------------------------
# Parameters (torch-shaped) and their kernel-layout preparation
# ----------------------------------------------------------------------------
def init_params(key, I, H, S, OUT):
    std = 0.02
    keys = jax.random.split(key, 64)
    kit = iter(keys)

    def nrm(shape):
        return std * jax.random.normal(next(kit), shape, dtype=jnp.float32)

    p = {}
    for n in ['U_j', 'U_i', 'U_f', 'U_o', 'U_c', 'U_last', 'U_time', 'Dw']:
        p[n] = nrm((I, 1, H))
    for n in ['W_j', 'W_i', 'W_f', 'W_o', 'W_c', 'W_d', 'W_decomp']:
        p[n] = nrm((I, H, H))
    for n in ['W_cell_i', 'W_cell_f', 'W_cell_o',
              'b_j', 'b_i', 'b_f', 'b_o', 'b_c', 'b_last', 'b_time', 'b_d',
              'b_j_mask', 'b_j_last']:
        p[n] = nrm((I, H))
    for n in ['W_ht_mask', 'W_ct_mask', 'W_ht_last', 'W_ct_last']:
        p[n] = nrm((I, H, 1))
    p['F_alpha'] = nrm((I, 2 * H, 1))
    p['F_alpha_n_b'] = nrm((I, 1))
    p['Fb_W'] = nrm((4 * H, S)); p['Fb_b'] = nrm((4 * H,))
    p['Phi_W'] = nrm((OUT, 4 * H)); p['Phi_b'] = nrm((OUT,))
    p['ln1_w'] = jnp.ones((I, S), jnp.float32); p['ln1_b'] = jnp.zeros((I, S), jnp.float32)
    p['ln2_w'] = jnp.ones((I, 4 * H), jnp.float32); p['ln2_b'] = jnp.zeros((I, 4 * H), jnp.float32)
    return p


def prepare_params(p, I, H, S, OUT):
    """Convert torch-shaped parameters to the lane-dense / block-structured kernel layout."""
    IH = I * H
    FH = 4 * H
    f32 = jnp.float32
    bf16 = jnp.bfloat16
    eyeI = jnp.eye(I, dtype=f32)

    def blockdiag(W):  # (I, H, H) -> (IH, IH); block i == W[i]  (row=H_in, col=H_out)
        return jnp.einsum('ijk,ip->ijpk', W, eyeI).reshape(IH, IH)

    # concatenated gate weights (one wide MXU RHS) and [W_d | W_decomp]
    Wg = jnp.concatenate([blockdiag(p[n]) for n in
                          ['W_j', 'W_i', 'W_f', 'W_o', 'W_c']], axis=1).astype(bf16)
    Wdd = jnp.concatenate([blockdiag(p['W_d']), blockdiag(p['W_decomp'])], axis=1).astype(bf16)
    P = jnp.kron(eyeI, jnp.ones((H, H), f32)).astype(bf16)   # per-feature sum + broadcast
    G = jnp.kron(eyeI, jnp.ones((H, 1), f32)).astype(bf16)   # per-feature sum -> (., I)

    def flat(a):
        return a.reshape(1, IH)

    Fa = p['F_alpha'][:, :, 0]                               # (I, 2H)
    vec_list = [flat(p['U_j']), flat(p['U_i']), flat(p['U_f']), flat(p['U_o']),
                flat(p['U_c']), flat(p['U_last']), flat(p['U_time']),
                flat(p['W_cell_i']), flat(p['W_cell_f']), flat(p['W_cell_o']),
                flat(p['b_j']), flat(p['b_i']), flat(p['b_f']), flat(p['b_o']),
                flat(p['b_c']), flat(p['b_last']), flat(p['b_time']),
                flat(p['b_j_mask']), flat(p['b_j_last']),
                flat(p['W_ht_mask']), flat(p['W_ct_mask']),
                flat(p['W_ht_last']), flat(p['W_ct_last']),
                Fa[:, :H].reshape(1, IH), Fa[:, H:].reshape(1, IH)]
    assert len(vec_list) == N_VEC
    vecs = jnp.stack(vec_list, axis=0)                       # (N_VEC, 1, IH)
    Fab = p['F_alpha_n_b'].reshape(1, I)

    # head weights in the flat (B, S*I) layout (torch raw-reshape semantics)
    FbT = p['Fb_W'].T                                        # (S, 4H)
    Wfb = jnp.einsum('pr,qc->pqrc', eyeI, FbT).reshape(S * I, I * FH).astype(bf16)
    Fbb = jnp.tile(p['Fb_b'], I).reshape(1, I * FH)
    PhT = p['Phi_W'].T                                       # (4H, OUT)
    Wphi = jnp.einsum('pr,co->pcro', eyeI, PhT).reshape(I * FH, I * OUT).astype(bf16)
    Phib = jnp.tile(p['Phi_b'], I).reshape(1, I * OUT)

    return dict(Wg=Wg, Wdd=Wdd, P=P, G=G, vecs=vecs, Fab=Fab,
                Dw_flat=p['Dw'].reshape(IH), bd_flat=p['b_d'].reshape(IH),
                ln1w=p['ln1_w'].reshape(1, I * S), ln1b=p['ln1_b'].reshape(1, I * S),
                Wfb=Wfb, Fbb=Fbb,
                ln2w=p['ln2_w'].reshape(1, I * FH), ln2b=p['ln2_b'].reshape(1, I * FH),
                Wphi=Wphi, Phib=Phib)


# ----------------------------------------------------------------------------
# Full forward (TimeLSTM.forward(..., is_test=False) -> outputs)
# ----------------------------------------------------------------------------
def time_lstm_forward(hist, times, last, freqs, kp):
    B, S, I = hist.shape
    IH = kp['Wdd'].shape[0]
    H = IH // I
    OUT = kp['Phib'].shape[-1] // I
    f32 = jnp.float32
    E = math.e
    ALPHA = 0.5       # self.factor
    IMP_W = 0.05      # self.imp_weight_freq
    ALPHA_IMP = 0.5   # self.factor_impu

    x_f = jnp.transpose(hist.astype(f32), (1, 0, 2))      # (S, B, I)
    t_f = jnp.transpose(times.astype(f32), (1, 0, 2))
    l_f = jnp.transpose(last.astype(f32), (1, 0, 2))
    q_f = jnp.transpose(freqs.astype(f32), (1, 0, 2))

    # backward direction: x flipped; t[0]=times[0], t[i>0]=flip(times)[i-1];
    # last_values / freqs are NOT flipped (matches the reference module).
    x_b = jnp.flip(x_f, axis=0)
    t_b = jnp.concatenate([t_f[:1], jnp.flip(t_f, axis=0)[:S - 1]], axis=0)

    # stack the two directions along batch -> (S, 2B, I)
    xs = jnp.concatenate([x_f, x_b], axis=1)
    ts = jnp.concatenate([t_f, t_b], axis=1)
    ls = jnp.concatenate([l_f, l_f], axis=1)
    qs = jnp.concatenate([q_f, q_f], axis=1)

    # ---- per-step, input-only precompute (hoisted out of the recurrence) ----
    T2 = 1.0 / jnp.log(ts + E)                                        # map_elapse_time
    sT2 = jax.nn.sigmoid(T2)
    sw = jnp.sum(jnp.exp(-ALPHA_IMP * qs), axis=2, keepdims=True)     # (S, 2B, 1)

    ff = jnp.exp(-IMP_W * qs)
    factor_feature = ff / jnp.max(ff, axis=(1, 2), keepdims=True)
    fi = jnp.exp(ALPHA_IMP * qs)
    factor_imp = fi / jnp.max(fi, axis=(1, 2), keepdims=True)
    cond = factor_imp == jnp.max(factor_imp, axis=(1, 2), keepdims=True)
    feat_decay = jnp.exp(-ALPHA * jnp.arange(I, dtype=f32))
    freqs2 = (float(S) - qs) * feat_decay[None, None, :]
    frequencies = freqs2 / jnp.max(freqs2, axis=(1, 2), keepdims=True)
    chooser = jnp.where(cond, frequencies, factor_feature)            # (S, 2B, I)

    nanx = jnp.isnan(xs)
    nanl = jnp.isnan(ls)
    cx = jnp.where(nanx, chooser, 0.0)
    hx0 = jnp.where(nanx, 0.0, float(H) * jnp.nan_to_num(xs))
    cl = jnp.where(nanl, chooser, 0.0)
    hl0 = jnp.where(nanl, 0.0, float(H) * jnp.nan_to_num(ls))

    def expand(a):                                                    # (S,2B,I)->(S,2B,I*H)
        return jnp.repeat(a, H, axis=-1)

    Afd = sw * kp['Dw_flat'][None, None, :] + kp['bd_flat'][None, None, :]
    # one packed operand: (7*S, 2B, IH); slot k*S+s holds feature k of step s
    feats = jnp.stack([expand(T2), expand(sT2), Afd,
                       expand(cx), expand(hx0), expand(cl), expand(hl0)],
                      axis=0).reshape(7 * S, 2 * B, IH)

    kernel = make_fused_kernel(S, B, I, H, OUT)
    # single pallas_call, no grid: inputs + ~0.4 MiB of weights + (B, OUT) output are
    # all VMEM-resident -> no per-step pipeline / dispatch overhead.
    return pl.pallas_call(
        kernel,
        out_shape=jax.ShapeDtypeStruct((B, OUT), jnp.float32),
    )(feats, kp['vecs'], kp['Wdd'], kp['Wg'], kp['P'], kp['G'], kp['Fab'],
      kp['ln1w'], kp['ln1b'], kp['Wfb'], kp['Fbb'],
      kp['ln2w'], kp['ln2b'], kp['Wphi'], kp['Phib'])


if __name__ == "__main__":
    B, S, I, H, OUT = 2, 8, 4, 32, 4
    key = jax.random.PRNGKey(0)
    k1, k2, k3, k4, k5, k6, kpk = jax.random.split(key, 7)

    hist = jax.random.normal(k1, (B, S, I), dtype=jnp.float32)
    hist = jnp.where(jax.random.uniform(k2, (B, S, I)) < 0.25, jnp.nan, hist)   # missing vals
    last = jax.random.normal(k3, (B, S, I), dtype=jnp.float32)
    last = jnp.where(jax.random.uniform(k4, (B, S, I)) < 0.25, jnp.nan, last)
    times = jax.random.uniform(k5, (B, S, I), minval=0.1, maxval=6.0, dtype=jnp.float32)
    freqs = jnp.floor(jax.random.uniform(k6, (B, S, I), minval=0.0, maxval=float(S),
                                         dtype=jnp.float32))

    raw_params = init_params(kpk, I, H, S, OUT)
    kparams = prepare_params(raw_params, I, H, S, OUT)

    out = jax.jit(time_lstm_forward)(hist, times, last, freqs, kparams)
    out = jax.block_until_ready(out)
    assert out.shape == (B, OUT)
    assert bool(jnp.all(jnp.isfinite(out)))
    print("KERNEL_OK")
</pallas_src>

<mosaic_0001>
module attributes {stable_mosaic.version = 11 : i64} {
  func.func @kernel(%arg0: memref<56x4x128xf32, #tpu.memory_space<vmem>>, %arg1: memref<25x1x128xf32, #tpu.memory_space<vmem>>, %arg2: memref<128x256xbf16, #tpu.memory_space<vmem>>, %arg3: memref<128x640xbf16, #tpu.memory_space<vmem>>, %arg4: memref<128x128xbf16, #tpu.memory_space<vmem>>, %arg5: memref<128x4xbf16, #tpu.memory_space<vmem>>, %arg6: memref<1x4xf32, #tpu.memory_space<vmem>>, %arg7: memref<1x32xf32, #tpu.memory_space<vmem>>, %arg8: memref<1x32xf32, #tpu.memory_space<vmem>>, %arg9: memref<32x512xbf16, #tpu.memory_space<vmem>>, %arg10: memref<1x512xf32, #tpu.memory_space<vmem>>, %arg11: memref<1x512xf32, #tpu.memory_space<vmem>>, %arg12: memref<1x512xf32, #tpu.memory_space<vmem>>, %arg13: memref<512x16xbf16, #tpu.memory_space<vmem>>, %arg14: memref<1x16xf32, #tpu.memory_space<vmem>>, %arg15: memref<2x4xf32, #tpu.memory_space<vmem>>) attributes {dimension_semantics = [], scalar_prefetch = 0 : i64, scratch_operands = 0 : i64, tpu.core_type = #tpu.core_type<tc>} {
    %c0 = arith.constant 0 : index
    %c0_0 = arith.constant 0 : index
    %c0_1 = arith.constant 0 : index
    %0 = vector.load %arg1[%c0, %c0_0, %c0_1] : memref<25x1x128xf32, #tpu.memory_space<vmem>>, vector<1x1x128xf32>
    %1 = vector.shape_cast %0 : vector<1x1x128xf32> to vector<1x128xf32>
    %c1 = arith.constant 1 : index
    %c0_2 = arith.constant 0 : index
    %c0_3 = arith.constant 0 : index
    %2 = vector.load %arg1[%c1, %c0_2, %c0_3] : memref<25x1x128xf32, #tpu.memory_space<vmem>>, vector<1x1x128xf32>
    %3 = vector.shape_cast %2 : vector<1x1x128xf32> to vector<1x128xf32>
    %c2 = arith.constant 2 : index
    %c0_4 = arith.constant 0 : index
    %c0_5 = arith.constant 0 : index
    %4 = vector.load %arg1[%c2, %c0_4, %c0_5] : memref<25x1x128xf32, #tpu.memory_space<vmem>>, vector<1x1x128xf32>
    %5 = vector.shape_cast %4 : vector<1x1x128xf32> to vector<1x128xf32>
    %c3 = arith.constant 3 : index
    %c0_6 = arith.constant 0 : index
    %c0_7 = arith.constant 0 : index
    %6 = vector.load %arg1[%c3, %c0_6, %c0_7] : memref<25x1x128xf32, #tpu.memory_space<vmem>>, vector<1x1x128xf32>
    %7 = vector.shape_cast %6 : vector<1x1x128xf32> to vector<1x128xf32>
    %c4 = arith.constant 4 : index
    %c0_8 = arith.constant 0 : index
    %c0_9 = arith.constant 0 : index
    %8 = vector.load %arg1[%c4, %c0_8, %c0_9] : memref<25x1x128xf32, #tpu.memory_space<vmem>>, vector<1x1x128xf32>
    %9 = vector.shape_cast %8 : vector<1x1x128xf32> to vector<1x128xf32>
    %c5 = arith.constant 5 : index
    %c0_10 = arith.constant 0 : index
    %c0_11 = arith.constant 0 : index
    %10 = vector.load %arg1[%c5, %c0_10, %c0_11] : memref<25x1x128xf32, #tpu.memory_space<vmem>>, vector<1x1x128xf32>
    %11 = vector.shape_cast %10 : vector<1x1x128xf32> to vector<1x128xf32>
    %c6 = arith.constant 6 : index
    %c0_12 = arith.constant 0 : index
    %c0_13 = arith.constant 0 : index
    %12 = vector.load %arg1[%c6, %c0_12, %c0_13] : memref<25x1x128xf32, #tpu.memory_space<vmem>>, vector<1x1x128xf32>
    %13 = vector.shape_cast %12 : vector<1x1x128xf32> to vector<1x128xf32>
    %c7 = arith.constant 7 : index
    %c0_14 = arith.constant 0 : index
    %c0_15 = arith.constant 0 : index
    %14 = vector.load %arg1[%c7, %c0_14, %c0_15] : memref<25x1x128xf32, #tpu.memory_space<vmem>>, vector<1x1x128xf32>
    %15 = vector.shape_cast %14 : vector<1x1x128xf32> to vector<1x128xf32>
    %c8 = arith.constant 8 : index
    %c0_16 = arith.constant 0 : index
    %c0_17 = arith.constant 0 : index
    %16 = vector.load %arg1[%c8, %c0_16, %c0_17] : memref<25x1x128xf32, #tpu.memory_space<vmem>>, vector<1x1x128xf32>
    %17 = vector.shape_cast %16 : vector<1x1x128xf32> to vector<1x128xf32>
    %c9 = arith.constant 9 : index
    %c0_18 = arith.constant 0 : index
    %c0_19 = arith.constant 0 : index
    %18 = vector.load %arg1[%c9, %c0_18, %c0_19] : memref<25x1x128xf32, #tpu.memory_space<vmem>>, vector<1x1x128xf32>
    %19 = vector.shape_cast %18 : vector<1x1x128xf32> to vector<1x128xf32>
    %c10 = arith.constant 10 : index
    %c0_20 = arith.constant 0 : index
    %c0_21 = arith.constant 0 : index
    %20 = vector.load %arg1[%c10, %c0_20, %c0_21] : memref<25x1x128xf32, #tpu.memory_space<vmem>>, vector<1x1x128xf32>
    %21 = vector.shape_cast %20 : vector<1x1x128xf32> to vector<1x128xf32>
    %c11 = arith.constant 11 : index
    %c0_22 = arith.constant 0 : index
    %c0_23 = arith.constant 0 : index
    %22 = vector.load %arg1[%c11, %c0_22, %c0_23] : memref<25x1x128xf32, #tpu.memory_space<vmem>>, vector<1x1x128xf32>
    %23 = vector.shape_cast %22 : vector<1x1x128xf32> to vector<1x128xf32>
    %c12 = arith.constant 12 : index
    %c0_24 = arith.constant 0 : index
    %c0_25 = arith.constant 0 : index
    %24 = vector.load %arg1[%c12, %c0_24, %c0_25] : memref<25x1x128xf32, #tpu.memory_space<vmem>>, vector<1x1x128xf32>
    %25 = vector.shape_cast %24 : vector<1x1x128xf32> to vector<1x128xf32>
    %c13 = arith.constant 13 : index
    %c0_26 = arith.constant 0 : index
    %c0_27 = arith.constant 0 : index
    %26 = vector.load %arg1[%c13, %c0_26, %c0_27] : memref<25x1x128xf32, #tpu.memory_space<vmem>>, vector<1x1x128xf32>
    %27 = vector.shape_cast %26 : vector<1x1x128xf32> to vector<1x128xf32>
    %c14 = arith.constant 14 : index
    %c0_28 = arith.constant 0 : index
    %c0_29 = arith.constant 0 : index
    %28 = vector.load %arg1[%c14, %c0_28, %c0_29] : memref<25x1x128xf32, #tpu.memory_space<vmem>>, vector<1x1x128xf32>
    %29 = vector.shape_cast %28 : vector<1x1x128xf32> to vector<1x128xf32>
    %c15 = arith.constant 15 : index
    %c0_30 = arith.constant 0 : index
    %c0_31 = arith.constant 0 : index
    %30 = vector.load %arg1[%c15, %c0_30, %c0_31] : memref<25x1x128xf32, #tpu.memory_space<vmem>>, vector<1x1x128xf32>
    %31 = vector.shape_cast %30 : vector<1x1x128xf32> to vector<1x128xf32>
    %c16 = arith.constant 16 : index
    %c0_32 = arith.constant 0 : index
    %c0_33 = arith.constant 0 : index
    %32 = vector.load %arg1[%c16, %c0_32, %c0_33] : memref<25x1x128xf32, #tpu.memory_space<vmem>>, vector<1x1x128xf32>
    %33 = vector.shape_cast %32 : vector<1x1x128xf32> to vector<1x128xf32>
    %c17 = arith.constant 17 : index
    %c0_34 = arith.constant 0 : index
    %c0_35 = arith.constant 0 : index
    %34 = vector.load %arg1[%c17, %c0_34, %c0_35] : memref<25x1x128xf32, #tpu.memory_space<vmem>>, vector<1x1x128xf32>
    %35 = vector.shape_cast %34 : vector<1x1x128xf32> to vector<1x128xf32>
    %c18 = arith.constant 18 : index
    %c0_36 = arith.constant 0 : index
    %c0_37 = arith.constant 0 : index
    %36 = vector.load %arg1[%c18, %c0_36, %c0_37] : memref<25x1x128xf32, #tpu.memory_space<vmem>>, vector<1x1x128xf32>
    %37 = vector.shape_cast %36 : vector<1x1x128xf32> to vector<1x128xf32>
    %c19 = arith.constant 19 : index
    %c0_38 = arith.constant 0 : index
    %c0_39 = arith.constant 0 : index
    %38 = vector.load %arg1[%c19, %c0_38, %c0_39] : memref<25x1x128xf32, #tpu.memory_space<vmem>>, vector<1x1x128xf32>
    %39 = vector.shape_cast %38 : vector<1x1x128xf32> to vector<1x128xf32>
    %c20 = arith.constant 20 : index
    %c0_40 = arith.constant 0 : index
    %c0_41 = arith.constant 0 : index
    %40 = vector.load %arg1[%c20, %c0_40, %c0_41] : memref<25x1x128xf32, #tpu.memory_space<vmem>>, vector<1x1x128xf32>
    %41 = vector.shape_cast %40 : vector<1x1x128xf32> to vector<1x128xf32>
    %c21 = arith.constant 21 : index
    %c0_42 = arith.constant 0 : index
    %c0_43 = arith.constant 0 : index
    %42 = vector.load %arg1[%c21, %c0_42, %c0_43] : memref<25x1x128xf32, #tpu.memory_space<vmem>>, vector<1x1x128xf32>
    %43 = vector.shape_cast %42 : vector<1x1x128xf32> to vector<1x128xf32>
    %c22 = arith.constant 22 : index
    %c0_44 = arith.constant 0 : index
    %c0_45 = arith.constant 0 : index
    %44 = vector.load %arg1[%c22, %c0_44, %c0_45] : memref<25x1x128xf32, #tpu.memory_space<vmem>>, vector<1x1x128xf32>
    %45 = vector.shape_cast %44 : vector<1x1x128xf32> to vector<1x128xf32>
    %c23 = arith.constant 23 : index
    %c0_46 = arith.constant 0 : index
    %c0_47 = arith.constant 0 : index
    %46 = vector.load %arg1[%c23, %c0_46, %c0_47] : memref<25x1x128xf32, #tpu.memory_space<vmem>>, vector<1x1x128xf32>
    %47 = vector.shape_cast %46 : vector<1x1x128xf32> to vector<1x128xf32>
    %c24 = arith.constant 24 : index
    %c0_48 = arith.constant 0 : index
    %c0_49 = arith.constant 0 : index
    %48 = vector.load %arg1[%c24, %c0_48, %c0_49] : memref<25x1x128xf32, #tpu.memory_space<vmem>>, vector<1x1x128xf32>
    %49 = vector.shape_cast %48 : vector<1x1x128xf32> to vector<1x128xf32>
    %c0_50 = arith.constant 0 : index
    %c0_51 = arith.constant 0 : index
    %50 = vector.load %arg4[%c0_50, %c0_51] : memref<128x128xbf16, #tpu.memory_space<vmem>>, vector<128x128xbf16>
    %c0_52 = arith.constant 0 : index
    %c0_53 = arith.constant 0 : index
    %51 = vector.load %arg6[%c0_52, %c0_53] : memref<1x4xf32, #tpu.memory_space<vmem>>, vector<1x4xf32>
    %cst = arith.constant 0.000000e+00 : f32
    %52 = vector.broadcast %cst : f32 to vector<4x128xf32>
    %cst_54 = arith.constant 0.000000e+00 : f32
    %53 = vector.broadcast %cst_54 : f32 to vector<4x128xf32>
    %c0_55 = arith.constant 0 : index
    %c0_56 = arith.constant 0 : index
    %c0_57 = arith.constant 0 : index
    %54 = vector.load %arg0[%c0_55, %c0_56, %c0_57] : memref<56x4x128xf32, #tpu.memory_space<vmem>>, vector<1x4x128xf32>
    %55 = vector.shape_cast %54 : vector<1x4x128xf32> to vector<4x128xf32>
    %c8_58 = arith.constant 8 : index
    %c0_59 = arith.constant 0 : index
    %c0_60 = arith.constant 0 : index
    %56 = vector.load %arg0[%c8_58, %c0_59, %c0_60] : memref<56x4x128xf32, #tpu.memory_space<vmem>>, vector<1x4x128xf32>
    %57 = vector.shape_cast %56 : vector<1x4x128xf32> to vector<4x128xf32>
    %c16_61 = arith.constant 16 : index
    %c0_62 = arith.constant 0 : index
    %c0_63 = arith.constant 0 : index
    %58 = vector.load %arg0[%c16_61, %c0_62, %c0_63] : memref<56x4x128xf32, #tpu.memory_space<vmem>>, vector<1x4x128xf32>
    %59 = vector.shape_cast %58 : vector<1x4x128xf32> to vector<4x128xf32>
    %c24_64 = arith.constant 24 : index
    %c0_65 = arith.constant 0 : index
    %c0_66 = arith.constant 0 : index
    %60 = vector.load %arg0[%c24_64, %c0_65, %c0_66] : memref<56x4x128xf32, #tpu.memory_space<vmem>>, vector<1x4x128xf32>
    %61 = vector.shape_cast %60 : vector<1x4x128xf32> to vector<4x128xf32>
    %c32 = arith.constant 32 : index
    %c0_67 = arith.constant 0 : index
    %c0_68 = arith.constant 0 : index
    %62 = vector.load %arg0[%c32, %c0_67, %c0_68] : memref<56x4x128xf32, #tpu.memory_space<vmem>>, vector<1x4x128xf32>
    %63 = vector.shape_cast %62 : vector<1x4x128xf32> to vector<4x128xf32>
    %c40 = arith.constant 40 : index
    %c0_69 = arith.constant 0 : index
    %c0_70 = arith.constant 0 : index
    %64 = vector.load %arg0[%c40, %c0_69, %c0_70] : memref<56x4x128xf32, #tpu.memory_space<vmem>>, vector<1x4x128xf32>
    %65 = vector.shape_cast %64 : vector<1x4x128xf32> to vector<4x128xf32>
    %c48 = arith.constant 48 : index
    %c0_71 = arith.constant 0 : index
    %c0_72 = arith.constant 0 : index
    %66 = vector.load %arg0[%c48, %c0_71, %c0_72] : memref<56x4x128xf32, #tpu.memory_space<vmem>>, vector<1x4x128xf32>
    %67 = vector.shape_cast %66 : vector<1x4x128xf32> to vector<4x128xf32>
    %68 = tpu.concatenate %52, %53 in 0 : vector<4x128xf32>, vector<4x128xf32> -> vector<8x128xf32>
    %c0_73 = arith.constant 0 : index
    %c0_74 = arith.constant 0 : index
    %69 = vector.load %arg2[%c0_73, %c0_74] : memref<128x256xbf16, #tpu.memory_space<vmem>>, vector<128x256xbf16>
    %70 = arith.truncf %68 : vector<8x128xf32> to vector<8x128xbf16>
    %cst_75 = arith.constant dense<0.000000e+00> : vector<8x256xf32>
    %71 = tpu.matmul %70, %69, %cst_75 {dimension_numbers = #tpu.dot_dimension_numbers<[1], [0], [0], [1], [0, 0, 1, 1], [], []>} : vector<8x128xbf16>, vector<128x256xbf16>, vector<8x256xf32> -> vector<8x256xf32>
    %72 = vector.extract_strided_slice %71 {offsets = [0, 0], sizes = [4, 128], strides = [1, 1]} : vector<8x256xf32> to vector<4x128xf32>
    %73 = arith.addf %59, %72 : vector<4x128xf32>
    %cst_76 = arith.constant 0.000000e+00 : f32
    %74 = vector.broadcast %cst_76 : f32 to vector<4x128xf32>
    %75 = arith.subf %74, %73 : vector<4x128xf32>
    %76 = math.exp %75 : vector<4x128xf32>
    %cst_77 = arith.constant 1.000000e+00 : f32
    %77 = vector.broadcast %cst_77 : f32 to vector<4x128xf32>
    %78 = arith.addf %77, %76 : vector<4x128xf32>
    %79 = tpu.reciprocal %78 {approx = true} : vector<4x128xf32> -> vector<4x128xf32>
    %80 = vector.extract_strided_slice %71 {offsets = [4, 128], sizes = [4, 128], strides = [1, 1]} : vector<8x256xf32> to vector<4x128xf32>
    %81 = math.tanh %80 : vector<4x128xf32>
    %82 = arith.mulf %55, %79 : vector<4x128xf32>
    %83 = arith.mulf %81, %82 : vector<4x128xf32>
    %84 = arith.subf %53, %81 : vector<4x128xf32>
    %cst_78 = arith.constant 2.000000e+00 : f32
    %85 = vector.broadcast %cst_78 : f32 to vector<4x128xf32>
    %86 = arith.mulf %85, %83 : vector<4x128xf32>
    %87 = arith.addf %84, %86 : vector<4x128xf32>
    %c0_79 = arith.constant 0 : index
    %c0_80 = arith.constant 0 : index
    %88 = vector.load %arg2[%c0_79, %c0_80] : memref<128x256xbf16, #tpu.memory_space<vmem>>, vector<128x128xbf16>
    %89 = arith.truncf %87 : vector<4x128xf32> to vector<4x128xbf16>
    %cst_81 = arith.constant dense<0.000000e+00> : vector<4x128xf32>
    %90 = tpu.matmul %89, %88, %cst_81 {dimension_numbers = #tpu.dot_dimension_numbers<[1], [0], [0], [1], [0, 0, 1, 1], [], []>} : vector<4x128xbf16>, vector<128x128xbf16>, vector<4x128xf32> -> vector<4x128xf32>
    %91 = arith.addf %59, %90 : vector<4x128xf32>
    %cst_82 = arith.constant 0.000000e+00 : f32
    %92 = vector.broadcast %cst_82 : f32 to vector<4x128xf32>
    %93 = arith.subf %92, %91 : vector<4x128xf32>
    %94 = math.exp %93 : vector<4x128xf32>
    %cst_83 = arith.constant 1.000000e+00 : f32
    %95 = vector.broadcast %cst_83 : f32 to vector<4x128xf32>
    %96 = arith.addf %95, %94 : vector<4x128xf32>
    %97 = tpu.reciprocal %96 {approx = true} : vector<4x128xf32> -> vector<4x128xf32>
    %98 = vector.broadcast %43 : vector<1x128xf32> to vector<4x128xf32>
    %99 = arith.mulf %79, %98 : vector<4x128xf32>
    %100 = vector.broadcast %45 : vector<1x128xf32> to vector<4x128xf32>
    %101 = arith.mulf %97, %100 : vector<4x128xf32>
    %102 = arith.addf %99, %101 : vector<4x128xf32>
    %103 = vector.broadcast %39 : vector<1x128xf32> to vector<4x128xf32>
    %104 = arith.mulf %79, %103 : vector<4x128xf32>
    %105 = vector.broadcast %41 : vector<1x128xf32> to vector<4x128xf32>
    %106 = arith.mulf %97, %105 : vector<4x128xf32>
    %107 = arith.addf %104, %106 : vector<4x128xf32>
    %108 = tpu.concatenate %102, %107 in 0 : vector<4x128xf32>, vector<4x128xf32> -> vector<8x128xf32>
    %109 = arith.truncf %108 : vector<8x128xf32> to vector<8x128xbf16>
    %cst_84 = arith.constant dense<0.000000e+00> : vector<8x128xf32>
    %110 = tpu.matmul %109, %50, %cst_84 {dimension_numbers = #tpu.dot_dimension_numbers<[1], [0], [0], [1], [0, 0, 1, 1], [], []>} : vector<8x128xbf16>, vector<128x128xbf16>, vector<8x128xf32> -> vector<8x128xf32>
    %111 = vector.extract_strided_slice %110 {offsets = [0, 0], sizes = [4, 128], strides = [1, 1]} : vector<8x128xf32> to vector<4x128xf32>
    %112 = vector.broadcast %37 : vector<1x128xf32> to vector<4x128xf32>
    %113 = arith.addf %111, %112 : vector<4x128xf32>
    %114 = math.tanh %113 : vector<4x128xf32>
    %115 = vector.extract_strided_slice %110 {offsets = [4, 0], sizes = [4, 128], strides = [1, 1]} : vector<8x128xf32> to vector<4x128xf32>
    %116 = vector.broadcast %35 : vector<1x128xf32> to vector<4x128xf32>
    %117 = arith.addf %115, %116 : vector<4x128xf32>
    %118 = math.tanh %117 : vector<4x128xf32>
    %119 = tpu.concatenate %114, %118 in 0 : vector<4x128xf32>, vector<4x128xf32> -> vector<8x128xf32>
    %120 = arith.truncf %119 : vector<8x128xf32> to vector<8x128xbf16>
    %cst_85 = arith.constant dense<0.000000e+00> : vector<8x128xf32>
    %121 = tpu.matmul %120, %50, %cst_85 {dimension_numbers = #tpu.dot_dimension_numbers<[1], [0], [0], [1], [0, 0, 1, 1], [], []>} : vector<8x128xbf16>, vector<128x128xbf16>, vector<8x128xf32> -> vector<8x128xf32>
    %122 = vector.extract_strided_slice %121 {offsets = [0, 0], sizes = [4, 128], strides = [1, 1]} : vector<8x128xf32> to vector<4x128xf32>
    %123 = arith.mulf %65, %122 : vector<4x128xf32>
    %124 = arith.addf %123, %67 : vector<4x128xf32>
    %125 = vector.extract_strided_slice %121 {offsets = [4, 0], sizes = [4, 128], strides = [1, 1]} : vector<8x128xf32> to vector<4x128xf32>
    %126 = arith.mulf %61, %125 : vector<4x128xf32>
    %127 = arith.addf %126, %63 : vector<4x128xf32>
    %128 = vector.broadcast %11 : vector<1x128xf32> to vector<4x128xf32>
    %129 = arith.mulf %124, %128 : vector<4x128xf32>
    %130 = vector.broadcast %31 : vector<1x128xf32> to vector<4x128xf32>
    %131 = arith.addf %129, %130 : vector<4x128xf32>
    %cst_86 = arith.constant 0.000000e+00 : f32
    %132 = vector.broadcast %cst_86 : f32 to vector<4x128xf32>
    %133 = arith.cmpf ogt, %131, %132 : vector<4x128xf32>
    %cst_87 = arith.constant 0.000000e+00 : f32
    %134 = vector.broadcast %cst_87 : f32 to vector<4x128xf32>
    %135 = arith.minimumf %131, %134 : vector<4x128xf32>
    %136 = math.exp %135 : vector<4x128xf32>
    %cst_88 = arith.constant 1.000000e+00 : f32
    %137 = vector.broadcast %cst_88 : f32 to vector<4x128xf32>
    %138 = arith.subf %136, %137 : vector<4x128xf32>
    %139 = arith.select %133, %131, %138 : vector<4x128xi1>, vector<4x128xf32>
    %140 = arith.addf %52, %139 : vector<4x128xf32>
    %c0_89 = arith.constant 0 : index
    %c0_90 = arith.constant 0 : index
    %141 = vector.load %arg3[%c0_89, %c0_90] : memref<128x640xbf16, #tpu.memory_space<vmem>>, vector<128x640xbf16>
    %142 = arith.truncf %140 : vector<4x128xf32> to vector<4x128xbf16>
    %cst_91 = arith.constant dense<0.000000e+00> : vector<4x640xf32>
    %143 = tpu.matmul %142, %141, %cst_91 {dimension_numbers = #tpu.dot_dimension_numbers<[1], [0], [0], [1], [0, 0, 1, 1], [], []>} : vector<4x128xbf16>, vector<128x640xbf16>, vector<4x640xf32> -> vector<4x640xf32>
    %144 = vector.extract_strided_slice %143 {offsets = [0, 0], sizes = [4, 128], strides = [1, 1]} : vector<4x640xf32> to vector<4x128xf32>
    %145 = vector.extract_strided_slice %143 {offsets = [0, 128], sizes = [4, 128], strides = [1, 1]} : vector<4x640xf32> to vector<4x128xf32>
    %146 = vector.extract_strided_slice %143 {offsets = [0, 256], sizes = [4, 128], strides = [1, 1]} : vector<4x640xf32> to vector<4x128xf32>
    %147 = vector.extract_strided_slice %143 {offsets = [0, 384], sizes = [4, 128], strides = [1, 1]} : vector<4x640xf32> to vector<4x128xf32>
    %148 = vector.extract_strided_slice %143 {offsets = [0, 512], sizes = [4, 128], strides = [1, 1]} : vector<4x640xf32> to vector<4x128xf32>
    %149 = vector.broadcast %1 : vector<1x128xf32> to vector<4x128xf32>
    %150 = arith.mulf %127, %149 : vector<4x128xf32>
    %151 = arith.addf %144, %150 : vector<4x128xf32>
    %152 = vector.broadcast %21 : vector<1x128xf32> to vector<4x128xf32>
    %153 = arith.addf %151, %152 : vector<4x128xf32>
    %154 = math.tanh %153 : vector<4x128xf32>
    %155 = vector.broadcast %13 : vector<1x128xf32> to vector<4x128xf32>
    %156 = arith.mulf %127, %155 : vector<4x128xf32>
    %157 = arith.addf %156, %57 : vector<4x128xf32>
    %158 = vector.broadcast %33 : vector<1x128xf32> to vector<4x128xf32>
    %159 = arith.addf %157, %158 : vector<4x128xf32>
    %cst_92 = arith.constant 0.000000e+00 : f32
    %160 = vector.broadcast %cst_92 : f32 to vector<4x128xf32>
    %161 = arith.subf %160, %159 : vector<4x128xf32>
    %162 = math.exp %161 : vector<4x128xf32>
    %cst_93 = arith.constant 1.000000e+00 : f32
    %163 = vector.broadcast %cst_93 : f32 to vector<4x128xf32>
    %164 = arith.addf %163, %162 : vector<4x128xf32>
    %165 = tpu.reciprocal %164 {approx = true} : vector<4x128xf32> -> vector<4x128xf32>
    %c0_94 = arith.constant 0 : index
    %c0_95 = arith.constant 0 : index
    %166 = vector.load %arg2[%c0_94, %c0_95] : memref<128x256xbf16, #tpu.memory_space<vmem>>, vector<128x128xbf16>
    %167 = arith.truncf %154 : vector<4x128xf32> to vector<4x128xbf16>
    %cst_96 = arith.constant dense<0.000000e+00> : vector<4x128xf32>
    %168 = tpu.matmul %167, %166, %cst_96 {dimension_numbers = #tpu.dot_dimension_numbers<[1], [0], [0], [1], [0, 0, 1, 1], [], []>} : vector<4x128xbf16>, vector<128x128xbf16>, vector<4x128xf32> -> vector<4x128xf32>
    %169 = arith.addf %59, %168 : vector<4x128xf32>
    %cst_97 = arith.constant 0.000000e+00 : f32
    %170 = vector.broadcast %cst_97 : f32 to vector<4x128xf32>
    %171 = arith.subf %170, %169 : vector<4x128xf32>
    %172 = math.exp %171 : vector<4x128xf32>
    %cst_98 = arith.constant 1.000000e+00 : f32
    %173 = vector.broadcast %cst_98 : f32 to vector<4x128xf32>
    %174 = arith.addf %173, %172 : vector<4x128xf32>
    %175 = tpu.reciprocal %174 {approx = true} : vector<4x128xf32> -> vector<4x128xf32>
    %176 = vector.broadcast %3 : vector<1x128xf32> to vector<4x128xf32>
    %177 = arith.mulf %127, %176 : vector<4x128xf32>
    %178 = arith.addf %177, %145 : vector<4x128xf32>
    %179 = vector.broadcast %15 : vector<1x128xf32> to vector<4x128xf32>
    %180 = arith.mulf %87, %179 : vector<4x128xf32>
    %181 = arith.addf %178, %180 : vector<4x128xf32>
    %182 = vector.broadcast %23 : vector<1x128xf32> to vector<4x128xf32>
    %183 = arith.mulf %182, %175 : vector<4x128xf32>
    %184 = arith.addf %181, %183 : vector<4x128xf32>
    %cst_99 = arith.constant 0.000000e+00 : f32
    %185 = vector.broadcast %cst_99 : f32 to vector<4x128xf32>
    %186 = arith.subf %185, %184 : vector<4x128xf32>
    %187 = math.exp %186 : vector<4x128xf32>
    %cst_100 = arith.constant 1.000000e+00 : f32
    %188 = vector.broadcast %cst_100 : f32 to vector<4x128xf32>
    %189 = arith.addf %188, %187 : vector<4x128xf32>
    %190 = tpu.reciprocal %189 {approx = true} : vector<4x128xf32> -> vector<4x128xf32>
    %191 = vector.broadcast %5 : vector<1x128xf32> to vector<4x128xf32>
    %192 = arith.mulf %127, %191 : vector<4x128xf32>
    %193 = arith.addf %192, %146 : vector<4x128xf32>
    %194 = vector.broadcast %17 : vector<1x128xf32> to vector<4x128xf32>
    %195 = arith.mulf %87, %194 : vector<4x128xf32>
    %196 = arith.addf %193, %195 : vector<4x128xf32>
    %197 = vector.broadcast %25 : vector<1x128xf32> to vector<4x128xf32>
    %198 = arith.addf %196, %197 : vector<4x128xf32>
    %199 = arith.addf %198, %154 : vector<4x128xf32>
    %cst_101 = arith.constant 0.000000e+00 : f32
    %200 = vector.broadcast %cst_101 : f32 to vector<4x128xf32>
    %201 = arith.subf %200, %199 : vector<4x128xf32>
    %202 = math.exp %201 : vector<4x128xf32>
    %cst_102 = arith.constant 1.000000e+00 : f32
    %203 = vector.broadcast %cst_102 : f32 to vector<4x128xf32>
    %204 = arith.addf %203, %202 : vector<4x128xf32>
    %205 = tpu.reciprocal %204 {approx = true} : vector<4x128xf32> -> vector<4x128xf32>
    %206 = arith.mulf %205, %55 : vector<4x128xf32>
    %cst_103 = arith.constant 1.000000e+00 : f32
    %207 = vector.broadcast %cst_103 : f32 to vector<4x128xf32>
    %208 = arith.subf %207, %205 : vector<4x128xf32>
    %209 = arith.mulf %208, %175 : vector<4x128xf32>
    %210 = arith.addf %206, %209 : vector<4x128xf32>
    %211 = vector.broadcast %9 : vector<1x128xf32> to vector<4x128xf32>
    %212 = arith.mulf %127, %211 : vector<4x128xf32>
    %213 = arith.addf %212, %148 : vector<4x128xf32>
    %214 = vector.broadcast %29 : vector<1x128xf32> to vector<4x128xf32>
    %215 = arith.addf %213, %214 : vector<4x128xf32>
    %216 = math.tanh %215 : vector<4x128xf32>
    %217 = arith.addf %210, %165 : vector<4x128xf32>
    %218 = arith.mulf %217, %87 : vector<4x128xf32>
    %219 = arith.mulf %190, %154 : vector<4x128xf32>
    %220 = arith.mulf %219, %165 : vector<4x128xf32>
    %221 = arith.mulf %220, %216 : vector<4x128xf32>
    %222 = arith.addf %218, %221 : vector<4x128xf32>
    %223 = vector.broadcast %7 : vector<1x128xf32> to vector<4x128xf32>
    %224 = arith.mulf %127, %223 : vector<4x128xf32>
    %225 = arith.addf %224, %147 : vector<4x128xf32>
    %226 = arith.addf %225, %165 : vector<4x128xf32>
    %227 = arith.addf %226, %139 : vector<4x128xf32>
    %228 = vector.broadcast %19 : vector<1x128xf32> to vector<4x128xf32>
    %229 = arith.mulf %222, %228 : vector<4x128xf32>
    %230 = arith.addf %227, %229 : vector<4x128xf32>
    %231 = vector.broadcast %27 : vector<1x128xf32> to vector<4x128xf32>
    %232 = arith.addf %230, %231 : vector<4x128xf32>
    %cst_104 = arith.constant 0.000000e+00 : f32
    %233 = vector.broadcast %cst_104 : f32 to vector<4x128xf32>
    %234 = arith.subf %233, %232 : vector<4x128xf32>
    %235 = math.exp %234 : vector<4x128xf32>
    %cst_105 = arith.constant 1.000000e+00 : f32
    %236 = vector.broadcast %cst_105 : f32 to vector<4x128xf32>
    %237 = arith.addf %236, %235 : vector<4x128xf32>
    %238 = tpu.reciprocal %237 {approx = true} : vector<4x128xf32> -> vector<4x128xf32>
    %239 = arith.addf %222, %139 : vector<4x128xf32>
    %240 = math.tanh %239 : vector<4x128xf32>
    %241 = arith.mulf %238, %240 : vector<4x128xf32>
    %242 = vector.extract_strided_slice %241 {offsets = [0, 0], sizes = [2, 128], strides = [1, 1]} : vector<4x128xf32> to vector<2x128xf32>
    %243 = vector.broadcast %47 : vector<1x128xf32> to vector<2x128xf32>
    %244 = arith.mulf %242, %243 : vector<2x128xf32>
    %245 = vector.extract_strided_slice %241 {offsets = [2, 0], sizes = [2, 128], strides = [1, 1]} : vector<4x128xf32> to vector<2x128xf32>
    %246 = vector.broadcast %49 : vector<1x128xf32> to vector<2x128xf32>
    %247 = arith.mulf %245, %246 : vector<2x128xf32>
    %248 = arith.addf %244, %247 : vector<2x128xf32>
    %c1_106 = arith.constant 1 : index
    %c0_107 = arith.constant 0 : index
    %c0_108 = arith.constant 0 : index
    %249 = vector.load %arg0[%c1_106, %c0_107, %c0_108] : memref<56x4x128xf32, #tpu.memory_space<vmem>>, vector<1x4x128xf32>
    %250 = vector.shape_cast %249 : vector<1x4x128xf32> to vector<4x128xf32>
    %c9_109 = arith.constant 9 : index
    %c0_110 = arith.constant 0 : index
    %c0_111 = arith.constant 0 : index
    %251 = vector.load %arg0[%c9_109, %c0_110, %c0_111] : memref<56x4x128xf32, #tpu.memory_space<vmem>>, vector<1x4x128xf32>
    %252 = vector.shape_cast %251 : vector<1x4x128xf32> to vector<4x128xf32>
    %c17_112 = arith.constant 17 : index
    %c0_113 = arith.constant 0 : index
    %c0_114 = arith.constant 0 : index
    %253 = vector.load %arg0[%c17_112, %c0_113, %c0_114] : memref<56x4x128xf32, #tpu.memory_space<vmem>>, vector<1x4x128xf32>
    %254 = vector.shape_cast %253 : vector<1x4x128xf32> to vector<4x128xf32>
    %c25 = arith.constant 25 : index
    %c0_115 = arith.constant 0 : index
    %c0_116 = arith.constant 0 : index
    %255 = vector.load %arg0[%c25, %c0_115, %c0_116] : memref<56x4x128xf32, #tpu.memory_space<vmem>>, vector<1x4x128xf32>
    %256 = vector.shape_cast %255 : vector<1x4x128xf32> to vector<4x128xf32>
    %c33 = arith.constant 33 : index
    %c0_117 = arith.constant 0 : index
    %c0_118 = arith.constant 0 : index
    %257 = vector.load %arg0[%c33, %c0_117, %c0_118] : memref<56x4x128xf32, #tpu.memory_space<vmem>>, vector<1x4x128xf32>
    %258 = vector.shape_cast %257 : vector<1x4x128xf32> to vector<4x128xf32>
    %c41 = arith.constant 41 : index
    %c0_119 = arith.constant 0 : index
    %c0_120 = arith.constant 0 : index
    %259 = vector.load %arg0[%c41, %c0_119, %c0_120] : memref<56x4x128xf32, #tpu.memory_space<vmem>>, vector<1x4x128xf32>
    %260 = vector.shape_cast %259 : vector<1x4x128xf32> to vector<4x128xf32>
    %c49 = arith.constant 49 : index
    %c0_121 = arith.constant 0 : index
    %c0_122 = arith.constant 0 : index
    %261 = vector.load %arg0[%c49, %c0_121, %c0_122] : memref<56x4x128xf32, #tpu.memory_space<vmem>>, vector<1x4x128xf32>
    %262 = vector.shape_cast %261 : vector<1x4x128xf32> to vector<4x128xf32>
    %263 = tpu.concatenate %241, %222 in 0 : vector<4x128xf32>, vector<4x128xf32> -> vector<8x128xf32>
    %c0_123 = arith.constant 0 : index
    %c0_124 = arith.constant 0 : index
    %264 = vector.load %arg2[%c0_123, %c0_124] : memref<128x256xbf16, #tpu.memory_space<vmem>>, vector<128x256xbf16>
    %265 = arith.truncf %263 : vector<8x128xf32> to vector<8x128xbf16>
    %cst_125 = arith.constant dense<0.000000e+00> : vector<8x256xf32>
    %266 = tpu.matmul %265, %264, %cst_125 {dimension_numbers = #tpu.dot_dimension_numbers<[1], [0], [0], [1], [0, 0, 1, 1], [], []>} : vector<8x128xbf16>, vector<128x256xbf16>, vector<8x256xf32> -> vector<8x256xf32>
    %267 = vector.extract_strided_slice %266 {offsets = [0, 0], sizes = [4, 128], strides = [1, 1]} : vector<8x256xf32> to vector<4x128xf32>
    %268 = arith.addf %254, %267 : vector<4x128xf32>
    %cst_126 = arith.constant 0.000000e+00 : f32
    %269 = vector.broadcast %cst_126 : f32 to vector<4x128xf32>
    %270 = arith.subf %269, %268 : vector<4x128xf32>
    %271 = math.exp %270 : vector<4x128xf32>
    %cst_127 = arith.constant 1.000000e+00 : f32
    %272 = vector.broadcast %cst_127 : f32 to vector<4x128xf32>
    %273 = arith.addf %272, %271 : vector<4x128xf32>
    %274 = tpu.reciprocal %273 {approx = true} : vector<4x128xf32> -> vector<4x128xf32>
    %275 = vector.extract_strided_slice %266 {offsets = [4, 128], sizes = [4, 128], strides = [1, 1]} : vector<8x256xf32> to vector<4x128xf32>
    %276 = math.tanh %275 : vector<4x128xf32>
    %277 = arith.mulf %250, %274 : vector<4x128xf32>
    %278 = arith.mulf %276, %277 : vector<4x128xf32>
    %279 = arith.subf %222, %276 : vector<4x128xf32>
    %cst_128 = arith.constant 2.000000e+00 : f32
    %280 = vector.broadcast %cst_128 : f32 to vector<4x128xf32>
    %281 = arith.mulf %280, %278 : vector<4x128xf32>
    %282 = arith.addf %279, %281 : vector<4x128xf32>
    %c0_129 = arith.constant 0 : index
    %c0_130 = arith.constant 0 : index
    %283 = vector.load %arg2[%c0_129, %c0_130] : memref<128x256xbf16, #tpu.memory_space<vmem>>, vector<128x128xbf16>
    %284 = arith.truncf %282 : vector<4x128xf32> to vector<4x128xbf16>
    %cst_131 = arith.constant dense<0.000000e+00> : vector<4x128xf32>
    %285 = tpu.matmul %284, %283, %cst_131 {dimension_numbers = #tpu.dot_dimension_numbers<[1], [0], [0], [1], [0, 0, 1, 1], [], []>} : vector<4x128xbf16>, vector<128x128xbf16>, vector<4x128xf32> -> vector<4x128xf32>
    %286 = arith.addf %254, %285 : vector<4x128xf32>
    %cst_132 = arith.constant 0.000000e+00 : f32
    %287 = vector.broadcast %cst_132 : f32 to vector<4x128xf32>
    %288 = arith.subf %287, %286 : vector<4x128xf32>
    %289 = math.exp %288 : vector<4x128xf32>
    %cst_133 = arith.constant 1.000000e+00 : f32
    %290 = vector.broadcast %cst_133 : f32 to vector<4x128xf32>
    %291 = arith.addf %290, %289 : vector<4x128xf32>
    %292 = tpu.reciprocal %291 {approx = true} : vector<4x128xf32> -> vector<4x128xf32>
    %293 = vector.broadcast %43 : vector<1x128xf32> to vector<4x128xf32>
    %294 = arith.mulf %274, %293 : vector<4x128xf32>
    %295 = vector.broadcast %45 : vector<1x128xf32> to vector<4x128xf32>
    %296 = arith.mulf %292, %295 : vector<4x128xf32>
    %297 = arith.addf %294, %296 : vector<4x128xf32>
    %298 = vector.broadcast %39 : vector<1x128xf32> to vector<4x128xf32>
    %299 = arith.mulf %274, %298 : vector<4x128xf32>
    %300 = vector.broadcast %41 : vector<1x128xf32> to vector<4x128xf32>
    %301 = arith.mulf %292, %300 : vector<4x128xf32>
    %302 = arith.addf %299, %301 : vector<4x128xf32>
    %303 = tpu.concatenate %297, %302 in 0 : vector<4x128xf32>, vector<4x128xf32> -> vector<8x128xf32>
    %304 = arith.truncf %303 : vector<8x128xf32> to vector<8x128xbf16>
    %cst_134 = arith.constant dense<0.000000e+00> : vector<8x128xf32>
    %305 = tpu.matmul %304, %50, %cst_134 {dimension_numbers = #tpu.dot_dimension_numbers<[1], [0], [0], [1], [0, 0, 1, 1], [], []>} : vector<8x128xbf16>, vector<128x128xbf16>, vector<8x128xf32> -> vector<8x128xf32>
    %306 = vector.extract_strided_slice %305 {offsets = [0, 0], sizes = [4, 128], strides = [1, 1]} : vector<8x128xf32> to vector<4x128xf32>
    %307 = vector.broadcast %37 : vector<1x128xf32> to vector<4x128xf32>
    %308 = arith.addf %306, %307 : vector<4x128xf32>
    %309 = math.tanh %308 : vector<4x128xf32>
    %310 = vector.extract_strided_slice %305 {offsets = [4, 0], sizes = [4, 128], strides = [1, 1]} : vector<8x128xf32> to vector<4x128xf32>
    %311 = vector.broadcast %35 : vector<1x128xf32> to vector<4x128xf32>
    %312 = arith.addf %310, %311 : vector<4x128xf32>
    %313 = math.tanh %312 : vector<4x128xf32>
    %314 = tpu.concatenate %309, %313 in 0 : vector<4x128xf32>, vector<4x128xf32> -> vector<8x128xf32>
    %315 = arith.truncf %314 : vector<8x128xf32> to vector<8x128xbf16>
    %cst_135 = arith.constant dense<0.000000e+00> : vector<8x128xf32>
    %316 = tpu.matmul %315, %50, %cst_135 {dimension_numbers = #tpu.dot_dimension_numbers<[1], [0], [0], [1], [0, 0, 1, 1], [], []>} : vector<8x128xbf16>, vector<128x128xbf16>, vector<8x128xf32> -> vector<8x128xf32>
    %317 = vector.extract_strided_slice %316 {offsets = [0, 0], sizes = [4, 128], strides = [1, 1]} : vector<8x128xf32> to vector<4x128xf32>
    %318 = arith.mulf %260, %317 : vector<4x128xf32>
    %319 = arith.addf %318, %262 : vector<4x128xf32>
    %320 = vector.extract_strided_slice %316 {offsets = [4, 0], sizes = [4, 128], strides = [1, 1]} : vector<8x128xf32> to vector<4x128xf32>
    %321 = arith.mulf %256, %320 : vector<4x128xf32>
    %322 = arith.addf %321, %258 : vector<4x128xf32>
    %323 = vector.broadcast %11 : vector<1x128xf32> to vector<4x128xf32>
    %324 = arith.mulf %319, %323 : vector<4x128xf32>
    %325 = vector.broadcast %31 : vector<1x128xf32> to vector<4x128xf32>
    %326 = arith.addf %324, %325 : vector<4x128xf32>
    %cst_136 = arith.constant 0.000000e+00 : f32
    %327 = vector.broadcast %cst_136 : f32 to vector<4x128xf32>
    %328 = arith.cmpf ogt, %326, %327 : vector<4x128xf32>
    %cst_137 = arith.constant 0.000000e+00 : f32
    %329 = vector.broadcast %cst_137 : f32 to vector<4x128xf32>
    %330 = arith.minimumf %326, %329 : vector<4x128xf32>
    %331 = math.exp %330 : vector<4x128xf32>
    %cst_138 = arith.constant 1.000000e+00 : f32
    %332 = vector.broadcast %cst_138 : f32 to vector<4x128xf32>
    %333 = arith.subf %331, %332 : vector<4x128xf32>
    %334 = arith.select %328, %326, %333 : vector<4x128xi1>, vector<4x128xf32>
    %335 = arith.addf %241, %334 : vector<4x128xf32>
    %c0_139 = arith.constant 0 : index
    %c0_140 = arith.constant 0 : index
    %336 = vector.load %arg3[%c0_139, %c0_140] : memref<128x640xbf16, #tpu.memory_space<vmem>>, vector<128x640xbf16>
    %337 = arith.truncf %335 : vector<4x128xf32> to vector<4x128xbf16>
    %cst_141 = arith.constant dense<0.000000e+00> : vector<4x640xf32>
    %338 = tpu.matmul %337, %336, %cst_141 {dimension_numbers = #tpu.dot_dimension_numbers<[1], [0], [0], [1], [0, 0, 1, 1], [], []>} : vector<4x128xbf16>, vector<128x640xbf16>, vector<4x640xf32> -> vector<4x640xf32>
    %339 = vector.extract_strided_slice %338 {offsets = [0, 0], sizes = [4, 128], strides = [1, 1]} : vector<4x640xf32> to vector<4x128xf32>
    %340 = vector.extract_strided_slice %338 {offsets = [0, 128], sizes = [4, 128], strides = [1, 1]} : vector<4x640xf32> to vector<4x128xf32>
    %341 = vector.extract_strided_slice %338 {offsets = [0, 256], sizes = [4, 128], strides = [1, 1]} : vector<4x640xf32> to vector<4x128xf32>
    %342 = vector.extract_strided_slice %338 {offsets = [0, 384], sizes = [4, 128], strides = [1, 1]} : vector<4x640xf32> to vector<4x128xf32>
    %343 = vector.extract_strided_slice %338 {offsets = [0, 512], sizes = [4, 128], strides = [1, 1]} : vector<4x640xf32> to vector<4x128xf32>
    %344 = vector.broadcast %1 : vector<1x128xf32> to vector<4x128xf32>
    %345 = arith.mulf %322, %344 : vector<4x128xf32>
    %346 = arith.addf %339, %345 : vector<4x128xf32>
    %347 = vector.broadcast %21 : vector<1x128xf32> to vector<4x128xf32>
    %348 = arith.addf %346, %347 : vector<4x128xf32>
    %349 = math.tanh %348 : vector<4x128xf32>
    %350 = vector.broadcast %13 : vector<1x128xf32> to vector<4x128xf32>
    %351 = arith.mulf %322, %350 : vector<4x128xf32>
    %352 = arith.addf %351, %252 : vector<4x128xf32>
    %353 = vector.broadcast %33 : vector<1x128xf32> to vector<4x128xf32>
    %354 = arith.addf %352, %353 : vector<4x128xf32>
    %cst_142 = arith.constant 0.000000e+00 : f32
    %355 = vector.broadcast %cst_142 : f32 to vector<4x128xf32>
    %356 = arith.subf %355, %354 : vector<4x128xf32>
    %357 = math.exp %356 : vector<4x128xf32>
    %cst_143 = arith.constant 1.000000e+00 : f32
    %358 = vector.broadcast %cst_143 : f32 to vector<4x128xf32>
    %359 = arith.addf %358, %357 : vector<4x128xf32>
    %360 = tpu.reciprocal %359 {approx = true} : vector<4x128xf32> -> vector<4x128xf32>
    %c0_144 = arith.constant 0 : index
    %c0_145 = arith.constant 0 : index
    %361 = vector.load %arg2[%c0_144, %c0_145] : memref<128x256xbf16, #tpu.memory_space<vmem>>, vector<128x128xbf16>
    %362 = arith.truncf %349 : vector<4x128xf32> to vector<4x128xbf16>
    %cst_146 = arith.constant dense<0.000000e+00> : vector<4x128xf32>
    %363 = tpu.matmul %362, %361, %cst_146 {dimension_numbers = #tpu.dot_dimension_numbers<[1], [0], [0], [1], [0, 0, 1, 1], [], []>} : vector<4x128xbf16>, vector<128x128xbf16>, vector<4x128xf32> -> vector<4x128xf32>
    %364 = arith.addf %254, %363 : vector<4x128xf32>
    %cst_147 = arith.constant 0.000000e+00 : f32
    %365 = vector.broadcast %cst_147 : f32 to vector<4x128xf32>
    %366 = arith.subf %365, %364 : vector<4x128xf32>
    %367 = math.exp %366 : vector<4x128xf32>
    %cst_148 = arith.constant 1.000000e+00 : f32
    %368 = vector.broadcast %cst_148 : f32 to vector<4x128xf32>
    %369 = arith.addf %368, %367 : vector<4x128xf32>
    %370 = tpu.reciprocal %369 {approx = true} : vector<4x128xf32> -> vector<4x128xf32>
    %371 = vector.broadcast %3 : vector<1x128xf32> to vector<4x128xf32>
    %372 = arith.mulf %322, %371 : vector<4x128xf32>
    %373 = arith.addf %372, %340 : vector<4x128xf32>
    %374 = vector.broadcast %15 : vector<1x128xf32> to vector<4x128xf32>
    %375 = arith.mulf %282, %374 : vector<4x128xf32>
    %376 = arith.addf %373, %375 : vector<4x128xf32>
    %377 = vector.broadcast %23 : vector<1x128xf32> to vector<4x128xf32>
    %378 = arith.mulf %377, %370 : vector<4x128xf32>
    %379 = arith.addf %376, %378 : vector<4x128xf32>
    %cst_149 = arith.constant 0.000000e+00 : f32
    %380 = vector.broadcast %cst_149 : f32 to vector<4x128xf32>
    %381 = arith.subf %380, %379 : vector<4x128xf32>
    %382 = math.exp %381 : vector<4x128xf32>
    %cst_150 = arith.constant 1.000000e+00 : f32
    %383 = vector.broadcast %cst_150 : f32 to vector<4x128xf32>
    %384 = arith.addf %383, %382 : vector<4x128xf32>
    %385 = tpu.reciprocal %384 {approx = true} : vector<4x128xf32> -> vector<4x128xf32>
    %386 = vector.broadcast %5 : vector<1x128xf32> to vector<4x128xf32>
    %387 = arith.mulf %322, %386 : vector<4x128xf32>
    %388 = arith.addf %387, %341 : vector<4x128xf32>
    %389 = vector.broadcast %17 : vector<1x128xf32> to vector<4x128xf32>
    %390 = arith.mulf %282, %389 : vector<4x128xf32>
    %391 = arith.addf %388, %390 : vector<4x128xf32>
    %392 = vector.broadcast %25 : vector<1x128xf32> to vector<4x128xf32>
    %393 = arith.addf %391, %392 : vector<4x128xf32>
    %394 = arith.addf %393, %349 : vector<4x128xf32>
    %cst_151 = arith.constant 0.000000e+00 : f32
    %395 = vector.broadcast %cst_151 : f32 to vector<4x128xf32>
    %396 = arith.subf %395, %394 : vector<4x128xf32>
    %397 = math.exp %396 : vector<4x128xf32>
    %cst_152 = arith.constant 1.000000e+00 : f32
    %398 = vector.broadcast %cst_152 : f32 to vector<4x128xf32>
    %399 = arith.addf %398, %397 : vector<4x128xf32>
    %400 = tpu.reciprocal %399 {approx = true} : vector<4x128xf32> -> vector<4x128xf32>
    %401 = arith.mulf %400, %250 : vector<4x128xf32>
    %cst_153 = arith.constant 1.000000e+00 : f32
    %402 = vector.broadcast %cst_153 : f32 to vector<4x128xf32>
    %403 = arith.subf %402, %400 : vector<4x128xf32>
    %404 = arith.mulf %403, %370 : vector<4x128xf32>
    %405 = arith.addf %401, %404 : vector<4x128xf32>
    %406 = vector.broadcast %9 : vector<1x128xf32> to vector<4x128xf32>
    %407 = arith.mulf %322, %406 : vector<4x128xf32>
    %408 = arith.addf %407, %343 : vector<4x128xf32>
    %409 = vector.broadcast %29 : vector<1x128xf32> to vector<4x128xf32>
    %410 = arith.addf %408, %409 : vector<4x128xf32>
    %411 = math.tanh %410 : vector<4x128xf32>
    %412 = arith.addf %405, %360 : vector<4x128xf32>
    %413 = arith.mulf %412, %282 : vector<4x128xf32>
    %414 = arith.mulf %385, %349 : vector<4x128xf32>
    %415 = arith.mulf %414, %360 : vector<4x128xf32>
    %416 = arith.mulf %415, %411 : vector<4x128xf32>
    %417 = arith.addf %413, %416 : vector<4x128xf32>
    %418 = vector.broadcast %7 : vector<1x128xf32> to vector<4x128xf32>
    %419 = arith.mulf %322, %418 : vector<4x128xf32>
    %420 = arith.addf %419, %342 : vector<4x128xf32>
    %421 = arith.addf %420, %360 : vector<4x128xf32>
    %422 = arith.addf %421, %334 : vector<4x128xf32>
    %423 = vector.broadcast %19 : vector<1x128xf32> to vector<4x128xf32>
    %424 = arith.mulf %417, %423 : vector<4x128xf32>
    %425 = arith.addf %422, %424 : vector<4x128xf32>
    %426 = vector.broadcast %27 : vector<1x128xf32> to vector<4x128xf32>
    %427 = arith.addf %425, %426 : vector<4x128xf32>
    %cst_154 = arith.constant 0.000000e+00 : f32
    %428 = vector.broadcast %cst_154 : f32 to vector<4x128xf32>
    %429 = arith.subf %428, %427 : vector<4x128xf32>
    %430 = math.exp %429 : vector<4x128xf32>
    %cst_155 = arith.constant 1.000000e+00 : f32
    %431 = vector.broadcast %cst_155 : f32 to vector<4x128xf32>
    %432 = arith.addf %431, %430 : vector<4x128xf32>
    %433 = tpu.reciprocal %432 {approx = true} : vector<4x128xf32> -> vector<4x128xf32>
    %434 = arith.addf %417, %334 : vector<4x128xf32>
    %435 = math.tanh %434 : vector<4x128xf32>
    %436 = arith.mulf %433, %435 : vector<4x128xf32>
    %437 = vector.extract_strided_slice %436 {offsets = [0, 0], sizes = [2, 128], strides = [1, 1]} : vector<4x128xf32> to vector<2x128xf32>
    %438 = vector.broadcast %47 : vector<1x128xf32> to vector<2x128xf32>
    %439 = arith.mulf %437, %438 : vector<2x128xf32>
    %440 = vector.extract_strided_slice %436 {offsets = [2, 0], sizes = [2, 128], strides = [1, 1]} : vector<4x128xf32> to vector<2x128xf32>
    %441 = vector.broadcast %49 : vector<1x128xf32> to vector<2x128xf32>
    %442 = arith.mulf %440, %441 : vector<2x128xf32>
    %443 = arith.addf %439, %442 : vector<2x128xf32>
    %c2_156 = arith.constant 2 : index
    %c0_157 = arith.constant 0 : index
    %c0_158 = arith.constant 0 : index
    %444 = vector.load %arg0[%c2_156, %c0_157, %c0_158] : memref<56x4x128xf32, #tpu.memory_space<vmem>>, vector<1x4x128xf32>
    %445 = vector.shape_cast %444 : vector<1x4x128xf32> to vector<4x128xf32>
    %c10_159 = arith.constant 10 : index
    %c0_160 = arith.constant 0 : index
    %c0_161 = arith.constant 0 : index
    %446 = vector.load %arg0[%c10_159, %c0_160, %c0_161] : memref<56x4x128xf32, #tpu.memory_space<vmem>>, vector<1x4x128xf32>
    %447 = vector.shape_cast %446 : vector<1x4x128xf32> to vector<4x128xf32>
    %c18_162 = arith.constant 18 : index
    %c0_163 = arith.constant 0 : index
    %c0_164 = arith.constant 0 : index
    %448 = vector.load %arg0[%c18_162, %c0_163, %c0_164] : memref<56x4x128xf32, #tpu.memory_space<vmem>>, vector<1x4x128xf32>
    %449 = vector.shape_cast %448 : vector<1x4x128xf32> to vector<4x128xf32>
    %c26 = arith.constant 26 : index
    %c0_165 = arith.constant 0 : index
    %c0_166 = arith.constant 0 : index
    %450 = vector.load %arg0[%c26, %c0_165, %c0_166] : memref<56x4x128xf32, #tpu.memory_space<vmem>>, vector<1x4x128xf32>
    %451 = vector.shape_cast %450 : vector<1x4x128xf32> to vector<4x128xf32>
    %c34 = arith.constant 34 : index
    %c0_167 = arith.constant 0 : index
    %c0_168 = arith.constant 0 : index
    %452 = vector.load %arg0[%c34, %c0_167, %c0_168] : memref<56x4x128xf32, #tpu.memory_space<vmem>>, vector<1x4x128xf32>
    %453 = vector.shape_cast %452 : vector<1x4x128xf32> to vector<4x128xf32>
    %c42 = arith.constant 42 : index
    %c0_169 = arith.constant 0 : index
    %c0_170 = arith.constant 0 : index
    %454 = vector.load %arg0[%c42, %c0_169, %c0_170] : memref<56x4x128xf32, #tpu.memory_space<vmem>>, vector<1x4x128xf32>
    %455 = vector.shape_cast %454 : vector<1x4x128xf32> to vector<4x128xf32>
    %c50 = arith.constant 50 : index
    %c0_171 = arith.constant 0 : index
    %c0_172 = arith.constant 0 : index
    %456 = vector.load %arg0[%c50, %c0_171, %c0_172] : memref<56x4x128xf32, #tpu.memory_space<vmem>>, vector<1x4x128xf32>
    %457 = vector.shape_cast %456 : vector<1x4x128xf32> to vector<4x128xf32>
    %458 = tpu.concatenate %436, %417 in 0 : vector<4x128xf32>, vector<4x128xf32> -> vector<8x128xf32>
    %c0_173 = arith.constant 0 : index
    %c0_174 = arith.constant 0 : index
    %459 = vector.load %arg2[%c0_173, %c0_174] : memref<128x256xbf16, #tpu.memory_space<vmem>>, vector<128x256xbf16>
    %460 = arith.truncf %458 : vector<8x128xf32> to vector<8x128xbf16>
    %cst_175 = arith.constant dense<0.000000e+00> : vector<8x256xf32>
    %461 = tpu.matmul %460, %459, %cst_175 {dimension_numbers = #tpu.dot_dimension_numbers<[1], [0], [0], [1], [0, 0, 1, 1], [], []>} : vector<8x128xbf16>, vector<128x256xbf16>, vector<8x256xf32> -> vector<8x256xf32>
    %462 = vector.extract_strided_slice %461 {offsets = [0, 0], sizes = [4, 128], strides = [1, 1]} : vector<8x256xf32> to vector<4x128xf32>
    %463 = arith.addf %449, %462 : vector<4x128xf32>
    %cst_176 = arith.constant 0.000000e+00 : f32
    %464 = vector.broadcast %cst_176 : f32 to vector<4x128xf32>
    %465 = arith.subf %464, %463 : vector<4x128xf32>
    %466 = math.exp %465 : vector<4x128xf32>
    %cst_177 = arith.constant 1.000000e+00 : f32
    %467 = vector.broadcast %cst_177 : f32 to vector<4x128xf32>
    %468 = arith.addf %467, %466 : vector<4x128xf32>
    %469 = tpu.reciprocal %468 {approx = true} : vector<4x128xf32> -> vector<4x128xf32>
    %470 = vector.extract_strided_slice %461 {offsets = [4, 128], sizes = [4, 128], strides = [1, 1]} : vector<8x256xf32> to vector<4x128xf32>
    %471 = math.tanh %470 : vector<4x128xf32>
    %472 = arith.mulf %445, %469 : vector<4x128xf32>
    %473 = arith.mulf %471, %472 : vector<4x128xf32>
    %474 = arith.subf %417, %471 : vector<4x128xf32>
    %cst_178 = arith.constant 2.000000e+00 : f32
    %475 = vector.broadcast %cst_178 : f32 to vector<4x128xf32>
    %476 = arith.mulf %475, %473 : vector<4x128xf32>
    %477 = arith.addf %474, %476 : vector<4x128xf32>
    %c0_179 = arith.constant 0 : index
    %c0_180 = arith.constant 0 : index
    %478 = vector.load %arg2[%c0_179, %c0_180] : memref<128x256xbf16, #tpu.memory_space<vmem>>, vector<128x128xbf16>
    %479 = arith.truncf %477 : vector<4x128xf32> to vector<4x128xbf16>
    %cst_181 = arith.constant dense<0.000000e+00> : vector<4x128xf32>
    %480 = tpu.matmul %479, %478, %cst_181 {dimension_numbers = #tpu.dot_dimension_numbers<[1], [0], [0], [1], [0, 0, 1, 1], [], []>} : vector<4x128xbf16>, vector<128x128xbf16>, vector<4x128xf32> -> vector<4x128xf32>
    %481 = arith.addf %449, %480 : vector<4x128xf32>
    %cst_182 = arith.constant 0.000000e+00 : f32
    %482 = vector.broadcast %cst_182 : f32 to vector<4x128xf32>
    %483 = arith.subf %482, %481 : vector<4x128xf32>
    %484 = math.exp %483 : vector<4x128xf32>
    %cst_183 = arith.constant 1.000000e+00 : f32
    %485 = vector.broadcast %cst_183 : f32 to vector<4x128xf32>
    %486 = arith.addf %485, %484 : vector<4x128xf32>
    %487 = tpu.reciprocal %486 {approx = true} : vector<4x128xf32> -> vector<4x128xf32>
    %488 = vector.broadcast %43 : vector<1x128xf32> to vector<4x128xf32>
    %489 = arith.mulf %469, %488 : vector<4x128xf32>
    %490 = vector.broadcast %45 : vector<1x128xf32> to vector<4x128xf32>
    %491 = arith.mulf %487, %490 : vector<4x128xf32>
    %492 = arith.addf %489, %491 : vector<4x128xf32>
    %493 = vector.broadcast %39 : vector<1x128xf32> to vector<4x128xf32>
    %494 = arith.mulf %469, %493 : vector<4x128xf32>
    %495 = vector.broadcast %41 : vector<1x128xf32> to vector<4x128xf32>
    %496 = arith.mulf %487, %495 : vector<4x128xf32>
    %497 = arith.addf %494, %496 : vector<4x128xf32>
    %498 = tpu.concatenate %492, %497 in 0 : vector<4x128xf32>, vector<4x128xf32> -> vector<8x128xf32>
    %499 = arith.truncf %498 : vector<8x128xf32> to vector<8x128xbf16>
    %cst_184 = arith.constant dense<0.000000e+00> : vector<8x128xf32>
    %500 = tpu.matmul %499, %50, %cst_184 {dimension_numbers = #tpu.dot_dimension_numbers<[1], [0], [0], [1], [0, 0, 1, 1], [], []>} : vector<8x128xbf16>, vector<128x128xbf16>, vector<8x128xf32> -> vector<8x128xf32>
    %501 = vector.extract_strided_slice %500 {offsets = [0, 0], sizes = [4, 128], strides = [1, 1]} : vector<8x128xf32> to vector<4x128xf32>
    %502 = vector.broadcast %37 : vector<1x128xf32> to vector<4x128xf32>
    %503 = arith.addf %501, %502 : vector<4x128xf32>
    %504 = math.tanh %503 : vector<4x128xf32>
    %505 = vector.extract_strided_slice %500 {offsets = [4, 0], sizes = [4, 128], strides = [1, 1]} : vector<8x128xf32> to vector<4x128xf32>
    %506 = vector.broadcast %35 : vector<1x128xf32> to vector<4x128xf32>
    %507 = arith.addf %505, %506 : vector<4x128xf32>
    %508 = math.tanh %507 : vector<4x128xf32>
    %509 = tpu.concatenate %504, %508 in 0 : vector<4x128xf32>, vector<4x128xf32> -> vector<8x128xf32>
    %510 = arith.truncf %509 : vector<8x128xf32> to vector<8x128xbf16>
    %cst_185 = arith.constant dense<0.000000e+00> : vector<8x128xf32>
    %511 = tpu.matmul %510, %50, %cst_185 {dimension_numbers = #tpu.dot_dimension_numbers<[1], [0], [0], [1], [0, 0, 1, 1], [], []>} : vector<8x128xbf16>, vector<128x128xbf16>, vector<8x128xf32> -> vector<8x128xf32>
    %512 = vector.extract_strided_slice %511 {offsets = [0, 0], sizes = [4, 128], strides = [1, 1]} : vector<8x128xf32> to vector<4x128xf32>
    %513 = arith.mulf %455, %512 : vector<4x128xf32>
    %514 = arith.addf %513, %457 : vector<4x128xf32>
    %515 = vector.extract_strided_slice %511 {offsets = [4, 0], sizes = [4, 128], strides = [1, 1]} : vector<8x128xf32> to vector<4x128xf32>
    %516 = arith.mulf %451, %515 : vector<4x128xf32>
    %517 = arith.addf %516, %453 : vector<4x128xf32>
    %518 = vector.broadcast %11 : vector<1x128xf32> to vector<4x128xf32>
    %519 = arith.mulf %514, %518 : vector<4x128xf32>
    %520 = vector.broadcast %31 : vector<1x128xf32> to vector<4x128xf32>
    %521 = arith.addf %519, %520 : vector<4x128xf32>
    %cst_186 = arith.constant 0.000000e+00 : f32
    %522 = vector.broadcast %cst_186 : f32 to vector<4x128xf32>
    %523 = arith.cmpf ogt, %521, %522 : vector<4x128xf32>
    %cst_187 = arith.constant 0.000000e+00 : f32
    %524 = vector.broadcast %cst_187 : f32 to vector<4x128xf32>
    %525 = arith.minimumf %521, %524 : vector<4x128xf32>
    %526 = math.exp %525 : vector<4x128xf32>
    %cst_188 = arith.constant 1.000000e+00 : f32
    %527 = vector.broadcast %cst_188 : f32 to vector<4x128xf32>
    %528 = arith.subf %526, %527 : vector<4x128xf32>
    %529 = arith.select %523, %521, %528 : vector<4x128xi1>, vector<4x128xf32>
    %530 = arith.addf %436, %529 : vector<4x128xf32>
    %c0_189 = arith.constant 0 : index
    %c0_190 = arith.constant 0 : index
    %531 = vector.load %arg3[%c0_189, %c0_190] : memref<128x640xbf16, #tpu.memory_space<vmem>>, vector<128x640xbf16>
    %532 = arith.truncf %530 : vector<4x128xf32> to vector<4x128xbf16>
    %cst_191 = arith.constant dense<0.000000e+00> : vector<4x640xf32>
    %533 = tpu.matmul %532, %531, %cst_191 {dimension_numbers = #tpu.dot_dimension_numbers<[1], [0], [0], [1], [0, 0, 1, 1], [], []>} : vector<4x128xbf16>, vector<128x640xbf16>, vector<4x640xf32> -> vector<4x640xf32>
    %534 = vector.extract_strided_slice %533 {offsets = [0, 0], sizes = [4, 128], strides = [1, 1]} : vector<4x640xf32> to vector<4x128xf32>
    %535 = vector.extract_strided_slice %533 {offsets = [0, 128], sizes = [4, 128], strides = [1, 1]} : vector<4x640xf32> to vector<4x128xf32>
    %536 = vector.extract_strided_slice %533 {offsets = [0, 256], sizes = [4, 128], strides = [1, 1]} : vector<4x640xf32> to vector<4x128xf32>
    %537 = vector.extract_strided_slice %533 {offsets = [0, 384], sizes = [4, 128], strides = [1, 1]} : vector<4x640xf32> to vector<4x128xf32>
    %538 = vector.extract_strided_slice %533 {offsets = [0, 512], sizes = [4, 128], strides = [1, 1]} : vector<4x640xf32> to vector<4x128xf32>
    %539 = vector.broadcast %1 : vector<1x128xf32> to vector<4x128xf32>
    %540 = arith.mulf %517, %539 : vector<4x128xf32>
    %541 = arith.addf %534, %540 : vector<4x128xf32>
    %542 = vector.broadcast %21 : vector<1x128xf32> to vector<4x128xf32>
    %543 = arith.addf %541, %542 : vector<4x128xf32>
    %544 = math.tanh %543 : vector<4x128xf32>
    %545 = vector.broadcast %13 : vector<1x128xf32> to vector<4x128xf32>
    %546 = arith.mulf %517, %545 : vector<4x128xf32>
    %547 = arith.addf %546, %447 : vector<4x128xf32>
    %548 = vector.broadcast %33 : vector<1x128xf32> to vector<4x128xf32>
    %549 = arith.addf %547, %548 : vector<4x128xf32>
    %cst_192 = arith.constant 0.000000e+00 : f32
    %550 = vector.broadcast %cst_192 : f32 to vector<4x128xf32>
    %551 = arith.subf %550, %549 : vector<4x128xf32>
    %552 = math.exp %551 : vector<4x128xf32>
    %cst_193 = arith.constant 1.000000e+00 : f32
    %553 = vector.broadcast %cst_193 : f32 to vector<4x128xf32>
    %554 = arith.addf %553, %552 : vector<4x128xf32>
    %555 = tpu.reciprocal %554 {approx = true} : vector<4x128xf32> -> vector<4x128xf32>
    %c0_194 = arith.constant 0 : index
    %c0_195 = arith.constant 0 : index
    %556 = vector.load %arg2[%c0_194, %c0_195] : memref<128x256xbf16, #tpu.memory_space<vmem>>, vector<128x128xbf16>
    %557 = arith.truncf %544 : vector<4x128xf32> to vector<4x128xbf16>
    %cst_196 = arith.constant dense<0.000000e+00> : vector<4x128xf32>
    %558 = tpu.matmul %557, %556, %cst_196 {dimension_numbers = #tpu.dot_dimension_numbers<[1], [0], [0], [1], [0, 0, 1, 1], [], []>} : vector<4x128xbf16>, vector<128x128xbf16>, vector<4x128xf32> -> vector<4x128xf32>
    %559 = arith.addf %449, %558 : vector<4x128xf32>
    %cst_197 = arith.constant 0.000000e+00 : f32
    %560 = vector.broadcast %cst_197 : f32 to vector<4x128xf32>
    %561 = arith.subf %560, %559 : vector<4x128xf32>
    %562 = math.exp %561 : vector<4x128xf32>
    %cst_198 = arith.constant 1.000000e+00 : f32
    %563 = vector.broadcast %cst_198 : f32 to vector<4x128xf32>
    %564 = arith.addf %563, %562 : vector<4x128xf32>
    %565 = tpu.reciprocal %564 {approx = true} : vector<4x128xf32> -> vector<4x128xf32>
    %566 = vector.broadcast %3 : vector<1x128xf32> to vector<4x128xf32>
    %567 = arith.mulf %517, %566 : vector<4x128xf32>
    %568 = arith.addf %567, %535 : vector<4x128xf32>
    %569 = vector.broadcast %15 : vector<1x128xf32> to vector<4x128xf32>
    %570 = arith.mulf %477, %569 : vector<4x128xf32>
    %571 = arith.addf %568, %570 : vector<4x128xf32>
    %572 = vector.broadcast %23 : vector<1x128xf32> to vector<4x128xf32>
    %573 = arith.mulf %572, %565 : vector<4x128xf32>
    %574 = arith.addf %571, %573 : vector<4x128xf32>
    %cst_199 = arith.constant 0.000000e+00 : f32
    %575 = vector.broadcast %cst_199 : f32 to vector<4x128xf32>
    %576 = arith.subf %575, %574 : vector<4x128xf32>
    %577 = math.exp %576 : vector<4x128xf32>
    %cst_200 = arith.constant 1.000000e+00 : f32
    %578 = vector.broadcast %cst_200 : f32 to vector<4x128xf32>
    %579 = arith.addf %578, %577 : vector<4x128xf32>
    %580 = tpu.reciprocal %579 {approx = true} : vector<4x128xf32> -> vector<4x128xf32>
    %581 = vector.broadcast %5 : vector<1x128xf32> to vector<4x128xf32>
    %582 = arith.mulf %517, %581 : vector<4x128xf32>
    %583 = arith.addf %582, %536 : vector<4x128xf32>
    %584 = vector.broadcast %17 : vector<1x128xf32> to vector<4x128xf32>
    %585 = arith.mulf %477, %584 : vector<4x128xf32>
    %586 = arith.addf %583, %585 : vector<4x128xf32>
    %587 = vector.broadcast %25 : vector<1x128xf32> to vector<4x128xf32>
    %588 = arith.addf %586, %587 : vector<4x128xf32>
    %589 = arith.addf %588, %544 : vector<4x128xf32>
    %cst_201 = arith.constant 0.000000e+00 : f32
    %590 = vector.broadcast %cst_201 : f32 to vector<4x128xf32>
    %591 = arith.subf %590, %589 : vector<4x128xf32>
    %592 = math.exp %591 : vector<4x128xf32>
    %cst_202 = arith.constant 1.000000e+00 : f32
    %593 = vector.broadcast %cst_202 : f32 to vector<4x128xf32>
    %594 = arith.addf %593, %592 : vector<4x128xf32>
    %595 = tpu.reciprocal %594 {approx = true} : vector<4x128xf32> -> vector<4x128xf32>
    %596 = arith.mulf %595, %445 : vector<4x128xf32>
    %cst_203 = arith.constant 1.000000e+00 : f32
    %597 = vector.broadcast %cst_203 : f32 to vector<4x128xf32>
    %598 = arith.subf %597, %595 : vector<4x128xf32>
    %599 = arith.mulf %598, %565 : vector<4x128xf32>
    %600 = arith.addf %596, %599 : vector<4x128xf32>
    %601 = vector.broadcast %9 : vector<1x128xf32> to vector<4x128xf32>
    %602 = arith.mulf %517, %601 : vector<4x128xf32>
    %603 = arith.addf %602, %538 : vector<4x128xf32>
    %604 = vector.broadcast %29 : vector<1x128xf32> to vector<4x128xf32>
    %605 = arith.addf %603, %604 : vector<4x128xf32>
    %606 = math.tanh %605 : vector<4x128xf32>
    %607 = arith.addf %600, %555 : vector<4x128xf32>
    %608 = arith.mulf %607, %477 : vector<4x128xf32>
    %609 = arith.mulf %580, %544 : vector<4x128xf32>
    %610 = arith.mulf %609, %555 : vector<4x128xf32>
    %611 = arith.mulf %610, %606 : vector<4x128xf32>
    %612 = arith.addf %608, %611 : vector<4x128xf32>
    %613 = vector.broadcast %7 : vector<1x128xf32> to vector<4x128xf32>
    %614 = arith.mulf %517, %613 : vector<4x128xf32>
    %615 = arith.addf %614, %537 : vector<4x128xf32>
    %616 = arith.addf %615, %555 : vector<4x128xf32>
    %617 = arith.addf %616, %529 : vector<4x128xf32>
    %618 = vector.broadcast %19 : vector<1x128xf32> to vector<4x128xf32>
    %619 = arith.mulf %612, %618 : vector<4x128xf32>
    %620 = arith.addf %617, %619 : vector<4x128xf32>
    %621 = vector.broadcast %27 : vector<1x128xf32> to vector<4x128xf32>
    %622 = arith.addf %620, %621 : vector<4x128xf32>
    %cst_204 = arith.constant 0.000000e+00 : f32
    %623 = vector.broadcast %cst_204 : f32 to vector<4x128xf32>
    %624 = arith.subf %623, %622 : vector<4x128xf32>
    %625 = math.exp %624 : vector<4x128xf32>
    %cst_205 = arith.constant 1.000000e+00 : f32
    %626 = vector.broadcast %cst_205 : f32 to vector<4x128xf32>
    %627 = arith.addf %626, %625 : vector<4x128xf32>
    %628 = tpu.reciprocal %627 {approx = true} : vector<4x128xf32> -> vector<4x128xf32>
    %629 = arith.addf %612, %529 : vector<4x128xf32>
    %630 = math.tanh %629 : vector<4x128xf32>
    %631 = arith.mulf %628, %630 : vector<4x128xf32>
    %632 = vector.extract_strided_slice %631 {offsets = [0, 0], sizes = [2, 128], strides = [1, 1]} : vector<4x128xf32> to vector<2x128xf32>
    %633 = vector.broadcast %47 : vector<1x128xf32> to vector<2x128xf32>
    %634 = arith.mulf %632, %633 : vector<2x128xf32>
    %635 = vector.extract_strided_slice %631 {offsets = [2, 0], sizes = [2, 128], strides = [1, 1]} : vector<4x128xf32> to vector<2x128xf32>
    %636 = vector.broadcast %49 : vector<1x128xf32> to vector<2x128xf32>
    %637 = arith.mulf %635, %636 : vector<2x128xf32>
    %638 = arith.addf %634, %637 : vector<2x128xf32>
    %c3_206 = arith.constant 3 : index
    %c0_207 = arith.constant 0 : index
    %c0_208 = arith.constant 0 : index
    %639 = vector.load %arg0[%c3_206, %c0_207, %c0_208] : memref<56x4x128xf32, #tpu.memory_space<vmem>>, vector<1x4x128xf32>
    %640 = vector.shape_cast %639 : vector<1x4x128xf32> to vector<4x128xf32>
    %c11_209 = arith.constant 11 : index
    %c0_210 = arith.constant 0 : index
    %c0_211 = arith.constant 0 : index
    %641 = vector.load %arg0[%c11_209, %c0_210, %c0_211] : memref<56x4x128xf32, #tpu.memory_space<vmem>>, vector<1x4x128xf32>
    %642 = vector.shape_cast %641 : vector<1x4x128xf32> to vector<4x128xf32>
    %c19_212 = arith.constant 19 : index
    %c0_213 = arith.constant 0 : index
    %c0_214 = arith.constant 0 : index
    %643 = vector.load %arg0[%c19_212, %c0_213, %c0_214] : memref<56x4x128xf32, #tpu.memory_space<vmem>>, vector<1x4x128xf32>
    %644 = vector.shape_cast %643 : vector<1x4x128xf32> to vector<4x128xf32>
    %c27 = arith.constant 27 : index
    %c0_215 = arith.constant 0 : index
    %c0_216 = arith.constant 0 : index
    %645 = vector.load %arg0[%c27, %c0_215, %c0_216] : memref<56x4x128xf32, #tpu.memory_space<vmem>>, vector<1x4x128xf32>
    %646 = vector.shape_cast %645 : vector<1x4x128xf32> to vector<4x128xf32>
    %c35 = arith.constant 35 : index
    %c0_217 = arith.constant 0 : index
    %c0_218 = arith.constant 0 : index
    %647 = vector.load %arg0[%c35, %c0_217, %c0_218] : memref<56x4x128xf32, #tpu.memory_space<vmem>>, vector<1x4x128xf32>
    %648 = vector.shape_cast %647 : vector<1x4x128xf32> to vector<4x128xf32>
    %c43 = arith.constant 43 : index
    %c0_219 = arith.constant 0 : index
    %c0_220 = arith.constant 0 : index
    %649 = vector.load %arg0[%c43, %c0_219, %c0_220] : memref<56x4x128xf32, #tpu.memory_space<vmem>>, vector<1x4x128xf32>
    %650 = vector.shape_cast %649 : vector<1x4x128xf32> to vector<4x128xf32>
    %c51 = arith.constant 51 : index
    %c0_221 = arith.constant 0 : index
    %c0_222 = arith.constant 0 : index
    %651 = vector.load %arg0[%c51, %c0_221, %c0_222] : memref<56x4x128xf32, #tpu.memory_space<vmem>>, vector<1x4x128xf32>
    %652 = vector.shape_cast %651 : vector<1x4x128xf32> to vector<4x128xf32>
    %653 = tpu.concatenate %631, %612 in 0 : vector<4x128xf32>, vector<4x128xf32> -> vector<8x128xf32>
    %c0_223 = arith.constant 0 : index
    %c0_224 = arith.constant 0 : index
    %654 = vector.load %arg2[%c0_223, %c0_224] : memref<128x256xbf16, #tpu.memory_space<vmem>>, vector<128x256xbf16>
    %655 = arith.truncf %653 : vector<8x128xf32> to vector<8x128xbf16>
    %cst_225 = arith.constant dense<0.000000e+00> : vector<8x256xf32>
    %656 = tpu.matmul %655, %654, %cst_225 {dimension_numbers = #tpu.dot_dimension_numbers<[1], [0], [0], [1], [0, 0, 1, 1], [], []>} : vector<8x128xbf16>, vector<128x256xbf16>, vector<8x256xf32> -> vector<8x256xf32>
    %657 = vector.extract_strided_slice %656 {offsets = [0, 0], sizes = [4, 128], strides = [1, 1]} : vector<8x256xf32> to vector<4x128xf32>
    %658 = arith.addf %644, %657 : vector<4x128xf32>
    %cst_226 = arith.constant 0.000000e+00 : f32
    %659 = vector.broadcast %cst_226 : f32 to vector<4x128xf32>
    %660 = arith.subf %659, %658 : vector<4x128xf32>
    %661 = math.exp %660 : vector<4x128xf32>
    %cst_227 = arith.constant 1.000000e+00 : f32
    %662 = vector.broadcast %cst_227 : f32 to vector<4x128xf32>
    %663 = arith.addf %662, %661 : vector<4x128xf32>
    %664 = tpu.reciprocal %663 {approx = true} : vector<4x128xf32> -> vector<4x128xf32>
    %665 = vector.extract_strided_slice %656 {offsets = [4, 128], sizes = [4, 128], strides = [1, 1]} : vector<8x256xf32> to vector<4x128xf32>
    %666 = math.tanh %665 : vector<4x128xf32>
    %667 = arith.mulf %640, %664 : vector<4x128xf32>
    %668 = arith.mulf %666, %667 : vector<4x128xf32>
    %669 = arith.subf %612, %666 : vector<4x128xf32>
    %cst_228 = arith.constant 2.000000e+00 : f32
    %670 = vector.broadcast %cst_228 : f32 to vector<4x128xf32>
    %671 = arith.mulf %670, %668 : vector<4x128xf32>
    %672 = arith.addf %669, %671 : vector<4x128xf32>
    %c0_229 = arith.constant 0 : index
    %c0_230 = arith.constant 0 : index
    %673 = vector.load %arg2[%c0_229, %c0_230] : memref<128x256xbf16, #tpu.memory_space<vmem>>, vector<128x128xbf16>
    %674 = arith.truncf %672 : vector<4x128xf32> to vector<4x128xbf16>
    %cst_231 = arith.constant dense<0.000000e+00> : vector<4x128xf32>
    %675 = tpu.matmul %674, %673, %cst_231 {dimension_numbers = #tpu.dot_dimension_numbers<[1], [0], [0], [1], [0, 0, 1, 1], [], []>} : vector<4x128xbf16>, vector<128x128xbf16>, vector<4x128xf32> -> vector<4x128xf32>
    %676 = arith.addf %644, %675 : vector<4x128xf32>
    %cst_232 = arith.constant 0.000000e+00 : f32
    %677 = vector.broadcast %cst_232 : f32 to vector<4x128xf32>
    %678 = arith.subf %677, %676 : vector<4x128xf32>
    %679 = math.exp %678 : vector<4x128xf32>
    %cst_233 = arith.constant 1.000000e+00 : f32
    %680 = vector.broadcast %cst_233 : f32 to vector<4x128xf32>
    %681 = arith.addf %680, %679 : vector<4x128xf32>
    %682 = tpu.reciprocal %681 {approx = true} : vector<4x128xf32> -> vector<4x128xf32>
    %683 = vector.broadcast %43 : vector<1x128xf32> to vector<4x128xf32>
    %684 = arith.mulf %664, %683 : vector<4x128xf32>
    %685 = vector.broadcast %45 : vector<1x128xf32> to vector<4x128xf32>
    %686 = arith.mulf %682, %685 : vector<4x128xf32>
    %687 = arith.addf %684, %686 : vector<4x128xf32>
    %688 = vector.broadcast %39 : vector<1x128xf32> to vector<4x128xf32>
    %689 = arith.mulf %664, %688 : vector<4x128xf32>
    %690 = vector.broadcast %41 : vector<1x128xf32> to vector<4x128xf32>
    %691 = arith.mulf %682, %690 : vector<4x128xf32>
    %692 = arith.addf %689, %691 : vector<4x128xf32>
    %693 = tpu.concatenate %687, %692 in 0 : vector<4x128xf32>, vector<4x128xf32> -> vector<8x128xf32>
    %694 = arith.truncf %693 : vector<8x128xf32> to vector<8x128xbf16>
    %cst_234 = arith.constant dense<0.000000e+00> : vector<8x128xf32>
    %695 = tpu.matmul %694, %50, %cst_234 {dimension_numbers = #tpu.dot_dimension_numbers<[1], [0], [0], [1], [0, 0, 1, 1], [], []>} : vector<8x128xbf16>, vector<128x128xbf16>, vector<8x128xf32> -> vector<8x128xf32>
    %696 = vector.extract_strided_slice %695 {offsets = [0, 0], sizes = [4, 128], strides = [1, 1]} : vector<8x128xf32> to vector<4x128xf32>
    %697 = vector.broadcast %37 : vector<1x128xf32> to vector<4x128xf32>
    %698 = arith.addf %696, %697 : vector<4x128xf32>
    %699 = math.tanh %698 : vector<4x128xf32>
    %700 = vector.extract_strided_slice %695 {offsets = [4, 0], sizes = [4, 128], strides = [1, 1]} : vector<8x128xf32> to vector<4x128xf32>
    %701 = vector.broadcast %35 : vector<1x128xf32> to vector<4x128xf32>
    %702 = arith.addf %700, %701 : vector<4x128xf32>
    %703 = math.tanh %702 : vector<4x128xf32>
    %704 = tpu.concatenate %699, %703 in 0 : vector<4x128xf32>, vector<4x128xf32> -> vector<8x128xf32>
    %705 = arith.truncf %704 : vector<8x128xf32> to vector<8x128xbf16>
    %cst_235 = arith.constant dense<0.000000e+00> : vector<8x128xf32>
    %706 = tpu.matmul %705, %50, %cst_235 {dimension_numbers = #tpu.dot_dimension_numbers<[1], [0], [0], [1], [0, 0, 1, 1], [], []>} : vector<8x128xbf16>, vector<128x128xbf16>, vector<8x128xf32> -> vector<8x128xf32>
    %707 = vector.extract_strided_slice %706 {offsets = [0, 0], sizes = [4, 128], strides = [1, 1]} : vector<8x128xf32> to vector<4x128xf32>
    %708 = arith.mulf %650, %707 : vector<4x128xf32>
    %709 = arith.addf %708, %652 : vector<4x128xf32>
    %710 = vector.extract_strided_slice %706 {offsets = [4, 0], sizes = [4, 128], strides = [1, 1]} : vector<8x128xf32> to vector<4x128xf32>
    %711 = arith.mulf %646, %710 : vector<4x128xf32>
    %712 = arith.addf %711, %648 : vector<4x128xf32>
    %713 = vector.broadcast %11 : vector<1x128xf32> to vector<4x128xf32>
    %714 = arith.mulf %709, %713 : vector<4x128xf32>
    %715 = vector.broadcast %31 : vector<1x128xf32> to vector<4x128xf32>
    %716 = arith.addf %714, %715 : vector<4x128xf32>
    %cst_236 = arith.constant 0.000000e+00 : f32
    %717 = vector.broadcast %cst_236 : f32 to vector<4x128xf32>
    %718 = arith.cmpf ogt, %716, %717 : vector<4x128xf32>
    %cst_237 = arith.constant 0.000000e+00 : f32
    %719 = vector.broadcast %cst_237 : f32 to vector<4x128xf32>
    %720 = arith.minimumf %716, %719 : vector<4x128xf32>
    %721 = math.exp %720 : vector<4x128xf32>
    %cst_238 = arith.constant 1.000000e+00 : f32
    %722 = vector.broadcast %cst_238 : f32 to vector<4x128xf32>
    %723 = arith.subf %721, %722 : vector<4x128xf32>
    %724 = arith.select %718, %716, %723 : vector<4x128xi1>, vector<4x128xf32>
    %725 = arith.addf %631, %724 : vector<4x128xf32>
    %c0_239 = arith.constant 0 : index
    %c0_240 = arith.constant 0 : index
    %726 = vector.load %arg3[%c0_239, %c0_240] : memref<128x640xbf16, #tpu.memory_space<vmem>>, vector<128x640xbf16>
    %727 = arith.truncf %725 : vector<4x128xf32> to vector<4x128xbf16>
    %cst_241 = arith.constant dense<0.000000e+00> : vector<4x640xf32>
    %728 = tpu.matmul %727, %726, %cst_241 {dimension_numbers = #tpu.dot_dimension_numbers<[1], [0], [0], [1], [0, 0, 1, 1], [], []>} : vector<4x128xbf16>, vector<128x640xbf16>, vector<4x640xf32> -> vector<4x640xf32>
    %729 = vector.extract_strided_slice %728 {offsets = [0, 0], sizes = [4, 128], strides = [1, 1]} : vector<4x640xf32> to vector<4x128xf32>
    %730 = vector.extract_strided_slice %728 {offsets = [0, 128], sizes = [4, 128], strides = [1, 1]} : vector<4x640xf32> to vector<4x128xf32>
    %731 = vector.extract_strided_slice %728 {offsets = [0, 256], sizes = [4, 128], strides = [1, 1]} : vector<4x640xf32> to vector<4x128xf32>
    %732 = vector.extract_strided_slice %728 {offsets = [0, 384], sizes = [4, 128], strides = [1, 1]} : vector<4x640xf32> to vector<4x128xf32>
    %733 = vector.extract_strided_slice %728 {offsets = [0, 512], sizes = [4, 128], strides = [1, 1]} : vector<4x640xf32> to vector<4x128xf32>
    %734 = vector.broadcast %1 : vector<1x128xf32> to vector<4x128xf32>
    %735 = arith.mulf %712, %734 : vector<4x128xf32>
    %736 = arith.addf %729, %735 : vector<4x128xf32>
    %737 = vector.broadcast %21 : vector<1x128xf32> to vector<4x128xf32>
    %738 = arith.addf %736, %737 : vector<4x128xf32>
    %739 = math.tanh %738 : vector<4x128xf32>
    %740 = vector.broadcast %13 : vector<1x128xf32> to vector<4x128xf32>
    %741 = arith.mulf %712, %740 : vector<4x128xf32>
    %742 = arith.addf %741, %642 : vector<4x128xf32>
    %743 = vector.broadcast %33 : vector<1x128xf32> to vector<4x128xf32>
    %744 = arith.addf %742, %743 : vector<4x128xf32>
    %cst_242 = arith.constant 0.000000e+00 : f32
    %745 = vector.broadcast %cst_242 : f32 to vector<4x128xf32>
    %746 = arith.subf %745, %744 : vector<4x128xf32>
    %747 = math.exp %746 : vector<4x128xf32>
    %cst_243 = arith.constant 1.000000e+00 : f32
    %748 = vector.broadcast %cst_243 : f32 to vector<4x128xf32>
    %749 = arith.addf %748, %747 : vector<4x128xf32>
    %750 = tpu.reciprocal %749 {approx = true} : vector<4x128xf32> -> vector<4x128xf32>
    %c0_244 = arith.constant 0 : index
    %c0_245 = arith.constant 0 : index
    %751 = vector.load %arg2[%c0_244, %c0_245] : memref<128x256xbf16, #tpu.memory_space<vmem>>, vector<128x128xbf16>
    %752 = arith.truncf %739 : vector<4x128xf32> to vector<4x128xbf16>
    %cst_246 = arith.constant dense<0.000000e+00> : vector<4x128xf32>
    %753 = tpu.matmul %752, %751, %cst_246 {dimension_numbers = #tpu.dot_dimension_numbers<[1], [0], [0], [1], [0, 0, 1, 1], [], []>} : vector<4x128xbf16>, vector<128x128xbf16>, vector<4x128xf32> -> vector<4x128xf32>
    %754 = arith.addf %644, %753 : vector<4x128xf32>
    %cst_247 = arith.constant 0.000000e+00 : f32
    %755 = vector.broadcast %cst_247 : f32 to vector<4x128xf32>
    %756 = arith.subf %755, %754 : vector<4x128xf32>
    %757 = math.exp %756 : vector<4x128xf32>
    %cst_248 = arith.constant 1.000000e+00 : f32
    %758 = vector.broadcast %cst_248 : f32 to vector<4x128xf32>
    %759 = arith.addf %758, %757 : vector<4x128xf32>
    %760 = tpu.reciprocal %759 {approx = true} : vector<4x128xf32> -> vector<4x128xf32>
    %761 = vector.broadcast %3 : vector<1x128xf32> to vector<4x128xf32>
    %762 = arith.mulf %712, %761 : vector<4x128xf32>
    %763 = arith.addf %762, %730 : vector<4x128xf32>
    %764 = vector.broadcast %15 : vector<1x128xf32> to vector<4x128xf32>
    %765 = arith.mulf %672, %764 : vector<4x128xf32>
    %766 = arith.addf %763, %765 : vector<4x128xf32>
    %767 = vector.broadcast %23 : vector<1x128xf32> to vector<4x128xf32>
    %768 = arith.mulf %767, %760 : vector<4x128xf32>
    %769 = arith.addf %766, %768 : vector<4x128xf32>
    %cst_249 = arith.constant 0.000000e+00 : f32
    %770 = vector.broadcast %cst_249 : f32 to vector<4x128xf32>
    %771 = arith.subf %770, %769 : vector<4x128xf32>
    %772 = math.exp %771 : vector<4x128xf32>
    %cst_250 = arith.constant 1.000000e+00 : f32
    %773 = vector.broadcast %cst_250 : f32 to vector<4x128xf32>
    %774 = arith.addf %773, %772 : vector<4x128xf32>
    %775 = tpu.reciprocal %774 {approx = true} : vector<4x128xf32> -> vector<4x128xf32>
    %776 = vector.broadcast %5 : vector<1x128xf32> to vector<4x128xf32>
    %777 = arith.mulf %712, %776 : vector<4x128xf32>
    %778 = arith.addf %777, %731 : vector<4x128xf32>
    %779 = vector.broadcast %17 : vector<1x128xf32> to vector<4x128xf32>
    %780 = arith.mulf %672, %779 : vector<4x128xf32>
    %781 = arith.addf %778, %780 : vector<4x128xf32>
    %782 = vector.broadcast %25 : vector<1x128xf32> to vector<4x128xf32>
    %783 = arith.addf %781, %782 : vector<4x128xf32>
    %784 = arith.addf %783, %739 : vector<4x128xf32>
    %cst_251 = arith.constant 0.000000e+00 : f32
    %785 = vector.broadcast %cst_251 : f32 to vector<4x128xf32>
    %786 = arith.subf %785, %784 : vector<4x128xf32>
    %787 = math.exp %786 : vector<4x128xf32>
    %cst_252 = arith.constant 1.000000e+00 : f32
    %788 = vector.broadcast %cst_252 : f32 to vector<4x128xf32>
    %789 = arith.addf %788, %787 : vector<4x128xf32>
    %790 = tpu.reciprocal %789 {approx = true} : vector<4x128xf32> -> vector<4x128xf32>
    %791 = arith.mulf %790, %640 : vector<4x128xf32>
    %cst_253 = arith.constant 1.000000e+00 : f32
    %792 = vector.broadcast %cst_253 : f32 to vector<4x128xf32>
    %793 = arith.subf %792, %790 : vector<4x128xf32>
    %794 = arith.mulf %793, %760 : vector<4x128xf32>
    %795 = arith.addf %791, %794 : vector<4x128xf32>
    %796 = vector.broadcast %9 : vector<1x128xf32> to vector<4x128xf32>
    %797 = arith.mulf %712, %796 : vector<4x128xf32>
    %798 = arith.addf %797, %733 : vector<4x128xf32>
    %799 = vector.broadcast %29 : vector<1x128xf32> to vector<4x128xf32>
    %800 = arith.addf %798, %799 : vector<4x128xf32>
    %801 = math.tanh %800 : vector<4x128xf32>
    %802 = arith.addf %795, %750 : vector<4x128xf32>
    %803 = arith.mulf %802, %672 : vector<4x128xf32>
    %804 = arith.mulf %775, %739 : vector<4x128xf32>
    %805 = arith.mulf %804, %750 : vector<4x128xf32>
    %806 = arith.mulf %805, %801 : vector<4x128xf32>
    %807 = arith.addf %803, %806 : vector<4x128xf32>
    %808 = vector.broadcast %7 : vector<1x128xf32> to vector<4x128xf32>
    %809 = arith.mulf %712, %808 : vector<4x128xf32>
    %810 = arith.addf %809, %732 : vector<4x128xf32>
    %811 = arith.addf %810, %750 : vector<4x128xf32>
    %812 = arith.addf %811, %724 : vector<4x128xf32>
    %813 = vector.broadcast %19 : vector<1x128xf32> to vector<4x128xf32>
    %814 = arith.mulf %807, %813 : vector<4x128xf32>
    %815 = arith.addf %812, %814 : vector<4x128xf32>
    %816 = vector.broadcast %27 : vector<1x128xf32> to vector<4x128xf32>
    %817 = arith.addf %815, %816 : vector<4x128xf32>
    %cst_254 = arith.constant 0.000000e+00 : f32
    %818 = vector.broadcast %cst_254 : f32 to vector<4x128xf32>
    %819 = arith.subf %818, %817 : vector<4x128xf32>
    %820 = math.exp %819 : vector<4x128xf32>
    %cst_255 = arith.constant 1.000000e+00 : f32
    %821 = vector.broadcast %cst_255 : f32 to vector<4x128xf32>
    %822 = arith.addf %821, %820 : vector<4x128xf32>
    %823 = tpu.reciprocal %822 {approx = true} : vector<4x128xf32> -> vector<4x128xf32>
    %824 = arith.addf %807, %724 : vector<4x128xf32>
    %825 = math.tanh %824 : vector<4x128xf32>
    %826 = arith.mulf %823, %825 : vector<4x128xf32>
    %827 = vector.extract_strided_slice %826 {offsets = [0, 0], sizes = [2, 128], strides = [1, 1]} : vector<4x128xf32> to vector<2x128xf32>
    %828 = vector.broadcast %47 : vector<1x128xf32> to vector<2x128xf32>
    %829 = arith.mulf %827, %828 : vector<2x128xf32>
    %830 = vector.extract_strided_slice %826 {offsets = [2, 0], sizes = [2, 128], strides = [1, 1]} : vector<4x128xf32> to vector<2x128xf32>
    %831 = vector.broadcast %49 : vector<1x128xf32> to vector<2x128xf32>
    %832 = arith.mulf %830, %831 : vector<2x128xf32>
    %833 = arith.addf %829, %832 : vector<2x128xf32>
    %c4_256 = arith.constant 4 : index
    %c0_257 = arith.constant 0 : index
    %c0_258 = arith.constant 0 : index
    %834 = vector.load %arg0[%c4_256, %c0_257, %c0_258] : memref<56x4x128xf32, #tpu.memory_space<vmem>>, vector<1x4x128xf32>
    %835 = vector.shape_cast %834 : vector<1x4x128xf32> to vector<4x128xf32>
    %c12_259 = arith.constant 12 : index
    %c0_260 = arith.constant 0 : index
    %c0_261 = arith.constant 0 : index
    %836 = vector.load %arg0[%c12_259, %c0_260, %c0_261] : memref<56x4x128xf32, #tpu.memory_space<vmem>>, vector<1x4x128xf32>
    %837 = vector.shape_cast %836 : vector<1x4x128xf32> to vector<4x128xf32>
    %c20_262 = arith.constant 20 : index
    %c0_263 = arith.constant 0 : index
    %c0_264 = arith.constant 0 : index
    %838 = vector.load %arg0[%c20_262, %c0_263, %c0_264] : memref<56x4x128xf32, #tpu.memory_space<vmem>>, vector<1x4x128xf32>
    %839 = vector.shape_cast %838 : vector<1x4x128xf32> to vector<4x128xf32>
    %c28 = arith.constant 28 : index
    %c0_265 = arith.constant 0 : index
    %c0_266 = arith.constant 0 : index
    %840 = vector.load %arg0[%c28, %c0_265, %c0_266] : memref<56x4x128xf32, #tpu.memory_space<vmem>>, vector<1x4x128xf32>
    %841 = vector.shape_cast %840 : vector<1x4x128xf32> to vector<4x128xf32>
    %c36 = arith.constant 36 : index
    %c0_267 = arith.constant 0 : index
    %c0_268 = arith.constant 0 : index
    %842 = vector.load %arg0[%c36, %c0_267, %c0_268] : memref<56x4x128xf32, #tpu.memory_space<vmem>>, vector<1x4x128xf32>
    %843 = vector.shape_cast %842 : vector<1x4x128xf32> to vector<4x128xf32>
    %c44 = arith.constant 44 : index
    %c0_269 = arith.constant 0 : index
    %c0_270 = arith.constant 0 : index
    %844 = vector.load %arg0[%c44, %c0_269, %c0_270] : memref<56x4x128xf32, #tpu.memory_space<vmem>>, vector<1x4x128xf32>
    %845 = vector.shape_cast %844 : vector<1x4x128xf32> to vector<4x128xf32>
    %c52 = arith.constant 52 : index
    %c0_271 = arith.constant 0 : index
    %c0_272 = arith.constant 0 : index
    %846 = vector.load %arg0[%c52, %c0_271, %c0_272] : memref<56x4x128xf32, #tpu.memory_space<vmem>>, vector<1x4x128xf32>
    %847 = vector.shape_cast %846 : vector<1x4x128xf32> to vector<4x128xf32>
    %848 = tpu.concatenate %826, %807 in 0 : vector<4x128xf32>, vector<4x128xf32> -> vector<8x128xf32>
    %c0_273 = arith.constant 0 : index
    %c0_274 = arith.constant 0 : index
    %849 = vector.load %arg2[%c0_273, %c0_274] : memref<128x256xbf16, #tpu.memory_space<vmem>>, vector<128x256xbf16>
    %850 = arith.truncf %848 : vector<8x128xf32> to vector<8x128xbf16>
    %cst_275 = arith.constant dense<0.000000e+00> : vector<8x256xf32>
    %851 = tpu.matmul %850, %849, %cst_275 {dimension_numbers = #tpu.dot_dimension_numbers<[1], [0], [0], [1], [0, 0, 1, 1], [], []>} : vector<8x128xbf16>, vector<128x256xbf16>, vector<8x256xf32> -> vector<8x256xf32>
    %852 = vector.extract_strided_slice %851 {offsets = [0, 0], sizes = [4, 128], strides = [1, 1]} : vector<8x256xf32> to vector<4x128xf32>
    %853 = arith.addf %839, %852 : vector<4x128xf32>
    %cst_276 = arith.constant 0.000000e+00 : f32
    %854 = vector.broadcast %cst_276 : f32 to vector<4x128xf32>
    %855 = arith.subf %854, %853 : vector<4x128xf32>
    %856 = math.exp %855 : vector<4x128xf32>
    %cst_277 = arith.constant 1.000000e+00 : f32
    %857 = vector.broadcast %cst_277 : f32 to vector<4x128xf32>
    %858 = arith.addf %857, %856 : vector<4x128xf32>
    %859 = tpu.reciprocal %858 {approx = true} : vector<4x128xf32> -> vector<4x128xf32>
    %860 = vector.extract_strided_slice %851 {offsets = [4, 128], sizes = [4, 128], strides = [1, 1]} : vector<8x256xf32> to vector<4x128xf32>
    %861 = math.tanh %860 : vector<4x128xf32>
    %862 = arith.mulf %835, %859 : vector<4x128xf32>
    %863 = arith.mulf %861, %862 : vector<4x128xf32>
    %864 = arith.subf %807, %861 : vector<4x128xf32>
    %cst_278 = arith.constant 2.000000e+00 : f32
    %865 = vector.broadcast %cst_278 : f32 to vector<4x128xf32>
    %866 = arith.mulf %865, %863 : vector<4x128xf32>
    %867 = arith.addf %864, %866 : vector<4x128xf32>
    %c0_279 = arith.constant 0 : index
    %c0_280 = arith.constant 0 : index
    %868 = vector.load %arg2[%c0_279, %c0_280] : memref<128x256xbf16, #tpu.memory_space<vmem>>, vector<128x128xbf16>
    %869 = arith.truncf %867 : vector<4x128xf32> to vector<4x128xbf16>
    %cst_281 = arith.constant dense<0.000000e+00> : vector<4x128xf32>
    %870 = tpu.matmul %869, %868, %cst_281 {dimension_numbers = #tpu.dot_dimension_numbers<[1], [0], [0], [1], [0, 0, 1, 1], [], []>} : vector<4x128xbf16>, vector<128x128xbf16>, vector<4x128xf32> -> vector<4x128xf32>
    %871 = arith.addf %839, %870 : vector<4x128xf32>
    %cst_282 = arith.constant 0.000000e+00 : f32
    %872 = vector.broadcast %cst_282 : f32 to vector<4x128xf32>
    %873 = arith.subf %872, %871 : vector<4x128xf32>
    %874 = math.exp %873 : vector<4x128xf32>
    %cst_283 = arith.constant 1.000000e+00 : f32
    %875 = vector.broadcast %cst_283 : f32 to vector<4x128xf32>
    %876 = arith.addf %875, %874 : vector<4x128xf32>
    %877 = tpu.reciprocal %876 {approx = true} : vector<4x128xf32> -> vector<4x128xf32>
    %878 = vector.broadcast %43 : vector<1x128xf32> to vector<4x128xf32>
    %879 = arith.mulf %859, %878 : vector<4x128xf32>
    %880 = vector.broadcast %45 : vector<1x128xf32> to vector<4x128xf32>
    %881 = arith.mulf %877, %880 : vector<4x128xf32>
    %882 = arith.addf %879, %881 : vector<4x128xf32>
    %883 = vector.broadcast %39 : vector<1x128xf32> to vector<4x128xf32>
    %884 = arith.mulf %859, %883 : vector<4x128xf32>
    %885 = vector.broadcast %41 : vector<1x128xf32> to vector<4x128xf32>
    %886 = arith.mulf %877, %885 : vector<4x128xf32>
    %887 = arith.addf %884, %886 : vector<4x128xf32>
    %888 = tpu.concatenate %882, %887 in 0 : vector<4x128xf32>, vector<4x128xf32> -> vector<8x128xf32>
    %889 = arith.truncf %888 : vector<8x128xf32> to vector<8x128xbf16>
    %cst_284 = arith.constant dense<0.000000e+00> : vector<8x128xf32>
    %890 = tpu.matmul %889, %50, %cst_284 {dimension_numbers = #tpu.dot_dimension_numbers<[1], [0], [0], [1], [0, 0, 1, 1], [], []>} : vector<8x128xbf16>, vector<128x128xbf16>, vector<8x128xf32> -> vector<8x128xf32>
    %891 = vector.extract_strided_slice %890 {offsets = [0, 0], sizes = [4, 128], strides = [1, 1]} : vector<8x128xf32> to vector<4x128xf32>
    %892 = vector.broadcast %37 : vector<1x128xf32> to vector<4x128xf32>
    %893 = arith.addf %891, %892 : vector<4x128xf32>
    %894 = math.tanh %893 : vector<4x128xf32>
    %895 = vector.extract_strided_slice %890 {offsets = [4, 0], sizes = [4, 128], strides = [1, 1]} : vector<8x128xf32> to vector<4x128xf32>
    %896 = vector.broadcast %35 : vector<1x128xf32> to vector<4x128xf32>
    %897 = arith.addf %895, %896 : vector<4x128xf32>
    %898 = math.tanh %897 : vector<4x128xf32>
    %899 = tpu.concatenate %894, %898 in 0 : vector<4x128xf32>, vector<4x128xf32> -> vector<8x128xf32>
    %900 = arith.truncf %899 : vector<8x128xf32> to vector<8x128xbf16>
    %cst_285 = arith.constant dense<0.000000e+00> : vector<8x128xf32>
    %901 = tpu.matmul %900, %50, %cst_285 {dimension_numbers = #tpu.dot_dimension_numbers<[1], [0], [0], [1], [0, 0, 1, 1], [], []>} : vector<8x128xbf16>, vector<128x128xbf16>, vector<8x128xf32> -> vector<8x128xf32>
    %902 = vector.extract_strided_slice %901 {offsets = [0, 0], sizes = [4, 128], strides = [1, 1]} : vector<8x128xf32> to vector<4x128xf32>
    %903 = arith.mulf %845, %902 : vector<4x128xf32>
    %904 = arith.addf %903, %847 : vector<4x128xf32>
    %905 = vector.extract_strided_slice %901 {offsets = [4, 0], sizes = [4, 128], strides = [1, 1]} : vector<8x128xf32> to vector<4x128xf32>
    %906 = arith.mulf %841, %905 : vector<4x128xf32>
    %907 = arith.addf %906, %843 : vector<4x128xf32>
    %908 = vector.broadcast %11 : vector<1x128xf32> to vector<4x128xf32>
    %909 = arith.mulf %904, %908 : vector<4x128xf32>
    %910 = vector.broadcast %31 : vector<1x128xf32> to vector<4x128xf32>
    %911 = arith.addf %909, %910 : vector<4x128xf32>
    %cst_286 = arith.constant 0.000000e+00 : f32
    %912 = vector.broadcast %cst_286 : f32 to vector<4x128xf32>
    %913 = arith.cmpf ogt, %911, %912 : vector<4x128xf32>
    %cst_287 = arith.constant 0.000000e+00 : f32
    %914 = vector.broadcast %cst_287 : f32 to vector<4x128xf32>
    %915 = arith.minimumf %911, %914 : vector<4x128xf32>
    %916 = math.exp %915 : vector<4x128xf32>
    %cst_288 = arith.constant 1.000000e+00 : f32
    %917 = vector.broadcast %cst_288 : f32 to vector<4x128xf32>
    %918 = arith.subf %916, %917 : vector<4x128xf32>
    %919 = arith.select %913, %911, %918 : vector<4x128xi1>, vector<4x128xf32>
    %920 = arith.addf %826, %919 : vector<4x128xf32>
    %c0_289 = arith.constant 0 : index
    %c0_290 = arith.constant 0 : index
    %921 = vector.load %arg3[%c0_289, %c0_290] : memref<128x640xbf16, #tpu.memory_space<vmem>>, vector<128x640xbf16>
    %922 = arith.truncf %920 : vector<4x128xf32> to vector<4x128xbf16>
    %cst_291 = arith.constant dense<0.000000e+00> : vector<4x640xf32>
    %923 = tpu.matmul %922, %921, %cst_291 {dimension_numbers = #tpu.dot_dimension_numbers<[1], [0], [0], [1], [0, 0, 1, 1], [], []>} : vector<4x128xbf16>, vector<128x640xbf16>, vector<4x640xf32> -> vector<4x640xf32>
    %924 = vector.extract_strided_slice %923 {offsets = [0, 0], sizes = [4, 128], strides = [1, 1]} : vector<4x640xf32> to vector<4x128xf32>
    %925 = vector.extract_strided_slice %923 {offsets = [0, 128], sizes = [4, 128], strides = [1, 1]} : vector<4x640xf32> to vector<4x128xf32>
    %926 = vector.extract_strided_slice %923 {offsets = [0, 256], sizes = [4, 128], strides = [1, 1]} : vector<4x640xf32> to vector<4x128xf32>
    %927 = vector.extract_strided_slice %923 {offsets = [0, 384], sizes = [4, 128], strides = [1, 1]} : vector<4x640xf32> to vector<4x128xf32>
    %928 = vector.extract_strided_slice %923 {offsets = [0, 512], sizes = [4, 128], strides = [1, 1]} : vector<4x640xf32> to vector<4x128xf32>
    %929 = vector.broadcast %1 : vector<1x128xf32> to vector<4x128xf32>
    %930 = arith.mulf %907, %929 : vector<4x128xf32>
    %931 = arith.addf %924, %930 : vector<4x128xf32>
    %932 = vector.broadcast %21 : vector<1x128xf32> to vector<4x128xf32>
    %933 = arith.addf %931, %932 : vector<4x128xf32>
    %934 = math.tanh %933 : vector<4x128xf32>
    %935 = vector.broadcast %13 : vector<1x128xf32> to vector<4x128xf32>
    %936 = arith.mulf %907, %935 : vector<4x128xf32>
    %937 = arith.addf %936, %837 : vector<4x128xf32>
    %938 = vector.broadcast %33 : vector<1x128xf32> to vector<4x128xf32>
    %939 = arith.addf %937, %938 : vector<4x128xf32>
    %cst_292 = arith.constant 0.000000e+00 : f32
    %940 = vector.broadcast %cst_292 : f32 to vector<4x128xf32>
    %941 = arith.subf %940, %939 : vector<4x128xf32>
    %942 = math.exp %941 : vector<4x128xf32>
    %cst_293 = arith.constant 1.000000e+00 : f32
    %943 = vector.broadcast %cst_293 : f32 to vector<4x128xf32>
    %944 = arith.addf %943, %942 : vector<4x128xf32>
    %945 = tpu.reciprocal %944 {approx = true} : vector<4x128xf32> -> vector<4x128xf32>
    %c0_294 = arith.constant 0 : index
    %c0_295 = arith.constant 0 : index
    %946 = vector.load %arg2[%c0_294, %c0_295] : memref<128x256xbf16, #tpu.memory_space<vmem>>, vector<128x128xbf16>
    %947 = arith.truncf %934 : vector<4x128xf32> to vector<4x128xbf16>
    %cst_296 = arith.constant dense<0.000000e+00> : vector<4x128xf32>
    %948 = tpu.matmul %947, %946, %cst_296 {dimension_numbers = #tpu.dot_dimension_numbers<[1], [0], [0], [1], [0, 0, 1, 1], [], []>} : vector<4x128xbf16>, vector<128x128xbf16>, vector<4x128xf32> -> vector<4x128xf32>
    %949 = arith.addf %839, %948 : vector<4x128xf32>
    %cst_297 = arith.constant 0.000000e+00 : f32
    %950 = vector.broadcast %cst_297 : f32 to vector<4x128xf32>
    %951 = arith.subf %950, %949 : vector<4x128xf32>
    %952 = math.exp %951 : vector<4x128xf32>
    %cst_298 = arith.constant 1.000000e+00 : f32
    %953 = vector.broadcast %cst_298 : f32 to vector<4x128xf32>
    %954 = arith.addf %953, %952 : vector<4x128xf32>
    %955 = tpu.reciprocal %954 {approx = true} : vector<4x128xf32> -> vector<4x128xf32>
    %956 = vector.broadcast %3 : vector<1x128xf32> to vector<4x128xf32>
    %957 = arith.mulf %907, %956 : vector<4x128xf32>
    %958 = arith.addf %957, %925 : vector<4x128xf32>
    %959 = vector.broadcast %15 : vector<1x128xf32> to vector<4x128xf32>
    %960 = arith.mulf %867, %959 : vector<4x128xf32>
    %961 = arith.addf %958, %960 : vector<4x128xf32>
    %962 = vector.broadcast %23 : vector<1x128xf32> to vector<4x128xf32>
    %963 = arith.mulf %962, %955 : vector<4x128xf32>
    %964 = arith.addf %961, %963 : vector<4x128xf32>
    %cst_299 = arith.constant 0.000000e+00 : f32
    %965 = vector.broadcast %cst_299 : f32 to vector<4x128xf32>
    %966 = arith.subf %965, %964 : vector<4x128xf32>
    %967 = math.exp %966 : vector<4x128xf32>
    %cst_300 = arith.constant 1.000000e+00 : f32
    %968 = vector.broadcast %cst_300 : f32 to vector<4x128xf32>
    %969 = arith.addf %968, %967 : vector<4x128xf32>
    %970 = tpu.reciprocal %969 {approx = true} : vector<4x128xf32> -> vector<4x128xf32>
    %971 = vector.broadcast %5 : vector<1x128xf32> to vector<4x128xf32>
    %972 = arith.mulf %907, %971 : vector<4x128xf32>
    %973 = arith.addf %972, %926 : vector<4x128xf32>
    %974 = vector.broadcast %17 : vector<1x128xf32> to vector<4x128xf32>
    %975 = arith.mulf %867, %974 : vector<4x128xf32>
    %976 = arith.addf %973, %975 : vector<4x128xf32>
    %977 = vector.broadcast %25 : vector<1x128xf32> to vector<4x128xf32>
    %978 = arith.addf %976, %977 : vector<4x128xf32>
    %979 = arith.addf %978, %934 : vector<4x128xf32>
    %cst_301 = arith.constant 0.000000e+00 : f32
    %980 = vector.broadcast %cst_301 : f32 to vector<4x128xf32>
    %981 = arith.subf %980, %979 : vector<4x128xf32>
    %982 = math.exp %981 : vector<4x128xf32>
    %cst_302 = arith.constant 1.000000e+00 : f32
    %983 = vector.broadcast %cst_302 : f32 to vector<4x128xf32>
    %984 = arith.addf %983, %982 : vector<4x128xf32>
    %985 = tpu.reciprocal %984 {approx = true} : vector<4x128xf32> -> vector<4x128xf32>
    %986 = arith.mulf %985, %835 : vector<4x128xf32>
    %cst_303 = arith.constant 1.000000e+00 : f32
    %987 = vector.broadcast %cst_303 : f32 to vector<4x128xf32>
    %988 = arith.subf %987, %985 : vector<4x128xf32>
    %989 = arith.mulf %988, %955 : vector<4x128xf32>
    %990 = arith.addf %986, %989 : vector<4x128xf32>
    %991 = vector.broadcast %9 : vector<1x128xf32> to vector<4x128xf32>
    %992 = arith.mulf %907, %991 : vector<4x128xf32>
    %993 = arith.addf %992, %928 : vector<4x128xf32>
    %994 = vector.broadcast %29 : vector<1x128xf32> to vector<4x128xf32>
    %995 = arith.addf %993, %994 : vector<4x128xf32>
    %996 = math.tanh %995 : vector<4x128xf32>
    %997 = arith.addf %990, %945 : vector<4x128xf32>
    %998 = arith.mulf %997, %867 : vector<4x128xf32>
    %999 = arith.mulf %970, %934 : vector<4x128xf32>
    %1000 = arith.mulf %999, %945 : vector<4x128xf32>
    %1001 = arith.mulf %1000, %996 : vector<4x128xf32>
    %1002 = arith.addf %998, %1001 : vector<4x128xf32>
    %1003 = vector.broadcast %7 : vector<1x128xf32> to vector<4x128xf32>
    %1004 = arith.mulf %907, %1003 : vector<4x128xf32>
    %1005 = arith.addf %1004, %927 : vector<4x128xf32>
    %1006 = arith.addf %1005, %945 : vector<4x128xf32>
    %1007 = arith.addf %1006, %919 : vector<4x128xf32>
    %1008 = vector.broadcast %19 : vector<1x128xf32> to vector<4x128xf32>
    %1009 = arith.mulf %1002, %1008 : vector<4x128xf32>
    %1010 = arith.addf %1007, %1009 : vector<4x128xf32>
    %1011 = vector.broadcast %27 : vector<1x128xf32> to vector<4x128xf32>
    %1012 = arith.addf %1010, %1011 : vector<4x128xf32>
    %cst_304 = arith.constant 0.000000e+00 : f32
    %1013 = vector.broadcast %cst_304 : f32 to vector<4x128xf32>
    %1014 = arith.subf %1013, %1012 : vector<4x128xf32>
    %1015 = math.exp %1014 : vector<4x128xf32>
    %cst_305 = arith.constant 1.000000e+00 : f32
    %1016 = vector.broadcast %cst_305 : f32 to vector<4x128xf32>
    %1017 = arith.addf %1016, %1015 : vector<4x128xf32>
    %1018 = tpu.reciprocal %1017 {approx = true} : vector<4x128xf32> -> vector<4x128xf32>
    %1019 = arith.addf %1002, %919 : vector<4x128xf32>
    %1020 = math.tanh %1019 : vector<4x128xf32>
    %1021 = arith.mulf %1018, %1020 : vector<4x128xf32>
    %1022 = vector.extract_strided_slice %1021 {offsets = [0, 0], sizes = [2, 128], strides = [1, 1]} : vector<4x128xf32> to vector<2x128xf32>
    %1023 = vector.broadcast %47 : vector<1x128xf32> to vector<2x128xf32>
    %1024 = arith.mulf %1022, %1023 : vector<2x128xf32>
    %1025 = vector.extract_strided_slice %1021 {offsets = [2, 0], sizes = [2, 128], strides = [1, 1]} : vector<4x128xf32> to vector<2x128xf32>
    %1026 = vector.broadcast %49 : vector<1x128xf32> to vector<2x128xf32>
    %1027 = arith.mulf %1025, %1026 : vector<2x128xf32>
    %1028 = arith.addf %1024, %1027 : vector<2x128xf32>
    %c5_306 = arith.constant 5 : index
    %c0_307 = arith.constant 0 : index
    %c0_308 = arith.constant 0 : index
    %1029 = vector.load %arg0[%c5_306, %c0_307, %c0_308] : memref<56x4x128xf32, #tpu.memory_space<vmem>>, vector<1x4x128xf32>
    %1030 = vector.shape_cast %1029 : vector<1x4x128xf32> to vector<4x128xf32>
    %c13_309 = arith.constant 13 : index
    %c0_310 = arith.constant 0 : index
    %c0_311 = arith.constant 0 : index
    %1031 = vector.load %arg0[%c13_309, %c0_310, %c0_311] : memref<56x4x128xf32, #tpu.memory_space<vmem>>, vector<1x4x128xf32>
    %1032 = vector.shape_cast %1031 : vector<1x4x128xf32> to vector<4x128xf32>
    %c21_312 = arith.constant 21 : index
    %c0_313 = arith.constant 0 : index
    %c0_314 = arith.constant 0 : index
    %1033 = vector.load %arg0[%c21_312, %c0_313, %c0_314] : memref<56x4x128xf32, #tpu.memory_space<vmem>>, vector<1x4x128xf32>
    %1034 = vector.shape_cast %1033 : vector<1x4x128xf32> to vector<4x128xf32>
    %c29 = arith.constant 29 : index
    %c0_315 = arith.constant 0 : index
    %c0_316 = arith.constant 0 : index
    %1035 = vector.load %arg0[%c29, %c0_315, %c0_316] : memref<56x4x128xf32, #tpu.memory_space<vmem>>, vector<1x4x128xf32>
    %1036 = vector.shape_cast %1035 : vector<1x4x128xf32> to vector<4x128xf32>
    %c37 = arith.constant 37 : index
    %c0_317 = arith.constant 0 : index
    %c0_318 = arith.constant 0 : index
    %1037 = vector.load %arg0[%c37, %c0_317, %c0_318] : memref<56x4x128xf32, #tpu.memory_space<vmem>>, vector<1x4x128xf32>
    %1038 = vector.shape_cast %1037 : vector<1x4x128xf32> to vector<4x128xf32>
    %c45 = arith.constant 45 : index
    %c0_319 = arith.constant 0 : index
    %c0_320 = arith.constant 0 : index
    %1039 = vector.load %arg0[%c45, %c0_319, %c0_320] : memref<56x4x128xf32, #tpu.memory_space<vmem>>, vector<1x4x128xf32>
    %1040 = vector.shape_cast %1039 : vector<1x4x128xf32> to vector<4x128xf32>
    %c53 = arith.constant 53 : index
    %c0_321 = arith.constant 0 : index
    %c0_322 = arith.constant 0 : index
    %1041 = vector.load %arg0[%c53, %c0_321, %c0_322] : memref<56x4x128xf32, #tpu.memory_space<vmem>>, vector<1x4x128xf32>
    %1042 = vector.shape_cast %1041 : vector<1x4x128xf32> to vector<4x128xf32>
    %1043 = tpu.concatenate %1021, %1002 in 0 : vector<4x128xf32>, vector<4x128xf32> -> vector<8x128xf32>
    %c0_323 = arith.constant 0 : index
    %c0_324 = arith.constant 0 : index
    %1044 = vector.load %arg2[%c0_323, %c0_324] : memref<128x256xbf16, #tpu.memory_space<vmem>>, vector<128x256xbf16>
    %1045 = arith.truncf %1043 : vector<8x128xf32> to vector<8x128xbf16>
    %cst_325 = arith.constant dense<0.000000e+00> : vector<8x256xf32>
    %1046 = tpu.matmul %1045, %1044, %cst_325 {dimension_numbers = #tpu.dot_dimension_numbers<[1], [0], [0], [1], [0, 0, 1, 1], [], []>} : vector<8x128xbf16>, vector<128x256xbf16>, vector<8x256xf32> -> vector<8x256xf32>
    %1047 = vector.extract_strided_slice %1046 {offsets = [0, 0], sizes = [4, 128], strides = [1, 1]} : vector<8x256xf32> to vector<4x128xf32>
    %1048 = arith.addf %1034, %1047 : vector<4x128xf32>
    %cst_326 = arith.constant 0.000000e+00 : f32
    %1049 = vector.broadcast %cst_326 : f32 to vector<4x128xf32>
    %1050 = arith.subf %1049, %1048 : vector<4x128xf32>
    %1051 = math.exp %1050 : vector<4x128xf32>
    %cst_327 = arith.constant 1.000000e+00 : f32
    %1052 = vector.broadcast %cst_327 : f32 to vector<4x128xf32>
    %1053 = arith.addf %1052, %1051 : vector<4x128xf32>
    %1054 = tpu.reciprocal %1053 {approx = true} : vector<4x128xf32> -> vector<4x128xf32>
    %1055 = vector.extract_strided_slice %1046 {offsets = [4, 128], sizes = [4, 128], strides = [1, 1]} : vector<8x256xf32> to vector<4x128xf32>
    %1056 = math.tanh %1055 : vector<4x128xf32>
    %1057 = arith.mulf %1030, %1054 : vector<4x128xf32>
    %1058 = arith.mulf %1056, %1057 : vector<4x128xf32>
    %1059 = arith.subf %1002, %1056 : vector<4x128xf32>
    %cst_328 = arith.constant 2.000000e+00 : f32
    %1060 = vector.broadcast %cst_328 : f32 to vector<4x128xf32>
    %1061 = arith.mulf %1060, %1058 : vector<4x128xf32>
    %1062 = arith.addf %1059, %1061 : vector<4x128xf32>
    %c0_329 = arith.constant 0 : index
    %c0_330 = arith.constant 0 : index
    %1063 = vector.load %arg2[%c0_329, %c0_330] : memref<128x256xbf16, #tpu.memory_space<vmem>>, vector<128x128xbf16>
    %1064 = arith.truncf %1062 : vector<4x128xf32> to vector<4x128xbf16>
    %cst_331 = arith.constant dense<0.000000e+00> : vector<4x128xf32>
    %1065 = tpu.matmul %1064, %1063, %cst_331 {dimension_numbers = #tpu.dot_dimension_numbers<[1], [0], [0], [1], [0, 0, 1, 1], [], []>} : vector<4x128xbf16>, vector<128x128xbf16>, vector<4x128xf32> -> vector<4x128xf32>
    %1066 = arith.addf %1034, %1065 : vector<4x128xf32>
    %cst_332 = arith.constant 0.000000e+00 : f32
    %1067 = vector.broadcast %cst_332 : f32 to vector<4x128xf32>
    %1068 = arith.subf %1067, %1066 : vector<4x128xf32>
    %1069 = math.exp %1068 : vector<4x128xf32>
    %cst_333 = arith.constant 1.000000e+00 : f32
    %1070 = vector.broadcast %cst_333 : f32 to vector<4x128xf32>
    %1071 = arith.addf %1070, %1069 : vector<4x128xf32>
    %1072 = tpu.reciprocal %1071 {approx = true} : vector<4x128xf32> -> vector<4x128xf32>
    %1073 = vector.broadcast %43 : vector<1x128xf32> to vector<4x128xf32>
    %1074 = arith.mulf %1054, %1073 : vector<4x128xf32>
    %1075 = vector.broadcast %45 : vector<1x128xf32> to vector<4x128xf32>
    %1076 = arith.mulf %1072, %1075 : vector<4x128xf32>
    %1077 = arith.addf %1074, %1076 : vector<4x128xf32>
    %1078 = vector.broadcast %39 : vector<1x128xf32> to vector<4x128xf32>
    %1079 = arith.mulf %1054, %1078 : vector<4x128xf32>
    %1080 = vector.broadcast %41 : vector<1x128xf32> to vector<4x128xf32>
    %1081 = arith.mulf %1072, %1080 : vector<4x128xf32>
    %1082 = arith.addf %1079, %1081 : vector<4x128xf32>
    %1083 = tpu.concatenate %1077, %1082 in 0 : vector<4x128xf32>, vector<4x128xf32> -> vector<8x128xf32>
    %1084 = arith.truncf %1083 : vector<8x128xf32> to vector<8x128xbf16>
    %cst_334 = arith.constant dense<0.000000e+00> : vector<8x128xf32>
    %1085 = tpu.matmul %1084, %50, %cst_334 {dimension_numbers = #tpu.dot_dimension_numbers<[1], [0], [0], [1], [0, 0, 1, 1], [], []>} : vector<8x128xbf16>, vector<128x128xbf16>, vector<8x128xf32> -> vector<8x128xf32>
    %1086 = vector.extract_strided_slice %1085 {offsets = [0, 0], sizes = [4, 128], strides = [1, 1]} : vector<8x128xf32> to vector<4x128xf32>
    %1087 = vector.broadcast %37 : vector<1x128xf32> to vector<4x128xf32>
    %1088 = arith.addf %1086, %1087 : vector<4x128xf32>
    %1089 = math.tanh %1088 : vector<4x128xf32>
    %1090 = vector.extract_strided_slice %1085 {offsets = [4, 0], sizes = [4, 128], strides = [1, 1]} : vector<8x128xf32> to vector<4x128xf32>
    %1091 = vector.broadcast %35 : vector<1x128xf32> to vector<4x128xf32>
    %1092 = arith.addf %1090, %1091 : vector<4x128xf32>
    %1093 = math.tanh %1092 : vector<4x128xf32>
    %1094 = tpu.concatenate %1089, %1093 in 0 : vector<4x128xf32>, vector<4x128xf32> -> vector<8x128xf32>
    %1095 = arith.truncf %1094 : vector<8x128xf32> to vector<8x128xbf16>
    %cst_335 = arith.constant dense<0.000000e+00> : vector<8x128xf32>
    %1096 = tpu.matmul %1095, %50, %cst_335 {dimension_numbers = #tpu.dot_dimension_numbers<[1], [0], [0], [1], [0, 0, 1, 1], [], []>} : vector<8x128xbf16>, vector<128x128xbf16>, vector<8x128xf32> -> vector<8x128xf32>
    %1097 = vector.extract_strided_slice %1096 {offsets = [0, 0], sizes = [4, 128], strides = [1, 1]} : vector<8x128xf32> to vector<4x128xf32>
    %1098 = arith.mulf %1040, %1097 : vector<4x128xf32>
    %1099 = arith.addf %1098, %1042 : vector<4x128xf32>
    %1100 = vector.extract_strided_slice %1096 {offsets = [4, 0], sizes = [4, 128], strides = [1, 1]} : vector<8x128xf32> to vector<4x128xf32>
    %1101 = arith.mulf %1036, %1100 : vector<4x128xf32>
    %1102 = arith.addf %1101, %1038 : vector<4x128xf32>
    %1103 = vector.broadcast %11 : vector<1x128xf32> to vector<4x128xf32>
    %1104 = arith.mulf %1099, %1103 : vector<4x128xf32>
    %1105 = vector.broadcast %31 : vector<1x128xf32> to vector<4x128xf32>
    %1106 = arith.addf %1104, %1105 : vector<4x128xf32>
    %cst_336 = arith.constant 0.000000e+00 : f32
    %1107 = vector.broadcast %cst_336 : f32 to vector<4x128xf32>
    %1108 = arith.cmpf ogt, %1106, %1107 : vector<4x128xf32>
    %cst_337 = arith.constant 0.000000e+00 : f32
    %1109 = vector.broadcast %cst_337 : f32 to vector<4x128xf32>
    %1110 = arith.minimumf %1106, %1109 : vector<4x128xf32>
    %1111 = math.exp %1110 : vector<4x128xf32>
    %cst_338 = arith.constant 1.000000e+00 : f32
    %1112 = vector.broadcast %cst_338 : f32 to vector<4x128xf32>
    %1113 = arith.subf %1111, %1112 : vector<4x128xf32>
    %1114 = arith.select %1108, %1106, %1113 : vector<4x128xi1>, vector<4x128xf32>
    %1115 = arith.addf %1021, %1114 : vector<4x128xf32>
    %c0_339 = arith.constant 0 : index
    %c0_340 = arith.constant 0 : index
    %1116 = vector.load %arg3[%c0_339, %c0_340] : memref<128x640xbf16, #tpu.memory_space<vmem>>, vector<128x640xbf16>
    %1117 = arith.truncf %1115 : vector<4x128xf32> to vector<4x128xbf16>
    %cst_341 = arith.constant dense<0.000000e+00> : vector<4x640xf32>
    %1118 = tpu.matmul %1117, %1116, %cst_341 {dimension_numbers = #tpu.dot_dimension_numbers<[1], [0], [0], [1], [0, 0, 1, 1], [], []>} : vector<4x128xbf16>, vector<128x640xbf16>, vector<4x640xf32> -> vector<4x640xf32>
    %1119 = vector.extract_strided_slice %1118 {offsets = [0, 0], sizes = [4, 128], strides = [1, 1]} : vector<4x640xf32> to vector<4x128xf32>
    %1120 = vector.extract_strided_slice %1118 {offsets = [0, 128], sizes = [4, 128], strides = [1, 1]} : vector<4x640xf32> to vector<4x128xf32>
    %1121 = vector.extract_strided_slice %1118 {offsets = [0, 256], sizes = [4, 128], strides = [1, 1]} : vector<4x640xf32> to vector<4x128xf32>
    %1122 = vector.extract_strided_slice %1118 {offsets = [0, 384], sizes = [4, 128], strides = [1, 1]} : vector<4x640xf32> to vector<4x128xf32>
    %1123 = vector.extract_strided_slice %1118 {offsets = [0, 512], sizes = [4, 128], strides = [1, 1]} : vector<4x640xf32> to vector<4x128xf32>
    %1124 = vector.broadcast %1 : vector<1x128xf32> to vector<4x128xf32>
    %1125 = arith.mulf %1102, %1124 : vector<4x128xf32>
    %1126 = arith.addf %1119, %1125 : vector<4x128xf32>
    %1127 = vector.broadcast %21 : vector<1x128xf32> to vector<4x128xf32>
    %1128 = arith.addf %1126, %1127 : vector<4x128xf32>
    %1129 = math.tanh %1128 : vector<4x128xf32>
    %1130 = vector.broadcast %13 : vector<1x128xf32> to vector<4x128xf32>
    %1131 = arith.mulf %1102, %1130 : vector<4x128xf32>
    %1132 = arith.addf %1131, %1032 : vector<4x128xf32>
    %1133 = vector.broadcast %33 : vector<1x128xf32> to vector<4x128xf32>
    %1134 = arith.addf %1132, %1133 : vector<4x128xf32>
    %cst_342 = arith.constant 0.000000e+00 : f32
    %1135 = vector.broadcast %cst_342 : f32 to vector<4x128xf32>
    %1136 = arith.subf %1135, %1134 : vector<4x128xf32>
    %1137 = math.exp %1136 : vector<4x128xf32>
    %cst_343 = arith.constant 1.000000e+00 : f32
    %1138 = vector.broadcast %cst_343 : f32 to vector<4x128xf32>
    %1139 = arith.addf %1138, %1137 : vector<4x128xf32>
    %1140 = tpu.reciprocal %1139 {approx = true} : vector<4x128xf32> -> vector<4x128xf32>
    %c0_344 = arith.constant 0 : index
    %c0_345 = arith.constant 0 : index
    %1141 = vector.load %arg2[%c0_344, %c0_345] : memref<128x256xbf16, #tpu.memory_space<vmem>>, vector<128x128xbf16>
    %1142 = arith.truncf %1129 : vector<4x128xf32> to vector<4x128xbf16>
    %cst_346 = arith.constant dense<0.000000e+00> : vector<4x128xf32>
    %1143 = tpu.matmul %1142, %1141, %cst_346 {dimension_numbers = #tpu.dot_dimension_numbers<[1], [0], [0], [1], [0, 0, 1, 1], [], []>} : vector<4x128xbf16>, vector<128x128xbf16>, vector<4x128xf32> -> vector<4x128xf32>
    %1144 = arith.addf %1034, %1143 : vector<4x128xf32>
    %cst_347 = arith.constant 0.000000e+00 : f32
    %1145 = vector.broadcast %cst_347 : f32 to vector<4x128xf32>
    %1146 = arith.subf %1145, %1144 : vector<4x128xf32>
    %1147 = math.exp %1146 : vector<4x128xf32>
    %cst_348 = arith.constant 1.000000e+00 : f32
    %1148 = vector.broadcast %cst_348 : f32 to vector<4x128xf32>
    %1149 = arith.addf %1148, %1147 : vector<4x128xf32>
    %1150 = tpu.reciprocal %1149 {approx = true} : vector<4x128xf32> -> vector<4x128xf32>
    %1151 = vector.broadcast %3 : vector<1x128xf32> to vector<4x128xf32>
    %1152 = arith.mulf %1102, %1151 : vector<4x128xf32>
    %1153 = arith.addf %1152, %1120 : vector<4x128xf32>
    %1154 = vector.broadcast %15 : vector<1x128xf32> to vector<4x128xf32>
    %1155 = arith.mulf %1062, %1154 : vector<4x128xf32>
    %1156 = arith.addf %1153, %1155 : vector<4x128xf32>
    %1157 = vector.broadcast %23 : vector<1x128xf32> to vector<4x128xf32>
    %1158 = arith.mulf %1157, %1150 : vector<4x128xf32>
    %1159 = arith.addf %1156, %1158 : vector<4x128xf32>
    %cst_349 = arith.constant 0.000000e+00 : f32
    %1160 = vector.broadcast %cst_349 : f32 to vector<4x128xf32>
    %1161 = arith.subf %1160, %1159 : vector<4x128xf32>
    %1162 = math.exp %1161 : vector<4x128xf32>
    %cst_350 = arith.constant 1.000000e+00 : f32
    %1163 = vector.broadcast %cst_350 : f32 to vector<4x128xf32>
    %1164 = arith.addf %1163, %1162 : vector<4x128xf32>
    %1165 = tpu.reciprocal %1164 {approx = true} : vector<4x128xf32> -> vector<4x128xf32>
    %1166 = vector.broadcast %5 : vector<1x128xf32> to vector<4x128xf32>
    %1167 = arith.mulf %1102, %1166 : vector<4x128xf32>
    %1168 = arith.addf %1167, %1121 : vector<4x128xf32>
    %1169 = vector.broadcast %17 : vector<1x128xf32> to vector<4x128xf32>
    %1170 = arith.mulf %1062, %1169 : vector<4x128xf32>
    %1171 = arith.addf %1168, %1170 : vector<4x128xf32>
    %1172 = vector.broadcast %25 : vector<1x128xf32> to vector<4x128xf32>
    %1173 = arith.addf %1171, %1172 : vector<4x128xf32>
    %1174 = arith.addf %1173, %1129 : vector<4x128xf32>
    %cst_351 = arith.constant 0.000000e+00 : f32
    %1175 = vector.broadcast %cst_351 : f32 to vector<4x128xf32>
    %1176 = arith.subf %1175, %1174 : vector<4x128xf32>
    %1177 = math.exp %1176 : vector<4x128xf32>
    %cst_352 = arith.constant 1.000000e+00 : f32
    %1178 = vector.broadcast %cst_352 : f32 to vector<4x128xf32>
    %1179 = arith.addf %1178, %1177 : vector<4x128xf32>
    %1180 = tpu.reciprocal %1179 {approx = true} : vector<4x128xf32> -> vector<4x128xf32>
    %1181 = arith.mulf %1180, %1030 : vector<4x128xf32>
    %cst_353 = arith.constant 1.000000e+00 : f32
    %1182 = vector.broadcast %cst_353 : f32 to vector<4x128xf32>
    %1183 = arith.subf %1182, %1180 : vector<4x128xf32>
    %1184 = arith.mulf %1183, %1150 : vector<4x128xf32>
    %1185 = arith.addf %1181, %1184 : vector<4x128xf32>
    %1186 = vector.broadcast %9 : vector<1x128xf32> to vector<4x128xf32>
    %1187 = arith.mulf %1102, %1186 : vector<4x128xf32>
    %1188 = arith.addf %1187, %1123 : vector<4x128xf32>
    %1189 = vector.broadcast %29 : vector<1x128xf32> to vector<4x128xf32>
    %1190 = arith.addf %1188, %1189 : vector<4x128xf32>
    %1191 = math.tanh %1190 : vector<4x128xf32>
    %1192 = arith.addf %1185, %1140 : vector<4x128xf32>
    %1193 = arith.mulf %1192, %1062 : vector<4x128xf32>
    %1194 = arith.mulf %1165, %1129 : vector<4x128xf32>
    %1195 = arith.mulf %1194, %1140 : vector<4x128xf32>
    %1196 = arith.mulf %1195, %1191 : vector<4x128xf32>
    %1197 = arith.addf %1193, %1196 : vector<4x128xf32>
    %1198 = vector.broadcast %7 : vector<1x128xf32> to vector<4x128xf32>
    %1199 = arith.mulf %1102, %1198 : vector<4x128xf32>
    %1200 = arith.addf %1199, %1122 : vector<4x128xf32>
    %1201 = arith.addf %1200, %1140 : vector<4x128xf32>
    %1202 = arith.addf %1201, %1114 : vector<4x128xf32>
    %1203 = vector.broadcast %19 : vector<1x128xf32> to vector<4x128xf32>
    %1204 = arith.mulf %1197, %1203 : vector<4x128xf32>
    %1205 = arith.addf %1202, %1204 : vector<4x128xf32>
    %1206 = vector.broadcast %27 : vector<1x128xf32> to vector<4x128xf32>
    %1207 = arith.addf %1205, %1206 : vector<4x128xf32>
    %cst_354 = arith.constant 0.000000e+00 : f32
    %1208 = vector.broadcast %cst_354 : f32 to vector<4x128xf32>
    %1209 = arith.subf %1208, %1207 : vector<4x128xf32>
    %1210 = math.exp %1209 : vector<4x128xf32>
    %cst_355 = arith.constant 1.000000e+00 : f32
    %1211 = vector.broadcast %cst_355 : f32 to vector<4x128xf32>
    %1212 = arith.addf %1211, %1210 : vector<4x128xf32>
    %1213 = tpu.reciprocal %1212 {approx = true} : vector<4x128xf32> -> vector<4x128xf32>
    %1214 = arith.addf %1197, %1114 : vector<4x128xf32>
    %1215 = math.tanh %1214 : vector<4x128xf32>
    %1216 = arith.mulf %1213, %1215 : vector<4x128xf32>
    %1217 = vector.extract_strided_slice %1216 {offsets = [0, 0], sizes = [2, 128], strides = [1, 1]} : vector<4x128xf32> to vector<2x128xf32>
    %1218 = vector.broadcast %47 : vector<1x128xf32> to vector<2x128xf32>
    %1219 = arith.mulf %1217, %1218 : vector<2x128xf32>
    %1220 = vector.extract_strided_slice %1216 {offsets = [2, 0], sizes = [2, 128], strides = [1, 1]} : vector<4x128xf32> to vector<2x128xf32>
    %1221 = vector.broadcast %49 : vector<1x128xf32> to vector<2x128xf32>
    %1222 = arith.mulf %1220, %1221 : vector<2x128xf32>
    %1223 = arith.addf %1219, %1222 : vector<2x128xf32>
    %c6_356 = arith.constant 6 : index
    %c0_357 = arith.constant 0 : index
    %c0_358 = arith.constant 0 : index
    %1224 = vector.load %arg0[%c6_356, %c0_357, %c0_358] : memref<56x4x128xf32, #tpu.memory_space<vmem>>, vector<1x4x128xf32>
    %1225 = vector.shape_cast %1224 : vector<1x4x128xf32> to vector<4x128xf32>
    %c14_359 = arith.constant 14 : index
    %c0_360 = arith.constant 0 : index
    %c0_361 = arith.constant 0 : index
    %1226 = vector.load %arg0[%c14_359, %c0_360, %c0_361] : memref<56x4x128xf32, #tpu.memory_space<vmem>>, vector<1x4x128xf32>
    %1227 = vector.shape_cast %1226 : vector<1x4x128xf32> to vector<4x128xf32>
    %c22_362 = arith.constant 22 : index
    %c0_363 = arith.constant 0 : index
    %c0_364 = arith.constant 0 : index
    %1228 = vector.load %arg0[%c22_362, %c0_363, %c0_364] : memref<56x4x128xf32, #tpu.memory_space<vmem>>, vector<1x4x128xf32>
    %1229 = vector.shape_cast %1228 : vector<1x4x128xf32> to vector<4x128xf32>
    %c30 = arith.constant 30 : index
    %c0_365 = arith.constant 0 : index
    %c0_366 = arith.constant 0 : index
    %1230 = vector.load %arg0[%c30, %c0_365, %c0_366] : memref<56x4x128xf32, #tpu.memory_space<vmem>>, vector<1x4x128xf32>
    %1231 = vector.shape_cast %1230 : vector<1x4x128xf32> to vector<4x128xf32>
    %c38 = arith.constant 38 : index
    %c0_367 = arith.constant 0 : index
    %c0_368 = arith.constant 0 : index
    %1232 = vector.load %arg0[%c38, %c0_367, %c0_368] : memref<56x4x128xf32, #tpu.memory_space<vmem>>, vector<1x4x128xf32>
    %1233 = vector.shape_cast %1232 : vector<1x4x128xf32> to vector<4x128xf32>
    %c46 = arith.constant 46 : index
    %c0_369 = arith.constant 0 : index
    %c0_370 = arith.constant 0 : index
    %1234 = vector.load %arg0[%c46, %c0_369, %c0_370] : memref<56x4x128xf32, #tpu.memory_space<vmem>>, vector<1x4x128xf32>
    %1235 = vector.shape_cast %1234 : vector<1x4x128xf32> to vector<4x128xf32>
    %c54 = arith.constant 54 : index
    %c0_371 = arith.constant 0 : index
    %c0_372 = arith.constant 0 : index
    %1236 = vector.load %arg0[%c54, %c0_371, %c0_372] : memref<56x4x128xf32, #tpu.memory_space<vmem>>, vector<1x4x128xf32>
    %1237 = vector.shape_cast %1236 : vector<1x4x128xf32> to vector<4x128xf32>
    %1238 = tpu.concatenate %1216, %1197 in 0 : vector<4x128xf32>, vector<4x128xf32> -> vector<8x128xf32>
    %c0_373 = arith.constant 0 : index
    %c0_374 = arith.constant 0 : index
    %1239 = vector.load %arg2[%c0_373, %c0_374] : memref<128x256xbf16, #tpu.memory_space<vmem>>, vector<128x256xbf16>
    %1240 = arith.truncf %1238 : vector<8x128xf32> to vector<8x128xbf16>
    %cst_375 = arith.constant dense<0.000000e+00> : vector<8x256xf32>
    %1241 = tpu.matmul %1240, %1239, %cst_375 {dimension_numbers = #tpu.dot_dimension_numbers<[1], [0], [0], [1], [0, 0, 1, 1], [], []>} : vector<8x128xbf16>, vector<128x256xbf16>, vector<8x256xf32> -> vector<8x256xf32>
    %1242 = vector.extract_strided_slice %1241 {offsets = [0, 0], sizes = [4, 128], strides = [1, 1]} : vector<8x256xf32> to vector<4x128xf32>
    %1243 = arith.addf %1229, %1242 : vector<4x128xf32>
    %cst_376 = arith.constant 0.000000e+00 : f32
    %1244 = vector.broadcast %cst_376 : f32 to vector<4x128xf32>
    %1245 = arith.subf %1244, %1243 : vector<4x128xf32>
    %1246 = math.exp %1245 : vector<4x128xf32>
    %cst_377 = arith.constant 1.000000e+00 : f32
    %1247 = vector.broadcast %cst_377 : f32 to vector<4x128xf32>
    %1248 = arith.addf %1247, %1246 : vector<4x128xf32>
    %1249 = tpu.reciprocal %1248 {approx = true} : vector<4x128xf32> -> vector<4x128xf32>
    %1250 = vector.extract_strided_slice %1241 {offsets = [4, 128], sizes = [4, 128], strides = [1, 1]} : vector<8x256xf32> to vector<4x128xf32>
    %1251 = math.tanh %1250 : vector<4x128xf32>
    %1252 = arith.mulf %1225, %1249 : vector<4x128xf32>
    %1253 = arith.mulf %1251, %1252 : vector<4x128xf32>
    %1254 = arith.subf %1197, %1251 : vector<4x128xf32>
    %cst_378 = arith.constant 2.000000e+00 : f32
    %1255 = vector.broadcast %cst_378 : f32 to vector<4x128xf32>
    %1256 = arith.mulf %1255, %1253 : vector<4x128xf32>
    %1257 = arith.addf %1254, %1256 : vector<4x128xf32>
    %c0_379 = arith.constant 0 : index
    %c0_380 = arith.constant 0 : index
    %1258 = vector.load %arg2[%c0_379, %c0_380] : memref<128x256xbf16, #tpu.memory_space<vmem>>, vector<128x128xbf16>
    %1259 = arith.truncf %1257 : vector<4x128xf32> to vector<4x128xbf16>
    %cst_381 = arith.constant dense<0.000000e+00> : vector<4x128xf32>
    %1260 = tpu.matmul %1259, %1258, %cst_381 {dimension_numbers = #tpu.dot_dimension_numbers<[1], [0], [0], [1], [0, 0, 1, 1], [], []>} : vector<4x128xbf16>, vector<128x128xbf16>, vector<4x128xf32> -> vector<4x128xf32>
    %1261 = arith.addf %1229, %1260 : vector<4x128xf32>
    %cst_382 = arith.constant 0.000000e+00 : f32
    %1262 = vector.broadcast %cst_382 : f32 to vector<4x128xf32>
    %1263 = arith.subf %1262, %1261 : vector<4x128xf32>
    %1264 = math.exp %1263 : vector<4x128xf32>
    %cst_383 = arith.constant 1.000000e+00 : f32
    %1265 = vector.broadcast %cst_383 : f32 to vector<4x128xf32>
    %1266 = arith.addf %1265, %1264 : vector<4x128xf32>
    %1267 = tpu.reciprocal %1266 {approx = true} : vector<4x128xf32> -> vector<4x128xf32>
    %1268 = vector.broadcast %43 : vector<1x128xf32> to vector<4x128xf32>
    %1269 = arith.mulf %1249, %1268 : vector<4x128xf32>
    %1270 = vector.broadcast %45 : vector<1x128xf32> to vector<4x128xf32>
    %1271 = arith.mulf %1267, %1270 : vector<4x128xf32>
    %1272 = arith.addf %1269, %1271 : vector<4x128xf32>
    %1273 = vector.broadcast %39 : vector<1x128xf32> to vector<4x128xf32>
    %1274 = arith.mulf %1249, %1273 : vector<4x128xf32>
    %1275 = vector.broadcast %41 : vector<1x128xf32> to vector<4x128xf32>
    %1276 = arith.mulf %1267, %1275 : vector<4x128xf32>
    %1277 = arith.addf %1274, %1276 : vector<4x128xf32>
    %1278 = tpu.concatenate %1272, %1277 in 0 : vector<4x128xf32>, vector<4x128xf32> -> vector<8x128xf32>
    %1279 = arith.truncf %1278 : vector<8x128xf32> to vector<8x128xbf16>
    %cst_384 = arith.constant dense<0.000000e+00> : vector<8x128xf32>
    %1280 = tpu.matmul %1279, %50, %cst_384 {dimension_numbers = #tpu.dot_dimension_numbers<[1], [0], [0], [1], [0, 0, 1, 1], [], []>} : vector<8x128xbf16>, vector<128x128xbf16>, vector<8x128xf32> -> vector<8x128xf32>
    %1281 = vector.extract_strided_slice %1280 {offsets = [0, 0], sizes = [4, 128], strides = [1, 1]} : vector<8x128xf32> to vector<4x128xf32>
    %1282 = vector.broadcast %37 : vector<1x128xf32> to vector<4x128xf32>
    %1283 = arith.addf %1281, %1282 : vector<4x128xf32>
    %1284 = math.tanh %1283 : vector<4x128xf32>
    %1285 = vector.extract_strided_slice %1280 {offsets = [4, 0], sizes = [4, 128], strides = [1, 1]} : vector<8x128xf32> to vector<4x128xf32>
    %1286 = vector.broadcast %35 : vector<1x128xf32> to vector<4x128xf32>
    %1287 = arith.addf %1285, %1286 : vector<4x128xf32>
    %1288 = math.tanh %1287 : vector<4x128xf32>
    %1289 = tpu.concatenate %1284, %1288 in 0 : vector<4x128xf32>, vector<4x128xf32> -> vector<8x128xf32>
    %1290 = arith.truncf %1289 : vector<8x128xf32> to vector<8x128xbf16>
    %cst_385 = arith.constant dense<0.000000e+00> : vector<8x128xf32>
    %1291 = tpu.matmul %1290, %50, %cst_385 {dimension_numbers = #tpu.dot_dimension_numbers<[1], [0], [0], [1], [0, 0, 1, 1], [], []>} : vector<8x128xbf16>, vector<128x128xbf16>, vector<8x128xf32> -> vector<8x128xf32>
    %1292 = vector.extract_strided_slice %1291 {offsets = [0, 0], sizes = [4, 128], strides = [1, 1]} : vector<8x128xf32> to vector<4x128xf32>
    %1293 = arith.mulf %1235, %1292 : vector<4x128xf32>
    %1294 = arith.addf %1293, %1237 : vector<4x128xf32>
    %1295 = vector.extract_strided_slice %1291 {offsets = [4, 0], sizes = [4, 128], strides = [1, 1]} : vector<8x128xf32> to vector<4x128xf32>
    %1296 = arith.mulf %1231, %1295 : vector<4x128xf32>
    %1297 = arith.addf %1296, %1233 : vector<4x128xf32>
    %1298 = vector.broadcast %11 : vector<1x128xf32> to vector<4x128xf32>
    %1299 = arith.mulf %1294, %1298 : vector<4x128xf32>
    %1300 = vector.broadcast %31 : vector<1x128xf32> to vector<4x128xf32>
    %1301 = arith.addf %1299, %1300 : vector<4x128xf32>
    %cst_386 = arith.constant 0.000000e+00 : f32
    %1302 = vector.broadcast %cst_386 : f32 to vector<4x128xf32>
    %1303 = arith.cmpf ogt, %1301, %1302 : vector<4x128xf32>
    %cst_387 = arith.constant 0.000000e+00 : f32
    %1304 = vector.broadcast %cst_387 : f32 to vector<4x128xf32>
    %1305 = arith.minimumf %1301, %1304 : vector<4x128xf32>
    %1306 = math.exp %1305 : vector<4x128xf32>
    %cst_388 = arith.constant 1.000000e+00 : f32
    %1307 = vector.broadcast %cst_388 : f32 to vector<4x128xf32>
    %1308 = arith.subf %1306, %1307 : vector<4x128xf32>
    %1309 = arith.select %1303, %1301, %1308 : vector<4x128xi1>, vector<4x128xf32>
    %1310 = arith.addf %1216, %1309 : vector<4x128xf32>
    %c0_389 = arith.constant 0 : index
    %c0_390 = arith.constant 0 : index
    %1311 = vector.load %arg3[%c0_389, %c0_390] : memref<128x640xbf16, #tpu.memory_space<vmem>>, vector<128x640xbf16>
    %1312 = arith.truncf %1310 : vector<4x128xf32> to vector<4x128xbf16>
    %cst_391 = arith.constant dense<0.000000e+00> : vector<4x640xf32>
    %1313 = tpu.matmul %1312, %1311, %cst_391 {dimension_numbers = #tpu.dot_dimension_numbers<[1], [0], [0], [1], [0, 0, 1, 1], [], []>} : vector<4x128xbf16>, vector<128x640xbf16>, vector<4x640xf32> -> vector<4x640xf32>
    %1314 = vector.extract_strided_slice %1313 {offsets = [0, 0], sizes = [4, 128], strides = [1, 1]} : vector<4x640xf32> to vector<4x128xf32>
    %1315 = vector.extract_strided_slice %1313 {offsets = [0, 128], sizes = [4, 128], strides = [1, 1]} : vector<4x640xf32> to vector<4x128xf32>
    %1316 = vector.extract_strided_slice %1313 {offsets = [0, 256], sizes = [4, 128], strides = [1, 1]} : vector<4x640xf32> to vector<4x128xf32>
    %1317 = vector.extract_strided_slice %1313 {offsets = [0, 384], sizes = [4, 128], strides = [1, 1]} : vector<4x640xf32> to vector<4x128xf32>
    %1318 = vector.extract_strided_slice %1313 {offsets = [0, 512], sizes = [4, 128], strides = [1, 1]} : vector<4x640xf32> to vector<4x128xf32>
    %1319 = vector.broadcast %1 : vector<1x128xf32> to vector<4x128xf32>
    %1320 = arith.mulf %1297, %1319 : vector<4x128xf32>
    %1321 = arith.addf %1314, %1320 : vector<4x128xf32>
    %1322 = vector.broadcast %21 : vector<1x128xf32> to vector<4x128xf32>
    %1323 = arith.addf %1321, %1322 : vector<4x128xf32>
    %1324 = math.tanh %1323 : vector<4x128xf32>
    %1325 = vector.broadcast %13 : vector<1x128xf32> to vector<4x128xf32>
    %1326 = arith.mulf %1297, %1325 : vector<4x128xf32>
    %1327 = arith.addf %1326, %1227 : vector<4x128xf32>
    %1328 = vector.broadcast %33 : vector<1x128xf32> to vector<4x128xf32>
    %1329 = arith.addf %1327, %1328 : vector<4x128xf32>
    %cst_392 = arith.constant 0.000000e+00 : f32
    %1330 = vector.broadcast %cst_392 : f32 to vector<4x128xf32>
    %1331 = arith.subf %1330, %1329 : vector<4x128xf32>
    %1332 = math.exp %1331 : vector<4x128xf32>
    %cst_393 = arith.constant 1.000000e+00 : f32
    %1333 = vector.broadcast %cst_393 : f32 to vector<4x128xf32>
    %1334 = arith.addf %1333, %1332 : vector<4x128xf32>
    %1335 = tpu.reciprocal %1334 {approx = true} : vector<4x128xf32> -> vector<4x128xf32>
    %c0_394 = arith.constant 0 : index
    %c0_395 = arith.constant 0 : index
    %1336 = vector.load %arg2[%c0_394, %c0_395] : memref<128x256xbf16, #tpu.memory_space<vmem>>, vector<128x128xbf16>
    %1337 = arith.truncf %1324 : vector<4x128xf32> to vector<4x128xbf16>
    %cst_396 = arith.constant dense<0.000000e+00> : vector<4x128xf32>
    %1338 = tpu.matmul %1337, %1336, %cst_396 {dimension_numbers = #tpu.dot_dimension_numbers<[1], [0], [0], [1], [0, 0, 1, 1], [], []>} : vector<4x128xbf16>, vector<128x128xbf16>, vector<4x128xf32> -> vector<4x128xf32>
    %1339 = arith.addf %1229, %1338 : vector<4x128xf32>
    %cst_397 = arith.constant 0.000000e+00 : f32
    %1340 = vector.broadcast %cst_397 : f32 to vector<4x128xf32>
    %1341 = arith.subf %1340, %1339 : vector<4x128xf32>
    %1342 = math.exp %1341 : vector<4x128xf32>
    %cst_398 = arith.constant 1.000000e+00 : f32
    %1343 = vector.broadcast %cst_398 : f32 to vector<4x128xf32>
    %1344 = arith.addf %1343, %1342 : vector<4x128xf32>
    %1345 = tpu.reciprocal %1344 {approx = true} : vector<4x128xf32> -> vector<4x128xf32>
    %1346 = vector.broadcast %3 : vector<1x128xf32> to vector<4x128xf32>
    %1347 = arith.mulf %1297, %1346 : vector<4x128xf32>
    %1348 = arith.addf %1347, %1315 : vector<4x128xf32>
    %1349 = vector.broadcast %15 : vector<1x128xf32> to vector<4x128xf32>
    %1350 = arith.mulf %1257, %1349 : vector<4x128xf32>
    %1351 = arith.addf %1348, %1350 : vector<4x128xf32>
    %1352 = vector.broadcast %23 : vector<1x128xf32> to vector<4x128xf32>
    %1353 = arith.mulf %1352, %1345 : vector<4x128xf32>
    %1354 = arith.addf %1351, %1353 : vector<4x128xf32>
    %cst_399 = arith.constant 0.000000e+00 : f32
    %1355 = vector.broadcast %cst_399 : f32 to vector<4x128xf32>
    %1356 = arith.subf %1355, %1354 : vector<4x128xf32>
    %1357 = math.exp %1356 : vector<4x128xf32>
    %cst_400 = arith.constant 1.000000e+00 : f32
    %1358 = vector.broadcast %cst_400 : f32 to vector<4x128xf32>
    %1359 = arith.addf %1358, %1357 : vector<4x128xf32>
    %1360 = tpu.reciprocal %1359 {approx = true} : vector<4x128xf32> -> vector<4x128xf32>
    %1361 = vector.broadcast %5 : vector<1x128xf32> to vector<4x128xf32>
    %1362 = arith.mulf %1297, %1361 : vector<4x128xf32>
    %1363 = arith.addf %1362, %1316 : vector<4x128xf32>
    %1364 = vector.broadcast %17 : vector<1x128xf32> to vector<4x128xf32>
    %1365 = arith.mulf %1257, %1364 : vector<4x128xf32>
    %1366 = arith.addf %1363, %1365 : vector<4x128xf32>
    %1367 = vector.broadcast %25 : vector<1x128xf32> to vector<4x128xf32>
    %1368 = arith.addf %1366, %1367 : vector<4x128xf32>
    %1369 = arith.addf %1368, %1324 : vector<4x128xf32>
    %cst_401 = arith.constant 0.000000e+00 : f32
    %1370 = vector.broadcast %cst_401 : f32 to vector<4x128xf32>
    %1371 = arith.subf %1370, %1369 : vector<4x128xf32>
    %1372 = math.exp %1371 : vector<4x128xf32>
    %cst_402 = arith.constant 1.000000e+00 : f32
    %1373 = vector.broadcast %cst_402 : f32 to vector<4x128xf32>
    %1374 = arith.addf %1373, %1372 : vector<4x128xf32>
    %1375 = tpu.reciprocal %1374 {approx = true} : vector<4x128xf32> -> vector<4x128xf32>
    %1376 = arith.mulf %1375, %1225 : vector<4x128xf32>
    %cst_403 = arith.constant 1.000000e+00 : f32
    %1377 = vector.broadcast %cst_403 : f32 to vector<4x128xf32>
    %1378 = arith.subf %1377, %1375 : vector<4x128xf32>
    %1379 = arith.mulf %1378, %1345 : vector<4x128xf32>
    %1380 = arith.addf %1376, %1379 : vector<4x128xf32>
    %1381 = vector.broadcast %9 : vector<1x128xf32> to vector<4x128xf32>
    %1382 = arith.mulf %1297, %1381 : vector<4x128xf32>
    %1383 = arith.addf %1382, %1318 : vector<4x128xf32>
    %1384 = vector.broadcast %29 : vector<1x128xf32> to vector<4x128xf32>
    %1385 = arith.addf %1383, %1384 : vector<4x128xf32>
    %1386 = math.tanh %1385 : vector<4x128xf32>
    %1387 = arith.addf %1380, %1335 : vector<4x128xf32>
    %1388 = arith.mulf %1387, %1257 : vector<4x128xf32>
    %1389 = arith.mulf %1360, %1324 : vector<4x128xf32>
    %1390 = arith.mulf %1389, %1335 : vector<4x128xf32>
    %1391 = arith.mulf %1390, %1386 : vector<4x128xf32>
    %1392 = arith.addf %1388, %1391 : vector<4x128xf32>
    %1393 = vector.broadcast %7 : vector<1x128xf32> to vector<4x128xf32>
    %1394 = arith.mulf %1297, %1393 : vector<4x128xf32>
    %1395 = arith.addf %1394, %1317 : vector<4x128xf32>
    %1396 = arith.addf %1395, %1335 : vector<4x128xf32>
    %1397 = arith.addf %1396, %1309 : vector<4x128xf32>
    %1398 = vector.broadcast %19 : vector<1x128xf32> to vector<4x128xf32>
    %1399 = arith.mulf %1392, %1398 : vector<4x128xf32>
    %1400 = arith.addf %1397, %1399 : vector<4x128xf32>
    %1401 = vector.broadcast %27 : vector<1x128xf32> to vector<4x128xf32>
    %1402 = arith.addf %1400, %1401 : vector<4x128xf32>
    %cst_404 = arith.constant 0.000000e+00 : f32
    %1403 = vector.broadcast %cst_404 : f32 to vector<4x128xf32>
    %1404 = arith.subf %1403, %1402 : vector<4x128xf32>
    %1405 = math.exp %1404 : vector<4x128xf32>
    %cst_405 = arith.constant 1.000000e+00 : f32
    %1406 = vector.broadcast %cst_405 : f32 to vector<4x128xf32>
    %1407 = arith.addf %1406, %1405 : vector<4x128xf32>
    %1408 = tpu.reciprocal %1407 {approx = true} : vector<4x128xf32> -> vector<4x128xf32>
    %1409 = arith.addf %1392, %1309 : vector<4x128xf32>
    %1410 = math.tanh %1409 : vector<4x128xf32>
    %1411 = arith.mulf %1408, %1410 : vector<4x128xf32>
    %1412 = vector.extract_strided_slice %1411 {offsets = [0, 0], sizes = [2, 128], strides = [1, 1]} : vector<4x128xf32> to vector<2x128xf32>
    %1413 = vector.broadcast %47 : vector<1x128xf32> to vector<2x128xf32>
    %1414 = arith.mulf %1412, %1413 : vector<2x128xf32>
    %1415 = vector.extract_strided_slice %1411 {offsets = [2, 0], sizes = [2, 128], strides = [1, 1]} : vector<4x128xf32> to vector<2x128xf32>
    %1416 = vector.broadcast %49 : vector<1x128xf32> to vector<2x128xf32>
    %1417 = arith.mulf %1415, %1416 : vector<2x128xf32>
    %1418 = arith.addf %1414, %1417 : vector<2x128xf32>
    %c7_406 = arith.constant 7 : index
    %c0_407 = arith.constant 0 : index
    %c0_408 = arith.constant 0 : index
    %1419 = vector.load %arg0[%c7_406, %c0_407, %c0_408] : memref<56x4x128xf32, #tpu.memory_space<vmem>>, vector<1x4x128xf32>
    %1420 = vector.shape_cast %1419 : vector<1x4x128xf32> to vector<4x128xf32>
    %c15_409 = arith.constant 15 : index
    %c0_410 = arith.constant 0 : index
    %c0_411 = arith.constant 0 : index
    %1421 = vector.load %arg0[%c15_409, %c0_410, %c0_411] : memref<56x4x128xf32, #tpu.memory_space<vmem>>, vector<1x4x128xf32>
    %1422 = vector.shape_cast %1421 : vector<1x4x128xf32> to vector<4x128xf32>
    %c23_412 = arith.constant 23 : index
    %c0_413 = arith.constant 0 : index
    %c0_414 = arith.constant 0 : index
    %1423 = vector.load %arg0[%c23_412, %c0_413, %c0_414] : memref<56x4x128xf32, #tpu.memory_space<vmem>>, vector<1x4x128xf32>
    %1424 = vector.shape_cast %1423 : vector<1x4x128xf32> to vector<4x128xf32>
    %c31 = arith.constant 31 : index
    %c0_415 = arith.constant 0 : index
    %c0_416 = arith.constant 0 : index
    %1425 = vector.load %arg0[%c31, %c0_415, %c0_416] : memref<56x4x128xf32, #tpu.memory_space<vmem>>, vector<1x4x128xf32>
    %1426 = vector.shape_cast %1425 : vector<1x4x128xf32> to vector<4x128xf32>
    %c39 = arith.constant 39 : index
    %c0_417 = arith.constant 0 : index
    %c0_418 = arith.constant 0 : index
    %1427 = vector.load %arg0[%c39, %c0_417, %c0_418] : memref<56x4x128xf32, #tpu.memory_space<vmem>>, vector<1x4x128xf32>
    %1428 = vector.shape_cast %1427 : vector<1x4x128xf32> to vector<4x128xf32>
    %c47 = arith.constant 47 : index
    %c0_419 = arith.constant 0 : index
    %c0_420 = arith.constant 0 : index
    %1429 = vector.load %arg0[%c47, %c0_419, %c0_420] : memref<56x4x128xf32, #tpu.memory_space<vmem>>, vector<1x4x128xf32>
    %1430 = vector.shape_cast %1429 : vector<1x4x128xf32> to vector<4x128xf32>
    %c55 = arith.constant 55 : index
    %c0_421 = arith.constant 0 : index
    %c0_422 = arith.constant 0 : index
    %1431 = vector.load %arg0[%c55, %c0_421, %c0_422] : memref<56x4x128xf32, #tpu.memory_space<vmem>>, vector<1x4x128xf32>
    %1432 = vector.shape_cast %1431 : vector<1x4x128xf32> to vector<4x128xf32>
    %1433 = tpu.concatenate %1411, %1392 in 0 : vector<4x128xf32>, vector<4x128xf32> -> vector<8x128xf32>
    %c0_423 = arith.constant 0 : index
    %c0_424 = arith.constant 0 : index
    %1434 = vector.load %arg2[%c0_423, %c0_424] : memref<128x256xbf16, #tpu.memory_space<vmem>>, vector<128x256xbf16>
    %1435 = arith.truncf %1433 : vector<8x128xf32> to vector<8x128xbf16>
    %cst_425 = arith.constant dense<0.000000e+00> : vector<8x256xf32>
    %1436 = tpu.matmul %1435, %1434, %cst_425 {dimension_numbers = #tpu.dot_dimension_numbers<[1], [0], [0], [1], [0, 0, 1, 1], [], []>} : vector<8x128xbf16>, vector<128x256xbf16>, vector<8x256xf32> -> vector<8x256xf32>
    %1437 = vector.extract_strided_slice %1436 {offsets = [0, 0], sizes = [4, 128], strides = [1, 1]} : vector<8x256xf32> to vector<4x128xf32>
    %1438 = arith.addf %1424, %1437 : vector<4x128xf32>
    %cst_426 = arith.constant 0.000000e+00 : f32
    %1439 = vector.broadcast %cst_426 : f32 to vector<4x128xf32>
    %1440 = arith.subf %1439, %1438 : vector<4x128xf32>
    %1441 = math.exp %1440 : vector<4x128xf32>
    %cst_427 = arith.constant 1.000000e+00 : f32
    %1442 = vector.broadcast %cst_427 : f32 to vector<4x128xf32>
    %1443 = arith.addf %1442, %1441 : vector<4x128xf32>
    %1444 = tpu.reciprocal %1443 {approx = true} : vector<4x128xf32> -> vector<4x128xf32>
    %1445 = vector.extract_strided_slice %1436 {offsets = [4, 128], sizes = [4, 128], strides = [1, 1]} : vector<8x256xf32> to vector<4x128xf32>
    %1446 = math.tanh %1445 : vector<4x128xf32>
    %1447 = arith.mulf %1420, %1444 : vector<4x128xf32>
    %1448 = arith.mulf %1446, %1447 : vector<4x128xf32>
    %1449 = arith.subf %1392, %1446 : vector<4x128xf32>
    %cst_428 = arith.constant 2.000000e+00 : f32
    %1450 = vector.broadcast %cst_428 : f32 to vector<4x128xf32>
    %1451 = arith.mulf %1450, %1448 : vector<4x128xf32>
    %1452 = arith.addf %1449, %1451 : vector<4x128xf32>
    %c0_429 = arith.constant 0 : index
    %c0_430 = arith.constant 0 : index
    %1453 = vector.load %arg2[%c0_429, %c0_430] : memref<128x256xbf16, #tpu.memory_space<vmem>>, vector<128x128xbf16>
    %1454 = arith.truncf %1452 : vector<4x128xf32> to vector<4x128xbf16>
    %cst_431 = arith.constant dense<0.000000e+00> : vector<4x128xf32>
    %1455 = tpu.matmul %1454, %1453, %cst_431 {dimension_numbers = #tpu.dot_dimension_numbers<[1], [0], [0], [1], [0, 0, 1, 1], [], []>} : vector<4x128xbf16>, vector<128x128xbf16>, vector<4x128xf32> -> vector<4x128xf32>
    %1456 = arith.addf %1424, %1455 : vector<4x128xf32>
    %cst_432 = arith.constant 0.000000e+00 : f32
    %1457 = vector.broadcast %cst_432 : f32 to vector<4x128xf32>
    %1458 = arith.subf %1457, %1456 : vector<4x128xf32>
    %1459 = math.exp %1458 : vector<4x128xf32>
    %cst_433 = arith.constant 1.000000e+00 : f32
    %1460 = vector.broadcast %cst_433 : f32 to vector<4x128xf32>
    %1461 = arith.addf %1460, %1459 : vector<4x128xf32>
    %1462 = tpu.reciprocal %1461 {approx = true} : vector<4x128xf32> -> vector<4x128xf32>
    %1463 = vector.broadcast %43 : vector<1x128xf32> to vector<4x128xf32>
    %1464 = arith.mulf %1444, %1463 : vector<4x128xf32>
    %1465 = vector.broadcast %45 : vector<1x128xf32> to vector<4x128xf32>
    %1466 = arith.mulf %1462, %1465 : vector<4x128xf32>
    %1467 = arith.addf %1464, %1466 : vector<4x128xf32>
    %1468 = vector.broadcast %39 : vector<1x128xf32> to vector<4x128xf32>
    %1469 = arith.mulf %1444, %1468 : vector<4x128xf32>
    %1470 = vector.broadcast %41 : vector<1x128xf32> to vector<4x128xf32>
    %1471 = arith.mulf %1462, %1470 : vector<4x128xf32>
    %1472 = arith.addf %1469, %1471 : vector<4x128xf32>
    %1473 = tpu.concatenate %1467, %1472 in 0 : vector<4x128xf32>, vector<4x128xf32> -> vector<8x128xf32>
    %1474 = arith.truncf %1473 : vector<8x128xf32> to vector<8x128xbf16>
    %cst_434 = arith.constant dense<0.000000e+00> : vector<8x128xf32>
    %1475 = tpu.matmul %1474, %50, %cst_434 {dimension_numbers = #tpu.dot_dimension_numbers<[1], [0], [0], [1], [0, 0, 1, 1], [], []>} : vector<8x128xbf16>, vector<128x128xbf16>, vector<8x128xf32> -> vector<8x128xf32>
    %1476 = vector.extract_strided_slice %1475 {offsets = [0, 0], sizes = [4, 128], strides = [1, 1]} : vector<8x128xf32> to vector<4x128xf32>
    %1477 = vector.broadcast %37 : vector<1x128xf32> to vector<4x128xf32>
    %1478 = arith.addf %1476, %1477 : vector<4x128xf32>
    %1479 = math.tanh %1478 : vector<4x128xf32>
    %1480 = vector.extract_strided_slice %1475 {offsets = [4, 0], sizes = [4, 128], strides = [1, 1]} : vector<8x128xf32> to vector<4x128xf32>
    %1481 = vector.broadcast %35 : vector<1x128xf32> to vector<4x128xf32>
    %1482 = arith.addf %1480, %1481 : vector<4x128xf32>
    %1483 = math.tanh %1482 : vector<4x128xf32>
    %1484 = tpu.concatenate %1479, %1483 in 0 : vector<4x128xf32>, vector<4x128xf32> -> vector<8x128xf32>
    %1485 = arith.truncf %1484 : vector<8x128xf32> to vector<8x128xbf16>
    %cst_435 = arith.constant dense<0.000000e+00> : vector<8x128xf32>
    %1486 = tpu.matmul %1485, %50, %cst_435 {dimension_numbers = #tpu.dot_dimension_numbers<[1], [0], [0], [1], [0, 0, 1, 1], [], []>} : vector<8x128xbf16>, vector<128x128xbf16>, vector<8x128xf32> -> vector<8x128xf32>
    %1487 = vector.extract_strided_slice %1486 {offsets = [0, 0], sizes = [4, 128], strides = [1, 1]} : vector<8x128xf32> to vector<4x128xf32>
    %1488 = arith.mulf %1430, %1487 : vector<4x128xf32>
    %1489 = arith.addf %1488, %1432 : vector<4x128xf32>
    %1490 = vector.extract_strided_slice %1486 {offsets = [4, 0], sizes = [4, 128], strides = [1, 1]} : vector<8x128xf32> to vector<4x128xf32>
    %1491 = arith.mulf %1426, %1490 : vector<4x128xf32>
    %1492 = arith.addf %1491, %1428 : vector<4x128xf32>
    %1493 = vector.broadcast %11 : vector<1x128xf32> to vector<4x128xf32>
    %1494 = arith.mulf %1489, %1493 : vector<4x128xf32>
    %1495 = vector.broadcast %31 : vector<1x128xf32> to vector<4x128xf32>
    %1496 = arith.addf %1494, %1495 : vector<4x128xf32>
    %cst_436 = arith.constant 0.000000e+00 : f32
    %1497 = vector.broadcast %cst_436 : f32 to vector<4x128xf32>
    %1498 = arith.cmpf ogt, %1496, %1497 : vector<4x128xf32>
    %cst_437 = arith.constant 0.000000e+00 : f32
    %1499 = vector.broadcast %cst_437 : f32 to vector<4x128xf32>
    %1500 = arith.minimumf %1496, %1499 : vector<4x128xf32>
    %1501 = math.exp %1500 : vector<4x128xf32>
    %cst_438 = arith.constant 1.000000e+00 : f32
    %1502 = vector.broadcast %cst_438 : f32 to vector<4x128xf32>
    %1503 = arith.subf %1501, %1502 : vector<4x128xf32>
    %1504 = arith.select %1498, %1496, %1503 : vector<4x128xi1>, vector<4x128xf32>
    %1505 = arith.addf %1411, %1504 : vector<4x128xf32>
    %c0_439 = arith.constant 0 : index
    %c0_440 = arith.constant 0 : index
    %1506 = vector.load %arg3[%c0_439, %c0_440] : memref<128x640xbf16, #tpu.memory_space<vmem>>, vector<128x640xbf16>
    %1507 = arith.truncf %1505 : vector<4x128xf32> to vector<4x128xbf16>
    %cst_441 = arith.constant dense<0.000000e+00> : vector<4x640xf32>
    %1508 = tpu.matmul %1507, %1506, %cst_441 {dimension_numbers = #tpu.dot_dimension_numbers<[1], [0], [0], [1], [0, 0, 1, 1], [], []>} : vector<4x128xbf16>, vector<128x640xbf16>, vector<4x640xf32> -> vector<4x640xf32>
    %1509 = vector.extract_strided_slice %1508 {offsets = [0, 0], sizes = [4, 128], strides = [1, 1]} : vector<4x640xf32> to vector<4x128xf32>
    %1510 = vector.extract_strided_slice %1508 {offsets = [0, 128], sizes = [4, 128], strides = [1, 1]} : vector<4x640xf32> to vector<4x128xf32>
    %1511 = vector.extract_strided_slice %1508 {offsets = [0, 256], sizes = [4, 128], strides = [1, 1]} : vector<4x640xf32> to vector<4x128xf32>
    %1512 = vector.extract_strided_slice %1508 {offsets = [0, 384], sizes = [4, 128], strides = [1, 1]} : vector<4x640xf32> to vector<4x128xf32>
    %1513 = vector.extract_strided_slice %1508 {offsets = [0, 512], sizes = [4, 128], strides = [1, 1]} : vector<4x640xf32> to vector<4x128xf32>
    %1514 = vector.broadcast %1 : vector<1x128xf32> to vector<4x128xf32>
    %1515 = arith.mulf %1492, %1514 : vector<4x128xf32>
    %1516 = arith.addf %1509, %1515 : vector<4x128xf32>
    %1517 = vector.broadcast %21 : vector<1x128xf32> to vector<4x128xf32>
    %1518 = arith.addf %1516, %1517 : vector<4x128xf32>
    %1519 = math.tanh %1518 : vector<4x128xf32>
    %1520 = vector.broadcast %13 : vector<1x128xf32> to vector<4x128xf32>
    %1521 = arith.mulf %1492, %1520 : vector<4x128xf32>
    %1522 = arith.addf %1521, %1422 : vector<4x128xf32>
    %1523 = vector.broadcast %33 : vector<1x128xf32> to vector<4x128xf32>
    %1524 = arith.addf %1522, %1523 : vector<4x128xf32>
    %cst_442 = arith.constant 0.000000e+00 : f32
    %1525 = vector.broadcast %cst_442 : f32 to vector<4x128xf32>
    %1526 = arith.subf %1525, %1524 : vector<4x128xf32>
    %1527 = math.exp %1526 : vector<4x128xf32>
    %cst_443 = arith.constant 1.000000e+00 : f32
    %1528 = vector.broadcast %cst_443 : f32 to vector<4x128xf32>
    %1529 = arith.addf %1528, %1527 : vector<4x128xf32>
    %1530 = tpu.reciprocal %1529 {approx = true} : vector<4x128xf32> -> vector<4x128xf32>
    %c0_444 = arith.constant 0 : index
    %c0_445 = arith.constant 0 : index
    %1531 = vector.load %arg2[%c0_444, %c0_445] : memref<128x256xbf16, #tpu.memory_space<vmem>>, vector<128x128xbf16>
    %1532 = arith.truncf %1519 : vector<4x128xf32> to vector<4x128xbf16>
    %cst_446 = arith.constant dense<0.000000e+00> : vector<4x128xf32>
    %1533 = tpu.matmul %1532, %1531, %cst_446 {dimension_numbers = #tpu.dot_dimension_numbers<[1], [0], [0], [1], [0, 0, 1, 1], [], []>} : vector<4x128xbf16>, vector<128x128xbf16>, vector<4x128xf32> -> vector<4x128xf32>
    %1534 = arith.addf %1424, %1533 : vector<4x128xf32>
    %cst_447 = arith.constant 0.000000e+00 : f32
    %1535 = vector.broadcast %cst_447 : f32 to vector<4x128xf32>
    %1536 = arith.subf %1535, %1534 : vector<4x128xf32>
    %1537 = math.exp %1536 : vector<4x128xf32>
    %cst_448 = arith.constant 1.000000e+00 : f32
    %1538 = vector.broadcast %cst_448 : f32 to vector<4x128xf32>
    %1539 = arith.addf %1538, %1537 : vector<4x128xf32>
    %1540 = tpu.reciprocal %1539 {approx = true} : vector<4x128xf32> -> vector<4x128xf32>
    %1541 = vector.broadcast %3 : vector<1x128xf32> to vector<4x128xf32>
    %1542 = arith.mulf %1492, %1541 : vector<4x128xf32>
    %1543 = arith.addf %1542, %1510 : vector<4x128xf32>
    %1544 = vector.broadcast %15 : vector<1x128xf32> to vector<4x128xf32>
    %1545 = arith.mulf %1452, %1544 : vector<4x128xf32>
    %1546 = arith.addf %1543, %1545 : vector<4x128xf32>
    %1547 = vector.broadcast %23 : vector<1x128xf32> to vector<4x128xf32>
    %1548 = arith.mulf %1547, %1540 : vector<4x128xf32>
    %1549 = arith.addf %1546, %1548 : vector<4x128xf32>
    %cst_449 = arith.constant 0.000000e+00 : f32
    %1550 = vector.broadcast %cst_449 : f32 to vector<4x128xf32>
    %1551 = arith.subf %1550, %1549 : vector<4x128xf32>
    %1552 = math.exp %1551 : vector<4x128xf32>
    %cst_450 = arith.constant 1.000000e+00 : f32
    %1553 = vector.broadcast %cst_450 : f32 to vector<4x128xf32>
    %1554 = arith.addf %1553, %1552 : vector<4x128xf32>
    %1555 = tpu.reciprocal %1554 {approx = true} : vector<4x128xf32> -> vector<4x128xf32>
    %1556 = vector.broadcast %5 : vector<1x128xf32> to vector<4x128xf32>
    %1557 = arith.mulf %1492, %1556 : vector<4x128xf32>
    %1558 = arith.addf %1557, %1511 : vector<4x128xf32>
    %1559 = vector.broadcast %17 : vector<1x128xf32> to vector<4x128xf32>
    %1560 = arith.mulf %1452, %1559 : vector<4x128xf32>
    %1561 = arith.addf %1558, %1560 : vector<4x128xf32>
    %1562 = vector.broadcast %25 : vector<1x128xf32> to vector<4x128xf32>
    %1563 = arith.addf %1561, %1562 : vector<4x128xf32>
    %1564 = arith.addf %1563, %1519 : vector<4x128xf32>
    %cst_451 = arith.constant 0.000000e+00 : f32
    %1565 = vector.broadcast %cst_451 : f32 to vector<4x128xf32>
    %1566 = arith.subf %1565, %1564 : vector<4x128xf32>
    %1567 = math.exp %1566 : vector<4x128xf32>
    %cst_452 = arith.constant 1.000000e+00 : f32
    %1568 = vector.broadcast %cst_452 : f32 to vector<4x128xf32>
    %1569 = arith.addf %1568, %1567 : vector<4x128xf32>
    %1570 = tpu.reciprocal %1569 {approx = true} : vector<4x128xf32> -> vector<4x128xf32>
    %1571 = arith.mulf %1570, %1420 : vector<4x128xf32>
    %cst_453 = arith.constant 1.000000e+00 : f32
    %1572 = vector.broadcast %cst_453 : f32 to vector<4x128xf32>
    %1573 = arith.subf %1572, %1570 : vector<4x128xf32>
    %1574 = arith.mulf %1573, %1540 : vector<4x128xf32>
    %1575 = arith.addf %1571, %1574 : vector<4x128xf32>
    %1576 = vector.broadcast %9 : vector<1x128xf32> to vector<4x128xf32>
    %1577 = arith.mulf %1492, %1576 : vector<4x128xf32>
    %1578 = arith.addf %1577, %1513 : vector<4x128xf32>
    %1579 = vector.broadcast %29 : vector<1x128xf32> to vector<4x128xf32>
    %1580 = arith.addf %1578, %1579 : vector<4x128xf32>
    %1581 = math.tanh %1580 : vector<4x128xf32>
    %1582 = arith.addf %1575, %1530 : vector<4x128xf32>
    %1583 = arith.mulf %1582, %1452 : vector<4x128xf32>
    %1584 = arith.mulf %1555, %1519 : vector<4x128xf32>
    %1585 = arith.mulf %1584, %1530 : vector<4x128xf32>
    %1586 = arith.mulf %1585, %1581 : vector<4x128xf32>
    %1587 = arith.addf %1583, %1586 : vector<4x128xf32>
    %1588 = vector.broadcast %7 : vector<1x128xf32> to vector<4x128xf32>
    %1589 = arith.mulf %1492, %1588 : vector<4x128xf32>
    %1590 = arith.addf %1589, %1512 : vector<4x128xf32>
    %1591 = arith.addf %1590, %1530 : vector<4x128xf32>
    %1592 = arith.addf %1591, %1504 : vector<4x128xf32>
    %1593 = vector.broadcast %19 : vector<1x128xf32> to vector<4x128xf32>
    %1594 = arith.mulf %1587, %1593 : vector<4x128xf32>
    %1595 = arith.addf %1592, %1594 : vector<4x128xf32>
    %1596 = vector.broadcast %27 : vector<1x128xf32> to vector<4x128xf32>
    %1597 = arith.addf %1595, %1596 : vector<4x128xf32>
    %cst_454 = arith.constant 0.000000e+00 : f32
    %1598 = vector.broadcast %cst_454 : f32 to vector<4x128xf32>
    %1599 = arith.subf %1598, %1597 : vector<4x128xf32>
    %1600 = math.exp %1599 : vector<4x128xf32>
    %cst_455 = arith.constant 1.000000e+00 : f32
    %1601 = vector.broadcast %cst_455 : f32 to vector<4x128xf32>
    %1602 = arith.addf %1601, %1600 : vector<4x128xf32>
    %1603 = tpu.reciprocal %1602 {approx = true} : vector<4x128xf32> -> vector<4x128xf32>
    %1604 = arith.addf %1587, %1504 : vector<4x128xf32>
    %1605 = math.tanh %1604 : vector<4x128xf32>
    %1606 = arith.mulf %1603, %1605 : vector<4x128xf32>
    %1607 = vector.extract_strided_slice %1606 {offsets = [0, 0], sizes = [2, 128], strides = [1, 1]} : vector<4x128xf32> to vector<2x128xf32>
    %1608 = vector.broadcast %47 : vector<1x128xf32> to vector<2x128xf32>
    %1609 = arith.mulf %1607, %1608 : vector<2x128xf32>
    %1610 = vector.extract_strided_slice %1606 {offsets = [2, 0], sizes = [2, 128], strides = [1, 1]} : vector<4x128xf32> to vector<2x128xf32>
    %1611 = vector.broadcast %49 : vector<1x128xf32> to vector<2x128xf32>
    %1612 = arith.mulf %1610, %1611 : vector<2x128xf32>
    %1613 = arith.addf %1609, %1612 : vector<2x128xf32>
    %1614 = tpu.concatenate %248, %443, %638, %833, %1028, %1223, %1418, %1613 in 0 : vector<2x128xf32>, vector<2x128xf32>, vector<2x128xf32>, vector<2x128xf32>, vector<2x128xf32>, vector<2x128xf32>, vector<2x128xf32>, vector<2x128xf32> -> vector<16x128xf32>
    %c0_456 = arith.constant 0 : index
    %c0_457 = arith.constant 0 : index
    %1615 = vector.load %arg5[%c0_456, %c0_457] : memref<128x4xbf16, #tpu.memory_space<vmem>>, vector<128x4xbf16>
    %1616 = arith.truncf %1614 : vector<16x128xf32> to vector<16x128xbf16>
    %cst_458 = arith.constant dense<0.000000e+00> : vector<16x4xf32>
    %1617 = tpu.matmul %1616, %1615, %cst_458 {dimension_numbers = #tpu.dot_dimension_numbers<[1], [0], [0], [1], [0, 0, 1, 1], [], []>} : vector<16x128xbf16>, vector<128x4xbf16>, vector<16x4xf32> -> vector<16x4xf32>
    %1618 = vector.broadcast %51 : vector<1x4xf32> to vector<16x4xf32>
    %1619 = arith.addf %1617, %1618 : vector<16x4xf32>
    %1620 = math.tanh %1619 : vector<16x4xf32>
    %1621 = vector.extract_strided_slice %1620 {offsets = [0, 0], sizes = [2, 4], strides = [1, 1]} : vector<16x4xf32> to vector<2x4xf32>
    %1622 = vector.extract_strided_slice %1620 {offsets = [2, 0], sizes = [2, 4], strides = [1, 1]} : vector<16x4xf32> to vector<2x4xf32>
    %1623 = vector.extract_strided_slice %1620 {offsets = [4, 0], sizes = [2, 4], strides = [1, 1]} : vector<16x4xf32> to vector<2x4xf32>
    %1624 = vector.extract_strided_slice %1620 {offsets = [6, 0], sizes = [2, 4], strides = [1, 1]} : vector<16x4xf32> to vector<2x4xf32>
    %1625 = vector.extract_strided_slice %1620 {offsets = [8, 0], sizes = [2, 4], strides = [1, 1]} : vector<16x4xf32> to vector<2x4xf32>
    %1626 = vector.extract_strided_slice %1620 {offsets = [10, 0], sizes = [2, 4], strides = [1, 1]} : vector<16x4xf32> to vector<2x4xf32>
    %1627 = vector.extract_strided_slice %1620 {offsets = [12, 0], sizes = [2, 4], strides = [1, 1]} : vector<16x4xf32> to vector<2x4xf32>
    %1628 = vector.extract_strided_slice %1620 {offsets = [14, 0], sizes = [2, 4], strides = [1, 1]} : vector<16x4xf32> to vector<2x4xf32>
    %1629 = tpu.concatenate %1621, %1622, %1623, %1624, %1625, %1626, %1627, %1628 in 1 : vector<2x4xf32>, vector<2x4xf32>, vector<2x4xf32>, vector<2x4xf32>, vector<2x4xf32>, vector<2x4xf32>, vector<2x4xf32>, vector<2x4xf32> -> vector<2x32xf32>
    %cst_459 = arith.constant dense<0.000000e+00> : vector<2xf32>
    %1630 = vector.multi_reduction <add>, %1629, %cst_459 [1] : vector<2x32xf32> to vector<2xf32>
    %1631 = vector.shape_cast %1630 : vector<2xf32> to vector<2x1xf32>
    %cst_460 = arith.constant 3.200000e+01 : f32
    %1632 = vector.broadcast %cst_460 : f32 to vector<2x1xf32>
    %1633 = arith.divf %1631, %1632 : vector<2x1xf32>
    %1634 = vector.broadcast %1633 : vector<2x1xf32> to vector<2x32xf32>
    %1635 = arith.subf %1629, %1634 : vector<2x32xf32>
    %1636 = arith.mulf %1635, %1635 : vector<2x32xf32>
    %cst_461 = arith.constant dense<0.000000e+00> : vector<2xf32>
    %1637 = vector.multi_reduction <add>, %1636, %cst_461 [1] : vector<2x32xf32> to vector<2xf32>
    %1638 = vector.shape_cast %1637 : vector<2xf32> to vector<2x1xf32>
    %cst_462 = arith.constant 3.200000e+01 : f32
    %1639 = vector.broadcast %cst_462 : f32 to vector<2x1xf32>
    %1640 = arith.divf %1638, %1639 : vector<2x1xf32>
    %cst_463 = arith.constant 9.99999974E-6 : f32
    %1641 = vector.broadcast %cst_463 : f32 to vector<2x1xf32>
    %1642 = arith.addf %1640, %1641 : vector<2x1xf32>
    %1643 = math.rsqrt %1642 : vector<2x1xf32>
    %1644 = vector.broadcast %1643 : vector<2x1xf32> to vector<2x32xf32>
    %1645 = arith.mulf %1635, %1644 : vector<2x32xf32>
    %c0_464 = arith.constant 0 : index
    %c0_465 = arith.constant 0 : index
    %1646 = vector.load %arg7[%c0_464, %c0_465] : memref<1x32xf32, #tpu.memory_space<vmem>>, vector<1x32xf32>
    %1647 = vector.broadcast %1646 : vector<1x32xf32> to vector<2x32xf32>
    %1648 = arith.mulf %1645, %1647 : vector<2x32xf32>
    %c0_466 = arith.constant 0 : index
    %c0_467 = arith.constant 0 : index
    %1649 = vector.load %arg8[%c0_466, %c0_467] : memref<1x32xf32, #tpu.memory_space<vmem>>, vector<1x32xf32>
    %1650 = vector.broadcast %1649 : vector<1x32xf32> to vector<2x32xf32>
    %1651 = arith.addf %1648, %1650 : vector<2x32xf32>
    %c0_468 = arith.constant 0 : index
    %c0_469 = arith.constant 0 : index
    %1652 = vector.load %arg9[%c0_468, %c0_469] : memref<32x512xbf16, #tpu.memory_space<vmem>>, vector<32x512xbf16>
    %1653 = arith.truncf %1651 : vector<2x32xf32> to vector<2x32xbf16>
    %cst_470 = arith.constant dense<0.000000e+00> : vector<2x512xf32>
    %1654 = tpu.matmul %1653, %1652, %cst_470 {dimension_numbers = #tpu.dot_dimension_numbers<[1], [0], [0], [1], [0, 0, 1, 1], [], []>} : vector<2x32xbf16>, vector<32x512xbf16>, vector<2x512xf32> -> vector<2x512xf32>
    %c0_471 = arith.constant 0 : index
    %c0_472 = arith.constant 0 : index
    %1655 = vector.load %arg10[%c0_471, %c0_472] : memref<1x512xf32, #tpu.memory_space<vmem>>, vector<1x512xf32>
    %1656 = vector.broadcast %1655 : vector<1x512xf32> to vector<2x512xf32>
    %1657 = arith.addf %1654, %1656 : vector<2x512xf32>
    %cst_473 = arith.constant dense<0.000000e+00> : vector<2xf32>
    %1658 = vector.multi_reduction <add>, %1657, %cst_473 [1] : vector<2x512xf32> to vector<2xf32>
    %1659 = vector.shape_cast %1658 : vector<2xf32> to vector<2x1xf32>
    %cst_474 = arith.constant 5.120000e+02 : f32
    %1660 = vector.broadcast %cst_474 : f32 to vector<2x1xf32>
    %1661 = arith.divf %1659, %1660 : vector<2x1xf32>
    %1662 = vector.broadcast %1661 : vector<2x1xf32> to vector<2x512xf32>
    %1663 = arith.subf %1657, %1662 : vector<2x512xf32>
    %1664 = arith.mulf %1663, %1663 : vector<2x512xf32>
    %cst_475 = arith.constant dense<0.000000e+00> : vector<2xf32>
    %1665 = vector.multi_reduction <add>, %1664, %cst_475 [1] : vector<2x512xf32> to vector<2xf32>
    %1666 = vector.shape_cast %1665 : vector<2xf32> to vector<2x1xf32>
    %cst_476 = arith.constant 5.120000e+02 : f32
    %1667 = vector.broadcast %cst_476 : f32 to vector<2x1xf32>
    %1668 = arith.divf %1666, %1667 : vector<2x1xf32>
    %cst_477 = arith.constant 9.99999974E-6 : f32
    %1669 = vector.broadcast %cst_477 : f32 to vector<2x1xf32>
    %1670 = arith.addf %1668, %1669 : vector<2x1xf32>
    %1671 = math.rsqrt %1670 : vector<2x1xf32>
    %1672 = vector.broadcast %1671 : vector<2x1xf32> to vector<2x512xf32>
    %1673 = arith.mulf %1663, %1672 : vector<2x512xf32>
    %c0_478 = arith.constant 0 : index
    %c0_479 = arith.constant 0 : index
    %1674 = vector.load %arg11[%c0_478, %c0_479] : memref<1x512xf32, #tpu.memory_space<vmem>>, vector<1x512xf32>
    %1675 = vector.broadcast %1674 : vector<1x512xf32> to vector<2x512xf32>
    %1676 = arith.mulf %1673, %1675 : vector<2x512xf32>
    %c0_480 = arith.constant 0 : index
    %c0_481 = arith.constant 0 : index
    %1677 = vector.load %arg12[%c0_480, %c0_481] : memref<1x512xf32, #tpu.memory_space<vmem>>, vector<1x512xf32>
    %1678 = vector.broadcast %1677 : vector<1x512xf32> to vector<2x512xf32>
    %1679 = arith.addf %1676, %1678 : vector<2x512xf32>
    %c0_482 = arith.constant 0 : index
    %c0_483 = arith.constant 0 : index
    %1680 = vector.load %arg13[%c0_482, %c0_483] : memref<512x16xbf16, #tpu.memory_space<vmem>>, vector<512x16xbf16>
    %1681 = arith.truncf %1679 : vector<2x512xf32> to vector<2x512xbf16>
    %cst_484 = arith.constant dense<0.000000e+00> : vector<2x16xf32>
    %1682 = tpu.matmul %1681, %1680, %cst_484 {dimension_numbers = #tpu.dot_dimension_numbers<[1], [0], [0], [1], [0, 0, 1, 1], [], []>} : vector<2x512xbf16>, vector<512x16xbf16>, vector<2x16xf32> -> vector<2x16xf32>
    %c0_485 = arith.constant 0 : index
    %c0_486 = arith.constant 0 : index
    %1683 = vector.load %arg14[%c0_485, %c0_486] : memref<1x16xf32, #tpu.memory_space<vmem>>, vector<1x16xf32>
    %1684 = vector.broadcast %1683 : vector<1x16xf32> to vector<2x16xf32>
    %1685 = arith.addf %1682, %1684 : vector<2x16xf32>
    %1686 = vector.extract_strided_slice %1685 {offsets = [0, 0], sizes = [2, 4], strides = [1, 1]} : vector<2x16xf32> to vector<2x4xf32>
    %1687 = vector.extract_strided_slice %1685 {offsets = [0, 4], sizes = [2, 4], strides = [1, 1]} : vector<2x16xf32> to vector<2x4xf32>
    %1688 = arith.maximumf %1686, %1687 : vector<2x4xf32>
    %1689 = vector.extract_strided_slice %1685 {offsets = [0, 8], sizes = [2, 4], strides = [1, 1]} : vector<2x16xf32> to vector<2x4xf32>
    %1690 = arith.maximumf %1688, %1689 : vector<2x4xf32>
    %1691 = vector.extract_strided_slice %1685 {offsets = [0, 12], sizes = [2, 4], strides = [1, 1]} : vector<2x16xf32> to vector<2x4xf32>
    %1692 = arith.maximumf %1690, %1691 : vector<2x4xf32>
    %c0_487 = arith.constant 0 : index
    %c0_488 = arith.constant 0 : index
    %1693 = vector.load %arg15[%c0_487, %c0_488] : memref<2x4xf32, #tpu.memory_space<vmem>>, vector<2x4xf32>
    tpu.vector_store %arg15[%c0_487, %c0_488], %1692 {strides = array<i32>} : memref<2x4xf32, #tpu.memory_space<vmem>>, vector<2x4xf32>,
    return
  }
}

</mosaic_0001>

<bundles_post_ra>
// kernel: reverse
= control target key start
LH: loop header
LB: loop body
LE: loop exit
PB: predicated region body
PF: predicated region fallthrough
CT: control target
= control target key end

     0   :  { %v2_v0 = vlaneseq  ;;  %s147_s0 = inlined_call_operand.vmem [shape: f32[7,2,4], index: 0, kind: input, shape index: {}]   ;;  %s148_s1 = inlined_call_operand.vmem [shape: f32[7,2,4], index: 1, kind: output, shape index: {}]  }
   0x2   :  { %v3_v1 = vsub.s32 6, %v2_v0 }
   0x4   :  { %4 = vset.pattern.permute.xlu0 %v3_v1 }
   0x5   :  { %v20_v2 = vld [vmem:[%s147_s0] sm:$0xff]  }
   0x6   :  { %21 = vst [vmem:[#allocation1] sm:$0xff] %v20_v2  }
   0xd   :  { %v54_v3 = vld [vmem:[#allocation1] sm:$0xf]  ;;  %v51_v4 = vld [vmem:[#allocation1 + $0x4] sm:$0xf] }
   0xe   :  { %55 = vst [vmem:[#allocation0] sm:$0xf] %v54_v3  ;;  %53 = vst [vmem:[#allocation0 + $0x8] sm:$0xf] %v51_v4 }
  0x15   :  { %v56_v5 = vld [vmem:[#allocation0] sm:$0xff]  ;;  %v62_v6 = vld [vmem:[#allocation0 + $0x8] sm:$0xff] }
  0x16   :  { %57 = vperm.xlu0 %4, %v56_v5  }
  0x1a   :  { %63 = vperm.xlu0 %4, %v62_v6  }
  0x95   :  { %v58_v7 = vpop.permute.xlu0 %57 }
  0x96   :  { %59 = vst [vmem:[#allocation2] sm:$0xff] %v58_v7 }
  0x99   :  { %v64_v8 = vpop.permute.xlu0 %63 }
  0x9a   :  { %65 = vst [vmem:[#allocation2 + $0x8] sm:$0xff] %v64_v8 }
  0x9d   :  { %v69_v9 = vld [vmem:[#allocation2] sm:$0xf] }
  0x9e   :  { %71 = vst [vmem:[#allocation3] sm:$0xf] %v69_v9 }
  0xa1   :  { %v73_v10 = vld [vmem:[#allocation2 + $0x8] sm:$0xf] }
  0xa2   :  { %76 = vst [vmem:[#allocation3 + $0x4] sm:$0xf] %v73_v10 }
  0xa5   :  { %v92_v11 = vld [vmem:[#allocation3] sm:$0xf] }
  0xa6   :  { %93 = vst [vmem:[%s148_s1] sm:$0xf] %v92_v11 }
  0xa9   :  { %v94_v12 = vld [vmem:[#allocation3 + $0x4] sm:$0xf] }
  0xaa   :  { %95 = vst [vmem:[%s148_s1 + $0x4] sm:$0xf] %v94_v12 }

// kernel: time_lstm_forward.1
= control target key start
LH: loop header
LB: loop body
LE: loop exit
PB: predicated region body
PF: predicated region fallthrough
CT: control target
= control target key end

     0   :  { %v11873_v2 = vmov 0   ;;  %v7704_v17 = vmov 0.0|0.0   ;;  %s11857_s0 = inlined_call_operand.vmem [shape: f32[56,4,128], index: 0, kind: input, shape index: {}]   ;;  %s11858_s1 = inlined_call_operand.vmem [shape: f32[25,1,128], index: 1, kind: input, shape index: {}]   ;;  %s11859_s2 = inlined_call_operand.vmem [shape: bf16[128,256], index: 2, kind: input, shape index: {}]   ;;  %s11860_s3 = inlined_call_operand.vmem [shape: bf16[128,640], index: 3, kind: input, shape index: {}]   ;;  %s11861_s4 = inlined_call_operand.vmem [shape: bf16[128,128], index: 4, kind: input, shape index: {}]   ;;  %s11862_s5 = inlined_call_operand.vmem [shape: bf16[128,4], index: 5, kind: input, shape index: {}]   ;;  %s11863_s6 = inlined_call_operand.vmem [shape: f32[1,4], index: 6, kind: input, shape index: {}]   ;;  %s11864_s7 = inlined_call_operand.vmem [shape: f32[1,32], index: 7, kind: input, shape index: {}]   ;;  %s11865_s8 = inlined_call_operand.vmem [shape: f32[1,32], index: 8, kind: input, shape index: {}]   ;;  %s11866_s9 = inlined_call_operand.vmem [shape: bf16[32,512], index: 9, kind: input, shape index: {}]   ;;  %s11867_s10 = inlined_call_operand.vmem [shape: f32[1,512], index: 10, kind: input, shape index: {}]   ;;  %s11868_s11 = inlined_call_operand.vmem [shape: f32[1,512], index: 11, kind: input, shape index: {}]   ;;  %s11869_s12 = inlined_call_operand.vmem [shape: f32[1,512], index: 12, kind: input, shape index: {}]   ;;  %s11870_s13 = inlined_call_operand.vmem [shape: bf16[512,16], index: 13, kind: input, shape index: {}]   ;;  %s11871_s14 = inlined_call_operand.vmem [shape: f32[1,16], index: 14, kind: input, shape index: {}]   ;;  %s11872_s15 = inlined_call_operand.hbm [shape: f32[2,4], index: 15, kind: output, shape index: {}]  }
   0x1   :  { %v7801_v0 = vld [vmem:[%s11859_s2 + $0x4] ss:$8 sps:$4 sm:$0xff]   ;;  %v7806_v1 = vld [vmem:[%s11859_s2] ss:$8 sps:$4 sm:$0xff]   ;;  %260 = vmatprep.mubr.bf16.mxu0 %v11873_v2  ;;  %v7813_v3 = vld [vmem:[%s11859_s2 + $0x14] ss:$8 sps:$4 sm:$0xff]  }
   0x2   :  { %228 = vmatprep.subr.bf16.mxu0 %v7801_v0  ;;  %v7819_v4 = vld [vmem:[%s11859_s2 + $0x10] ss:$8 sps:$4 sm:$0xff]   ;;  %v7825_v5 = vld [vmem:[%s11859_s2 + $0x24] ss:$8 sps:$4 sm:$0xff]   ;;  %v7831_v6 = vld [vmem:[%s11859_s2 + $0x20] ss:$8 sps:$4 sm:$0xff]  }
   0x3   :  { %229 = vmatpush1.bf16.msra.mxu0 %v7806_v1  ;;  %v7837_v7 = vld [vmem:[%s11859_s2 + $0x34] ss:$8 sps:$4 sm:$0xff]   ;;  %v7842_v8 = vld [vmem:[%s11859_s2 + $0x30] ss:$8 sps:$4 sm:$0xff]   ;;  %v7847_v9 = vld [vmem:[%s11859_s2 + $0x44] ss:$8 sps:$4 sm:$0xff]  }
   0x4   :  { %230 = vmatprep.subr.bf16.mxu0 %v7813_v3  ;;  %v7854_v10 = vld [vmem:[%s11859_s2 + $0x40] ss:$8 sps:$4 sm:$0xff]   ;;  %v7859_v11 = vld [vmem:[%s11859_s2 + $0x54] ss:$8 sps:$4 sm:$0xff]   ;;  %v7866_v12 = vld [vmem:[%s11859_s2 + $0x50] ss:$8 sps:$4 sm:$0xff]  }
   0x5   :  { %v7871_v13 = vld [vmem:[%s11859_s2 + $0x64] ss:$8 sps:$4 sm:$0xff]   ;;  %v7878_v14 = vld [vmem:[%s11859_s2 + $0x60] ss:$8 sps:$4 sm:$0xff]   ;;  %v7883_v15 = vld [vmem:[%s11859_s2 + $0x74] ss:$8 sps:$4 sm:$0xff]  }
   0x6   :  { %v7890_v16 = vld [vmem:[%s11859_s2 + $0x70] ss:$8 sps:$4 sm:$0xff]  }
   0x7   :  { %231 = vmatpush1.bf16.msra.mxu0 %v7819_v4 }
   0x8   :  { %232 = vmatprep.subr.bf16.mxu0 %v7825_v5 }
   0xb   :  { %233 = vmatpush1.bf16.msra.mxu0 %v7831_v6 }
   0xc   :  { %234 = vmatprep.subr.bf16.mxu0 %v7837_v7 }
   0xf   :  { %235 = vmatpush1.bf16.msra.mxu0 %v7842_v8 }
  0x10   :  { %236 = vmatprep.subr.bf16.mxu0 %v7847_v9 }
  0x13   :  { %237 = vmatpush1.bf16.msra.mxu0 %v7854_v10 }
  0x14   :  { %238 = vmatprep.subr.bf16.mxu0 %v7859_v11 }
  0x17   :  { %239 = vmatpush1.bf16.msra.mxu0 %v7866_v12 }
  0x18   :  { %240 = vmatprep.subr.bf16.mxu0 %v7871_v13 }
  0x1b   :  { %241 = vmatpush1.bf16.msra.mxu0 %v7878_v14 }
  0x1c   :  { %242 = vmatprep.subr.bf16.mxu0 %v7883_v15 }
  0x1f   :  { %243 = vmatpush1.bf16.msra.mxu0 %v7890_v16 }
  0x22   :  { %261 = vmatmul.mubr.bf16.vlgmr.msra.gmra.mrb[0].mxu0 %v7704_v17 }
  0x23   :  { %20 = vsyncpa [#allocation3], 0  ;;  %v7898_v18 = vld [vmem:[%s11859_s2] ss:$8 sps:$4 sm:$0xff]   ;;  %v11875_v19 = vmov 0.0   ;;  %vm7706_vm0 = vmmov 0  }
  0x24   :  { %6059 = vmatprep.subr.bf16.mxu1 %v11875_v19  ;;  %6079 = vmatprep.subr.bf16.mxu0 %v11875_v19  ;;  %v7907_v20 = vld [vmem:[%s11859_s2 + $0x10] ss:$8 sps:$4 sm:$0xff]   ;;  %v7914_v21 = vld [vmem:[%s11859_s2 + $0x20] ss:$8 sps:$4 sm:$0xff]   ;;  %vm431_vm1 = vcmask 1043456   ;;  %vm4592_vm10 = vcmask 1041408  }
  0x25   :  { %6060 = vmatpush3.bf16.msra.mxu1 %v7898_v18  ;;  %v7921_v22 = vld [vmem:[%s11859_s2 + $0x30] ss:$8 sps:$4 sm:$0xff]   ;;  %v7928_v23 = vld [vmem:[%s11859_s2 + $0x40] ss:$8 sps:$4 sm:$0xff]   ;;  %6075 = vmatprep.mubr.msk.bf16.mxu1 %vm7706_vm0, %v11875_v19  ;;  %vm4595_vm11 = vcmask 1045504   ;;  %s7707_s20 = smov 12  }
  0x26   :  { %6061 = vmatprep.subr.bf16.mxu1 %v11875_v19  ;;  %v7935_v24 = vld [vmem:[%s11859_s2 + $0x50] ss:$8 sps:$4 sm:$0xff]   ;;  %v7942_v25 = vld [vmem:[%s11859_s2 + $0x60] ss:$8 sps:$4 sm:$0xff]   ;;  %6095 = vmatprep.mubr.msk.bf16.mxu0 %vm7706_vm0, %v11875_v19  ;;  %s7708_s21 = smov 4   ;;  %s7709_s22 = smov 8  }
  0x27   :  { %v7948_v26 = vld [vmem:[%s11859_s2 + $0x70] ss:$8 sps:$4 sm:$0xff]   ;;  %v7960_v27 = vld [vmem:[%s11857_s0 + $0x40] sm:$0xf]  ;;  %v7990_v49 = vld [vmem:[%s11861_s4 + $0x8] sm:$0xff]   ;;  %s7712_s23 = smov 20  }
  0x28   :  { %v7966_v37 = vld [vmem:[%s11857_s0] sm:$0xf]  ;;  %v7999_v50 = vld [vmem:[%s11861_s4 + $0x10] sm:$0xff]   ;;  %v8008_v51 = vld [vmem:[%s11861_s4 + $0x18] sm:$0xff]   ;;  %s7713_s24 = smov 28   ;;  %vm4743_vm12 = vcmask 31744  }
  0x29   :  { %6062 = vmatpush3.bf16.msra.mxu1 %v7907_v20  ;;  %v7981_v48 = vld [vmem:[%s11861_s4] sm:$0xff]   ;;  %v8023_v53 = vld [vmem:[%s11861_s4 + $0x28] sm:$0xff]   ;;  %v8032_v54 = vld [vmem:[%s11861_s4 + $0x30] sm:$0xff]   ;;  %vm4745_vm13 = vcmask 64512   ;;  %vm4747_vm14 = vcmask 97280   ;;  %vm4749_vm15 = vcmask 130048  }
  0x2a   :  { %6063 = vmatprep.subr.bf16.mxu1 %v11875_v19  ;;  %6080 = vmatpush3.bf16.msra.mxu0 %v7981_v48  ;;  %v8014_v52 = vld [vmem:[%s11861_s4 + $0x20] sm:$0xff]   ;;  %v8041_v55 = vld [vmem:[%s11861_s4 + $0x38] sm:$0xff]  }
  0x2b   :  { %6081 = vmatprep.subr.bf16.mxu0 %v11875_v19 }
  0x2d   :  { %6064 = vmatpush3.bf16.msra.mxu1 %v7914_v21 }
  0x2e   :  { %6065 = vmatprep.subr.bf16.mxu1 %v11875_v19  ;;  %6082 = vmatpush3.bf16.msra.mxu0 %v7990_v49 }
  0x2f   :  { %6083 = vmatprep.subr.bf16.mxu0 %v11875_v19 }
  0x31   :  { %6066 = vmatpush3.bf16.msra.mxu1 %v7921_v22 }
  0x32   :  { %6067 = vmatprep.subr.bf16.mxu1 %v11875_v19  ;;  %6084 = vmatpush3.bf16.msra.mxu0 %v7999_v50 }
  0x33   :  { %6085 = vmatprep.subr.bf16.mxu0 %v11875_v19 }
  0x35   :  { %6068 = vmatpush3.bf16.msra.mxu1 %v7928_v23 }
  0x36   :  { %6069 = vmatprep.subr.bf16.mxu1 %v11875_v19  ;;  %6086 = vmatpush3.bf16.msra.mxu0 %v8008_v51 }
  0x37   :  { %6087 = vmatprep.subr.bf16.mxu0 %v11875_v19 }
  0x39   :  { %6070 = vmatpush3.bf16.msra.mxu1 %v7935_v24 }
  0x3a   :  { %6071 = vmatprep.subr.bf16.mxu1 %v11875_v19  ;;  %6088 = vmatpush3.bf16.msra.mxu0 %v8014_v52 }
  0x3b   :  { %6089 = vmatprep.subr.bf16.mxu0 %v11875_v19 }
  0x3d   :  { %6072 = vmatpush3.bf16.msra.mxu1 %v7942_v25 }
  0x3e   :  { %6073 = vmatprep.subr.bf16.mxu1 %v11875_v19  ;;  %6090 = vmatpush3.bf16.msra.mxu0 %v8023_v53 }
  0x3f   :  { %6091 = vmatprep.subr.bf16.mxu0 %v11875_v19 }
  0x41   :  { %6074 = vmatpush3.bf16.msra.mxu1 %v7948_v26 }
  0x42   :  { %6099 = vmatprep.subr.bf16.mxu1 %v11875_v19  ;;  %6092 = vmatpush3.bf16.msra.mxu0 %v8032_v54 }
  0x43   :  { %6093 = vmatprep.subr.bf16.mxu0 %v11875_v19 }
  0x46   :  { %6094 = vmatpush3.bf16.msra.mxu0 %v8041_v55 }
  0xf5   :  { %v262_v28 = vpop.f32.mrb[0].mxu0 }
  0xf6   :  { %v269_v29 = vadd.f32 %v7960_v27, %v262_v28  ;;  %v264_v30 = vpop.f32.mrb[1].mxu0  ;;  %v8052_v28 = vld [vmem:[%s11858_s1 + $0x13] ss:$0 sm:$0xff] }
  0xf7   :  { %v266_v31 = vpop.f32.mrb[2].mxu0 }
  0xf8   :  { %v270_v32 = vsub.f32 0.0, %v269_v29  ;;  %v267_v33 = vpop.f32.mrb[3].mxu0  ;;  %v8057_v29 = vld [vmem:[%s11858_s1 + $0x14] ss:$0 sm:$0xff]  ;;  %v8067_v31 = vld [vmem:[%s11858_s1 + $0x16] ss:$0 sm:$0xff] }
  0xfa   :  { %v271_v34 = vmul.f32 1.442695, %v270_v32 }
  0xfc   :  { %7042 = vpow2.f32 %v271_v34 }
 0x106   :  { %v7043_v35 = vpop.eup %7042 }
 0x107   :  { %v273_v36 = vadd.f32 1.0, %v7043_v35 }
 0x109   :  { %7044 = vrcp.f32 %v273_v36 }
 0x10a   :  { %7046 = vtanh.f32 %v264_v30  ;;  %v8062_v30 = vld [vmem:[%s11858_s1 + $0x15] ss:$0 sm:$0xff] }
 0x113   :  { %v7968_v38 = vpop.eup %7044 }
 0x114   :  { %v276_v39 = vmul.f32 %v7968_v38, %v7966_v37  ;;  %v7047_v41 = vpop.eup %7046  ;;  %v404_v33 = vmul.f32 %v7968_v38, %v8062_v30  ;;  %v419_v35 = vmul.f32 %v7968_v38, %v8052_v28  ;;  %v8085_v38 = vld [vmem:[%s11860_s3] ss:$20 sps:$4 sm:$0xff]  }
 0x115   :  { %v281_v43 = vsub.f32 0.0, %v7047_v41 }
 0x116   :  { %v278_v40 = vrot.slane %v276_v39, 4 }
 0x118   :  { %v280_v42 = vmul.f32 %v7047_v41, %v278_v40 }
 0x11a   :  { %v282_v44 = vmul.f32 2.0, %v280_v42 }
 0x11c   :  { %v7972_v45 = vadd.f32 %v282_v44, %v281_v43  ;;  %v8080_v44 = vld [vmem:[%s11860_s3 + $0x4] ss:$20 sps:$4 sm:$0xff]  }
 0x11d   :  { %865 = vmatprep.subr.bf16.mxu0 %v8080_v44 }
 0x11e   :  { %v300_v46 = vpack.c.bf16 %v7972_v45, %v7972_v45 }
 0x120   :  { %v302_v47 = vrot.slane %v300_v46, 2  ;;  %v8090_v46 = vld [vmem:[%s11860_s3 + $0xc] ss:$20 sps:$4 sm:$0xff]  }
 0x122   :  { %6076 = vmatmul.mubr.bf16.vlgmr.msra.gmra.mrb[0].mxu1 %v302_v47  ;;  %v8098_v47 = vld [vmem:[%s11858_s1 + $0x11] ss:$0 sm:$0xff] }
 0x123   :  { %6115 = vmatprep.mubr.msk.bf16.mxu1 %vm7706_vm0, %v11875_v19  ;;  %6100 = vmatpush3.bf16.msra.mxu1 %v7981_v48  ;;  %12026 = vst [vmem:[#allocation5_spill] sm:$0xff] %v8098_v47 }
 0x124   :  { %6101 = vmatprep.subr.bf16.mxu1 %v11875_v19 }
 0x127   :  { %6102 = vmatpush3.bf16.msra.mxu1 %v7990_v49 }
 0x128   :  { %6103 = vmatprep.subr.bf16.mxu1 %v11875_v19 }
 0x12b   :  { %6104 = vmatpush3.bf16.msra.mxu1 %v7999_v50 }
 0x12c   :  { %6105 = vmatprep.subr.bf16.mxu1 %v11875_v19 }
 0x12f   :  { %6106 = vmatpush3.bf16.msra.mxu1 %v8008_v51 }
 0x130   :  { %6107 = vmatprep.subr.bf16.mxu1 %v11875_v19 }
 0x133   :  { %6108 = vmatpush3.bf16.msra.mxu1 %v8014_v52 }
 0x134   :  { %6109 = vmatprep.subr.bf16.mxu1 %v11875_v19 }
 0x137   :  { %6110 = vmatpush3.bf16.msra.mxu1 %v8023_v53 }
 0x138   :  { %6111 = vmatprep.subr.bf16.mxu1 %v11875_v19 }
 0x13b   :  { %6112 = vmatpush3.bf16.msra.mxu1 %v8032_v54 }
 0x13c   :  { %6113 = vmatprep.subr.bf16.mxu1 %v11875_v19  ;;  %v8224_v19 = vld [vmem:[%s11860_s3 + $0xd4] ss:$20 sps:$4 sm:$0xff]  }
 0x13d   :  { %12041 = vst [vmem:[#allocation20_spill] sm:$0xff] %v8224_v19 }
 0x13f   :  { %6114 = vmatpush3.bf16.msra.mxu1 %v8041_v55 }
 0x140   :  { %906 = vmatprep.subr.bf16.mxu1 %v8090_v46 }
 0x1f5   :  { %v386_v56 = vpop.f32.mrb[0].mxu1 }
 0x1f6   :  { %v392_v57 = vadd.f32 %v7960_v27, %v386_v56  ;;  %v6077_v58 = vpop.f32.mrb[1].mxu1  ;;  %v8103_v56 = vld [vmem:[%s11858_s1 + $0x12] ss:$0 sm:$0xff] }
 0x1f7   :  { %v389_v59 = vpop.f32.mrb[2].mxu1  ;;  %12027 = vst [vmem:[#allocation6_spill] sm:$0xff] %v8103_v56 }
 0x1f8   :  { %v393_v60 = vsub.f32 0.0, %v392_v57  ;;  %v6078_v61 = vpop.f32.mrb[3].mxu1 }
 0x1fa   :  { %v394_v62 = vmul.f32 1.442695, %v393_v60 }
 0x1fc   :  { %7048 = vpow2.f32 %v394_v62 }
 0x206   :  { %v7049_v63 = vpop.eup %7048 }
 0x207   :  { %v396_v17 = vadd.f32 1.0, %v7049_v63 }
 0x209   :  { %7050 = vrcp.f32 %v396_v17 }
 0x213   :  { %v7051_v32 = vpop.eup %7050 }
 0x214   :  { %v411_v34 = vmul.f32 %v7051_v32, %v8067_v31  ;;  %v426_v36 = vmul.f32 %v7051_v32, %v8057_v29 }
 0x216   :  { %v412_v39 = vadd.f32 %v411_v34, %v404_v33  ;;  %v427_v40 = vadd.f32 %v426_v36, %v419_v35  ;;  %v8111_v33 = vld [vmem:[%s11860_s3 + $0x8] ss:$20 sps:$4 sm:$0xff]   ;;  %v8118_v35 = vld [vmem:[%s11860_s3 + $0x2c] ss:$20 sps:$4 sm:$0xff]  }
 0x217   :  { %12028 = vst [vmem:[#allocation7_spill] sm:$0xff] %v8111_v33  ;;  %v8123_v36 = vld [vmem:[%s11860_s3 + $0x28] ss:$20 sps:$4 sm:$0xff]  }
 0x218   :  { %v429_v41 = vrot.slane %v427_v40, 4  ;;  %v8134_v40 = vld [vmem:[%s11860_s3 + $0x30] ss:$20 sps:$4 sm:$0xff]  }
 0x219   :  { %12030 = vst [vmem:[#allocation9_spill] sm:$0xff] %v8134_v40 }
 0x21a   :  { %v432_v42 = vsel %vm431_vm1, %v412_v39, %v429_v41  ;;  %v8128_v39 = vld [vmem:[%s11860_s3 + $0x34] ss:$20 sps:$4 sm:$0xff]  }
 0x21b   :  { %v433_v43 = vpack.c.bf16 %v432_v42, %v432_v42  ;;  %12029 = vst [vmem:[#allocation8_spill] sm:$0xff] %v8128_v39  ;;  %v8142_v41 = vld [vmem:[%s11860_s3 + $0x54] ss:$20 sps:$4 sm:$0xff]   ;;  %v8147_v42 = vld [vmem:[%s11860_s3 + $0x50] ss:$20 sps:$4 sm:$0xff]  }
 0x21d   :  { %6096 = vmatmul.mubr.bf16.vlgmr.msra.gmra.mrb[4].mxu0 %v433_v43  ;;  %v8152_v43 = vld [vmem:[%s11860_s3 + $0x5c] ss:$20 sps:$4 sm:$0xff]  }
 0x21e   :  { %897 = vmatprep.mubr.bf16.mxu0 %v11873_v2  ;;  %866 = vmatpush1.bf16.msra.mxu0 %v8085_v38  ;;  %12031 = vst [vmem:[#allocation10_spill] sm:$0xff] %v8152_v43 }
 0x21f   :  { %867 = vmatprep.subr.bf16.mxu0 %v8118_v35 }
 0x222   :  { %868 = vmatpush1.bf16.msra.mxu0 %v8123_v36 }
 0x223   :  { %869 = vmatprep.subr.bf16.mxu0 %v8142_v41 }
 0x226   :  { %870 = vmatpush1.bf16.msra.mxu0 %v8147_v42 }
 0x2f0   :  { %v516_v57 = vpop.f32.mrb[4].mxu0 }
 0x2f1   :  { %v528_v58 = vadd.f32 %v8103_v56, %v516_v57  ;;  %v536_v59 = vadd.f32 %v8098_v47, %v516_v57  ;;  %v6097_v60 = vpop.f32.mrb[5].mxu0  ;;  %v8158_v57 = vld [vmem:[%s11860_s3 + $0x58] ss:$20 sps:$4 sm:$0xff]  }
 0x2f2   :  { %v519_v61 = vpop.f32.mrb[6].mxu0  ;;  %12032 = vst [vmem:[#allocation11_spill] sm:$0xff] %v8158_v57  ;;  %v8176_v60 = vld [vmem:[%s11860_s3 + $0x84] ss:$20 sps:$4 sm:$0xff]  }
 0x2f3   :  { %7052 = vtanh.f32 %v528_v58  ;;  %v6098_v62 = vpop.f32.mrb[7].mxu0  ;;  %v8166_v58 = vld [vmem:[%s11860_s3 + $0x7c] ss:$20 sps:$4 sm:$0xff]   ;;  %12033 = vst [vmem:[#allocation12_spill] sm:$0xff] %v8176_v60  ;;  %v8182_v61 = vld [vmem:[%s11860_s3 + $0x80] ss:$20 sps:$4 sm:$0xff]  }
 0x2f4   :  { %7054 = vtanh.f32 %v536_v59  ;;  %v8171_v59 = vld [vmem:[%s11860_s3 + $0x78] ss:$20 sps:$4 sm:$0xff]   ;;  %871 = vmatprep.subr.bf16.mxu0 %v8166_v58  ;;  %12034 = vst [vmem:[#allocation13_spill] sm:$0xff] %v8182_v61 }
 0x2f5   :  { %872 = vmatpush1.bf16.msra.mxu0 %v8171_v59  ;;  %v8190_v62 = vld [vmem:[%s11860_s3 + $0xa4] ss:$20 sps:$4 sm:$0xff]  }
 0x2f6   :  { %12035 = vst [vmem:[#allocation14_spill] sm:$0xff] %v8190_v62  ;;  %873 = vmatprep.subr.bf16.mxu0 %v8190_v62 }
 0x2fd   :  { %v7053_v63 = vpop.eup %7052 }
 0x2fe   :  { %v7055_v17 = vpop.eup %7054 }
 0x2ff   :  { %v538_v32 = vsel %vm431_vm1, %v7053_v63, %v7055_v17  ;;  %v8195_v63 = vld [vmem:[%s11860_s3 + $0xa0] ss:$20 sps:$4 sm:$0xff]  }
 0x300   :  { %v539_v34 = vpack.c.bf16 %v538_v32, %v538_v32  ;;  %12036 = vst [vmem:[#allocation15_spill] sm:$0xff] %v8195_v63  ;;  %v8200_v17 = vld [vmem:[%s11860_s3 + $0xac] ss:$20 sps:$4 sm:$0xff]   ;;  %v8206_v32 = vld [vmem:[%s11860_s3 + $0xa8] ss:$20 sps:$4 sm:$0xff]   ;;  %874 = vmatpush1.bf16.msra.mxu0 %v8195_v63 }
 0x301   :  { %12037 = vst [vmem:[#allocation16_spill] sm:$0xff] %v8200_v17  ;;  %12038 = vst [vmem:[#allocation17_spill] sm:$0xff] %v8206_v32 }
 0x302   :  { %6116 = vmatmul.mubr.bf16.vlgmr.msra.gmra.mrb[4].mxu1 %v539_v34  ;;  %v8214_v34 = vld [vmem:[%s11860_s3 + $0xcc] ss:$20 sps:$4 sm:$0xff]  }
 0x303   :  { %907 = vmatpush1.bf16.msra.mxu1 %v8111_v33  ;;  %938 = vmatprep.mubr.bf16.mxu1 %v11873_v2  ;;  %12039 = vst [vmem:[#allocation18_spill] sm:$0xff] %v8214_v34  ;;  %v8219_v2 = vld [vmem:[%s11860_s3 + $0xc8] ss:$20 sps:$4 sm:$0xff]  }
 0x304   :  { %908 = vmatprep.subr.bf16.mxu1 %v8128_v39  ;;  %12040 = vst [vmem:[#allocation19_spill] sm:$0xff] %v8219_v2  ;;  %875 = vmatprep.subr.bf16.mxu0 %v8214_v34  ;;  %v5437_v39 = vld [vmem:[%s11857_s0 + $0xc0] sm:$0xf] }
 0x305   :  { %876 = vmatpush1.bf16.msra.mxu0 %v8219_v2 }
 0x307   :  { %909 = vmatpush1.bf16.msra.mxu1 %v8134_v40  ;;  %v12051_v40 = vmov 0.0  }
 0x308   :  { %910 = vmatprep.subr.bf16.mxu1 %v8152_v43  ;;  %v8265_v43 = vld [vmem:[%s11860_s3 + $0x124] ss:$20 sps:$4 sm:$0xff]  }
 0x309   :  { %12048 = vst [vmem:[#allocation27_spill] sm:$0xff] %v8265_v43 }
 0x30b   :  { %911 = vmatpush1.bf16.msra.mxu1 %v8158_v57  ;;  %v8258_v57 = vld [vmem:[%s11860_s3 + $0x11c] ss:$20 sps:$4 sm:$0xff]  }
 0x30c   :  { %912 = vmatprep.subr.bf16.mxu1 %v8176_v60  ;;  %v8247_v60 = vld [vmem:[%s11860_s3 + $0xfc] ss:$20 sps:$4 sm:$0xff]   ;;  %12047 = vst [vmem:[#allocation26_spill] sm:$0xff] %v8258_v57 }
 0x30d   :  { %12045 = vst [vmem:[#allocation24_spill] sm:$0xff] %v8247_v60 }
 0x30f   :  { %913 = vmatpush1.bf16.msra.mxu1 %v8182_v61  ;;  %v8242_v61 = vld [vmem:[%s11860_s3 + $0xf0] ss:$20 sps:$4 sm:$0xff]  }
 0x310   :  { %914 = vmatprep.subr.bf16.mxu1 %v8200_v17  ;;  %v8237_v17 = vld [vmem:[%s11860_s3 + $0xf4] ss:$20 sps:$4 sm:$0xff]   ;;  %12044 = vst [vmem:[#allocation23_spill] sm:$0xff] %v8242_v61 }
 0x311   :  { %12043 = vst [vmem:[#allocation22_spill] sm:$0xff] %v8237_v17  ;;  %877 = vmatprep.subr.bf16.mxu0 %v8237_v17 }
 0x312   :  { %878 = vmatpush1.bf16.msra.mxu0 %v8242_v61  ;;  %v8302_v61 = vld [vmem:[%s11858_s1 + $0xf] ss:$0 sm:$0xff] }
 0x313   :  { %915 = vmatpush1.bf16.msra.mxu1 %v8206_v32  ;;  %v8230_v32 = vld [vmem:[%s11860_s3 + $0xd0] ss:$20 sps:$4 sm:$0xff]   ;;  %879 = vmatprep.subr.bf16.mxu0 %v8258_v57 }
 0x314   :  { %12042 = vst [vmem:[#allocation21_spill] sm:$0xff] %v8230_v32  ;;  %916 = vmatprep.subr.bf16.mxu1 %v8224_v19  ;;  %v8253_v19 = vld [vmem:[%s11860_s3 + $0xf8] ss:$20 sps:$4 sm:$0xff]  }
 0x315   :  { %12046 = vst [vmem:[#allocation25_spill] sm:$0xff] %v8253_v19 }
 0x317   :  { %917 = vmatpush1.bf16.msra.mxu1 %v8230_v32  ;;  %v8271_v32 = vld [vmem:[%s11860_s3 + $0x118] ss:$20 sps:$4 sm:$0xff]  }
 0x318   :  { %918 = vmatprep.subr.bf16.mxu1 %v8247_v60  ;;  %12049 = vst [vmem:[#allocation28_spill] sm:$0xff] %v8271_v32  ;;  %v8278_v60 = vld [vmem:[%s11860_s3 + $0x120] ss:$20 sps:$4 sm:$0xff]   ;;  %880 = vmatpush1.bf16.msra.mxu0 %v8271_v32 }
 0x319   :  { %12050 = vst [vmem:[#allocation29_spill] sm:$0xff] %v8278_v60  ;;  %6119 = vmatprep.subr.bf16.mxu0 %v12051_v40 }
 0x31b   :  { %919 = vmatpush1.bf16.msra.mxu1 %v8253_v19  ;;  %v5436_v19 = vld [vmem:[%s11857_s0 + $0xa0] sm:$0xf] }
 0x31c   :  { %920 = vmatprep.subr.bf16.mxu1 %v8265_v43 }
 0x31f   :  { %921 = vmatpush1.bf16.msra.mxu1 %v8278_v60  ;;  %v8297_v60 = vld [vmem:[%s11858_s1 + $0x5] ss:$0 sm:$0xff] }
 0x320   :  { %6139 = vmatprep.subr.bf16.mxu1 %v12051_v40 }
 0x3d5   :  { %v8291_v33 = vpop.f32.mrb[4].mxu1 }
 0x3d6   :  { %v580_v43 = vmul.f32 %v5436_v19, %v8291_v33  ;;  %v6117_v47 = vpop.f32.mrb[5].mxu1 }
 0x3d7   :  { %v577_v56 = vpop.f32.mrb[6].mxu1 }
 0x3d8   :  { %v581_v32 = vadd.f32 %v5437_v39, %v580_v43  ;;  %v6118_v57 = vpop.f32.mrb[7].mxu1  ;;  %v8311_v56 = vld [vmem:[%s11860_s3 + $0x10] ss:$20 sps:$4 sm:$0xff]   ;;  %v8319_v43 = vld [vmem:[%s11860_s3 + $0x38] ss:$20 sps:$4 sm:$0xff]  }
 0x3d9   :  { %12052 = vst [vmem:[#allocation30_spill] sm:$0xff] %v8311_v56  ;;  %12053 = vst [vmem:[#allocation31_spill] sm:$0xff] %v8319_v43  ;;  %v8341_v57 = vld [vmem:[%s11860_s3 + $0x88] ss:$20 sps:$4 sm:$0xff]  }
 0x3da   :  { %v593_v17 = vmul.f32 %v8297_v60, %v581_v32  ;;  %12055 = vst [vmem:[#allocation33_spill] sm:$0xff] %v8341_v57  ;;  %v8368_v32 = vld [vmem:[%s11860_s3 + $0x100] ss:$20 sps:$4 sm:$0xff]  }
 0x3db   :  { %12058 = vst [vmem:[#allocation36_spill] sm:$0xff] %v8368_v32 }
 0x3dc   :  { %v600_v2 = vadd.f32 %v8302_v61, %v593_v17  ;;  %v8359_v17 = vld [vmem:[%s11860_s3 + $0xd8] ss:$20 sps:$4 sm:$0xff]  }
 0x3dd   :  { %12057 = vst [vmem:[#allocation35_spill] sm:$0xff] %v8359_v17 }
 0x3de   :  { %v602_v34 = vmin.f32 %v600_v2, 0.0  ;;  %vm601_vm2 = vcmp.gt.f32.partialorder %v600_v2, 0.0 }
 0x3e0   :  { %v603_v19 = vmul.f32 1.442695, %v602_v34  ;;  %v8377_v34 = vld [vmem:[%s11860_s3 + $0x128] ss:$20 sps:$4 sm:$0xff]  }
 0x3e1   :  { %12059 = vst [vmem:[#allocation37_spill] sm:$0xff] %v8377_v34 }
 0x3e2   :  { %7056 = vpow2.f32 %v603_v19  ;;  %v12060_v19 = vmov 0  }
 0x3ec   :  { %v7057_v47 = vpop.eup %7056 }
 0x3ed   :  { %v5478_v63 = vadd.f32 -1.0, %v7057_v47  ;;  %v8438_v47 = vld [vmem:[%s11858_s1] ss:$0 sm:$0xff] }
 0x3ee   :  { %12065 = vst [vmem:[#allocation42_spill] sm:$0xff] %v8438_v47 }
 0x3ef   :  { %v8306_v62 = vsel %vm601_vm2, %v600_v2, %v5478_v63  ;;  %v8332_v2 = vld [vmem:[%s11860_s3 + $0x60] ss:$20 sps:$4 sm:$0xff]   ;;  %v8350_v63 = vld [vmem:[%s11860_s3 + $0xb0] ss:$20 sps:$4 sm:$0xff]   ;;  %vm4755_vm2 = vcmask 228352  }
 0x3f0   :  { %v656_v39 = vpack.c.bf16 %v8306_v62, %v8306_v62  ;;  %12054 = vst [vmem:[#allocation32_spill] sm:$0xff] %v8332_v2  ;;  %12056 = vst [vmem:[#allocation34_spill] sm:$0xff] %v8350_v63 }
 0x3f2   :  { %898 = vmatmul.mubr.bf16.vlgmr.msra.gmra.mrb[8].mxu0 %v656_v39  ;;  %939 = vmatmul.mubr.bf16.vlgmr.msra.gmra.mrb[8].mxu1 %v656_v39 }
 0x3f3   :  { %6120 = vmatpush3.bf16.msra.mxu0 %v8311_v56  ;;  %6135 = vmatprep.mubr.msk.bf16.mxu0 %vm7706_vm0, %v12051_v40 }
 0x3f4   :  { %6121 = vmatprep.subr.bf16.mxu0 %v12051_v40  ;;  %6140 = vmatpush3.bf16.msra.mxu1 %v7898_v18 }
 0x3f5   :  { %6141 = vmatprep.subr.bf16.mxu1 %v12051_v40  ;;  %6155 = vmatprep.mubr.msk.bf16.mxu1 %vm7706_vm0, %v12051_v40 }
 0x3f7   :  { %6122 = vmatpush3.bf16.msra.mxu0 %v8319_v43 }
 0x3f8   :  { %6123 = vmatprep.subr.bf16.mxu0 %v12051_v40  ;;  %6142 = vmatpush3.bf16.msra.mxu1 %v7907_v20 }
 0x3f9   :  { %6143 = vmatprep.subr.bf16.mxu1 %v12051_v40 }
 0x3fb   :  { %6124 = vmatpush3.bf16.msra.mxu0 %v8332_v2 }
 0x3fc   :  { %6125 = vmatprep.subr.bf16.mxu0 %v12051_v40  ;;  %6144 = vmatpush3.bf16.msra.mxu1 %v7914_v21 }
 0x3fd   :  { %6145 = vmatprep.subr.bf16.mxu1 %v12051_v40 }
 0x3ff   :  { %6126 = vmatpush3.bf16.msra.mxu0 %v8341_v57 }
 0x400   :  { %6127 = vmatprep.subr.bf16.mxu0 %v12051_v40  ;;  %6146 = vmatpush3.bf16.msra.mxu1 %v7921_v22 }
 0x401   :  { %6147 = vmatprep.subr.bf16.mxu1 %v12051_v40 }
 0x403   :  { %6128 = vmatpush3.bf16.msra.mxu0 %v8350_v63 }
 0x404   :  { %6129 = vmatprep.subr.bf16.mxu0 %v12051_v40  ;;  %6148 = vmatpush3.bf16.msra.mxu1 %v7928_v23 }
 0x405   :  { %6149 = vmatprep.subr.bf16.mxu1 %v12051_v40 }
 0x407   :  { %6130 = vmatpush3.bf16.msra.mxu0 %v8359_v17 }
 0x408   :  { %6131 = vmatprep.subr.bf16.mxu0 %v12051_v40  ;;  %6150 = vmatpush3.bf16.msra.mxu1 %v7935_v24 }
 0x409   :  { %6151 = vmatprep.subr.bf16.mxu1 %v12051_v40 }
 0x40b   :  { %6132 = vmatpush3.bf16.msra.mxu0 %v8368_v32 }
 0x40c   :  { %6133 = vmatprep.subr.bf16.mxu0 %v12051_v40  ;;  %6152 = vmatpush3.bf16.msra.mxu1 %v7942_v25 }
 0x40d   :  { %6153 = vmatprep.subr.bf16.mxu1 %v12051_v40 }
 0x40f   :  { %6134 = vmatpush3.bf16.msra.mxu0 %v8377_v34 }
 0x410   :  { %6154 = vmatpush3.bf16.msra.mxu1 %v7948_v26  ;;  %1233 = vmatprep.subr.bf16.mxu0 %v7801_v0  ;;  %v583_v0 = vrot.slane %v8291_v33, 4  ;;  %v8433_v33 = vld [vmem:[%s11858_s1 + $0x7] ss:$0 sm:$0xff] }
 0x411   :  { %6159 = vmatprep.subr.bf16.mxu1 %v12051_v40  ;;  %12064 = vst [vmem:[#allocation41_spill] sm:$0xff] %v8433_v33 }
 0x412   :  { %6136 = vmatmul.mubr.bf16.vlgmr.msra.gmra.mrb[12].mxu0 %v656_v39  ;;  %v8443_v39 = vld [vmem:[%s11858_s1 + $0x2] ss:$0 sm:$0xff] }
 0x413   :  { %1234 = vmatpush1.bf16.msra.mxu0 %v7806_v1  ;;  %1265 = vmatprep.mubr.bf16.mxu0 %v12060_v19  ;;  %v5434_v1 = vld [vmem:[%s11857_s0 + $0x60] sm:$0xf]  ;;  %12066 = vst [vmem:[#allocation43_spill] sm:$0xff] %v8443_v39 }
 0x414   :  { %1235 = vmatprep.subr.bf16.mxu0 %v7813_v3  ;;  %v585_v3 = vmul.f32 %v5434_v1, %v583_v0  ;;  %v8450_v1 = vld [vmem:[%s11858_s1 + $0x1] ss:$0 sm:$0xff] }
 0x415   :  { %12067 = vst [vmem:[#allocation44_spill] sm:$0xff] %v8450_v1 }
 0x417   :  { %1236 = vmatpush1.bf16.msra.mxu0 %v7819_v4  ;;  %v5435_v4 = vld [vmem:[%s11857_s0 + $0x80] sm:$0xf] }
 0x418   :  { %1237 = vmatprep.subr.bf16.mxu0 %v7825_v5  ;;  %v586_v5 = vadd.f32 %v5435_v4, %v585_v3  ;;  %v8455_v3 = vld [vmem:[%s11858_s1 + $0x3] ss:$0 sm:$0xff]  ;;  %v1084_v4 = vmul.f32 %v8433_v33, %v7972_v45 }
 0x419   :  { %12068 = vst [vmem:[#allocation45_spill] sm:$0xff] %v8455_v3 }
 0x41b   :  { %1238 = vmatpush1.bf16.msra.mxu0 %v7831_v6  ;;  %v8413_v6 = vld [vmem:[%s11858_s1 + $0x6] ss:$0 sm:$0xff] }
 0x41c   :  { %1239 = vmatprep.subr.bf16.mxu0 %v7837_v7  ;;  %12061 = vst [vmem:[#allocation38_spill] sm:$0xff] %v8413_v6  ;;  %v1009_v7 = vmul.f32 %v8413_v6, %v586_v5 }
 0x41f   :  { %1240 = vmatpush1.bf16.msra.mxu0 %v7842_v8  ;;  %v5432_v8 = vld [vmem:[%s11857_s0 + $0x20] sm:$0xf] }
 0x420   :  { %1241 = vmatprep.subr.bf16.mxu0 %v7847_v9  ;;  %v1010_v9 = vadd.f32 %v5432_v8, %v1009_v7  ;;  %v993_v7 = vmul.f32 %v8438_v47, %v586_v5  ;;  %v1108_v8 = vmul.f32 %v8443_v39, %v586_v5  ;;  %v1086_v47 = vrot.slane %v1084_v4, 4 }
 0x423   :  { %1242 = vmatpush1.bf16.msra.mxu0 %v7854_v10  ;;  %v8422_v10 = vld [vmem:[%s11858_s1 + $0x10] ss:$0 sm:$0xff] }
 0x424   :  { %1243 = vmatprep.subr.bf16.mxu0 %v7859_v11  ;;  %12062 = vst [vmem:[#allocation39_spill] sm:$0xff] %v8422_v10  ;;  %v1017_v11 = vadd.f32 %v8422_v10, %v1010_v9  ;;  %v8464_v9 = vld [vmem:[%s11858_s1 + $0xa] ss:$0 sm:$0xff] }
 0x427   :  { %1244 = vmatpush1.bf16.msra.mxu0 %v7866_v12  ;;  %v1018_v12 = vsub.f32 0.0, %v1017_v11 }
 0x428   :  { %1245 = vmatprep.subr.bf16.mxu0 %v7871_v13 }
 0x429   :  { %v1019_v13 = vmul.f32 1.442695, %v1018_v12 }
 0x42b   :  { %1246 = vmatpush1.bf16.msra.mxu0 %v7878_v14  ;;  %7058 = vpow2.f32 %v1019_v13  ;;  %v1076_v13 = vmul.f32 %v8450_v1, %v586_v5 }
 0x42c   :  { %1247 = vmatprep.subr.bf16.mxu0 %v7883_v15 }
 0x42f   :  { %1248 = vmatpush1.bf16.msra.mxu0 %v7890_v16  ;;  %v8428_v16 = vld [vmem:[%s11858_s1 + $0x8] ss:$0 sm:$0xff] }
 0x430   :  { %6179 = vmatprep.subr.bf16.mxu0 %v12051_v40  ;;  %12063 = vst [vmem:[#allocation40_spill] sm:$0xff] %v8428_v16  ;;  %v1116_v0 = vmul.f32 %v8428_v16, %v7972_v45 }
 0x432   :  { %v1118_v10 = vrot.slane %v1116_v0, 4 }
 0x435   :  { %v7059_v14 = vpop.eup %7058 }
 0x436   :  { %v1021_v15 = vadd.f32 1.0, %v7059_v14  ;;  %v1169_v14 = vmul.f32 %v8455_v3, %v586_v5 }
 0x438   :  { %7060 = vrcp.f32 %v1021_v15 }
 0x442   :  { %v8468_v63 = vpop.eup %7060 }
 0x4c5   :  { %v899_v11 = vpop.f32.mrb[8].mxu0  ;;  %v940_v12 = vpop.f32.mrb[8].mxu1 }
 0x4c6   :  { %v994_v15 = vadd.f32 %v993_v7, %v899_v11  ;;  %v1109_v16 = vadd.f32 %v1108_v8, %v940_v12  ;;  %v901_v6 = vpop.f32.mrb[9].mxu0  ;;  %v942_v33 = vpop.f32.mrb[9].mxu1  ;;  %v8513_v11 = vld [vmem:[%s11858_s1 + $0xb] ss:$0 sm:$0xff] }
 0x4c7   :  { %v1077_v34 = vadd.f32 %v1076_v13, %v901_v6  ;;  %v1170_v32 = vadd.f32 %v1169_v14, %v942_v33  ;;  %v903_v39 = vpop.f32.mrb[10].mxu0  ;;  %v944_v17 = vpop.f32.mrb[10].mxu1 }
 0x4c8   :  { %v1001_v57 = vadd.f32 %v8464_v9, %v994_v15  ;;  %v1120_v2 = vadd.f32 %v1118_v10, %v1109_v16  ;;  %v904_v43 = vpop.f32.mrb[11].mxu0  ;;  %v945_v56 = vpop.f32.mrb[11].mxu1 }
 0x4c9   :  { %v1088_v1 = vadd.f32 %v1086_v47, %v1077_v34  ;;  %v8472_v3 = vadd.f32 %v8468_v63, %v1170_v32  ;;  %v8488_v56 = vld [vmem:[%s11858_s1 + $0x4] ss:$0 sm:$0xff] }
 0x4ca   :  { %7062 = vtanh.f32 %v1001_v57 }
 0x4d4   :  { %v8474_v0 = vpop.eup %7062 }
 0x4d5   :  { %v1023_v6 = vpack.c.bf16 %v8474_v0, %v8474_v0 }
 0x4d7   :  { %6156 = vmatmul.mubr.bf16.vlgmr.msra.gmra.mrb[12].mxu1 %v1023_v6 }
 0x4d8   :  { %6160 = vmatpush3.bf16.msra.mxu1 %v7898_v18  ;;  %6175 = vmatprep.mubr.msk.bf16.mxu1 %vm7706_vm0, %v12051_v40  ;;  %v1144_v18 = vmul.f32 %v8488_v56, %v586_v5 }
 0x4d9   :  { %6161 = vmatprep.subr.bf16.mxu1 %v12051_v40 }
 0x4dc   :  { %6162 = vmatpush3.bf16.msra.mxu1 %v7907_v20 }
 0x4dd   :  { %6163 = vmatprep.subr.bf16.mxu1 %v12051_v40 }
 0x4e0   :  { %6164 = vmatpush3.bf16.msra.mxu1 %v7914_v21  ;;  %v8505_v21 = vld [vmem:[%s11858_s1 + $0xc] ss:$0 sm:$0xff] }
 0x4e1   :  { %6165 = vmatprep.subr.bf16.mxu1 %v12051_v40 }
 0x4e4   :  { %6166 = vmatpush3.bf16.msra.mxu1 %v7921_v22  ;;  %v1127_v22 = vadd.f32 %v8505_v21, %v1120_v2 }
 0x4e5   :  { %v981_v43 = vpop.f32.mrb[12].mxu0  ;;  %6167 = vmatprep.subr.bf16.mxu1 %v12051_v40 }
 0x4e6   :  { %v1145_v57 = vadd.f32 %v1144_v18, %v981_v43  ;;  %v6137_v20 = vpop.f32.mrb[13].mxu0  ;;  %v1156_v43 = vrot.slane %v7972_v45, 4 }
 0x4e7   :  { %v984_v17 = vpop.f32.mrb[14].mxu0 }
 0x4e8   :  { %v6138_v32 = vpop.f32.mrb[15].mxu0  ;;  %6168 = vmatpush3.bf16.msra.mxu1 %v7928_v23  ;;  %v1128_v23 = vadd.f32 %v8474_v0, %v1127_v22 }
 0x4e9   :  { %6169 = vmatprep.subr.bf16.mxu1 %v12051_v40 }
 0x4ec   :  { %6170 = vmatpush3.bf16.msra.mxu1 %v7935_v24  ;;  %v1129_v24 = vsub.f32 0.0, %v1128_v23 }
 0x4ed   :  { %6171 = vmatprep.subr.bf16.mxu1 %v12051_v40 }
 0x4ee   :  { %v1130_v34 = vmul.f32 1.442695, %v1129_v24  ;;  %v8522_v24 = vld [vmem:[%s11858_s1 + $0xe] ss:$0 sm:$0xff] }
 0x4f0   :  { %6172 = vmatpush3.bf16.msra.mxu1 %v7942_v25  ;;  %7064 = vpow2.f32 %v1130_v34 }
 0x4f1   :  { %6173 = vmatprep.subr.bf16.mxu1 %v12051_v40 }
 0x4f4   :  { %6174 = vmatpush3.bf16.msra.mxu1 %v7948_v26 }
 0x4f5   :  { %6199 = vmatprep.subr.bf16.mxu1 %v12051_v40 }
 0x4fa   :  { %v7065_v39 = vpop.eup %7064 }
 0x4fb   :  { %v1132_v4 = vadd.f32 1.0, %v7065_v39 }
 0x5aa   :  { %v1058_v5 = vpop.f32.mrb[12].mxu1 }
 0x5ab   :  { %v1064_v25 = vadd.f32 %v7960_v27, %v1058_v5  ;;  %v6157_v10 = vpop.f32.mrb[13].mxu1 }
 0x5ac   :  { %v1061_v16 = vpop.f32.mrb[14].mxu1 }
 0x5ad   :  { %v1065_v26 = vsub.f32 0.0, %v1064_v25  ;;  %v6158_v33 = vpop.f32.mrb[15].mxu1  ;;  %v8530_v16 = vld [vmem:[%s11858_s1 + $0x9] ss:$0 sm:$0xff] }
 0x5ae   :  { %v1172_v33 = vadd.f32 %v8472_v3, %v8306_v62 }
 0x5af   :  { %v1066_v47 = vmul.f32 1.442695, %v1065_v26 }
 0x5b1   :  { %7066 = vpow2.f32 %v1066_v47  ;;  %v8538_v47 = vld [vmem:[%s11858_s1 + $0xd] ss:$0 sm:$0xff] }
 0x5b2   :  { %7068 = vrcp.f32 %v1132_v4 }
 0x5bb   :  { %v7067_v7 = vpop.eup %7066 }
 0x5bc   :  { %v1068_v8 = vadd.f32 1.0, %v7067_v7  ;;  %v7069_v2 = vpop.eup %7068 }
 0x5bd   :  { %v1135_v12 = vsub.f32 1.0, %v7069_v2  ;;  %v1134_v14 = vmul.f32 %v7069_v2, %v7966_v37  ;;  %v1152_v37 = vadd.f32 %v8522_v24, %v1145_v57 }
 0x5be   :  { %7070 = vrcp.f32 %v1068_v8 }
 0x5c8   :  { %v7071_v27 = vpop.eup %7070 }
 0x5c9   :  { %v1095_v13 = vmul.f32 %v7071_v27, %v8513_v11  ;;  %v1136_v15 = vmul.f32 %v7071_v27, %v1135_v12 }
 0x5cb   :  { %v1096_v6 = vadd.f32 %v1095_v13, %v1088_v1  ;;  %v1137_v18 = vadd.f32 %v1136_v15, %v1134_v14 }
 0x5cd   :  { %v1097_v20 = vsub.f32 0.0, %v1096_v6  ;;  %v1154_v17 = vadd.f32 %v8468_v63, %v1137_v18 }
 0x5cf   :  { %v1098_v32 = vmul.f32 1.442695, %v1097_v20  ;;  %v1158_v22 = vmul.f32 %v1156_v43, %v1154_v17 }
 0x5d1   :  { %7072 = vpow2.f32 %v1098_v32 }
 0x5db   :  { %v7073_v23 = vpop.eup %7072 }
 0x5dc   :  { %v1100_v34 = vadd.f32 1.0, %v7073_v23 }
 0x5de   :  { %7074 = vrcp.f32 %v1100_v34 }
 0x5df   :  { %7076 = vtanh.f32 %v1152_v37 }
 0x5e8   :  { %v7075_v1 = vpop.eup %7074 }
 0x5e9   :  { %v1159_v45 = vmul.f32 %v7075_v1, %v8474_v0  ;;  %v7077_v25 = vpop.eup %7076 }
 0x5eb   :  { %v1160_v5 = vmul.f32 %v8468_v63, %v1159_v45 }
 0x5ed   :  { %v1161_v10 = vmul.f32 %v7077_v25, %v1160_v5 }
 0x5ef   :  { %v1162_v26 = vadd.f32 %v1161_v10, %v1158_v22 }
 0x5f1   :  { %v1179_v57 = vmul.f32 %v8530_v16, %v1162_v26  ;;  %v1193_v7 = vadd.f32 %v1162_v26, %v8306_v62  ;;  %v1229_v13 = vrot.slane %v1162_v26, 4  ;;  %v8567_v62 = vld [vmem:[%s11857_s0 + $0x44] sm:$0xf] }
 0x5f3   :  { %v1180_v0 = vadd.f32 %v1179_v57, %v1172_v33 }
 0x5f5   :  { %v1187_v63 = vadd.f32 %v8538_v47, %v1180_v0 }
 0x5f7   :  { %v1188_v39 = vsub.f32 0.0, %v1187_v63 }
 0x5f9   :  { %v1189_v4 = vmul.f32 1.442695, %v1188_v39 }
 0x5fb   :  { %7078 = vpow2.f32 %v1189_v4 }
 0x5fc   :  { %7080 = vtanh.f32 %v1193_v7 }
 0x605   :  { %v7079_v8 = vpop.eup %7078 }
 0x606   :  { %v1191_v2 = vadd.f32 1.0, %v7079_v8  ;;  %v7081_v3 = vpop.eup %7080 }
 0x608   :  { %7082 = vrcp.f32 %v1191_v2 }
 0x612   :  { %v7083_v12 = vpop.eup %7082 }
 0x613   :  { %v8542_v27 = vmul.f32 %v7083_v12, %v7081_v3 }
 0x615   :  { %12069 = vst [vmem:[#allocation46_spill] sm:$0xff] %v8542_v27  ;;  %v1231_v14 = vsel %vm431_vm1, %v8542_v27, %v1229_v13 }
 0x616   :  { %v1232_v15 = vpack.c.bf16 %v1231_v14, %v1231_v14 }
 0x618   :  { %1266 = vmatmul.mubr.bf16.vlgmr.msra.gmra.mrb[16].mxu0 %v1232_v15 }
 0x619   :  { %6180 = vmatpush3.bf16.msra.mxu0 %v7981_v48  ;;  %6195 = vmatprep.mubr.msk.bf16.mxu0 %vm7706_vm0, %v12051_v40 }
 0x61a   :  { %6181 = vmatprep.subr.bf16.mxu0 %v12051_v40 }
 0x61d   :  { %6182 = vmatpush3.bf16.msra.mxu0 %v7990_v49 }
 0x61e   :  { %6183 = vmatprep.subr.bf16.mxu0 %v12051_v40 }
 0x621   :  { %6184 = vmatpush3.bf16.msra.mxu0 %v7999_v50 }
 0x622   :  { %6185 = vmatprep.subr.bf16.mxu0 %v12051_v40 }
 0x625   :  { %6186 = vmatpush3.bf16.msra.mxu0 %v8008_v51 }
 0x626   :  { %6187 = vmatprep.subr.bf16.mxu0 %v12051_v40 }
 0x629   :  { %6188 = vmatpush3.bf16.msra.mxu0 %v8014_v52 }
 0x62a   :  { %6189 = vmatprep.subr.bf16.mxu0 %v12051_v40 }
 0x62d   :  { %6190 = vmatpush3.bf16.msra.mxu0 %v8023_v53 }
 0x62e   :  { %6191 = vmatprep.subr.bf16.mxu0 %v12051_v40 }
 0x631   :  { %6192 = vmatpush3.bf16.msra.mxu0 %v8032_v54 }
 0x632   :  { %6193 = vmatprep.subr.bf16.mxu0 %v12051_v40 }
 0x635   :  { %6194 = vmatpush3.bf16.msra.mxu0 %v8041_v55 }
 0x636   :  { %1456 = vmatprep.subr.bf16.mxu0 %v8080_v44  ;;  %v8573_v44 = vld [vmem:[%s11857_s0 + $0x4] sm:$0xf] }
 0x6eb   :  { %v1267_v6 = vpop.f32.mrb[16].mxu0 }
 0x6ec   :  { %v1274_v18 = vadd.f32 %v8567_v62, %v1267_v6  ;;  %v1269_v43 = vpop.f32.mrb[17].mxu0  ;;  %v12079_v6 = vld [vmem:[#allocation5_spill] sm:$0xff] }
 0x6ed   :  { %v1271_v20 = vpop.f32.mrb[18].mxu0 }
 0x6ee   :  { %v1275_v17 = vsub.f32 0.0, %v1274_v18  ;;  %v1272_v32 = vpop.f32.mrb[19].mxu0 }
 0x6f0   :  { %v1276_v22 = vmul.f32 1.442695, %v1275_v17 }
 0x6f2   :  { %7084 = vpow2.f32 %v1276_v22 }
 0x6fc   :  { %v7085_v23 = vpop.eup %7084 }
 0x6fd   :  { %v1278_v34 = vadd.f32 1.0, %v7085_v23 }
 0x6ff   :  { %7086 = vrcp.f32 %v1278_v34 }
 0x700   :  { %7088 = vtanh.f32 %v1269_v43 }
 0x709   :  { %v7087_v37 = vpop.eup %7086 }
 0x70a   :  { %v1281_v1 = vmul.f32 %v7087_v37, %v8573_v44  ;;  %v7089_v45 = vpop.eup %7088 }
 0x70b   :  { %v1287_v10 = vrot.slane %v7089_v45, 4 }
 0x70c   :  { %v1283_v5 = vrot.slane %v1281_v1, 4  ;;  %v12081_v1 = vld [vmem:[#allocation8_spill] sm:$0xff] }
 0x70d   :  { %v1289_v57 = vsub.f32 %v1162_v26, %v1287_v10  ;;  %v12085_v10 = vld [vmem:[#allocation12_spill] sm:$0xff] }
 0x70e   :  { %v1285_v25 = vmul.f32 %v7089_v45, %v1283_v5  ;;  %v12082_v45 = vld [vmem:[#allocation9_spill] sm:$0xff]  ;;  %v12083_v5 = vld [vmem:[#allocation10_spill] sm:$0xff] }
 0x710   :  { %v1290_v33 = vmul.f32 2.0, %v1285_v25  ;;  %v12084_v25 = vld [vmem:[#allocation11_spill] sm:$0xff] }
 0x712   :  { %v1292_v0 = vrot.slane %v1290_v33, 4  ;;  %v12086_v33 = vld [vmem:[#allocation13_spill] sm:$0xff] }
 0x714   :  { %v8576_v63 = vadd.f32 %v1292_v0, %v1289_v57  ;;  %v12087_v57 = vld [vmem:[#allocation16_spill] sm:$0xff]  ;;  %v12088_v0 = vld [vmem:[#allocation17_spill] sm:$0xff] }
 0x716   :  { %v1295_v39 = vpack.c.bf16 %v8576_v63, %v8576_v63 }
 0x718   :  { %6176 = vmatmul.mubr.bf16.vlgmr.msra.gmra.mrb[16].mxu1 %v1295_v39  ;;  %v12089_v39 = vld [vmem:[#allocation20_spill] sm:$0xff] }
 0x719   :  { %6200 = vmatpush3.bf16.msra.mxu1 %v7981_v48  ;;  %6215 = vmatprep.mubr.msk.bf16.mxu1 %vm7706_vm0, %v12051_v40 }
 0x71a   :  { %6201 = vmatprep.subr.bf16.mxu1 %v12051_v40 }
 0x71d   :  { %6202 = vmatpush3.bf16.msra.mxu1 %v7990_v49 }
 0x71e   :  { %6203 = vmatprep.subr.bf16.mxu1 %v12051_v40 }
 0x721   :  { %6204 = vmatpush3.bf16.msra.mxu1 %v7999_v50 }
 0x722   :  { %6205 = vmatprep.subr.bf16.mxu1 %v12051_v40 }
 0x725   :  { %6206 = vmatpush3.bf16.msra.mxu1 %v8008_v51 }
 0x726   :  { %6207 = vmatprep.subr.bf16.mxu1 %v12051_v40 }
 0x729   :  { %6208 = vmatpush3.bf16.msra.mxu1 %v8014_v52 }
 0x72a   :  { %6209 = vmatprep.subr.bf16.mxu1 %v12051_v40 }
 0x72d   :  { %6210 = vmatpush3.bf16.msra.mxu1 %v8023_v53 }
 0x72e   :  { %6211 = vmatprep.subr.bf16.mxu1 %v12051_v40 }
 0x731   :  { %6212 = vmatpush3.bf16.msra.mxu1 %v8032_v54  ;;  %v1342_v54 = vmul.f32 %v7087_v37, %v8062_v30  ;;  %v12072_v30 = vld [vmem:[#allocation18_spill] sm:$0xff] }
 0x732   :  { %6213 = vmatprep.subr.bf16.mxu1 %v12051_v40 }
 0x735   :  { %6214 = vmatpush3.bf16.msra.mxu1 %v8041_v55  ;;  %v1345_v55 = vmul.f32 %v7087_v37, %v8052_v28  ;;  %v12070_v28 = vld [vmem:[#allocation14_spill] sm:$0xff]  ;;  %v12080_v37 = vld [vmem:[#allocation7_spill] sm:$0xff] }
 0x736   :  { %1497 = vmatprep.subr.bf16.mxu1 %v8090_v46 }
 0x7eb   :  { %v1330_v48 = vpop.f32.mrb[16].mxu1 }
 0x7ec   :  { %v1336_v49 = vadd.f32 %v8567_v62, %v1330_v48  ;;  %v6177_v50 = vpop.f32.mrb[17].mxu1  ;;  %v12090_v48 = vld [vmem:[#allocation21_spill] sm:$0xff] }
 0x7ed   :  { %v1333_v51 = vpop.f32.mrb[18].mxu1  ;;  %v12092_v50 = vld [vmem:[#allocation25_spill] sm:$0xff] }
 0x7ee   :  { %v1337_v52 = vsub.f32 0.0, %v1336_v49  ;;  %v6178_v26 = vpop.f32.mrb[19].mxu1  ;;  %v12091_v49 = vld [vmem:[#allocation24_spill] sm:$0xff]  ;;  %v12093_v51 = vld [vmem:[#allocation27_spill] sm:$0xff] }
 0x7ef   :  { %v5541_v26 = vld [vmem:[%s11857_s0 + $0xa4] sm:$0xf] }
 0x7f0   :  { %v1338_v4 = vmul.f32 1.442695, %v1337_v52  ;;  %v12094_v52 = vld [vmem:[#allocation29_spill] sm:$0xff] }
 0x7f2   :  { %7090 = vpow2.f32 %v1338_v4  ;;  %v5542_v4 = vld [vmem:[%s11857_s0 + $0xc4] sm:$0xf] }
 0x7fc   :  { %v7091_v53 = vpop.eup %7090 }
 0x7fd   :  { %v1340_v7 = vadd.f32 1.0, %v7091_v53 }
 0x7ff   :  { %7092 = vrcp.f32 %v1340_v7 }
 0x809   :  { %v7093_v8 = vpop.eup %7092 }
 0x80a   :  { %v1343_v2 = vmul.f32 %v7093_v8, %v8067_v31  ;;  %v1346_v46 = vmul.f32 %v7093_v8, %v8057_v29  ;;  %v12071_v29 = vld [vmem:[#allocation15_spill] sm:$0xff] }
 0x80b   :  { %v12073_v31 = vld [vmem:[#allocation19_spill] sm:$0xff] }
 0x80c   :  { %v1344_v3 = vadd.f32 %v1343_v2, %v1342_v54  ;;  %v1347_v12 = vadd.f32 %v1346_v46, %v1345_v55 }
 0x80e   :  { %v1349_v13 = vrot.slane %v1347_v12, 4 }
 0x810   :  { %v1351_v14 = vsel %vm431_vm1, %v1344_v3, %v1349_v13 }
 0x811   :  { %v1352_v15 = vpack.c.bf16 %v1351_v14, %v1351_v14 }
 0x813   :  { %6196 = vmatmul.mubr.bf16.vlgmr.msra.gmra.mrb[20].mxu0 %v1352_v15 }
 0x814   :  { %1457 = vmatpush1.bf16.msra.mxu0 %v8085_v38  ;;  %1488 = vmatprep.mubr.bf16.mxu0 %v12060_v19  ;;  %v12074_v38 = vld [vmem:[#allocation22_spill] sm:$0xff] }
 0x815   :  { %1458 = vmatprep.subr.bf16.mxu0 %v8118_v35  ;;  %v12075_v35 = vld [vmem:[#allocation23_spill] sm:$0xff] }
 0x818   :  { %1459 = vmatpush1.bf16.msra.mxu0 %v8123_v36  ;;  %v12076_v36 = vld [vmem:[#allocation26_spill] sm:$0xff] }
 0x819   :  { %1460 = vmatprep.subr.bf16.mxu0 %v8142_v41  ;;  %v12077_v41 = vld [vmem:[#allocation28_spill] sm:$0xff] }
 0x81c   :  { %1461 = vmatpush1.bf16.msra.mxu0 %v8147_v42 }
 0x81d   :  { %1462 = vmatprep.subr.bf16.mxu0 %v8166_v58  ;;  %v12078_v58 = vld [vmem:[#allocation6_spill] sm:$0xff] }
 0x820   :  { %1463 = vmatpush1.bf16.msra.mxu0 %v8171_v59 }
 0x821   :  { %1464 = vmatprep.subr.bf16.mxu0 %v12070_v28 }
 0x824   :  { %1465 = vmatpush1.bf16.msra.mxu0 %v12071_v29 }
 0x825   :  { %1466 = vmatprep.subr.bf16.mxu0 %v12072_v30 }
 0x828   :  { %1467 = vmatpush1.bf16.msra.mxu0 %v12073_v31  ;;  %v12095_v31 = vld [vmem:[#allocation30_spill] sm:$0xff] }
 0x829   :  { %1468 = vmatprep.subr.bf16.mxu0 %v12074_v38  ;;  %v8674_v38 = vld [vmem:[%s11859_s2 + $0x10] ss:$8 sps:$4 sm:$0xff]  }
 0x82c   :  { %1469 = vmatpush1.bf16.msra.mxu0 %v12075_v35  ;;  %v12097_v35 = vld [vmem:[#allocation32_spill] sm:$0xff] }
 0x82d   :  { %1470 = vmatprep.subr.bf16.mxu0 %v12076_v36  ;;  %v8683_v36 = vld [vmem:[%s11859_s2 + $0x20] ss:$8 sps:$4 sm:$0xff]  }
 0x830   :  { %1471 = vmatpush1.bf16.msra.mxu0 %v12077_v41  ;;  %v12098_v41 = vld [vmem:[#allocation33_spill] sm:$0xff] }
 0x831   :  { %6219 = vmatprep.subr.bf16.mxu0 %v12051_v40 }
 0x8e6   :  { %v1387_v42 = vpop.f32.mrb[20].mxu0 }
 0x8e7   :  { %v1393_v59 = vadd.f32 %v12078_v58, %v1387_v42  ;;  %v1395_v18 = vadd.f32 %v12079_v6, %v1387_v42  ;;  %v6197_v43 = vpop.f32.mrb[21].mxu0  ;;  %v8692_v42 = vld [vmem:[%s11859_s2 + $0x30] ss:$8 sps:$4 sm:$0xff]  }
 0x8e8   :  { %v1390_v20 = vpop.f32.mrb[22].mxu0  ;;  %v12099_v58 = vld [vmem:[#allocation34_spill] sm:$0xff]  ;;  %v12100_v6 = vld [vmem:[#allocation35_spill] sm:$0xff]  ;;  %v12101_v43 = vld [vmem:[#allocation36_spill] sm:$0xff] }
 0x8e9   :  { %7094 = vtanh.f32 %v1393_v59  ;;  %v6198_v17 = vpop.f32.mrb[23].mxu0  ;;  %v8701_v59 = vld [vmem:[%s11859_s2 + $0x40] ss:$8 sps:$4 sm:$0xff]  }
 0x8ea   :  { %7096 = vtanh.f32 %v1395_v18  ;;  %v8710_v18 = vld [vmem:[%s11859_s2 + $0x50] ss:$8 sps:$4 sm:$0xff]   ;;  %v8719_v20 = vld [vmem:[%s11859_s2 + $0x60] ss:$8 sps:$4 sm:$0xff]  }
 0x8eb   :  { %v12102_v17 = vld [vmem:[#allocation37_spill] sm:$0xff] }
 0x8f3   :  { %v7095_v32 = vpop.eup %7094 }
 0x8f4   :  { %v7097_v22 = vpop.eup %7096 }
 0x8f5   :  { %v1397_v23 = vsel %vm431_vm1, %v7095_v32, %v7097_v22  ;;  %v8727_v32 = vld [vmem:[%s11859_s2 + $0x70] ss:$8 sps:$4 sm:$0xff]   ;;  %v8733_v22 = vld [vmem:[%s11859_s2 + $0x4] ss:$8 sps:$4 sm:$0xff]  }
 0x8f6   :  { %v1398_v34 = vpack.c.bf16 %v1397_v23, %v1397_v23  ;;  %v8740_v23 = vld [vmem:[%s11859_s2] ss:$8 sps:$4 sm:$0xff]  }
 0x8f8   :  { %6216 = vmatmul.mubr.bf16.vlgmr.msra.gmra.mrb[20].mxu1 %v1398_v34  ;;  %v8747_v34 = vld [vmem:[%s11859_s2 + $0x14] ss:$8 sps:$4 sm:$0xff]  }
 0x8f9   :  { %1498 = vmatpush1.bf16.msra.mxu1 %v12080_v37  ;;  %1529 = vmatprep.mubr.bf16.mxu1 %v12060_v19  ;;  %v8753_v37 = vld [vmem:[%s11859_s2 + $0x10] ss:$8 sps:$4 sm:$0xff]  }
 0x8fa   :  { %1499 = vmatprep.subr.bf16.mxu1 %v12081_v1  ;;  %v8759_v1 = vld [vmem:[%s11859_s2 + $0x24] ss:$8 sps:$4 sm:$0xff]  }
 0x8fd   :  { %1500 = vmatpush1.bf16.msra.mxu1 %v12082_v45  ;;  %v8765_v45 = vld [vmem:[%s11859_s2 + $0x20] ss:$8 sps:$4 sm:$0xff]  }
 0x8fe   :  { %1501 = vmatprep.subr.bf16.mxu1 %v12083_v5  ;;  %v8771_v5 = vld [vmem:[%s11859_s2 + $0x34] ss:$8 sps:$4 sm:$0xff]  }
 0x901   :  { %1502 = vmatpush1.bf16.msra.mxu1 %v12084_v25  ;;  %v8777_v25 = vld [vmem:[%s11859_s2 + $0x30] ss:$8 sps:$4 sm:$0xff]  }
 0x902   :  { %1503 = vmatprep.subr.bf16.mxu1 %v12085_v10  ;;  %v8783_v10 = vld [vmem:[%s11859_s2 + $0x44] ss:$8 sps:$4 sm:$0xff]  }
 0x905   :  { %1504 = vmatpush1.bf16.msra.mxu1 %v12086_v33  ;;  %v8789_v33 = vld [vmem:[%s11859_s2 + $0x40] ss:$8 sps:$4 sm:$0xff]  }
 0x906   :  { %1505 = vmatprep.subr.bf16.mxu1 %v12087_v57  ;;  %v8795_v57 = vld [vmem:[%s11859_s2 + $0x54] ss:$8 sps:$4 sm:$0xff]  }
 0x909   :  { %1506 = vmatpush1.bf16.msra.mxu1 %v12088_v0  ;;  %v8801_v0 = vld [vmem:[%s11859_s2 + $0x50] ss:$8 sps:$4 sm:$0xff]  }
 0x90a   :  { %1507 = vmatprep.subr.bf16.mxu1 %v12089_v39  ;;  %v8807_v39 = vld [vmem:[%s11859_s2 + $0x64] ss:$8 sps:$4 sm:$0xff]  }
 0x90d   :  { %1508 = vmatpush1.bf16.msra.mxu1 %v12090_v48  ;;  %v8813_v48 = vld [vmem:[%s11859_s2 + $0x60] ss:$8 sps:$4 sm:$0xff]  }
 0x90e   :  { %1509 = vmatprep.subr.bf16.mxu1 %v12091_v49  ;;  %v8819_v49 = vld [vmem:[%s11859_s2 + $0x74] ss:$8 sps:$4 sm:$0xff]  }
 0x911   :  { %1510 = vmatpush1.bf16.msra.mxu1 %v12092_v50  ;;  %v8825_v50 = vld [vmem:[%s11859_s2 + $0x70] ss:$8 sps:$4 sm:$0xff]  }
 0x912   :  { %1511 = vmatprep.subr.bf16.mxu1 %v12093_v51 }
 0x915   :  { %1512 = vmatpush1.bf16.msra.mxu1 %v12094_v52  ;;  %v5539_v52 = vld [vmem:[%s11857_s0 + $0x64] sm:$0xf] }
 0x916   :  { %6239 = vmatprep.subr.bf16.mxu1 %v12051_v40 }
 0x9cb   :  { %v8647_v53 = vpop.f32.mrb[20].mxu1 }
 0x9cc   :  { %v1439_v7 = vmul.f32 %v5541_v26, %v8647_v53  ;;  %v6217_v8 = vpop.f32.mrb[21].mxu1  ;;  %v1442_v51 = vrot.slane %v8647_v53, 4 }
 0x9cd   :  { %v1436_v54 = vpop.f32.mrb[22].mxu1  ;;  %v12103_v8 = vld [vmem:[#allocation38_spill] sm:$0xff] }
 0x9ce   :  { %v1440_v2 = vadd.f32 %v5542_v4, %v1439_v7  ;;  %v6218_v55 = vpop.f32.mrb[23].mxu1  ;;  %v1444_v26 = vmul.f32 %v5539_v52, %v1442_v51  ;;  %v5540_v4 = vld [vmem:[%s11857_s0 + $0x84] sm:$0xf] }
 0x9d0   :  { %v1446_v46 = vmul.f32 %v8297_v60, %v1440_v2  ;;  %v8663_v60 = vld [vmem:[%s11859_s2] ss:$8 sps:$4 sm:$0xff]   ;;  %v1445_v7 = vadd.f32 %v5540_v4, %v1444_v26  ;;  %v5537_v2 = vld [vmem:[%s11857_s0 + $0x24] sm:$0xf] }
 0x9d2   :  { %v1447_v3 = vadd.f32 %v8302_v61, %v1446_v46  ;;  %v12096_v61 = vld [vmem:[#allocation31_spill] sm:$0xff]  ;;  %v1582_v54 = vmul.f32 %v12103_v8, %v1445_v7 }
 0x9d3   :  { %v12104_v46 = vld [vmem:[#allocation39_spill] sm:$0xff] }
 0x9d4   :  { %v1449_v12 = vmin.f32 %v1447_v3, 0.0  ;;  %vm1448_vm3 = vcmp.gt.f32.partialorder %v1447_v3, 0.0  ;;  %v1583_v55 = vadd.f32 %v5537_v2, %v1582_v54 }
 0x9d6   :  { %v1450_v13 = vmul.f32 1.442695, %v1449_v12 }
 0x9d8   :  { %7098 = vpow2.f32 %v1450_v13 }
 0x9e2   :  { %v7099_v14 = vpop.eup %7098 }
 0x9e3   :  { %v5543_v15 = vadd.f32 -1.0, %v7099_v14 }
 0x9e5   :  { %v8652_v28 = vsel %vm1448_vm3, %v1447_v3, %v5543_v15  ;;  %v1584_v3 = vadd.f32 %v12104_v46, %v1583_v55  ;;  %v12105_v15 = vld [vmem:[#allocation42_spill] sm:$0xff]  ;;  %vm4757_vm3 = vcmask 254976  }
 0x9e6   :  { %v1454_v29 = vadd.f32 %v8652_v28, %v8542_v27 }
 0x9e7   :  { %v1585_v53 = vsub.f32 0.0, %v1584_v3 }
 0x9e8   :  { %v1455_v30 = vpack.c.bf16 %v1454_v29, %v1454_v29  ;;  %v1578_v29 = vmul.f32 %v12105_v15, %v1445_v7 }
 0x9e9   :  { %v1586_v12 = vmul.f32 1.442695, %v1585_v53 }
 0x9ea   :  { %1489 = vmatmul.mubr.bf16.vlgmr.msra.gmra.mrb[24].mxu0 %v1455_v30  ;;  %1530 = vmatmul.mubr.bf16.vlgmr.msra.gmra.mrb[24].mxu1 %v1455_v30 }
 0x9eb   :  { %6220 = vmatpush3.bf16.msra.mxu0 %v12095_v31  ;;  %6235 = vmatprep.mubr.msk.bf16.mxu0 %vm7706_vm0, %v12051_v40  ;;  %7100 = vpow2.f32 %v1586_v12 }
 0x9ec   :  { %6221 = vmatprep.subr.bf16.mxu0 %v12051_v40  ;;  %6240 = vmatpush3.bf16.msra.mxu1 %v8663_v60 }
 0x9ed   :  { %6241 = vmatprep.subr.bf16.mxu1 %v12051_v40  ;;  %6255 = vmatprep.mubr.msk.bf16.mxu1 %vm7706_vm0, %v12051_v40 }
 0x9ef   :  { %6222 = vmatpush3.bf16.msra.mxu0 %v12096_v61 }
 0x9f0   :  { %6223 = vmatprep.subr.bf16.mxu0 %v12051_v40  ;;  %6242 = vmatpush3.bf16.msra.mxu1 %v8674_v38 }
 0x9f1   :  { %6243 = vmatprep.subr.bf16.mxu1 %v12051_v40 }
 0x9f3   :  { %6224 = vmatpush3.bf16.msra.mxu0 %v12097_v35 }
 0x9f4   :  { %6225 = vmatprep.subr.bf16.mxu0 %v12051_v40  ;;  %6244 = vmatpush3.bf16.msra.mxu1 %v8683_v36 }
 0x9f5   :  { %6245 = vmatprep.subr.bf16.mxu1 %v12051_v40  ;;  %v7101_v13 = vpop.eup %7100 }
 0x9f6   :  { %v1588_v14 = vadd.f32 1.0, %v7101_v13 }
 0x9f7   :  { %6226 = vmatpush3.bf16.msra.mxu0 %v12098_v41  ;;  %v12107_v41 = vld [vmem:[#allocation44_spill] sm:$0xff] }
 0x9f8   :  { %6227 = vmatprep.subr.bf16.mxu0 %v12051_v40  ;;  %6246 = vmatpush3.bf16.msra.mxu1 %v8692_v42  ;;  %7102 = vrcp.f32 %v1588_v14 }
 0x9f9   :  { %6247 = vmatprep.subr.bf16.mxu1 %v12051_v40 }
 0x9fb   :  { %6228 = vmatpush3.bf16.msra.mxu0 %v12099_v58  ;;  %v1637_v58 = vmul.f32 %v12107_v41, %v1445_v7 }
 0x9fc   :  { %6229 = vmatprep.subr.bf16.mxu0 %v12051_v40  ;;  %6248 = vmatpush3.bf16.msra.mxu1 %v8701_v59 }
 0x9fd   :  { %6249 = vmatprep.subr.bf16.mxu1 %v12051_v40 }
 0x9ff   :  { %6230 = vmatpush3.bf16.msra.mxu0 %v12100_v6  ;;  %v12108_v6 = vld [vmem:[#allocation45_spill] sm:$0xff] }
 0xa00   :  { %6231 = vmatprep.subr.bf16.mxu0 %v12051_v40  ;;  %6250 = vmatpush3.bf16.msra.mxu1 %v8710_v18 }
 0xa01   :  { %6251 = vmatprep.subr.bf16.mxu1 %v12051_v40 }
 0xa02   :  { %v8845_v55 = vpop.eup %7102 }
 0xa03   :  { %6232 = vmatpush3.bf16.msra.mxu0 %v12101_v43  ;;  %v1673_v43 = vmul.f32 %v12108_v6, %v1445_v7 }
 0xa04   :  { %6233 = vmatprep.subr.bf16.mxu0 %v12051_v40  ;;  %6252 = vmatpush3.bf16.msra.mxu1 %v8719_v20 }
 0xa05   :  { %6253 = vmatprep.subr.bf16.mxu1 %v12051_v40 }
 0xa07   :  { %6234 = vmatpush3.bf16.msra.mxu0 %v12102_v17 }
 0xa08   :  { %6254 = vmatpush3.bf16.msra.mxu1 %v8727_v32  ;;  %1713 = vmatprep.subr.bf16.mxu0 %v8733_v22 }
 0xa09   :  { %6259 = vmatprep.subr.bf16.mxu1 %v12051_v40 }
 0xa0a   :  { %6236 = vmatmul.mubr.bf16.vlgmr.msra.gmra.mrb[28].mxu0 %v1455_v30  ;;  %v12106_v30 = vld [vmem:[#allocation43_spill] sm:$0xff] }
 0xa0b   :  { %1714 = vmatpush1.bf16.msra.mxu0 %v8740_v23  ;;  %1745 = vmatprep.mubr.bf16.mxu0 %v12060_v19  ;;  %v1648_v31 = vmul.f32 %v12106_v30, %v1445_v7 }
 0xa0c   :  { %1715 = vmatprep.subr.bf16.mxu0 %v8747_v34 }
 0xa0f   :  { %1716 = vmatpush1.bf16.msra.mxu0 %v8753_v37 }
 0xa10   :  { %1717 = vmatprep.subr.bf16.mxu0 %v8759_v1 }
 0xa13   :  { %1718 = vmatpush1.bf16.msra.mxu0 %v8765_v45 }
 0xa14   :  { %1719 = vmatprep.subr.bf16.mxu0 %v8771_v5 }
 0xa17   :  { %1720 = vmatpush1.bf16.msra.mxu0 %v8777_v25 }
 0xa18   :  { %1721 = vmatprep.subr.bf16.mxu0 %v8783_v10 }
 0xa1b   :  { %1722 = vmatpush1.bf16.msra.mxu0 %v8789_v33 }
 0xa1c   :  { %1723 = vmatprep.subr.bf16.mxu0 %v8795_v57 }
 0xa1f   :  { %1724 = vmatpush1.bf16.msra.mxu0 %v8801_v0 }
 0xa20   :  { %1725 = vmatprep.subr.bf16.mxu0 %v8807_v39 }
 0xa23   :  { %1726 = vmatpush1.bf16.msra.mxu0 %v8813_v48 }
 0xa24   :  { %1727 = vmatprep.subr.bf16.mxu0 %v8819_v49 }
 0xa27   :  { %1728 = vmatpush1.bf16.msra.mxu0 %v8825_v50 }
 0xa28   :  { %6279 = vmatprep.subr.bf16.mxu0 %v12051_v40 }
 0xabd   :  { %v1490_v61 = vpop.f32.mrb[24].mxu0  ;;  %v1531_v35 = vpop.f32.mrb[24].mxu1 }
 0xabe   :  { %v1579_v17 = vadd.f32 %v1578_v29, %v1490_v61  ;;  %v1649_v51 = vadd.f32 %v1648_v31, %v1531_v35  ;;  %v1492_v52 = vpop.f32.mrb[25].mxu0  ;;  %v1533_v26 = vpop.f32.mrb[25].mxu1 }
 0xabf   :  { %v1638_v4 = vadd.f32 %v1637_v58, %v1492_v52  ;;  %v1674_v8 = vadd.f32 %v1673_v43, %v1533_v26  ;;  %v1494_v54 = vpop.f32.mrb[26].mxu0  ;;  %v1535_v2 = vpop.f32.mrb[26].mxu1 }
 0xac0   :  { %v1580_v46 = vadd.f32 %v8464_v9, %v1579_v17  ;;  %v1495_v3 = vpop.f32.mrb[27].mxu0  ;;  %v1536_v53 = vpop.f32.mrb[27].mxu1  ;;  %v1663_v9 = vmul.f32 %v8488_v56, %v1445_v7  ;;  %v12109_v56 = vld [vmem:[#allocation40_spill] sm:$0xff] }
 0xac1   :  { %v8849_v12 = vadd.f32 %v8845_v55, %v1674_v8  ;;  %v1650_v7 = vmul.f32 %v12109_v56, %v8576_v63 }
 0xac2   :  { %7104 = vtanh.f32 %v1580_v46 }
 0xac3   :  { %v1651_v35 = vadd.f32 %v1650_v7, %v1649_v51 }
 0xac5   :  { %v1652_v41 = vadd.f32 %v8505_v21, %v1651_v35 }
 0xacc   :  { %v8851_v13 = vpop.eup %7104 }
 0xacd   :  { %v1590_v14 = vpack.c.bf16 %v8851_v13, %v8851_v13  ;;  %v1653_v58 = vadd.f32 %v8851_v13, %v1652_v41 }
 0xacf   :  { %6256 = vmatmul.mubr.bf16.vlgmr.msra.gmra.mrb[28].mxu1 %v1590_v14  ;;  %v1654_v6 = vsub.f32 0.0, %v1653_v58 }
 0xad0   :  { %6260 = vmatpush3.bf16.msra.mxu1 %v8663_v60  ;;  %6275 = vmatprep.mubr.msk.bf16.mxu1 %vm7706_vm0, %v12051_v40 }
 0xad1   :  { %6261 = vmatprep.subr.bf16.mxu1 %v12051_v40  ;;  %v1655_v43 = vmul.f32 1.442695, %v1654_v6 }
 0xad3   :  { %7106 = vpow2.f32 %v1655_v43 }
 0xad4   :  { %6262 = vmatpush3.bf16.msra.mxu1 %v8674_v38 }
 0xad5   :  { %6263 = vmatprep.subr.bf16.mxu1 %v12051_v40 }
 0xad8   :  { %6264 = vmatpush3.bf16.msra.mxu1 %v8683_v36 }
 0xad9   :  { %6265 = vmatprep.subr.bf16.mxu1 %v12051_v40 }
 0xadc   :  { %6266 = vmatpush3.bf16.msra.mxu1 %v8692_v42 }
 0xadd   :  { %v1572_v15 = vpop.f32.mrb[28].mxu0  ;;  %6267 = vmatprep.subr.bf16.mxu1 %v12051_v40  ;;  %v7107_v3 = vpop.eup %7106 }
 0xade   :  { %v1664_v29 = vadd.f32 %v1663_v9, %v1572_v15  ;;  %v6237_v30 = vpop.f32.mrb[29].mxu0  ;;  %v1657_v53 = vadd.f32 1.0, %v7107_v3  ;;  %v12110_v9 = vld [vmem:[#allocation41_spill] sm:$0xff]  ;;  %v1676_v3 = vadd.f32 %v8849_v12, %v8652_v28 }
 0xadf   :  { %v1575_v31 = vpop.f32.mrb[30].mxu0  ;;  %v1639_v15 = vmul.f32 %v12110_v9, %v8576_v63 }
 0xae0   :  { %v6238_v61 = vpop.f32.mrb[31].mxu0  ;;  %6268 = vmatpush3.bf16.msra.mxu1 %v8701_v59 }
 0xae1   :  { %6269 = vmatprep.subr.bf16.mxu1 %v12051_v40  ;;  %v1640_v61 = vadd.f32 %v1639_v15, %v1638_v4 }
 0xae4   :  { %6270 = vmatpush3.bf16.msra.mxu1 %v8710_v18 }
 0xae5   :  { %6271 = vmatprep.subr.bf16.mxu1 %v12051_v40 }
 0xae8   :  { %6272 = vmatpush3.bf16.msra.mxu1 %v8719_v20 }
 0xae9   :  { %6273 = vmatprep.subr.bf16.mxu1 %v12051_v40 }
 0xaec   :  { %6274 = vmatpush3.bf16.msra.mxu1 %v8727_v32 }
 0xaed   :  { %6299 = vmatprep.subr.bf16.mxu1 %v12051_v40 }
 0xba2   :  { %v1625_v17 = vpop.f32.mrb[28].mxu1 }
 0xba3   :  { %v1631_v52 = vadd.f32 %v8567_v62, %v1625_v17  ;;  %v6257_v26 = vpop.f32.mrb[29].mxu1 }
 0xba4   :  { %v1628_v8 = vpop.f32.mrb[30].mxu1  ;;  %v1665_v26 = vadd.f32 %v8522_v24, %v1664_v29 }
 0xba5   :  { %v1632_v54 = vsub.f32 0.0, %v1631_v52  ;;  %v6258_v2 = vpop.f32.mrb[31].mxu1 }
 0xba7   :  { %v1633_v46 = vmul.f32 1.442695, %v1632_v54 }
 0xba9   :  { %7108 = vpow2.f32 %v1633_v46 }
 0xbaa   :  { %7110 = vrcp.f32 %v1657_v53 }
 0xbb3   :  { %v7109_v51 = vpop.eup %7108 }
 0xbb4   :  { %v1635_v14 = vadd.f32 1.0, %v7109_v51  ;;  %v7111_v21 = vpop.eup %7110 }
 0xbb5   :  { %v1660_v30 = vsub.f32 1.0, %v7111_v21  ;;  %v1659_v56 = vmul.f32 %v7111_v21, %v8573_v44 }
 0xbb6   :  { %7112 = vrcp.f32 %v1635_v14 }
 0xbc0   :  { %v7113_v31 = vpop.eup %7112 }
 0xbc1   :  { %v1641_v62 = vmul.f32 %v7113_v31, %v8513_v11  ;;  %v1661_v7 = vmul.f32 %v7113_v31, %v1660_v30  ;;  %v8905_v30 = vld [vmem:[%s11861_s4] sm:$0xff]   ;;  %v8921_v31 = vld [vmem:[%s11861_s4 + $0x10] sm:$0xff]  }
 0xbc3   :  { %v1642_v35 = vadd.f32 %v1641_v62, %v1640_v61  ;;  %v1662_v41 = vadd.f32 %v1661_v7, %v1659_v56  ;;  %v8928_v61 = vld [vmem:[%s11861_s4 + $0x18] sm:$0xff]   ;;  %v8935_v62 = vld [vmem:[%s11861_s4 + $0x20] sm:$0xff]   ;;  %v8942_v56 = vld [vmem:[%s11861_s4 + $0x28] sm:$0xff]  }
 0xbc4   :  { %v8949_v7 = vld [vmem:[%s11861_s4 + $0x30] sm:$0xff]  }
 0xbc5   :  { %v1643_v58 = vsub.f32 0.0, %v1642_v35  ;;  %v1667_v6 = vadd.f32 %v8845_v55, %v1662_v41  ;;  %v8956_v35 = vld [vmem:[%s11861_s4 + $0x38] sm:$0xff]  }
 0xbc6   :  { %v8962_v41 = vld [vmem:[%s11860_s3 + $0x4] ss:$20 sps:$4 sm:$0xff]  }
 0xbc7   :  { %v1644_v43 = vmul.f32 1.442695, %v1643_v58  ;;  %v1668_v54 = vmul.f32 %v1667_v6, %v8576_v63  ;;  %v8968_v58 = vld [vmem:[%s11857_s0 + $0x48] sm:$0xf] }
 0xbc9   :  { %7114 = vpow2.f32 %v1644_v43 }
 0xbd3   :  { %v7115_v17 = vpop.eup %7114 }
 0xbd4   :  { %v1646_v52 = vadd.f32 1.0, %v7115_v17 }
 0xbd6   :  { %7116 = vrcp.f32 %v1646_v52 }
 0xbd7   :  { %7118 = vtanh.f32 %v1665_v26 }
 0xbe0   :  { %v7117_v8 = vpop.eup %7116 }
 0xbe1   :  { %v1669_v4 = vmul.f32 %v7117_v8, %v8851_v13  ;;  %v7119_v44 = vpop.eup %7118 }
 0xbe3   :  { %v1670_v11 = vmul.f32 %v8845_v55, %v1669_v4 }
 0xbe5   :  { %v1671_v2 = vmul.f32 %v7119_v44, %v1670_v11 }
 0xbe7   :  { %v8888_v46 = vadd.f32 %v1671_v2, %v1668_v54  ;;  %v8974_v54 = vld [vmem:[%s11857_s0 + $0x8] sm:$0xf] }
 0xbe9   :  { %v1677_v53 = vmul.f32 %v8530_v16, %v8888_v46  ;;  %v1685_v55 = vadd.f32 %v8888_v46, %v8652_v28  ;;  %v1709_v12 = vrot.slane %v8888_v46, 4  ;;  %v8914_v28 = vld [vmem:[%s11861_s4 + $0x8] sm:$0xff]  }
 0xbeb   :  { %v1678_v24 = vadd.f32 %v1677_v53, %v1676_v3 }
 0xbed   :  { %v1679_v29 = vadd.f32 %v8538_v47, %v1678_v24 }
 0xbef   :  { %v1680_v51 = vsub.f32 0.0, %v1679_v29 }
 0xbf1   :  { %v1681_v14 = vmul.f32 1.442695, %v1680_v51 }
 0xbf3   :  { %7120 = vpow2.f32 %v1681_v14 }
 0xbf4   :  { %7122 = vtanh.f32 %v1685_v55 }
 0xbfd   :  { %v7121_v13 = vpop.eup %7120 }
 0xbfe   :  { %v1683_v63 = vadd.f32 1.0, %v7121_v13  ;;  %v7123_v21 = vpop.eup %7122 }
 0xc00   :  { %7124 = vrcp.f32 %v1683_v63 }
 0xc0a   :  { %v7125_v9 = vpop.eup %7124 }
 0xc0b   :  { %v8897_v15 = vmul.f32 %v7125_v9, %v7123_v21 }
 0xc0d   :  { %12111 = vst [vmem:[#allocation14_spill] sm:$0xff] %v8897_v15  ;;  %v1711_v16 = vsel %vm431_vm1, %v8897_v15, %v1709_v12 }
 0xc0e   :  { %v1712_v47 = vpack.c.bf16 %v1711_v16, %v1711_v16 }
 0xc10   :  { %1746 = vmatmul.mubr.bf16.vlgmr.msra.gmra.mrb[32].mxu0 %v1712_v47 }
 0xc11   :  { %6280 = vmatpush3.bf16.msra.mxu0 %v8905_v30  ;;  %6295 = vmatprep.mubr.msk.bf16.mxu0 %vm7706_vm0, %v12051_v40 }
 0xc12   :  { %6281 = vmatprep.subr.bf16.mxu0 %v12051_v40 }
 0xc15   :  { %6282 = vmatpush3.bf16.msra.mxu0 %v8914_v28 }
 0xc16   :  { %6283 = vmatprep.subr.bf16.mxu0 %v12051_v40 }
 0xc19   :  { %6284 = vmatpush3.bf16.msra.mxu0 %v8921_v31 }
 0xc1a   :  { %6285 = vmatprep.subr.bf16.mxu0 %v12051_v40 }
 0xc1d   :  { %6286 = vmatpush3.bf16.msra.mxu0 %v8928_v61 }
 0xc1e   :  { %6287 = vmatprep.subr.bf16.mxu0 %v12051_v40 }
 0xc21   :  { %6288 = vmatpush3.bf16.msra.mxu0 %v8935_v62 }
 0xc22   :  { %6289 = vmatprep.subr.bf16.mxu0 %v12051_v40 }
 0xc25   :  { %6290 = vmatpush3.bf16.msra.mxu0 %v8942_v56 }
 0xc26   :  { %6291 = vmatprep.subr.bf16.mxu0 %v12051_v40 }
 0xc29   :  { %6292 = vmatpush3.bf16.msra.mxu0 %v8949_v7 }
 0xc2a   :  { %6293 = vmatprep.subr.bf16.mxu0 %v12051_v40 }
 0xc2d   :  { %6294 = vmatpush3.bf16.msra.mxu0 %v8956_v35 }
 0xc2e   :  { %1936 = vmatprep.subr.bf16.mxu0 %v8962_v41 }
 0xce3   :  { %v1747_v6 = vpop.f32.mrb[32].mxu0 }
 0xce4   :  { %v1754_v43 = vadd.f32 %v8968_v58, %v1747_v6  ;;  %v1749_v17 = vpop.f32.mrb[33].mxu0 }
 0xce5   :  { %v1751_v52 = vpop.f32.mrb[34].mxu0 }
 0xce6   :  { %v1755_v26 = vsub.f32 0.0, %v1754_v43  ;;  %v1752_v8 = vpop.f32.mrb[35].mxu0 }
 0xce8   :  { %v1756_v4 = vmul.f32 1.442695, %v1755_v26 }
 0xcea   :  { %7126 = vpow2.f32 %v1756_v4  ;;  %v9009_v4 = vld [vmem:[%s11858_s1 + $0x15] ss:$0 sm:$0xff] }
 0xcf4   :  { %v7127_v11 = vpop.eup %7126 }
 0xcf5   :  { %v1758_v44 = vadd.f32 1.0, %v7127_v11 }
 0xcf7   :  { %7128 = vrcp.f32 %v1758_v44  ;;  %v9015_v44 = vld [vmem:[%s11858_s1 + $0x16] ss:$0 sm:$0xff] }
 0xcf8   :  { %7130 = vtanh.f32 %v1749_v17 }
 0xd01   :  { %v7129_v2 = vpop.eup %7128 }
 0xd02   :  { %v1761_v3 = vmul.f32 %v7129_v2, %v8974_v54  ;;  %v7131_v53 = vpop.eup %7130  ;;  %v1822_v11 = vmul.f32 %v9009_v4, %v7129_v2 }
 0xd03   :  { %v1767_v51 = vrot.slane %v7131_v53, 4 }
 0xd04   :  { %v1763_v24 = vrot.slane %v1761_v3, 4 }
 0xd05   :  { %v1769_v55 = vsub.f32 %v8888_v46, %v1767_v51  ;;  %v9002_v46 = vld [vmem:[%s11860_s3 + $0xc] ss:$20 sps:$4 sm:$0xff]  }
 0xd06   :  { %v1765_v29 = vmul.f32 %v7131_v53, %v1763_v24  ;;  %v9021_v53 = vld [vmem:[%s11858_s1 + $0x13] ss:$0 sm:$0xff] }
 0xd07   :  { %v1825_v24 = vmul.f32 %v9021_v53, %v7129_v2  ;;  %v9041_v2 = vld [vmem:[%s11860_s3 + $0x2c] ss:$20 sps:$4 sm:$0xff]  }
 0xd08   :  { %v1770_v14 = vmul.f32 2.0, %v1765_v29  ;;  %v9027_v29 = vld [vmem:[%s11858_s1 + $0x14] ss:$0 sm:$0xff] }
 0xd0a   :  { %v1772_v13 = vrot.slane %v1770_v14, 4 }
 0xd0c   :  { %v8978_v63 = vadd.f32 %v1772_v13, %v1769_v55 }
 0xd0e   :  { %v1775_v21 = vpack.c.bf16 %v8978_v63, %v8978_v63 }
 0xd10   :  { %6276 = vmatmul.mubr.bf16.vlgmr.msra.gmra.mrb[32].mxu1 %v1775_v21 }
 0xd11   :  { %6300 = vmatpush3.bf16.msra.mxu1 %v8905_v30  ;;  %6315 = vmatprep.mubr.msk.bf16.mxu1 %vm7706_vm0, %v12051_v40 }
 0xd12   :  { %6301 = vmatprep.subr.bf16.mxu1 %v12051_v40 }
 0xd15   :  { %6302 = vmatpush3.bf16.msra.mxu1 %v8914_v28 }
 0xd16   :  { %6303 = vmatprep.subr.bf16.mxu1 %v12051_v40 }
 0xd19   :  { %6304 = vmatpush3.bf16.msra.mxu1 %v8921_v31 }
 0xd1a   :  { %6305 = vmatprep.subr.bf16.mxu1 %v12051_v40 }
 0xd1d   :  { %6306 = vmatpush3.bf16.msra.mxu1 %v8928_v61 }
 0xd1e   :  { %6307 = vmatprep.subr.bf16.mxu1 %v12051_v40 }
 0xd21   :  { %6308 = vmatpush3.bf16.msra.mxu1 %v8935_v62 }
 0xd22   :  { %6309 = vmatprep.subr.bf16.mxu1 %v12051_v40 }
 0xd25   :  { %6310 = vmatpush3.bf16.msra.mxu1 %v8942_v56 }
 0xd26   :  { %6311 = vmatprep.subr.bf16.mxu1 %v12051_v40 }
 0xd29   :  { %6312 = vmatpush3.bf16.msra.mxu1 %v8949_v7 }
 0xd2a   :  { %6313 = vmatprep.subr.bf16.mxu1 %v12051_v40 }
 0xd2d   :  { %6314 = vmatpush3.bf16.msra.mxu1 %v8956_v35 }
 0xd2e   :  { %1977 = vmatprep.subr.bf16.mxu1 %v9002_v46 }
 0xde3   :  { %v1810_v9 = vpop.f32.mrb[32].mxu1 }
 0xde4   :  { %v1816_v12 = vadd.f32 %v8968_v58, %v1810_v9  ;;  %v6277_v16 = vpop.f32.mrb[33].mxu1 }
 0xde5   :  { %v1813_v47 = vpop.f32.mrb[34].mxu1  ;;  %v9047_v16 = vld [vmem:[%s11860_s3 + $0x28] ss:$20 sps:$4 sm:$0xff]  }
 0xde6   :  { %v1817_v6 = vsub.f32 0.0, %v1816_v12  ;;  %v6278_v43 = vpop.f32.mrb[35].mxu1  ;;  %v9034_v12 = vld [vmem:[%s11860_s3] ss:$20 sps:$4 sm:$0xff]  }
 0xde7   :  { %v9053_v47 = vld [vmem:[%s11860_s3 + $0x54] ss:$20 sps:$4 sm:$0xff]   ;;  %v9065_v43 = vld [vmem:[%s11860_s3 + $0x7c] ss:$20 sps:$4 sm:$0xff]  }
 0xde8   :  { %v1818_v17 = vmul.f32 1.442695, %v1817_v6  ;;  %v9059_v6 = vld [vmem:[%s11860_s3 + $0x50] ss:$20 sps:$4 sm:$0xff]  }
 0xdea   :  { %7132 = vpow2.f32 %v1818_v17  ;;  %v9071_v17 = vld [vmem:[%s11860_s3 + $0x78] ss:$20 sps:$4 sm:$0xff]  }
 0xdf4   :  { %v7133_v52 = vpop.eup %7132 }
 0xdf5   :  { %v1820_v26 = vadd.f32 1.0, %v7133_v52  ;;  %v9077_v52 = vld [vmem:[%s11860_s3 + $0xa4] ss:$20 sps:$4 sm:$0xff]  }
 0xdf6   :  { %12112 = vst [vmem:[#allocation15_spill] sm:$0xff] %v9077_v52 }
 0xdf7   :  { %7134 = vrcp.f32 %v1820_v26  ;;  %v9083_v26 = vld [vmem:[%s11860_s3 + $0xa0] ss:$20 sps:$4 sm:$0xff]  }
 0xdf8   :  { %12113 = vst [vmem:[#allocation18_spill] sm:$0xff] %v9083_v26 }
 0xe01   :  { %v7135_v8 = vpop.eup %7134 }
 0xe02   :  { %v1823_v3 = vmul.f32 %v9015_v44, %v7135_v8  ;;  %v1826_v51 = vmul.f32 %v9027_v29, %v7135_v8  ;;  %v9089_v8 = vld [vmem:[%s11860_s3 + $0xcc] ss:$20 sps:$4 sm:$0xff]  }
 0xe03   :  { %12114 = vst [vmem:[#allocation19_spill] sm:$0xff] %v9089_v8 }
 0xe04   :  { %v1824_v14 = vadd.f32 %v1823_v3, %v1822_v11  ;;  %v1827_v55 = vadd.f32 %v1826_v51, %v1825_v24  ;;  %v9095_v11 = vld [vmem:[%s11860_s3 + $0xc8] ss:$20 sps:$4 sm:$0xff]   ;;  %v9107_v24 = vld [vmem:[%s11860_s3 + $0xf0] ss:$20 sps:$4 sm:$0xff]  }
 0xe05   :  { %12115 = vst [vmem:[#allocation22_spill] sm:$0xff] %v9095_v11  ;;  %v9101_v3 = vld [vmem:[%s11860_s3 + $0xf4] ss:$20 sps:$4 sm:$0xff]   ;;  %12117 = vst [vmem:[#allocation26_spill] sm:$0xff] %v9107_v24  ;;  %v9113_v51 = vld [vmem:[%s11860_s3 + $0x11c] ss:$20 sps:$4 sm:$0xff]  }
 0xe06   :  { %v1829_v13 = vrot.slane %v1827_v55, 4  ;;  %12116 = vst [vmem:[#allocation23_spill] sm:$0xff] %v9101_v3  ;;  %12118 = vst [vmem:[#allocation28_spill] sm:$0xff] %v9113_v51 }
 0xe08   :  { %v1831_v21 = vsel %vm431_vm1, %v1824_v14, %v1829_v13  ;;  %v9119_v14 = vld [vmem:[%s11860_s3 + $0x118] ss:$20 sps:$4 sm:$0xff]   ;;  %v9126_v13 = vld [vmem:[%s11858_s1 + $0x12] ss:$0 sm:$0xff] }
 0xe09   :  { %v1832_v9 = vpack.c.bf16 %v1831_v21, %v1831_v21  ;;  %12119 = vst [vmem:[#allocation6_spill] sm:$0xff] %v9119_v14  ;;  %12120 = vst [vmem:[#allocation5_spill] sm:$0xff] %v9126_v13 }
 0xe0b   :  { %6296 = vmatmul.mubr.bf16.vlgmr.msra.gmra.mrb[36].mxu0 %v1832_v9  ;;  %v9132_v9 = vld [vmem:[%s11858_s1 + $0x11] ss:$0 sm:$0xff] }
 0xe0c   :  { %1937 = vmatpush1.bf16.msra.mxu0 %v9034_v12  ;;  %1968 = vmatprep.mubr.bf16.mxu0 %v12060_v19  ;;  %12121 = vst [vmem:[#allocation7_spill] sm:$0xff] %v9132_v9 }
 0xe0d   :  { %1938 = vmatprep.subr.bf16.mxu0 %v9041_v2 }
 0xe10   :  { %1939 = vmatpush1.bf16.msra.mxu0 %v9047_v16 }
 0xe11   :  { %1940 = vmatprep.subr.bf16.mxu0 %v9053_v47 }
 0xe14   :  { %1941 = vmatpush1.bf16.msra.mxu0 %v9059_v6 }
 0xe15   :  { %1942 = vmatprep.subr.bf16.mxu0 %v9065_v43 }
 0xe18   :  { %1943 = vmatpush1.bf16.msra.mxu0 %v9071_v17 }
 0xe19   :  { %1944 = vmatprep.subr.bf16.mxu0 %v9077_v52 }
 0xe1c   :  { %1945 = vmatpush1.bf16.msra.mxu0 %v9083_v26 }
 0xe1d   :  { %1946 = vmatprep.subr.bf16.mxu0 %v9089_v8 }
 0xe20   :  { %1947 = vmatpush1.bf16.msra.mxu0 %v9095_v11 }
 0xe21   :  { %1948 = vmatprep.subr.bf16.mxu0 %v9101_v3 }
 0xe24   :  { %1949 = vmatpush1.bf16.msra.mxu0 %v9107_v24 }
 0xe25   :  { %1950 = vmatprep.subr.bf16.mxu0 %v9113_v51 }
 0xe28   :  { %1951 = vmatpush1.bf16.msra.mxu0 %v9119_v14 }
 0xe29   :  { %6319 = vmatprep.subr.bf16.mxu0 %v12051_v40 }
 0xede   :  { %v1867_v55 = vpop.f32.mrb[36].mxu0 }
 0xedf   :  { %v1873_v21 = vadd.f32 %v9126_v13, %v1867_v55  ;;  %v1875_v27 = vadd.f32 %v9132_v9, %v1867_v55  ;;  %v6297_v51 = vpop.f32.mrb[37].mxu0  ;;  %v9139_v13 = vld [vmem:[%s11860_s3 + $0x8] ss:$20 sps:$4 sm:$0xff]  }
 0xee0   :  { %v1870_v24 = vpop.f32.mrb[38].mxu0  ;;  %12122 = vst [vmem:[#allocation8_spill] sm:$0xff] %v9139_v13  ;;  %v9182_v51 = vld [vmem:[%s11860_s3 + $0xac] ss:$20 sps:$4 sm:$0xff]   ;;  %v9194_v55 = vld [vmem:[%s11860_s3 + $0xd4] ss:$20 sps:$4 sm:$0xff]  }
 0xee1   :  { %7136 = vtanh.f32 %v1873_v21  ;;  %v6298_v14 = vpop.f32.mrb[39].mxu0  ;;  %v9146_v24 = vld [vmem:[%s11860_s3 + $0x34] ss:$20 sps:$4 sm:$0xff]   ;;  %12129 = vst [vmem:[#allocation17_spill] sm:$0xff] %v9182_v51  ;;  %12131 = vst [vmem:[#allocation21_spill] sm:$0xff] %v9194_v55 }
 0xee2   :  { %7138 = vtanh.f32 %v1875_v27  ;;  %12123 = vst [vmem:[#allocation9_spill] sm:$0xff] %v9146_v24  ;;  %v9152_v27 = vld [vmem:[%s11860_s3 + $0x30] ss:$20 sps:$4 sm:$0xff]   ;;  %v9188_v14 = vld [vmem:[%s11860_s3 + $0xa8] ss:$20 sps:$4 sm:$0xff]  }
 0xee3   :  { %12124 = vst [vmem:[#allocation10_spill] sm:$0xff] %v9152_v27  ;;  %12130 = vst [vmem:[#allocation20_spill] sm:$0xff] %v9188_v14  ;;  %v9200_v21 = vld [vmem:[%s11860_s3 + $0xd0] ss:$20 sps:$4 sm:$0xff]  }
 0xee4   :  { %12132 = vst [vmem:[#allocation24_spill] sm:$0xff] %v9200_v21 }
 0xeeb   :  { %v7137_v3 = vpop.eup %7136 }
 0xeec   :  { %v7139_v11 = vpop.eup %7138 }
 0xeed   :  { %v1877_v8 = vsel %vm431_vm1, %v7137_v3, %v7139_v11  ;;  %v9170_v11 = vld [vmem:[%s11860_s3 + $0x84] ss:$20 sps:$4 sm:$0xff]   ;;  %v9176_v3 = vld [vmem:[%s11860_s3 + $0x80] ss:$20 sps:$4 sm:$0xff]  }
 0xeee   :  { %v1878_v26 = vpack.c.bf16 %v1877_v8, %v1877_v8  ;;  %v9164_v8 = vld [vmem:[%s11860_s3 + $0x58] ss:$20 sps:$4 sm:$0xff]   ;;  %12127 = vst [vmem:[#allocation13_spill] sm:$0xff] %v9170_v11  ;;  %12128 = vst [vmem:[#allocation16_spill] sm:$0xff] %v9176_v3 }
 0xeef   :  { %12126 = vst [vmem:[#allocation12_spill] sm:$0xff] %v9164_v8 }
 0xef0   :  { %6316 = vmatmul.mubr.bf16.vlgmr.msra.gmra.mrb[36].mxu1 %v1878_v26  ;;  %v9158_v26 = vld [vmem:[%s11860_s3 + $0x5c] ss:$20 sps:$4 sm:$0xff]  }
 0xef1   :  { %1978 = vmatpush1.bf16.msra.mxu1 %v9139_v13  ;;  %2009 = vmatprep.mubr.bf16.mxu1 %v12060_v19  ;;  %12125 = vst [vmem:[#allocation11_spill] sm:$0xff] %v9158_v26  ;;  %v9246_v13 = vld [vmem:[%s11858_s1 + $0xf] ss:$0 sm:$0xff] }
 0xef2   :  { %1979 = vmatprep.subr.bf16.mxu1 %v9146_v24 }
 0xef5   :  { %1980 = vmatpush1.bf16.msra.mxu1 %v9152_v27 }
 0xef6   :  { %1981 = vmatprep.subr.bf16.mxu1 %v9158_v26 }
 0xef9   :  { %1982 = vmatpush1.bf16.msra.mxu1 %v9164_v8 }
 0xefa   :  { %1983 = vmatprep.subr.bf16.mxu1 %v9170_v11 }
 0xefd   :  { %1984 = vmatpush1.bf16.msra.mxu1 %v9176_v3 }
 0xefe   :  { %1985 = vmatprep.subr.bf16.mxu1 %v9182_v51  ;;  %v9206_v51 = vld [vmem:[%s11860_s3 + $0xfc] ss:$20 sps:$4 sm:$0xff]  }
 0xeff   :  { %12133 = vst [vmem:[#allocation25_spill] sm:$0xff] %v9206_v51 }
 0xf01   :  { %1986 = vmatpush1.bf16.msra.mxu1 %v9188_v14  ;;  %v9212_v14 = vld [vmem:[%s11860_s3 + $0xf8] ss:$20 sps:$4 sm:$0xff]  }
 0xf02   :  { %1987 = vmatprep.subr.bf16.mxu1 %v9194_v55  ;;  %12134 = vst [vmem:[#allocation27_spill] sm:$0xff] %v9212_v14  ;;  %v9218_v55 = vld [vmem:[%s11860_s3 + $0x124] ss:$20 sps:$4 sm:$0xff]  }
 0xf03   :  { %12135 = vst [vmem:[#allocation29_spill] sm:$0xff] %v9218_v55 }
 0xf05   :  { %1988 = vmatpush1.bf16.msra.mxu1 %v9200_v21  ;;  %v9224_v21 = vld [vmem:[%s11860_s3 + $0x120] ss:$20 sps:$4 sm:$0xff]  }
 0xf06   :  { %1989 = vmatprep.subr.bf16.mxu1 %v9206_v51  ;;  %12136 = vst [vmem:[#allocation30_spill] sm:$0xff] %v9224_v21  ;;  %v5550_v51 = vld [vmem:[%s11857_s0 + $0xc8] sm:$0xf] }
 0xf09   :  { %1990 = vmatpush1.bf16.msra.mxu1 %v9212_v14  ;;  %v5549_v14 = vld [vmem:[%s11857_s0 + $0xa8] sm:$0xf] }
 0xf0a   :  { %1991 = vmatprep.subr.bf16.mxu1 %v9218_v55 }
 0xf0d   :  { %1992 = vmatpush1.bf16.msra.mxu1 %v9224_v21  ;;  %v9240_v21 = vld [vmem:[%s11858_s1 + $0x5] ss:$0 sm:$0xff] }
 0xf0e   :  { %6339 = vmatprep.subr.bf16.mxu1 %v12051_v40 }
 0xfc3   :  { %v9234_v3 = vpop.f32.mrb[36].mxu1 }
 0xfc4   :  { %v1919_v55 = vmul.f32 %v5549_v14, %v9234_v3  ;;  %v6317_v11 = vpop.f32.mrb[37].mxu1 }
 0xfc5   :  { %v1916_v8 = vpop.f32.mrb[38].mxu1 }
 0xfc6   :  { %v1920_v26 = vadd.f32 %v5550_v51, %v1919_v55  ;;  %v6318_v27 = vpop.f32.mrb[39].mxu1 }
 0xfc8   :  { %v1926_v24 = vmul.f32 %v9240_v21, %v1920_v26  ;;  %v9256_v26 = vld [vmem:[%s11860_s3 + $0x10] ss:$20 sps:$4 sm:$0xff]  }
 0xfca   :  { %v1927_v9 = vadd.f32 %v9246_v13, %v1926_v24  ;;  %v9287_v24 = vld [vmem:[%s11860_s3 + $0x88] ss:$20 sps:$4 sm:$0xff]  }
 0xfcc   :  { %v1929_v52 = vmin.f32 %v1927_v9, 0.0  ;;  %vm1928_vm4 = vcmp.gt.f32.partialorder %v1927_v9, 0.0 }
 0xfce   :  { %v1930_v14 = vmul.f32 1.442695, %v1929_v52  ;;  %v9269_v52 = vld [vmem:[%s11860_s3 + $0x38] ss:$20 sps:$4 sm:$0xff]  }
 0xfd0   :  { %7140 = vpow2.f32 %v1930_v14  ;;  %v9296_v14 = vld [vmem:[%s11860_s3 + $0xb0] ss:$20 sps:$4 sm:$0xff]  }
 0xfda   :  { %v7141_v8 = vpop.eup %7140 }
 0xfdb   :  { %v5551_v11 = vadd.f32 -1.0, %v7141_v8  ;;  %v9305_v8 = vld [vmem:[%s11860_s3 + $0xd8] ss:$20 sps:$4 sm:$0xff]  }
 0xfdd   :  { %v9249_v27 = vsel %vm1928_vm4, %v1927_v9, %v5551_v11  ;;  %v9278_v9 = vld [vmem:[%s11860_s3 + $0x60] ss:$20 sps:$4 sm:$0xff]   ;;  %vm4859_vm4 = vcmask 261120  }
 0xfde   :  { %v1934_v51 = vadd.f32 %v9249_v27, %v8897_v15  ;;  %v9314_v11 = vld [vmem:[%s11860_s3 + $0x100] ss:$20 sps:$4 sm:$0xff]  }
 0xfe0   :  { %v1935_v55 = vpack.c.bf16 %v1934_v51, %v1934_v51  ;;  %v9323_v51 = vld [vmem:[%s11860_s3 + $0x128] ss:$20 sps:$4 sm:$0xff]  }
 0xfe1   :  { %12137 = vst [vmem:[#allocation31_spill] sm:$0xff] %v9323_v51 }
 0xfe2   :  { %1969 = vmatmul.mubr.bf16.vlgmr.msra.gmra.mrb[40].mxu0 %v1935_v55  ;;  %2010 = vmatmul.mubr.bf16.vlgmr.msra.gmra.mrb[40].mxu1 %v1935_v55 }
 0xfe3   :  { %6320 = vmatpush3.bf16.msra.mxu0 %v9256_v26  ;;  %6335 = vmatprep.mubr.msk.bf16.mxu0 %vm7706_vm0, %v12051_v40 }
 0xfe4   :  { %6321 = vmatprep.subr.bf16.mxu0 %v12051_v40  ;;  %6340 = vmatpush3.bf16.msra.mxu1 %v8663_v60 }
 0xfe5   :  { %6341 = vmatprep.subr.bf16.mxu1 %v12051_v40  ;;  %6355 = vmatprep.mubr.msk.bf16.mxu1 %vm7706_vm0, %v12051_v40 }
 0xfe7   :  { %6322 = vmatpush3.bf16.msra.mxu0 %v9269_v52 }
 0xfe8   :  { %6323 = vmatprep.subr.bf16.mxu0 %v12051_v40  ;;  %6342 = vmatpush3.bf16.msra.mxu1 %v8674_v38 }
 0xfe9   :  { %6343 = vmatprep.subr.bf16.mxu1 %v12051_v40 }
 0xfeb   :  { %6324 = vmatpush3.bf16.msra.mxu0 %v9278_v9 }
 0xfec   :  { %6325 = vmatprep.subr.bf16.mxu0 %v12051_v40  ;;  %6344 = vmatpush3.bf16.msra.mxu1 %v8683_v36 }
 0xfed   :  { %6345 = vmatprep.subr.bf16.mxu1 %v12051_v40 }
 0xfef   :  { %6326 = vmatpush3.bf16.msra.mxu0 %v9287_v24 }
 0xff0   :  { %6327 = vmatprep.subr.bf16.mxu0 %v12051_v40  ;;  %6346 = vmatpush3.bf16.msra.mxu1 %v8692_v42 }
 0xff1   :  { %6347 = vmatprep.subr.bf16.mxu1 %v12051_v40 }
 0xff3   :  { %6328 = vmatpush3.bf16.msra.mxu0 %v9296_v14 }
 0xff4   :  { %6329 = vmatprep.subr.bf16.mxu0 %v12051_v40  ;;  %6348 = vmatpush3.bf16.msra.mxu1 %v8701_v59 }
 0xff5   :  { %6349 = vmatprep.subr.bf16.mxu1 %v12051_v40 }
 0xff7   :  { %6330 = vmatpush3.bf16.msra.mxu0 %v9305_v8 }
 0xff8   :  { %6331 = vmatprep.subr.bf16.mxu0 %v12051_v40  ;;  %6350 = vmatpush3.bf16.msra.mxu1 %v8710_v18 }
 0xff9   :  { %6351 = vmatprep.subr.bf16.mxu1 %v12051_v40 }
 0xffb   :  { %6332 = vmatpush3.bf16.msra.mxu0 %v9314_v11 }
 0xffc   :  { %6333 = vmatprep.subr.bf16.mxu0 %v12051_v40  ;;  %6352 = vmatpush3.bf16.msra.mxu1 %v8719_v20 }
 0xffd   :  { %6353 = vmatprep.subr.bf16.mxu1 %v12051_v40 }
 0xfff   :  { %6334 = vmatpush3.bf16.msra.mxu0 %v9323_v51 }
0x1000   :  { %6354 = vmatpush3.bf16.msra.mxu1 %v8727_v32  ;;  %2193 = vmatprep.subr.bf16.mxu0 %v8733_v22  ;;  %v1922_v22 = vrot.slane %v9234_v3, 4 }
0x1001   :  { %6359 = vmatprep.subr.bf16.mxu1 %v12051_v40 }
0x1002   :  { %6336 = vmatmul.mubr.bf16.vlgmr.msra.gmra.mrb[44].mxu0 %v1935_v55  ;;  %v9377_v55 = vld [vmem:[%s11858_s1 + $0x2] ss:$0 sm:$0xff] }
0x1003   :  { %2194 = vmatpush1.bf16.msra.mxu0 %v8740_v23  ;;  %2225 = vmatprep.mubr.bf16.mxu0 %v12060_v19  ;;  %v5547_v23 = vld [vmem:[%s11857_s0 + $0x68] sm:$0xf]  ;;  %12141 = vst [vmem:[#allocation35_spill] sm:$0xff] %v9377_v55 }
0x1004   :  { %2195 = vmatprep.subr.bf16.mxu0 %v8747_v34  ;;  %v1924_v34 = vmul.f32 %v5547_v23, %v1922_v22 }
0x1007   :  { %2196 = vmatpush1.bf16.msra.mxu0 %v8753_v37  ;;  %v5548_v37 = vld [vmem:[%s11857_s0 + $0x88] sm:$0xf] }
0x1008   :  { %2197 = vmatprep.subr.bf16.mxu0 %v8759_v1  ;;  %v1925_v1 = vadd.f32 %v5548_v37, %v1924_v34  ;;  %v9383_v37 = vld [vmem:[%s11858_s1 + $0x1] ss:$0 sm:$0xff] }
0x1009   :  { %12142 = vst [vmem:[#allocation36_spill] sm:$0xff] %v9383_v37 }
0x100a   :  { %v2128_v22 = vmul.f32 %v9377_v55, %v1925_v1 }
0x100b   :  { %2198 = vmatpush1.bf16.msra.mxu0 %v8765_v45  ;;  %v9356_v45 = vld [vmem:[%s11858_s1 + $0x6] ss:$0 sm:$0xff] }
0x100c   :  { %2199 = vmatprep.subr.bf16.mxu0 %v8771_v5  ;;  %12138 = vst [vmem:[#allocation32_spill] sm:$0xff] %v9356_v45  ;;  %v2062_v5 = vmul.f32 %v9356_v45, %v1925_v1 }
0x100f   :  { %2200 = vmatpush1.bf16.msra.mxu0 %v8777_v25  ;;  %v5545_v25 = vld [vmem:[%s11857_s0 + $0x28] sm:$0xf] }
0x1010   :  { %2201 = vmatprep.subr.bf16.mxu0 %v8783_v10  ;;  %v2063_v10 = vadd.f32 %v5545_v25, %v2062_v5  ;;  %v2117_v5 = vmul.f32 %v9383_v37, %v1925_v1  ;;  %v9389_v25 = vld [vmem:[%s11858_s1 + $0x3] ss:$0 sm:$0xff]  ;;  %v9399_v37 = vld [vmem:[%s11858_s1 + $0xa] ss:$0 sm:$0xff] }
0x1011   :  { %12143 = vst [vmem:[#allocation37_spill] sm:$0xff] %v9389_v25 }
0x1013   :  { %2202 = vmatpush1.bf16.msra.mxu0 %v8789_v33  ;;  %v9365_v33 = vld [vmem:[%s11858_s1 + $0x10] ss:$0 sm:$0xff] }
0x1014   :  { %2203 = vmatprep.subr.bf16.mxu0 %v8795_v57  ;;  %12139 = vst [vmem:[#allocation33_spill] sm:$0xff] %v9365_v33  ;;  %v2064_v57 = vadd.f32 %v9365_v33, %v2063_v10  ;;  %v2153_v10 = vmul.f32 %v9389_v25, %v1925_v1 }
0x1017   :  { %2204 = vmatpush1.bf16.msra.mxu0 %v8801_v0  ;;  %v2065_v0 = vsub.f32 0.0, %v2064_v57 }
0x1018   :  { %2205 = vmatprep.subr.bf16.mxu0 %v8807_v39 }
0x1019   :  { %v2066_v39 = vmul.f32 1.442695, %v2065_v0 }
0x101b   :  { %2206 = vmatpush1.bf16.msra.mxu0 %v8813_v48  ;;  %7142 = vpow2.f32 %v2066_v39 }
0x101c   :  { %2207 = vmatprep.subr.bf16.mxu0 %v8819_v49 }
0x101f   :  { %2208 = vmatpush1.bf16.msra.mxu0 %v8825_v50  ;;  %v9371_v50 = vld [vmem:[%s11858_s1] ss:$0 sm:$0xff] }
0x1020   :  { %6379 = vmatprep.subr.bf16.mxu0 %v12051_v40  ;;  %12140 = vst [vmem:[#allocation34_spill] sm:$0xff] %v9371_v50  ;;  %v2058_v3 = vmul.f32 %v9371_v50, %v1925_v1 }
0x1025   :  { %v7143_v48 = vpop.eup %7142 }
0x1026   :  { %v2068_v49 = vadd.f32 1.0, %v7143_v48 }
0x1028   :  { %7144 = vrcp.f32 %v2068_v49 }
0x1032   :  { %v9394_v33 = vpop.eup %7144 }
0x10b5   :  { %v1970_v23 = vpop.f32.mrb[40].mxu0  ;;  %v2011_v34 = vpop.f32.mrb[40].mxu1 }
0x10b6   :  { %v2059_v57 = vadd.f32 %v2058_v3, %v1970_v23  ;;  %v2129_v0 = vadd.f32 %v2128_v22, %v2011_v34  ;;  %v1972_v39 = vpop.f32.mrb[41].mxu0  ;;  %v2013_v48 = vpop.f32.mrb[41].mxu1 }
0x10b7   :  { %v9392_v49 = vadd.f32 %v2117_v5, %v1972_v39  ;;  %v2154_v15 = vadd.f32 %v2153_v10, %v2013_v48  ;;  %v1974_v55 = vpop.f32.mrb[42].mxu0  ;;  %v2015_v50 = vpop.f32.mrb[42].mxu1 }
0x10b8   :  { %v2060_v45 = vadd.f32 %v9399_v37, %v2059_v57  ;;  %v1975_v51 = vpop.f32.mrb[43].mxu0  ;;  %v2016_v25 = vpop.f32.mrb[43].mxu1 }
0x10b9   :  { %v9403_v3 = vadd.f32 %v9394_v33, %v2154_v15  ;;  %v9420_v15 = vld [vmem:[%s11858_s1 + $0x4] ss:$0 sm:$0xff] }
0x10ba   :  { %7146 = vtanh.f32 %v2060_v45 }
0x10c4   :  { %v9405_v22 = vpop.eup %7146 }
0x10c5   :  { %v2070_v50 = vpack.c.bf16 %v9405_v22, %v9405_v22 }
0x10c7   :  { %6356 = vmatmul.mubr.bf16.vlgmr.msra.gmra.mrb[44].mxu1 %v2070_v50 }
0x10c8   :  { %6360 = vmatpush3.bf16.msra.mxu1 %v8663_v60  ;;  %6375 = vmatprep.mubr.msk.bf16.mxu1 %vm7706_vm0, %v12051_v40  ;;  %v2143_v60 = vmul.f32 %v9420_v15, %v1925_v1 }
0x10c9   :  { %6361 = vmatprep.subr.bf16.mxu1 %v12051_v40 }
0x10cc   :  { %6362 = vmatpush3.bf16.msra.mxu1 %v8674_v38 }
0x10cd   :  { %6363 = vmatprep.subr.bf16.mxu1 %v12051_v40 }
0x10d0   :  { %6364 = vmatpush3.bf16.msra.mxu1 %v8683_v36  ;;  %v9436_v36 = vld [vmem:[%s11858_s1 + $0x8] ss:$0 sm:$0xff] }
0x10d1   :  { %6365 = vmatprep.subr.bf16.mxu1 %v12051_v40 }
0x10d4   :  { %6366 = vmatpush3.bf16.msra.mxu1 %v8692_v42  ;;  %v2130_v42 = vmul.f32 %v9436_v36, %v8978_v63 }
0x10d5   :  { %v2052_v51 = vpop.f32.mrb[44].mxu0  ;;  %6367 = vmatprep.subr.bf16.mxu1 %v12051_v40 }
0x10d6   :  { %v2144_v45 = vadd.f32 %v2143_v60, %v2052_v51  ;;  %v6337_v38 = vpop.f32.mrb[45].mxu0 }
0x10d7   :  { %v2055_v55 = vpop.f32.mrb[46].mxu0 }
0x10d8   :  { %v6338_v23 = vpop.f32.mrb[47].mxu0  ;;  %6368 = vmatpush3.bf16.msra.mxu1 %v8701_v59  ;;  %v2131_v59 = vadd.f32 %v2130_v42, %v2129_v0 }
0x10d9   :  { %6369 = vmatprep.subr.bf16.mxu1 %v12051_v40  ;;  %v9451_v23 = vld [vmem:[%s11858_s1 + $0x7] ss:$0 sm:$0xff] }
0x10dc   :  { %6370 = vmatpush3.bf16.msra.mxu1 %v8710_v18  ;;  %v9443_v18 = vld [vmem:[%s11858_s1 + $0xc] ss:$0 sm:$0xff] }
0x10dd   :  { %6371 = vmatprep.subr.bf16.mxu1 %v12051_v40 }
0x10e0   :  { %6372 = vmatpush3.bf16.msra.mxu1 %v8719_v20  ;;  %v2132_v20 = vadd.f32 %v9443_v18, %v2131_v59 }
0x10e1   :  { %6373 = vmatprep.subr.bf16.mxu1 %v12051_v40 }
0x10e4   :  { %6374 = vmatpush3.bf16.msra.mxu1 %v8727_v32  ;;  %v2133_v32 = vadd.f32 %v9405_v22, %v2132_v20 }
0x10e5   :  { %6399 = vmatprep.subr.bf16.mxu1 %v12051_v40 }
0x10e6   :  { %v2134_v1 = vsub.f32 0.0, %v2133_v32  ;;  %v9459_v32 = vld [vmem:[%s11858_s1 + $0xb] ss:$0 sm:$0xff] }
0x10e8   :  { %v2135_v34 = vmul.f32 1.442695, %v2134_v1 }
0x10ea   :  { %7148 = vpow2.f32 %v2135_v34 }
0x10f4   :  { %v7149_v50 = vpop.eup %7148 }
0x10f5   :  { %v2137_v60 = vadd.f32 1.0, %v7149_v50 }
0x119a   :  { %v2105_v5 = vpop.f32.mrb[44].mxu1 }
0x119b   :  { %v2111_v25 = vadd.f32 %v8968_v58, %v2105_v5  ;;  %v6357_v10 = vpop.f32.mrb[45].mxu1  ;;  %v2119_v58 = vmul.f32 %v9451_v23, %v8978_v63 }
0x119c   :  { %v2108_v57 = vpop.f32.mrb[46].mxu1 }
0x119d   :  { %v2112_v39 = vsub.f32 0.0, %v2111_v25  ;;  %v6358_v48 = vpop.f32.mrb[47].mxu1  ;;  %v2120_v20 = vadd.f32 %v2119_v58, %v9392_v49  ;;  %v9467_v49 = vld [vmem:[%s11858_s1 + $0xe] ss:$0 sm:$0xff] }
0x119f   :  { %v2113_v0 = vmul.f32 1.442695, %v2112_v39 }
0x11a1   :  { %7150 = vpow2.f32 %v2113_v0 }
0x11a2   :  { %7152 = vrcp.f32 %v2137_v60  ;;  %v2145_v60 = vadd.f32 %v9467_v49, %v2144_v45 }
0x11ab   :  { %v7151_v51 = vpop.eup %7150 }
0x11ac   :  { %v2115_v38 = vadd.f32 1.0, %v7151_v51  ;;  %v7153_v55 = vpop.eup %7152 }
0x11ad   :  { %v2140_v42 = vsub.f32 1.0, %v7153_v55  ;;  %v2139_v34 = vmul.f32 %v7153_v55, %v8974_v54 }
0x11ae   :  { %7154 = vrcp.f32 %v2115_v38 }
0x11b8   :  { %v7155_v59 = vpop.eup %7154 }
0x11b9   :  { %v2121_v1 = vmul.f32 %v9459_v32, %v7155_v59  ;;  %v2141_v5 = vmul.f32 %v7155_v59, %v2140_v42 }
0x11bb   :  { %v2122_v25 = vadd.f32 %v2121_v1, %v2120_v20  ;;  %v2142_v10 = vadd.f32 %v2141_v5, %v2139_v34  ;;  %v2156_v20 = vadd.f32 %v9403_v3, %v9249_v27  ;;  %v9478_v1 = vld [vmem:[%s11858_s1 + $0x9] ss:$0 sm:$0xff] }
0x11bd   :  { %v2123_v57 = vsub.f32 0.0, %v2122_v25  ;;  %v2147_v39 = vadd.f32 %v9394_v33, %v2142_v10 }
0x11bf   :  { %v2124_v48 = vmul.f32 1.442695, %v2123_v57  ;;  %v2148_v58 = vmul.f32 %v2147_v39, %v8978_v63 }
0x11c1   :  { %7156 = vpow2.f32 %v2124_v48 }
0x11cb   :  { %v7157_v0 = vpop.eup %7156 }
0x11cc   :  { %v2126_v50 = vadd.f32 1.0, %v7157_v0 }
0x11ce   :  { %7158 = vrcp.f32 %v2126_v50 }
0x11cf   :  { %7160 = vtanh.f32 %v2145_v60 }
0x11d8   :  { %v7159_v54 = vpop.eup %7158 }
0x11d9   :  { %v2149_v51 = vmul.f32 %v7159_v54, %v9405_v22  ;;  %v7161_v55 = vpop.eup %7160 }
0x11db   :  { %v2150_v38 = vmul.f32 %v9394_v33, %v2149_v51  ;;  %v9484_v33 = vld [vmem:[%s11858_s1 + $0xd] ss:$0 sm:$0xff] }
0x11dd   :  { %v2151_v42 = vmul.f32 %v7161_v55, %v2150_v38 }
0x11df   :  { %v2152_v59 = vadd.f32 %v2151_v42, %v2148_v58 }
0x11e1   :  { %v2157_v45 = vmul.f32 %v9478_v1, %v2152_v59  ;;  %v2165_v3 = vadd.f32 %v2152_v59, %v9249_v27  ;;  %v2189_v0 = vrot.slane %v2152_v59, 4  ;;  %v9513_v27 = vld [vmem:[%s11857_s0 + $0x4c] sm:$0xf] }
0x11e3   :  { %v2158_v34 = vadd.f32 %v2157_v45, %v2156_v20 }
0x11e5   :  { %v2159_v63 = vadd.f32 %v9484_v33, %v2158_v34 }
0x11e7   :  { %v2160_v22 = vsub.f32 0.0, %v2159_v63 }
0x11e9   :  { %v2161_v5 = vmul.f32 1.442695, %v2160_v22 }
0x11eb   :  { %7162 = vpow2.f32 %v2161_v5 }
0x11ec   :  { %7164 = vtanh.f32 %v2165_v3 }
0x11f5   :  { %v7163_v25 = vpop.eup %7162 }
0x11f6   :  { %v2163_v10 = vadd.f32 1.0, %v7163_v25  ;;  %v7165_v57 = vpop.eup %7164 }
0x11f8   :  { %7166 = vrcp.f32 %v2163_v10 }
0x1202   :  { %v7167_v39 = vpop.eup %7166 }
0x1203   :  { %v9488_v48 = vmul.f32 %v7167_v39, %v7165_v57 }
0x1205   :  { %12144 = vst [vmem:[#allocation38_spill] sm:$0xff] %v9488_v48  ;;  %v2191_v50 = vsel %vm431_vm1, %v9488_v48, %v2189_v0 }
0x1206   :  { %v2192_v60 = vpack.c.bf16 %v2191_v50, %v2191_v50 }
0x1208   :  { %2226 = vmatmul.mubr.bf16.vlgmr.msra.gmra.mrb[48].mxu0 %v2192_v60 }
0x1209   :  { %6380 = vmatpush3.bf16.msra.mxu0 %v8905_v30  ;;  %6395 = vmatprep.mubr.msk.bf16.mxu0 %vm7706_vm0, %v12051_v40 }
0x120a   :  { %6381 = vmatprep.subr.bf16.mxu0 %v12051_v40 }
0x120d   :  { %6382 = vmatpush3.bf16.msra.mxu0 %v8914_v28 }
0x120e   :  { %6383 = vmatprep.subr.bf16.mxu0 %v12051_v40 }
0x1211   :  { %6384 = vmatpush3.bf16.msra.mxu0 %v8921_v31 }
0x1212   :  { %6385 = vmatprep.subr.bf16.mxu0 %v12051_v40 }
0x1215   :  { %6386 = vmatpush3.bf16.msra.mxu0 %v8928_v61 }
0x1216   :  { %6387 = vmatprep.subr.bf16.mxu0 %v12051_v40 }
0x1219   :  { %6388 = vmatpush3.bf16.msra.mxu0 %v8935_v62 }
0x121a   :  { %6389 = vmatprep.subr.bf16.mxu0 %v12051_v40 }
0x121d   :  { %6390 = vmatpush3.bf16.msra.mxu0 %v8942_v56 }
0x121e   :  { %6391 = vmatprep.subr.bf16.mxu0 %v12051_v40 }
0x1221   :  { %6392 = vmatpush3.bf16.msra.mxu0 %v8949_v7 }
0x1222   :  { %6393 = vmatprep.subr.bf16.mxu0 %v12051_v40 }
0x1225   :  { %6394 = vmatpush3.bf16.msra.mxu0 %v8956_v35 }
0x1226   :  { %2416 = vmatprep.subr.bf16.mxu0 %v8962_v41  ;;  %v9519_v41 = vld [vmem:[%s11857_s0 + $0xc] sm:$0xf] }
0x12db   :  { %v2227_v54 = vpop.f32.mrb[48].mxu0 }
0x12dc   :  { %v2234_v51 = vadd.f32 %v9513_v27, %v2227_v54  ;;  %v2229_v38 = vpop.f32.mrb[49].mxu0 }
0x12dd   :  { %v2231_v55 = vpop.f32.mrb[50].mxu0 }
0x12de   :  { %v2235_v58 = vsub.f32 0.0, %v2234_v51  ;;  %v2232_v42 = vpop.f32.mrb[51].mxu0 }
0x12e0   :  { %v2236_v20 = vmul.f32 1.442695, %v2235_v58 }
0x12e2   :  { %7168 = vpow2.f32 %v2236_v20 }
0x12ec   :  { %v7169_v45 = vpop.eup %7168 }
0x12ed   :  { %v2238_v34 = vadd.f32 1.0, %v7169_v45 }
0x12ef   :  { %7170 = vrcp.f32 %v2238_v34 }
0x12f0   :  { %7172 = vtanh.f32 %v2229_v38 }
0x12f9   :  { %v7171_v63 = vpop.eup %7170 }
0x12fa   :  { %v2241_v22 = vmul.f32 %v7171_v63, %v9519_v41  ;;  %v7173_v5 = vpop.eup %7172 }
0x12fb   :  { %v2247_v10 = vrot.slane %v7173_v5, 4 }
0x12fc   :  { %v2243_v3 = vrot.slane %v2241_v22, 4 }
0x12fd   :  { %v2249_v39 = vsub.f32 %v2152_v59, %v2247_v10 }
0x12fe   :  { %v2245_v25 = vmul.f32 %v7173_v5, %v2243_v3 }
0x1300   :  { %v2250_v57 = vmul.f32 2.0, %v2245_v25 }
0x1302   :  { %v2252_v0 = vrot.slane %v2250_v57, 4 }
0x1304   :  { %v9522_v50 = vadd.f32 %v2252_v0, %v2249_v39 }
0x1306   :  { %v2255_v60 = vpack.c.bf16 %v9522_v50, %v9522_v50 }
0x1308   :  { %6376 = vmatmul.mubr.bf16.vlgmr.msra.gmra.mrb[48].mxu1 %v2255_v60  ;;  %v12155_v60 = vld [vmem:[#allocation8_spill] sm:$0xff] }
0x1309   :  { %6400 = vmatpush3.bf16.msra.mxu1 %v8905_v30  ;;  %6415 = vmatprep.mubr.msk.bf16.mxu1 %vm7706_vm0, %v12051_v40 }
0x130a   :  { %6401 = vmatprep.subr.bf16.mxu1 %v12051_v40 }
0x130d   :  { %6402 = vmatpush3.bf16.msra.mxu1 %v8914_v28 }
0x130e   :  { %6403 = vmatprep.subr.bf16.mxu1 %v12051_v40 }
0x1311   :  { %6404 = vmatpush3.bf16.msra.mxu1 %v8921_v31 }
0x1312   :  { %6405 = vmatprep.subr.bf16.mxu1 %v12051_v40 }
0x1315   :  { %6406 = vmatpush3.bf16.msra.mxu1 %v8928_v61 }
0x1316   :  { %6407 = vmatprep.subr.bf16.mxu1 %v12051_v40 }
0x1319   :  { %6408 = vmatpush3.bf16.msra.mxu1 %v8935_v62 }
0x131a   :  { %6409 = vmatprep.subr.bf16.mxu1 %v12051_v40 }
0x131d   :  { %6410 = vmatpush3.bf16.msra.mxu1 %v8942_v56 }
0x131e   :  { %6411 = vmatprep.subr.bf16.mxu1 %v12051_v40 }
0x1321   :  { %6412 = vmatpush3.bf16.msra.mxu1 %v8949_v7  ;;  %v2302_v7 = vmul.f32 %v9009_v4, %v7171_v63  ;;  %v12145_v4 = vld [vmem:[#allocation15_spill] sm:$0xff] }
0x1322   :  { %6413 = vmatprep.subr.bf16.mxu1 %v12051_v40 }
0x1325   :  { %6414 = vmatpush3.bf16.msra.mxu1 %v8956_v35  ;;  %v2305_v35 = vmul.f32 %v9021_v53, %v7171_v63  ;;  %v12147_v53 = vld [vmem:[#allocation19_spill] sm:$0xff] }
0x1326   :  { %2457 = vmatprep.subr.bf16.mxu1 %v9002_v46  ;;  %v12154_v63 = vld [vmem:[#allocation7_spill] sm:$0xff] }
0x13db   :  { %v2290_v30 = vpop.f32.mrb[48].mxu1 }
0x13dc   :  { %v2296_v28 = vadd.f32 %v9513_v27, %v2290_v30  ;;  %v6377_v31 = vpop.f32.mrb[49].mxu1  ;;  %v12156_v30 = vld [vmem:[#allocation9_spill] sm:$0xff] }
0x13dd   :  { %v2293_v61 = vpop.f32.mrb[50].mxu1  ;;  %v12158_v31 = vld [vmem:[#allocation11_spill] sm:$0xff] }
0x13de   :  { %v2297_v62 = vsub.f32 0.0, %v2296_v28  ;;  %v6378_v59 = vpop.f32.mrb[51].mxu1  ;;  %v12157_v28 = vld [vmem:[#allocation10_spill] sm:$0xff]  ;;  %v12159_v61 = vld [vmem:[#allocation12_spill] sm:$0xff] }
0x13df   :  { %v12161_v59 = vld [vmem:[#allocation16_spill] sm:$0xff] }
0x13e0   :  { %v2298_v54 = vmul.f32 1.442695, %v2297_v62  ;;  %v12160_v62 = vld [vmem:[#allocation13_spill] sm:$0xff] }
0x13e2   :  { %7174 = vpow2.f32 %v2298_v54  ;;  %v12162_v54 = vld [vmem:[#allocation17_spill] sm:$0xff] }
0x13ec   :  { %v7175_v56 = vpop.eup %7174 }
0x13ed   :  { %v2300_v51 = vadd.f32 1.0, %v7175_v56  ;;  %v12163_v56 = vld [vmem:[#allocation20_spill] sm:$0xff] }
0x13ef   :  { %7176 = vrcp.f32 %v2300_v51  ;;  %v12164_v51 = vld [vmem:[#allocation21_spill] sm:$0xff] }
0x13f9   :  { %v7177_v38 = vpop.eup %7176 }
0x13fa   :  { %v2303_v55 = vmul.f32 %v9015_v44, %v7177_v38  ;;  %v2306_v46 = vmul.f32 %v9027_v29, %v7177_v38  ;;  %v12146_v44 = vld [vmem:[#allocation18_spill] sm:$0xff]  ;;  %v12165_v38 = vld [vmem:[#allocation24_spill] sm:$0xff] }
0x13fb   :  { %v12148_v29 = vld [vmem:[#allocation22_spill] sm:$0xff] }
0x13fc   :  { %v2304_v58 = vadd.f32 %v2303_v55, %v2302_v7  ;;  %v2307_v42 = vadd.f32 %v2306_v46, %v2305_v35  ;;  %v12166_v7 = vld [vmem:[#allocation25_spill] sm:$0xff]  ;;  %v12167_v55 = vld [vmem:[#allocation27_spill] sm:$0xff]  ;;  %v12169_v46 = vld [vmem:[#allocation30_spill] sm:$0xff] }
0x13fd   :  { %v12168_v35 = vld [vmem:[#allocation29_spill] sm:$0xff] }
0x13fe   :  { %v2309_v20 = vrot.slane %v2307_v42, 4  ;;  %v5558_v42 = vld [vmem:[%s11857_s0 + $0xcc] sm:$0xf] }
0x1400   :  { %v2311_v45 = vsel %vm431_vm1, %v2304_v58, %v2309_v20  ;;  %v5557_v58 = vld [vmem:[%s11857_s0 + $0xac] sm:$0xf] }
0x1401   :  { %v2312_v34 = vpack.c.bf16 %v2311_v45, %v2311_v45 }
0x1403   :  { %6396 = vmatmul.mubr.bf16.vlgmr.msra.gmra.mrb[52].mxu0 %v2312_v34 }
0x1404   :  { %2417 = vmatpush1.bf16.msra.mxu0 %v9034_v12  ;;  %2448 = vmatprep.mubr.bf16.mxu0 %v12060_v19  ;;  %v12149_v12 = vld [vmem:[#allocation23_spill] sm:$0xff] }
0x1405   :  { %2418 = vmatprep.subr.bf16.mxu0 %v9041_v2  ;;  %v12150_v2 = vld [vmem:[#allocation26_spill] sm:$0xff] }
0x1408   :  { %2419 = vmatpush1.bf16.msra.mxu0 %v9047_v16  ;;  %v12151_v16 = vld [vmem:[#allocation28_spill] sm:$0xff] }
0x1409   :  { %2420 = vmatprep.subr.bf16.mxu0 %v9053_v47  ;;  %v12152_v47 = vld [vmem:[#allocation6_spill] sm:$0xff] }
0x140c   :  { %2421 = vmatpush1.bf16.msra.mxu0 %v9059_v6 }
0x140d   :  { %2422 = vmatprep.subr.bf16.mxu0 %v9065_v43  ;;  %v12153_v43 = vld [vmem:[#allocation5_spill] sm:$0xff] }
0x1410   :  { %2423 = vmatpush1.bf16.msra.mxu0 %v9071_v17 }
0x1411   :  { %2424 = vmatprep.subr.bf16.mxu0 %v12145_v4 }
0x1414   :  { %2425 = vmatpush1.bf16.msra.mxu0 %v12146_v44 }
0x1415   :  { %2426 = vmatprep.subr.bf16.mxu0 %v12147_v53 }
0x1418   :  { %2427 = vmatpush1.bf16.msra.mxu0 %v12148_v29 }
0x1419   :  { %2428 = vmatprep.subr.bf16.mxu0 %v12149_v12 }
0x141c   :  { %2429 = vmatpush1.bf16.msra.mxu0 %v12150_v2 }
0x141d   :  { %2430 = vmatprep.subr.bf16.mxu0 %v12151_v16 }
0x1420   :  { %2431 = vmatpush1.bf16.msra.mxu0 %v12152_v47 }
0x1421   :  { %6419 = vmatprep.subr.bf16.mxu0 %v12051_v40 }
0x14d6   :  { %v2347_v6 = vpop.f32.mrb[52].mxu0 }
0x14d7   :  { %v2353_v17 = vadd.f32 %v12153_v43, %v2347_v6  ;;  %v2355_v22 = vadd.f32 %v12154_v63, %v2347_v6  ;;  %v6397_v5 = vpop.f32.mrb[53].mxu0 }
0x14d8   :  { %v2350_v3 = vpop.f32.mrb[54].mxu0  ;;  %v9686_v5 = vld [vmem:[%s11859_s2] ss:$8 sps:$4 sm:$0xff]  }
0x14d9   :  { %7178 = vtanh.f32 %v2353_v17  ;;  %v6398_v25 = vpop.f32.mrb[55].mxu0  ;;  %v9693_v3 = vld [vmem:[%s11859_s2 + $0x14] ss:$8 sps:$4 sm:$0xff]  }
0x14da   :  { %7180 = vtanh.f32 %v2355_v22  ;;  %v9673_v22 = vld [vmem:[%s11859_s2 + $0x70] ss:$8 sps:$4 sm:$0xff]  }
0x14db   :  { %v9699_v25 = vld [vmem:[%s11859_s2 + $0x10] ss:$8 sps:$4 sm:$0xff]  }
0x14e3   :  { %v7179_v10 = vpop.eup %7178 }
0x14e4   :  { %v7181_v57 = vpop.eup %7180 }
0x14e5   :  { %v2357_v39 = vsel %vm431_vm1, %v7179_v10, %v7181_v57  ;;  %v9705_v10 = vld [vmem:[%s11859_s2 + $0x24] ss:$8 sps:$4 sm:$0xff]   ;;  %v9711_v57 = vld [vmem:[%s11859_s2 + $0x20] ss:$8 sps:$4 sm:$0xff]  }
0x14e6   :  { %v2358_v0 = vpack.c.bf16 %v2357_v39, %v2357_v39  ;;  %v9717_v39 = vld [vmem:[%s11859_s2 + $0x34] ss:$8 sps:$4 sm:$0xff]  }
0x14e8   :  { %6416 = vmatmul.mubr.bf16.vlgmr.msra.gmra.mrb[52].mxu1 %v2358_v0  ;;  %v9723_v0 = vld [vmem:[%s11859_s2 + $0x30] ss:$8 sps:$4 sm:$0xff]  }
0x14e9   :  { %2458 = vmatpush1.bf16.msra.mxu1 %v12155_v60  ;;  %2489 = vmatprep.mubr.bf16.mxu1 %v12060_v19  ;;  %v9729_v60 = vld [vmem:[%s11859_s2 + $0x44] ss:$8 sps:$4 sm:$0xff]  }
0x14ea   :  { %2459 = vmatprep.subr.bf16.mxu1 %v12156_v30  ;;  %v9735_v30 = vld [vmem:[%s11859_s2 + $0x40] ss:$8 sps:$4 sm:$0xff]  }
0x14ed   :  { %2460 = vmatpush1.bf16.msra.mxu1 %v12157_v28  ;;  %v9741_v28 = vld [vmem:[%s11859_s2 + $0x54] ss:$8 sps:$4 sm:$0xff]  }
0x14ee   :  { %2461 = vmatprep.subr.bf16.mxu1 %v12158_v31  ;;  %v9747_v31 = vld [vmem:[%s11859_s2 + $0x50] ss:$8 sps:$4 sm:$0xff]  }
0x14f1   :  { %2462 = vmatpush1.bf16.msra.mxu1 %v12159_v61  ;;  %v9753_v61 = vld [vmem:[%s11859_s2 + $0x64] ss:$8 sps:$4 sm:$0xff]  }
0x14f2   :  { %2463 = vmatprep.subr.bf16.mxu1 %v12160_v62  ;;  %v9759_v62 = vld [vmem:[%s11859_s2 + $0x60] ss:$8 sps:$4 sm:$0xff]  }
0x14f5   :  { %2464 = vmatpush1.bf16.msra.mxu1 %v12161_v59  ;;  %v9765_v59 = vld [vmem:[%s11859_s2 + $0x74] ss:$8 sps:$4 sm:$0xff]  }
0x14f6   :  { %2465 = vmatprep.subr.bf16.mxu1 %v12162_v54  ;;  %v9771_v54 = vld [vmem:[%s11859_s2 + $0x70] ss:$8 sps:$4 sm:$0xff]  }
0x14f9   :  { %2466 = vmatpush1.bf16.msra.mxu1 %v12163_v56 }
0x14fa   :  { %2467 = vmatprep.subr.bf16.mxu1 %v12164_v51  ;;  %v5555_v51 = vld [vmem:[%s11857_s0 + $0x6c] sm:$0xf] }
0x14fd   :  { %2468 = vmatpush1.bf16.msra.mxu1 %v12165_v38 }
0x14fe   :  { %2469 = vmatprep.subr.bf16.mxu1 %v12166_v7  ;;  %v5556_v7 = vld [vmem:[%s11857_s0 + $0x8c] sm:$0xf] }
0x1501   :  { %2470 = vmatpush1.bf16.msra.mxu1 %v12167_v55 }
0x1502   :  { %2471 = vmatprep.subr.bf16.mxu1 %v12168_v35  ;;  %v12171_v35 = vld [vmem:[#allocation32_spill] sm:$0xff] }
0x1505   :  { %2472 = vmatpush1.bf16.msra.mxu1 %v12169_v46 }
0x1506   :  { %6439 = vmatprep.subr.bf16.mxu1 %v12051_v40 }
0x15bb   :  { %v9593_v20 = vpop.f32.mrb[52].mxu1 }
0x15bc   :  { %v2399_v45 = vmul.f32 %v5557_v58, %v9593_v20  ;;  %v6417_v34 = vpop.f32.mrb[53].mxu1  ;;  %v2402_v56 = vrot.slane %v9593_v20, 4  ;;  %v5553_v58 = vld [vmem:[%s11857_s0 + $0x2c] sm:$0xf] }
0x15bd   :  { %v2396_v4 = vpop.f32.mrb[54].mxu1 }
0x15be   :  { %v2400_v44 = vadd.f32 %v5558_v42, %v2399_v45  ;;  %v6418_v53 = vpop.f32.mrb[55].mxu1  ;;  %v2404_v38 = vmul.f32 %v5555_v51, %v2402_v56  ;;  %v12172_v45 = vld [vmem:[#allocation33_spill] sm:$0xff] }
0x15c0   :  { %v2406_v29 = vmul.f32 %v9240_v21, %v2400_v44  ;;  %v9620_v21 = vld [vmem:[%s11859_s2 + $0x10] ss:$8 sps:$4 sm:$0xff]   ;;  %v2405_v55 = vadd.f32 %v5556_v7, %v2404_v38 }
0x15c2   :  { %v2407_v12 = vadd.f32 %v9246_v13, %v2406_v29  ;;  %v9609_v13 = vld [vmem:[%s11859_s2] ss:$8 sps:$4 sm:$0xff]   ;;  %v2542_v46 = vmul.f32 %v12171_v35, %v2405_v55 }
0x15c3   :  { %v12173_v29 = vld [vmem:[#allocation34_spill] sm:$0xff] }
0x15c4   :  { %v2409_v2 = vmin.f32 %v2407_v12, 0.0  ;;  %vm2408_vm5 = vcmp.gt.f32.partialorder %v2407_v12, 0.0  ;;  %v2543_v42 = vadd.f32 %v5553_v58, %v2542_v46 }
0x15c6   :  { %v2410_v16 = vmul.f32 1.442695, %v2409_v2  ;;  %v2544_v34 = vadd.f32 %v12172_v45, %v2543_v42  ;;  %v12174_v2 = vld [vmem:[#allocation35_spill] sm:$0xff] }
0x15c8   :  { %7182 = vpow2.f32 %v2410_v16  ;;  %v2545_v20 = vsub.f32 0.0, %v2544_v34  ;;  %v2608_v16 = vmul.f32 %v12174_v2, %v2405_v55 }
0x15ca   :  { %v2546_v4 = vmul.f32 1.442695, %v2545_v20 }
0x15cc   :  { %7184 = vpow2.f32 %v2546_v4 }
0x15d2   :  { %v7183_v47 = vpop.eup %7182 }
0x15d3   :  { %v5559_v6 = vadd.f32 -1.0, %v7183_v47 }
0x15d5   :  { %v9598_v43 = vsel %vm2408_vm5, %v2407_v12, %v5559_v6  ;;  %v2538_v12 = vmul.f32 %v12173_v29, %v2405_v55  ;;  %vm5392_vm5 = vcmask 25600  }
0x15d6   :  { %v2414_v17 = vadd.f32 %v9598_v43, %v9488_v48  ;;  %v7185_v44 = vpop.eup %7184 }
0x15d7   :  { %v2548_v53 = vadd.f32 1.0, %v7185_v44 }
0x15d8   :  { %v2415_v63 = vpack.c.bf16 %v2414_v17, %v2414_v17  ;;  %v12175_v17 = vld [vmem:[#allocation36_spill] sm:$0xff] }
0x15d9   :  { %7186 = vrcp.f32 %v2548_v53 }
0x15da   :  { %2449 = vmatmul.mubr.bf16.vlgmr.msra.gmra.mrb[56].mxu0 %v2415_v63  ;;  %2490 = vmatmul.mubr.bf16.vlgmr.msra.gmra.mrb[56].mxu1 %v2415_v63 }
0x15db   :  { %6420 = vmatpush3.bf16.msra.mxu0 %v9256_v26  ;;  %6435 = vmatprep.mubr.msk.bf16.mxu0 %vm7706_vm0, %v12051_v40  ;;  %v9629_v26 = vld [vmem:[%s11859_s2 + $0x20] ss:$8 sps:$4 sm:$0xff]  }
0x15dc   :  { %6421 = vmatprep.subr.bf16.mxu0 %v12051_v40  ;;  %6440 = vmatpush3.bf16.msra.mxu1 %v9609_v13 }
0x15dd   :  { %6441 = vmatprep.subr.bf16.mxu1 %v12051_v40  ;;  %6455 = vmatprep.mubr.msk.bf16.mxu1 %vm7706_vm0, %v12051_v40 }
0x15df   :  { %6422 = vmatpush3.bf16.msra.mxu0 %v9269_v52  ;;  %v9638_v52 = vld [vmem:[%s11859_s2 + $0x30] ss:$8 sps:$4 sm:$0xff]  }
0x15e0   :  { %6423 = vmatprep.subr.bf16.mxu0 %v12051_v40  ;;  %6442 = vmatpush3.bf16.msra.mxu1 %v9620_v21 }
0x15e1   :  { %6443 = vmatprep.subr.bf16.mxu1 %v12051_v40 }
0x15e3   :  { %6424 = vmatpush3.bf16.msra.mxu0 %v9278_v9  ;;  %v9647_v9 = vld [vmem:[%s11859_s2 + $0x40] ss:$8 sps:$4 sm:$0xff]   ;;  %v9791_v34 = vpop.eup %7186 }
0x15e4   :  { %6425 = vmatprep.subr.bf16.mxu0 %v12051_v40  ;;  %6444 = vmatpush3.bf16.msra.mxu1 %v9629_v26 }
0x15e5   :  { %6445 = vmatprep.subr.bf16.mxu1 %v12051_v40 }
0x15e7   :  { %6426 = vmatpush3.bf16.msra.mxu0 %v9287_v24  ;;  %v9656_v24 = vld [vmem:[%s11859_s2 + $0x50] ss:$8 sps:$4 sm:$0xff]  }
0x15e8   :  { %6427 = vmatprep.subr.bf16.mxu0 %v12051_v40  ;;  %6446 = vmatpush3.bf16.msra.mxu1 %v9638_v52 }
0x15e9   :  { %6447 = vmatprep.subr.bf16.mxu1 %v12051_v40 }
0x15eb   :  { %6428 = vmatpush3.bf16.msra.mxu0 %v9296_v14  ;;  %v9665_v14 = vld [vmem:[%s11859_s2 + $0x60] ss:$8 sps:$4 sm:$0xff]  }
0x15ec   :  { %6429 = vmatprep.subr.bf16.mxu0 %v12051_v40  ;;  %6448 = vmatpush3.bf16.msra.mxu1 %v9647_v9 }
0x15ed   :  { %6449 = vmatprep.subr.bf16.mxu1 %v12051_v40 }
0x15ef   :  { %6430 = vmatpush3.bf16.msra.mxu0 %v9305_v8  ;;  %v12170_v8 = vld [vmem:[#allocation31_spill] sm:$0xff] }
0x15f0   :  { %6431 = vmatprep.subr.bf16.mxu0 %v12051_v40  ;;  %6450 = vmatpush3.bf16.msra.mxu1 %v9656_v24 }
0x15f1   :  { %6451 = vmatprep.subr.bf16.mxu1 %v12051_v40 }
0x15f3   :  { %6432 = vmatpush3.bf16.msra.mxu0 %v9314_v11  ;;  %v9679_v11 = vld [vmem:[%s11859_s2 + $0x4] ss:$8 sps:$4 sm:$0xff]  }
0x15f4   :  { %6433 = vmatprep.subr.bf16.mxu0 %v12051_v40  ;;  %6452 = vmatpush3.bf16.msra.mxu1 %v9665_v14 }
0x15f5   :  { %6453 = vmatprep.subr.bf16.mxu1 %v12051_v40 }
0x15f7   :  { %6434 = vmatpush3.bf16.msra.mxu0 %v12170_v8  ;;  %v12176_v8 = vld [vmem:[#allocation37_spill] sm:$0xff] }
0x15f8   :  { %6454 = vmatpush3.bf16.msra.mxu1 %v9673_v22  ;;  %2673 = vmatprep.subr.bf16.mxu0 %v9679_v11  ;;  %v2633_v56 = vmul.f32 %v12176_v8, %v2405_v55 }
0x15f9   :  { %6459 = vmatprep.subr.bf16.mxu1 %v12051_v40 }
0x15fa   :  { %6436 = vmatmul.mubr.bf16.vlgmr.msra.gmra.mrb[60].mxu0 %v2415_v63  ;;  %v2597_v63 = vmul.f32 %v12175_v17, %v2405_v55 }
0x15fb   :  { %2674 = vmatpush1.bf16.msra.mxu0 %v9686_v5  ;;  %2705 = vmatprep.mubr.bf16.mxu0 %v12060_v19 }
0x15fc   :  { %2675 = vmatprep.subr.bf16.mxu0 %v9693_v3 }
0x15ff   :  { %2676 = vmatpush1.bf16.msra.mxu0 %v9699_v25 }
0x1600   :  { %2677 = vmatprep.subr.bf16.mxu0 %v9705_v10 }
0x1603   :  { %2678 = vmatpush1.bf16.msra.mxu0 %v9711_v57 }
0x1604   :  { %2679 = vmatprep.subr.bf16.mxu0 %v9717_v39 }
0x1607   :  { %2680 = vmatpush1.bf16.msra.mxu0 %v9723_v0 }
0x1608   :  { %2681 = vmatprep.subr.bf16.mxu0 %v9729_v60 }
0x160b   :  { %2682 = vmatpush1.bf16.msra.mxu0 %v9735_v30 }
0x160c   :  { %2683 = vmatprep.subr.bf16.mxu0 %v9741_v28 }
0x160f   :  { %2684 = vmatpush1.bf16.msra.mxu0 %v9747_v31 }
0x1610   :  { %2685 = vmatprep.subr.bf16.mxu0 %v9753_v61 }
0x1613   :  { %2686 = vmatpush1.bf16.msra.mxu0 %v9759_v62 }
0x1614   :  { %2687 = vmatprep.subr.bf16.mxu0 %v9765_v59 }
0x1617   :  { %2688 = vmatpush1.bf16.msra.mxu0 %v9771_v54 }
0x1618   :  { %6479 = vmatprep.subr.bf16.mxu0 %v12051_v40 }
0x16ad   :  { %v2450_v47 = vpop.f32.mrb[56].mxu0  ;;  %v2491_v6 = vpop.f32.mrb[56].mxu1 }
0x16ae   :  { %v2539_v51 = vadd.f32 %v2538_v12, %v2450_v47  ;;  %v2609_v38 = vadd.f32 %v2608_v16, %v2491_v6  ;;  %v2452_v7 = vpop.f32.mrb[57].mxu0  ;;  %v2493_v35 = vpop.f32.mrb[57].mxu1 }
0x16af   :  { %v2598_v46 = vadd.f32 %v2597_v63, %v2452_v7  ;;  %v2634_v58 = vadd.f32 %v2633_v56, %v2493_v35  ;;  %v2454_v42 = vpop.f32.mrb[58].mxu0  ;;  %v2495_v45 = vpop.f32.mrb[58].mxu1 }
0x16b0   :  { %v2540_v20 = vadd.f32 %v9399_v37, %v2539_v51  ;;  %v2455_v4 = vpop.f32.mrb[59].mxu0  ;;  %v2496_v44 = vpop.f32.mrb[59].mxu1  ;;  %v2623_v37 = vmul.f32 %v9420_v15, %v2405_v55  ;;  %v2610_v15 = vmul.f32 %v9436_v36, %v9522_v50 }
0x16b1   :  { %v9795_v53 = vadd.f32 %v9791_v34, %v2634_v58 }
0x16b2   :  { %7188 = vtanh.f32 %v2540_v20  ;;  %v2611_v55 = vadd.f32 %v2610_v15, %v2609_v38 }
0x16b4   :  { %v2612_v63 = vadd.f32 %v9443_v18, %v2611_v55 }
0x16bc   :  { %v9797_v29 = vpop.eup %7188 }
0x16bd   :  { %v2550_v12 = vpack.c.bf16 %v9797_v29, %v9797_v29  ;;  %v2613_v8 = vadd.f32 %v9797_v29, %v2612_v63 }
0x16bf   :  { %6456 = vmatmul.mubr.bf16.vlgmr.msra.gmra.mrb[60].mxu1 %v2550_v12  ;;  %v2614_v56 = vsub.f32 0.0, %v2613_v8 }
0x16c0   :  { %6460 = vmatpush3.bf16.msra.mxu1 %v9609_v13  ;;  %6475 = vmatprep.mubr.msk.bf16.mxu1 %vm7706_vm0, %v12051_v40 }
0x16c1   :  { %6461 = vmatprep.subr.bf16.mxu1 %v12051_v40  ;;  %v2615_v51 = vmul.f32 1.442695, %v2614_v56 }
0x16c3   :  { %7190 = vpow2.f32 %v2615_v51 }
0x16c4   :  { %6462 = vmatpush3.bf16.msra.mxu1 %v9620_v21 }
0x16c5   :  { %6463 = vmatprep.subr.bf16.mxu1 %v12051_v40 }
0x16c8   :  { %6464 = vmatpush3.bf16.msra.mxu1 %v9629_v26 }
0x16c9   :  { %6465 = vmatprep.subr.bf16.mxu1 %v12051_v40 }
0x16cc   :  { %6466 = vmatpush3.bf16.msra.mxu1 %v9638_v52 }
0x16cd   :  { %v2532_v2 = vpop.f32.mrb[60].mxu0  ;;  %6467 = vmatprep.subr.bf16.mxu1 %v12051_v40  ;;  %v7191_v44 = vpop.eup %7190 }
0x16ce   :  { %v2624_v16 = vadd.f32 %v2623_v37, %v2532_v2  ;;  %v6437_v47 = vpop.f32.mrb[61].mxu0  ;;  %v2617_v12 = vadd.f32 1.0, %v7191_v44  ;;  %v2599_v37 = vmul.f32 %v9451_v23, %v9522_v50 }
0x16cf   :  { %v2535_v6 = vpop.f32.mrb[62].mxu0 }
0x16d0   :  { %v6438_v17 = vpop.f32.mrb[63].mxu0  ;;  %6468 = vmatpush3.bf16.msra.mxu1 %v9647_v9  ;;  %v2600_v6 = vadd.f32 %v2599_v37, %v2598_v46 }
0x16d1   :  { %6469 = vmatprep.subr.bf16.mxu1 %v12051_v40 }
0x16d4   :  { %6470 = vmatpush3.bf16.msra.mxu1 %v9656_v24 }
0x16d5   :  { %6471 = vmatprep.subr.bf16.mxu1 %v12051_v40 }
0x16d8   :  { %6472 = vmatpush3.bf16.msra.mxu1 %v9665_v14 }
0x16d9   :  { %6473 = vmatprep.subr.bf16.mxu1 %v12051_v40 }
0x16dc   :  { %6474 = vmatpush3.bf16.msra.mxu1 %v9673_v22 }
0x16dd   :  { %6499 = vmatprep.subr.bf16.mxu1 %v12051_v40 }
0x1792   :  { %v2585_v7 = vpop.f32.mrb[60].mxu1 }
0x1793   :  { %v2591_v35 = vadd.f32 %v9513_v27, %v2585_v7  ;;  %v6457_v58 = vpop.f32.mrb[61].mxu1 }
0x1794   :  { %v2588_v42 = vpop.f32.mrb[62].mxu1  ;;  %v2625_v58 = vadd.f32 %v9467_v49, %v2624_v16 }
0x1795   :  { %v2592_v45 = vsub.f32 0.0, %v2591_v35  ;;  %v6458_v20 = vpop.f32.mrb[63].mxu1 }
0x1797   :  { %v2593_v4 = vmul.f32 1.442695, %v2592_v45 }
0x1799   :  { %7192 = vpow2.f32 %v2593_v4  ;;  %v2636_v4 = vadd.f32 %v9795_v53, %v9598_v43 }
0x179a   :  { %7194 = vrcp.f32 %v2617_v12 }
0x17a3   :  { %v7193_v36 = vpop.eup %7192 }
0x17a4   :  { %v2595_v38 = vadd.f32 1.0, %v7193_v36  ;;  %v7195_v18 = vpop.eup %7194 }
0x17a5   :  { %v2620_v2 = vsub.f32 1.0, %v7195_v18  ;;  %v2619_v17 = vmul.f32 %v7195_v18, %v9519_v41 }
0x17a6   :  { %7196 = vrcp.f32 %v2595_v38 }
0x17b0   :  { %v7197_v47 = vpop.eup %7196 }
0x17b1   :  { %v2601_v27 = vmul.f32 %v9459_v32, %v7197_v47  ;;  %v2621_v15 = vmul.f32 %v7197_v47, %v2620_v2  ;;  %v9851_v2 = vld [vmem:[%s11861_s4] sm:$0xff]   ;;  %v9867_v47 = vld [vmem:[%s11861_s4 + $0x10] sm:$0xff]  }
0x17b3   :  { %v2602_v55 = vadd.f32 %v2601_v27, %v2600_v6  ;;  %v2622_v63 = vadd.f32 %v2621_v15, %v2619_v17  ;;  %v9874_v6 = vld [vmem:[%s11861_s4 + $0x18] sm:$0xff]   ;;  %v9881_v27 = vld [vmem:[%s11861_s4 + $0x20] sm:$0xff]   ;;  %v9888_v17 = vld [vmem:[%s11861_s4 + $0x28] sm:$0xff]  }
0x17b4   :  { %v9895_v15 = vld [vmem:[%s11861_s4 + $0x30] sm:$0xff]  }
0x17b5   :  { %v2603_v8 = vsub.f32 0.0, %v2602_v55  ;;  %v2627_v56 = vadd.f32 %v9791_v34, %v2622_v63  ;;  %v9902_v55 = vld [vmem:[%s11861_s4 + $0x38] sm:$0xff]  }
0x17b6   :  { %v9908_v63 = vld [vmem:[%s11860_s3 + $0x4] ss:$20 sps:$4 sm:$0xff]  }
0x17b7   :  { %v2604_v51 = vmul.f32 1.442695, %v2603_v8  ;;  %v2628_v42 = vmul.f32 %v2627_v56, %v9522_v50  ;;  %v9914_v8 = vld [vmem:[%s11857_s0 + $0x50] sm:$0xf] }
0x17b9   :  { %7198 = vpow2.f32 %v2604_v51 }
0x17c3   :  { %v7199_v7 = vpop.eup %7198 }
0x17c4   :  { %v2606_v35 = vadd.f32 1.0, %v7199_v7 }
0x17c6   :  { %7200 = vrcp.f32 %v2606_v35 }
0x17c7   :  { %7202 = vtanh.f32 %v2625_v58 }
0x17d0   :  { %v7201_v23 = vpop.eup %7200 }
0x17d1   :  { %v2629_v46 = vmul.f32 %v7201_v23, %v9797_v29  ;;  %v7203_v41 = vpop.eup %7202 }
0x17d3   :  { %v2630_v32 = vmul.f32 %v9791_v34, %v2629_v46 }
0x17d5   :  { %v2631_v45 = vmul.f32 %v7203_v41, %v2630_v32 }
0x17d7   :  { %v9834_v20 = vadd.f32 %v2631_v45, %v2628_v42  ;;  %v9920_v42 = vld [vmem:[%s11857_s0 + $0x10] sm:$0xf] }
0x17d9   :  { %v2637_v44 = vmul.f32 %v9478_v1, %v9834_v20  ;;  %v2645_v34 = vadd.f32 %v9834_v20, %v9598_v43  ;;  %v2669_v53 = vrot.slane %v9834_v20, 4  ;;  %v9860_v43 = vld [vmem:[%s11861_s4 + $0x8] sm:$0xff]  }
0x17db   :  { %v2638_v49 = vadd.f32 %v2637_v44, %v2636_v4 }
0x17dd   :  { %v2639_v16 = vadd.f32 %v9484_v33, %v2638_v49 }
0x17df   :  { %v2640_v12 = vsub.f32 0.0, %v2639_v16 }
0x17e1   :  { %v2641_v36 = vmul.f32 1.442695, %v2640_v12 }
0x17e3   :  { %7204 = vpow2.f32 %v2641_v36 }
0x17e4   :  { %7206 = vtanh.f32 %v2645_v34 }
0x17ed   :  { %v7205_v29 = vpop.eup %7204 }
0x17ee   :  { %v2643_v50 = vadd.f32 1.0, %v7205_v29  ;;  %v7207_v38 = vpop.eup %7206 }
0x17f0   :  { %7208 = vrcp.f32 %v2643_v50 }
0x17fa   :  { %v7209_v18 = vpop.eup %7208 }
0x17fb   :  { %v9843_v37 = vmul.f32 %v7209_v18, %v7207_v38 }
0x17fd   :  { %12177 = vst [vmem:[#allocation39_spill] sm:$0xff] %v9843_v37  ;;  %v2671_v1 = vsel %vm431_vm1, %v9843_v37, %v2669_v53 }
0x17fe   :  { %v2672_v33 = vpack.c.bf16 %v2671_v1, %v2671_v1 }
0x1800   :  { %2706 = vmatmul.mubr.bf16.vlgmr.msra.gmra.mrb[64].mxu0 %v2672_v33 }
0x1801   :  { %6480 = vmatpush3.bf16.msra.mxu0 %v9851_v2  ;;  %6495 = vmatprep.mubr.msk.bf16.mxu0 %vm7706_vm0, %v12051_v40 }
0x1802   :  { %6481 = vmatprep.subr.bf16.mxu0 %v12051_v40 }
0x1805   :  { %6482 = vmatpush3.bf16.msra.mxu0 %v9860_v43 }
0x1806   :  { %6483 = vmatprep.subr.bf16.mxu0 %v12051_v40 }
0x1809   :  { %6484 = vmatpush3.bf16.msra.mxu0 %v9867_v47 }
0x180a   :  { %6485 = vmatprep.subr.bf16.mxu0 %v12051_v40 }
0x180d   :  { %6486 = vmatpush3.bf16.msra.mxu0 %v9874_v6 }
0x180e   :  { %6487 = vmatprep.subr.bf16.mxu0 %v12051_v40 }
0x1811   :  { %6488 = vmatpush3.bf16.msra.mxu0 %v9881_v27 }
0x1812   :  { %6489 = vmatprep.subr.bf16.mxu0 %v12051_v40 }
0x1815   :  { %6490 = vmatpush3.bf16.msra.mxu0 %v9888_v17 }
0x1816   :  { %6491 = vmatprep.subr.bf16.mxu0 %v12051_v40 }
0x1819   :  { %6492 = vmatpush3.bf16.msra.mxu0 %v9895_v15 }
0x181a   :  { %6493 = vmatprep.subr.bf16.mxu0 %v12051_v40 }
0x181d   :  { %6494 = vmatpush3.bf16.msra.mxu0 %v9902_v55 }
0x181e   :  { %2896 = vmatprep.subr.bf16.mxu0 %v9908_v63 }
0x18d3   :  { %v2707_v56 = vpop.f32.mrb[64].mxu0 }
0x18d4   :  { %v2714_v51 = vadd.f32 %v9914_v8, %v2707_v56  ;;  %v2709_v7 = vpop.f32.mrb[65].mxu0 }
0x18d5   :  { %v2711_v35 = vpop.f32.mrb[66].mxu0 }
0x18d6   :  { %v2715_v58 = vsub.f32 0.0, %v2714_v51  ;;  %v2712_v23 = vpop.f32.mrb[67].mxu0 }
0x18d8   :  { %v2716_v46 = vmul.f32 1.442695, %v2715_v58 }
0x18da   :  { %7210 = vpow2.f32 %v2716_v46  ;;  %v9955_v46 = vld [vmem:[%s11858_s1 + $0x15] ss:$0 sm:$0xff] }
0x18e4   :  { %v7211_v32 = vpop.eup %7210 }
0x18e5   :  { %v2718_v41 = vadd.f32 1.0, %v7211_v32 }
0x18e7   :  { %7212 = vrcp.f32 %v2718_v41  ;;  %v9961_v41 = vld [vmem:[%s11858_s1 + $0x16] ss:$0 sm:$0xff] }
0x18e8   :  { %7214 = vtanh.f32 %v2709_v7 }
0x18f1   :  { %v7213_v45 = vpop.eup %7212 }
0x18f2   :  { %v2721_v4 = vmul.f32 %v7213_v45, %v9920_v42  ;;  %v7215_v44 = vpop.eup %7214  ;;  %v2782_v32 = vmul.f32 %v9955_v46, %v7213_v45 }
0x18f3   :  { %v2727_v12 = vrot.slane %v7215_v44, 4 }
0x18f4   :  { %v2723_v49 = vrot.slane %v2721_v4, 4 }
0x18f5   :  { %v2729_v34 = vsub.f32 %v9834_v20, %v2727_v12  ;;  %v9948_v20 = vld [vmem:[%s11860_s3 + $0xc] ss:$20 sps:$4 sm:$0xff]  }
0x18f6   :  { %v2725_v16 = vmul.f32 %v7215_v44, %v2723_v49  ;;  %v9967_v44 = vld [vmem:[%s11858_s1 + $0x13] ss:$0 sm:$0xff] }
0x18f7   :  { %v2785_v49 = vmul.f32 %v9967_v44, %v7213_v45  ;;  %v9987_v45 = vld [vmem:[%s11860_s3 + $0x2c] ss:$20 sps:$4 sm:$0xff]  }
0x18f8   :  { %v2730_v36 = vmul.f32 2.0, %v2725_v16  ;;  %v9973_v16 = vld [vmem:[%s11858_s1 + $0x14] ss:$0 sm:$0xff] }
0x18fa   :  { %v2732_v29 = vrot.slane %v2730_v36, 4 }
0x18fc   :  { %v9924_v50 = vadd.f32 %v2732_v29, %v2729_v34 }
0x18fe   :  { %v2735_v38 = vpack.c.bf16 %v9924_v50, %v9924_v50 }
0x1900   :  { %6476 = vmatmul.mubr.bf16.vlgmr.msra.gmra.mrb[64].mxu1 %v2735_v38 }
0x1901   :  { %6500 = vmatpush3.bf16.msra.mxu1 %v9851_v2  ;;  %6515 = vmatprep.mubr.msk.bf16.mxu1 %vm7706_vm0, %v12051_v40 }
0x1902   :  { %6501 = vmatprep.subr.bf16.mxu1 %v12051_v40 }
0x1905   :  { %6502 = vmatpush3.bf16.msra.mxu1 %v9860_v43 }
0x1906   :  { %6503 = vmatprep.subr.bf16.mxu1 %v12051_v40 }
0x1909   :  { %6504 = vmatpush3.bf16.msra.mxu1 %v9867_v47 }
0x190a   :  { %6505 = vmatprep.subr.bf16.mxu1 %v12051_v40 }
0x190d   :  { %6506 = vmatpush3.bf16.msra.mxu1 %v9874_v6 }
0x190e   :  { %6507 = vmatprep.subr.bf16.mxu1 %v12051_v40 }
0x1911   :  { %6508 = vmatpush3.bf16.msra.mxu1 %v9881_v27 }
0x1912   :  { %6509 = vmatprep.subr.bf16.mxu1 %v12051_v40 }
0x1915   :  { %6510 = vmatpush3.bf16.msra.mxu1 %v9888_v17 }
0x1916   :  { %6511 = vmatprep.subr.bf16.mxu1 %v12051_v40 }
0x1919   :  { %6512 = vmatpush3.bf16.msra.mxu1 %v9895_v15 }
0x191a   :  { %6513 = vmatprep.subr.bf16.mxu1 %v12051_v40 }
0x191d   :  { %6514 = vmatpush3.bf16.msra.mxu1 %v9902_v55 }
0x191e   :  { %2937 = vmatprep.subr.bf16.mxu1 %v9948_v20 }
0x19d3   :  { %v2770_v18 = vpop.f32.mrb[64].mxu1 }
0x19d4   :  { %v2776_v53 = vadd.f32 %v9914_v8, %v2770_v18  ;;  %v6477_v1 = vpop.f32.mrb[65].mxu1 }
0x19d5   :  { %v2773_v33 = vpop.f32.mrb[66].mxu1  ;;  %v9993_v1 = vld [vmem:[%s11860_s3 + $0x28] ss:$20 sps:$4 sm:$0xff]  }
0x19d6   :  { %v2777_v56 = vsub.f32 0.0, %v2776_v53  ;;  %v6478_v51 = vpop.f32.mrb[67].mxu1  ;;  %v9980_v53 = vld [vmem:[%s11860_s3] ss:$20 sps:$4 sm:$0xff]  }
0x19d7   :  { %v9999_v33 = vld [vmem:[%s11860_s3 + $0x54] ss:$20 sps:$4 sm:$0xff]   ;;  %v10011_v51 = vld [vmem:[%s11860_s3 + $0x7c] ss:$20 sps:$4 sm:$0xff]  }
0x19d8   :  { %v2778_v7 = vmul.f32 1.442695, %v2777_v56  ;;  %v10005_v56 = vld [vmem:[%s11860_s3 + $0x50] ss:$20 sps:$4 sm:$0xff]  }
0x19da   :  { %7216 = vpow2.f32 %v2778_v7  ;;  %v10017_v7 = vld [vmem:[%s11860_s3 + $0x78] ss:$20 sps:$4 sm:$0xff]  }
0x19e4   :  { %v7217_v35 = vpop.eup %7216 }
0x19e5   :  { %v2780_v58 = vadd.f32 1.0, %v7217_v35  ;;  %v10023_v35 = vld [vmem:[%s11860_s3 + $0xa4] ss:$20 sps:$4 sm:$0xff]  }
0x19e6   :  { %12178 = vst [vmem:[#allocation42_spill] sm:$0xff] %v10023_v35 }
0x19e7   :  { %7218 = vrcp.f32 %v2780_v58  ;;  %v10029_v58 = vld [vmem:[%s11860_s3 + $0xa0] ss:$20 sps:$4 sm:$0xff]  }
0x19e8   :  { %12179 = vst [vmem:[#allocation43_spill] sm:$0xff] %v10029_v58 }
0x19f1   :  { %v7219_v23 = vpop.eup %7218 }
0x19f2   :  { %v2783_v4 = vmul.f32 %v9961_v41, %v7219_v23  ;;  %v2786_v12 = vmul.f32 %v9973_v16, %v7219_v23  ;;  %v10035_v23 = vld [vmem:[%s11860_s3 + $0xcc] ss:$20 sps:$4 sm:$0xff]  }
0x19f3   :  { %12180 = vst [vmem:[#allocation44_spill] sm:$0xff] %v10035_v23 }
0x19f4   :  { %v2784_v36 = vadd.f32 %v2783_v4, %v2782_v32  ;;  %v2787_v34 = vadd.f32 %v2786_v12, %v2785_v49  ;;  %v10041_v32 = vld [vmem:[%s11860_s3 + $0xc8] ss:$20 sps:$4 sm:$0xff]   ;;  %v10053_v49 = vld [vmem:[%s11860_s3 + $0xf0] ss:$20 sps:$4 sm:$0xff]  }
0x19f5   :  { %12181 = vst [vmem:[#allocation45_spill] sm:$0xff] %v10041_v32  ;;  %v10047_v4 = vld [vmem:[%s11860_s3 + $0xf4] ss:$20 sps:$4 sm:$0xff]   ;;  %12183 = vst [vmem:[#allocation41_spill] sm:$0xff] %v10053_v49  ;;  %v10059_v12 = vld [vmem:[%s11860_s3 + $0x11c] ss:$20 sps:$4 sm:$0xff]  }
0x19f6   :  { %v2789_v29 = vrot.slane %v2787_v34, 4  ;;  %12182 = vst [vmem:[#allocation40_spill] sm:$0xff] %v10047_v4  ;;  %12184 = vst [vmem:[#allocation15_spill] sm:$0xff] %v10059_v12 }
0x19f8   :  { %v2791_v38 = vsel %vm431_vm1, %v2784_v36, %v2789_v29  ;;  %v10065_v36 = vld [vmem:[%s11860_s3 + $0x118] ss:$20 sps:$4 sm:$0xff]   ;;  %v10072_v29 = vld [vmem:[%s11858_s1 + $0x12] ss:$0 sm:$0xff] }
0x19f9   :  { %v2792_v18 = vpack.c.bf16 %v2791_v38, %v2791_v38  ;;  %12185 = vst [vmem:[#allocation18_spill] sm:$0xff] %v10065_v36  ;;  %12186 = vst [vmem:[#allocation19_spill] sm:$0xff] %v10072_v29 }
0x19fb   :  { %6496 = vmatmul.mubr.bf16.vlgmr.msra.gmra.mrb[68].mxu0 %v2792_v18  ;;  %v10078_v18 = vld [vmem:[%s11858_s1 + $0x11] ss:$0 sm:$0xff] }
0x19fc   :  { %2897 = vmatpush1.bf16.msra.mxu0 %v9980_v53  ;;  %2928 = vmatprep.mubr.bf16.mxu0 %v12060_v19  ;;  %12187 = vst [vmem:[#allocation22_spill] sm:$0xff] %v10078_v18 }
0x19fd   :  { %2898 = vmatprep.subr.bf16.mxu0 %v9987_v45 }
0x1a00   :  { %2899 = vmatpush1.bf16.msra.mxu0 %v9993_v1 }
0x1a01   :  { %2900 = vmatprep.subr.bf16.mxu0 %v9999_v33 }
0x1a04   :  { %2901 = vmatpush1.bf16.msra.mxu0 %v10005_v56 }
0x1a05   :  { %2902 = vmatprep.subr.bf16.mxu0 %v10011_v51 }
0x1a08   :  { %2903 = vmatpush1.bf16.msra.mxu0 %v10017_v7 }
0x1a09   :  { %2904 = vmatprep.subr.bf16.mxu0 %v10023_v35 }
0x1a0c   :  { %2905 = vmatpush1.bf16.msra.mxu0 %v10029_v58 }
0x1a0d   :  { %2906 = vmatprep.subr.bf16.mxu0 %v10035_v23 }
0x1a10   :  { %2907 = vmatpush1.bf16.msra.mxu0 %v10041_v32 }
0x1a11   :  { %2908 = vmatprep.subr.bf16.mxu0 %v10047_v4 }
0x1a14   :  { %2909 = vmatpush1.bf16.msra.mxu0 %v10053_v49 }
0x1a15   :  { %2910 = vmatprep.subr.bf16.mxu0 %v10059_v12 }
0x1a18   :  { %2911 = vmatpush1.bf16.msra.mxu0 %v10065_v36 }
0x1a19   :  { %6519 = vmatprep.subr.bf16.mxu0 %v12051_v40 }
0x1ace   :  { %v2827_v34 = vpop.f32.mrb[68].mxu0 }
0x1acf   :  { %v2833_v38 = vadd.f32 %v10072_v29, %v2827_v34  ;;  %v2835_v48 = vadd.f32 %v10078_v18, %v2827_v34  ;;  %v6497_v12 = vpop.f32.mrb[69].mxu0  ;;  %v10085_v29 = vld [vmem:[%s11860_s3 + $0x8] ss:$20 sps:$4 sm:$0xff]  }
0x1ad0   :  { %v2830_v49 = vpop.f32.mrb[70].mxu0  ;;  %12188 = vst [vmem:[#allocation23_spill] sm:$0xff] %v10085_v29  ;;  %v10128_v12 = vld [vmem:[%s11860_s3 + $0xac] ss:$20 sps:$4 sm:$0xff]   ;;  %v10140_v34 = vld [vmem:[%s11860_s3 + $0xd4] ss:$20 sps:$4 sm:$0xff]  }
0x1ad1   :  { %7220 = vtanh.f32 %v2833_v38  ;;  %v6498_v36 = vpop.f32.mrb[71].mxu0  ;;  %v10092_v49 = vld [vmem:[%s11860_s3 + $0x34] ss:$20 sps:$4 sm:$0xff]   ;;  %12195 = vst [vmem:[#allocation9_spill] sm:$0xff] %v10128_v12  ;;  %12197 = vst [vmem:[#allocation11_spill] sm:$0xff] %v10140_v34 }
0x1ad2   :  { %7222 = vtanh.f32 %v2835_v48  ;;  %12189 = vst [vmem:[#allocation26_spill] sm:$0xff] %v10092_v49  ;;  %v10098_v48 = vld [vmem:[%s11860_s3 + $0x30] ss:$20 sps:$4 sm:$0xff]   ;;  %v10134_v36 = vld [vmem:[%s11860_s3 + $0xa8] ss:$20 sps:$4 sm:$0xff]  }
0x1ad3   :  { %12190 = vst [vmem:[#allocation28_spill] sm:$0xff] %v10098_v48  ;;  %12196 = vst [vmem:[#allocation10_spill] sm:$0xff] %v10134_v36  ;;  %v10146_v38 = vld [vmem:[%s11860_s3 + $0xd0] ss:$20 sps:$4 sm:$0xff]  }
0x1ad4   :  { %12198 = vst [vmem:[#allocation12_spill] sm:$0xff] %v10146_v38 }
0x1adb   :  { %v7221_v4 = vpop.eup %7220 }
0x1adc   :  { %v7223_v32 = vpop.eup %7222 }
0x1add   :  { %v2837_v23 = vsel %vm431_vm1, %v7221_v4, %v7223_v32  ;;  %v10116_v32 = vld [vmem:[%s11860_s3 + $0x84] ss:$20 sps:$4 sm:$0xff]   ;;  %v10122_v4 = vld [vmem:[%s11860_s3 + $0x80] ss:$20 sps:$4 sm:$0xff]  }
0x1ade   :  { %v2838_v58 = vpack.c.bf16 %v2837_v23, %v2837_v23  ;;  %v10110_v23 = vld [vmem:[%s11860_s3 + $0x58] ss:$20 sps:$4 sm:$0xff]   ;;  %12193 = vst [vmem:[#allocation7_spill] sm:$0xff] %v10116_v32  ;;  %12194 = vst [vmem:[#allocation8_spill] sm:$0xff] %v10122_v4 }
0x1adf   :  { %12192 = vst [vmem:[#allocation5_spill] sm:$0xff] %v10110_v23 }
0x1ae0   :  { %6516 = vmatmul.mubr.bf16.vlgmr.msra.gmra.mrb[68].mxu1 %v2838_v58  ;;  %v10104_v58 = vld [vmem:[%s11860_s3 + $0x5c] ss:$20 sps:$4 sm:$0xff]  }
0x1ae1   :  { %2938 = vmatpush1.bf16.msra.mxu1 %v10085_v29  ;;  %2969 = vmatprep.mubr.bf16.mxu1 %v12060_v19  ;;  %12191 = vst [vmem:[#allocation6_spill] sm:$0xff] %v10104_v58  ;;  %v10192_v29 = vld [vmem:[%s11858_s1 + $0xf] ss:$0 sm:$0xff] }
0x1ae2   :  { %2939 = vmatprep.subr.bf16.mxu1 %v10092_v49 }
0x1ae5   :  { %2940 = vmatpush1.bf16.msra.mxu1 %v10098_v48 }
0x1ae6   :  { %2941 = vmatprep.subr.bf16.mxu1 %v10104_v58 }
0x1ae9   :  { %2942 = vmatpush1.bf16.msra.mxu1 %v10110_v23 }
0x1aea   :  { %2943 = vmatprep.subr.bf16.mxu1 %v10116_v32 }
0x1aed   :  { %2944 = vmatpush1.bf16.msra.mxu1 %v10122_v4 }
0x1aee   :  { %2945 = vmatprep.subr.bf16.mxu1 %v10128_v12  ;;  %v10152_v12 = vld [vmem:[%s11860_s3 + $0xfc] ss:$20 sps:$4 sm:$0xff]  }
0x1aef   :  { %12199 = vst [vmem:[#allocation13_spill] sm:$0xff] %v10152_v12 }
0x1af1   :  { %2946 = vmatpush1.bf16.msra.mxu1 %v10134_v36  ;;  %v10158_v36 = vld [vmem:[%s11860_s3 + $0xf8] ss:$20 sps:$4 sm:$0xff]  }
0x1af2   :  { %2947 = vmatprep.subr.bf16.mxu1 %v10140_v34  ;;  %12200 = vst [vmem:[#allocation16_spill] sm:$0xff] %v10158_v36  ;;  %v10164_v34 = vld [vmem:[%s11860_s3 + $0x124] ss:$20 sps:$4 sm:$0xff]  }
0x1af3   :  { %12201 = vst [vmem:[#allocation17_spill] sm:$0xff] %v10164_v34 }
0x1af5   :  { %2948 = vmatpush1.bf16.msra.mxu1 %v10146_v38  ;;  %v10170_v38 = vld [vmem:[%s11860_s3 + $0x120] ss:$20 sps:$4 sm:$0xff]  }
0x1af6   :  { %2949 = vmatprep.subr.bf16.mxu1 %v10152_v12  ;;  %12202 = vst [vmem:[#allocation20_spill] sm:$0xff] %v10170_v38  ;;  %v5566_v12 = vld [vmem:[%s11857_s0 + $0xd0] sm:$0xf] }
0x1af9   :  { %2950 = vmatpush1.bf16.msra.mxu1 %v10158_v36  ;;  %v5565_v36 = vld [vmem:[%s11857_s0 + $0xb0] sm:$0xf] }
0x1afa   :  { %2951 = vmatprep.subr.bf16.mxu1 %v10164_v34 }
0x1afd   :  { %2952 = vmatpush1.bf16.msra.mxu1 %v10170_v38  ;;  %v10186_v38 = vld [vmem:[%s11858_s1 + $0x5] ss:$0 sm:$0xff] }
0x1afe   :  { %6539 = vmatprep.subr.bf16.mxu1 %v12051_v40 }
0x1bb3   :  { %v10180_v4 = vpop.f32.mrb[68].mxu1 }
0x1bb4   :  { %v2879_v34 = vmul.f32 %v5565_v36, %v10180_v4  ;;  %v6517_v32 = vpop.f32.mrb[69].mxu1 }
0x1bb5   :  { %v2876_v23 = vpop.f32.mrb[70].mxu1 }
0x1bb6   :  { %v2880_v58 = vadd.f32 %v5566_v12, %v2879_v34  ;;  %v6518_v48 = vpop.f32.mrb[71].mxu1 }
0x1bb8   :  { %v2886_v49 = vmul.f32 %v10186_v38, %v2880_v58  ;;  %v10202_v58 = vld [vmem:[%s11860_s3 + $0x10] ss:$20 sps:$4 sm:$0xff]  }
0x1bba   :  { %v2887_v18 = vadd.f32 %v10192_v29, %v2886_v49  ;;  %v10233_v49 = vld [vmem:[%s11860_s3 + $0x88] ss:$20 sps:$4 sm:$0xff]  }
0x1bbc   :  { %v2889_v35 = vmin.f32 %v2887_v18, 0.0  ;;  %vm2888_vm6 = vcmp.gt.f32.partialorder %v2887_v18, 0.0 }
0x1bbe   :  { %v2890_v36 = vmul.f32 1.442695, %v2889_v35  ;;  %v10215_v35 = vld [vmem:[%s11860_s3 + $0x38] ss:$20 sps:$4 sm:$0xff]  }
0x1bc0   :  { %7224 = vpow2.f32 %v2890_v36  ;;  %v10242_v36 = vld [vmem:[%s11860_s3 + $0xb0] ss:$20 sps:$4 sm:$0xff]  }
0x1bca   :  { %v7225_v23 = vpop.eup %7224 }
0x1bcb   :  { %v5567_v32 = vadd.f32 -1.0, %v7225_v23  ;;  %v10251_v23 = vld [vmem:[%s11860_s3 + $0xd8] ss:$20 sps:$4 sm:$0xff]  }
0x1bcd   :  { %v10195_v48 = vsel %vm2888_vm6, %v2887_v18, %v5567_v32  ;;  %v10224_v18 = vld [vmem:[%s11860_s3 + $0x60] ss:$20 sps:$4 sm:$0xff]  }
0x1bce   :  { %v2894_v12 = vadd.f32 %v10195_v48, %v9843_v37  ;;  %v10260_v32 = vld [vmem:[%s11860_s3 + $0x100] ss:$20 sps:$4 sm:$0xff]  }
0x1bd0   :  { %v2895_v34 = vpack.c.bf16 %v2894_v12, %v2894_v12  ;;  %v10269_v12 = vld [vmem:[%s11860_s3 + $0x128] ss:$20 sps:$4 sm:$0xff]  }
0x1bd1   :  { %12203 = vst [vmem:[#allocation21_spill] sm:$0xff] %v10269_v12 }
0x1bd2   :  { %2929 = vmatmul.mubr.bf16.vlgmr.msra.gmra.mrb[72].mxu0 %v2895_v34  ;;  %2970 = vmatmul.mubr.bf16.vlgmr.msra.gmra.mrb[72].mxu1 %v2895_v34 }
0x1bd3   :  { %6520 = vmatpush3.bf16.msra.mxu0 %v10202_v58  ;;  %6535 = vmatprep.mubr.msk.bf16.mxu0 %vm7706_vm0, %v12051_v40 }
0x1bd4   :  { %6521 = vmatprep.subr.bf16.mxu0 %v12051_v40  ;;  %6540 = vmatpush3.bf16.msra.mxu1 %v9609_v13 }
0x1bd5   :  { %6541 = vmatprep.subr.bf16.mxu1 %v12051_v40  ;;  %6555 = vmatprep.mubr.msk.bf16.mxu1 %vm7706_vm0, %v12051_v40 }
0x1bd7   :  { %6522 = vmatpush3.bf16.msra.mxu0 %v10215_v35 }
0x1bd8   :  { %6523 = vmatprep.subr.bf16.mxu0 %v12051_v40  ;;  %6542 = vmatpush3.bf16.msra.mxu1 %v9620_v21 }
0x1bd9   :  { %6543 = vmatprep.subr.bf16.mxu1 %v12051_v40 }
0x1bdb   :  { %6524 = vmatpush3.bf16.msra.mxu0 %v10224_v18 }
0x1bdc   :  { %6525 = vmatprep.subr.bf16.mxu0 %v12051_v40  ;;  %6544 = vmatpush3.bf16.msra.mxu1 %v9629_v26 }
0x1bdd   :  { %6545 = vmatprep.subr.bf16.mxu1 %v12051_v40 }
0x1bdf   :  { %6526 = vmatpush3.bf16.msra.mxu0 %v10233_v49 }
0x1be0   :  { %6527 = vmatprep.subr.bf16.mxu0 %v12051_v40  ;;  %6546 = vmatpush3.bf16.msra.mxu1 %v9638_v52 }
0x1be1   :  { %6547 = vmatprep.subr.bf16.mxu1 %v12051_v40 }
0x1be3   :  { %6528 = vmatpush3.bf16.msra.mxu0 %v10242_v36 }
0x1be4   :  { %6529 = vmatprep.subr.bf16.mxu0 %v12051_v40  ;;  %6548 = vmatpush3.bf16.msra.mxu1 %v9647_v9 }
0x1be5   :  { %6549 = vmatprep.subr.bf16.mxu1 %v12051_v40 }
0x1be7   :  { %6530 = vmatpush3.bf16.msra.mxu0 %v10251_v23 }
0x1be8   :  { %6531 = vmatprep.subr.bf16.mxu0 %v12051_v40  ;;  %6550 = vmatpush3.bf16.msra.mxu1 %v9656_v24 }
0x1be9   :  { %6551 = vmatprep.subr.bf16.mxu1 %v12051_v40 }
0x1beb   :  { %6532 = vmatpush3.bf16.msra.mxu0 %v10260_v32 }
0x1bec   :  { %6533 = vmatprep.subr.bf16.mxu0 %v12051_v40  ;;  %6552 = vmatpush3.bf16.msra.mxu1 %v9665_v14 }
0x1bed   :  { %6553 = vmatprep.subr.bf16.mxu1 %v12051_v40 }
0x1bef   :  { %6534 = vmatpush3.bf16.msra.mxu0 %v10269_v12 }
0x1bf0   :  { %6554 = vmatpush3.bf16.msra.mxu1 %v9673_v22  ;;  %3153 = vmatprep.subr.bf16.mxu0 %v9679_v11  ;;  %v2882_v11 = vrot.slane %v10180_v4, 4 }
0x1bf1   :  { %6559 = vmatprep.subr.bf16.mxu1 %v12051_v40 }
0x1bf2   :  { %6536 = vmatmul.mubr.bf16.vlgmr.msra.gmra.mrb[76].mxu0 %v2895_v34  ;;  %v10323_v34 = vld [vmem:[%s11858_s1 + $0x2] ss:$0 sm:$0xff] }
0x1bf3   :  { %3154 = vmatpush1.bf16.msra.mxu0 %v9686_v5  ;;  %3185 = vmatprep.mubr.bf16.mxu0 %v12060_v19  ;;  %v5563_v5 = vld [vmem:[%s11857_s0 + $0x70] sm:$0xf]  ;;  %12207 = vst [vmem:[#allocation29_spill] sm:$0xff] %v10323_v34 }
0x1bf4   :  { %3155 = vmatprep.subr.bf16.mxu0 %v9693_v3  ;;  %v2884_v3 = vmul.f32 %v5563_v5, %v2882_v11 }
0x1bf7   :  { %3156 = vmatpush1.bf16.msra.mxu0 %v9699_v25  ;;  %v5564_v25 = vld [vmem:[%s11857_s0 + $0x90] sm:$0xf] }
0x1bf8   :  { %3157 = vmatprep.subr.bf16.mxu0 %v9705_v10  ;;  %v2885_v10 = vadd.f32 %v5564_v25, %v2884_v3  ;;  %v10329_v25 = vld [vmem:[%s11858_s1 + $0x1] ss:$0 sm:$0xff] }
0x1bf9   :  { %12208 = vst [vmem:[#allocation30_spill] sm:$0xff] %v10329_v25 }
0x1bfa   :  { %v3088_v11 = vmul.f32 %v10323_v34, %v2885_v10 }
0x1bfb   :  { %3158 = vmatpush1.bf16.msra.mxu0 %v9711_v57  ;;  %v10302_v57 = vld [vmem:[%s11858_s1 + $0x6] ss:$0 sm:$0xff] }
0x1bfc   :  { %3159 = vmatprep.subr.bf16.mxu0 %v9717_v39  ;;  %12204 = vst [vmem:[#allocation24_spill] sm:$0xff] %v10302_v57  ;;  %v3022_v39 = vmul.f32 %v10302_v57, %v2885_v10 }
0x1bff   :  { %3160 = vmatpush1.bf16.msra.mxu0 %v9723_v0  ;;  %v5561_v0 = vld [vmem:[%s11857_s0 + $0x30] sm:$0xf] }
0x1c00   :  { %3161 = vmatprep.subr.bf16.mxu0 %v9729_v60  ;;  %v3023_v60 = vadd.f32 %v5561_v0, %v3022_v39  ;;  %v3077_v39 = vmul.f32 %v10329_v25, %v2885_v10  ;;  %v10335_v0 = vld [vmem:[%s11858_s1 + $0x3] ss:$0 sm:$0xff]  ;;  %v10345_v25 = vld [vmem:[%s11858_s1 + $0xa] ss:$0 sm:$0xff] }
0x1c01   :  { %12209 = vst [vmem:[#allocation31_spill] sm:$0xff] %v10335_v0 }
0x1c03   :  { %3162 = vmatpush1.bf16.msra.mxu0 %v9735_v30  ;;  %v10311_v30 = vld [vmem:[%s11858_s1 + $0x10] ss:$0 sm:$0xff] }
0x1c04   :  { %3163 = vmatprep.subr.bf16.mxu0 %v9741_v28  ;;  %12205 = vst [vmem:[#allocation25_spill] sm:$0xff] %v10311_v30  ;;  %v3024_v28 = vadd.f32 %v10311_v30, %v3023_v60  ;;  %v3113_v60 = vmul.f32 %v10335_v0, %v2885_v10 }
0x1c07   :  { %3164 = vmatpush1.bf16.msra.mxu0 %v9747_v31  ;;  %v3025_v31 = vsub.f32 0.0, %v3024_v28 }
0x1c08   :  { %3165 = vmatprep.subr.bf16.mxu0 %v9753_v61 }
0x1c09   :  { %v3026_v61 = vmul.f32 1.442695, %v3025_v31 }
0x1c0b   :  { %3166 = vmatpush1.bf16.msra.mxu0 %v9759_v62  ;;  %7226 = vpow2.f32 %v3026_v61 }
0x1c0c   :  { %3167 = vmatprep.subr.bf16.mxu0 %v9765_v59 }
0x1c0f   :  { %3168 = vmatpush1.bf16.msra.mxu0 %v9771_v54  ;;  %v10317_v54 = vld [vmem:[%s11858_s1] ss:$0 sm:$0xff] }
0x1c10   :  { %6579 = vmatprep.subr.bf16.mxu0 %v12051_v40  ;;  %12206 = vst [vmem:[#allocation27_spill] sm:$0xff] %v10317_v54  ;;  %v3018_v4 = vmul.f32 %v10317_v54, %v2885_v10 }
0x1c15   :  { %v7227_v62 = vpop.eup %7226 }
0x1c16   :  { %v3028_v59 = vadd.f32 1.0, %v7227_v62 }
0x1c18   :  { %7228 = vrcp.f32 %v3028_v59 }
0x1c22   :  { %v10340_v30 = vpop.eup %7228 }
0x1ca5   :  { %v2930_v5 = vpop.f32.mrb[72].mxu0  ;;  %v2971_v3 = vpop.f32.mrb[72].mxu1 }
0x1ca6   :  { %v3019_v28 = vadd.f32 %v3018_v4, %v2930_v5  ;;  %v3089_v31 = vadd.f32 %v3088_v11, %v2971_v3  ;;  %v2932_v61 = vpop.f32.mrb[73].mxu0  ;;  %v2973_v62 = vpop.f32.mrb[73].mxu1 }
0x1ca7   :  { %v10338_v59 = vadd.f32 %v3077_v39, %v2932_v61  ;;  %v3114_v37 = vadd.f32 %v3113_v60, %v2973_v62  ;;  %v2934_v34 = vpop.f32.mrb[74].mxu0  ;;  %v2975_v54 = vpop.f32.mrb[74].mxu1 }
0x1ca8   :  { %v3020_v57 = vadd.f32 %v10345_v25, %v3019_v28  ;;  %v2935_v12 = vpop.f32.mrb[75].mxu0  ;;  %v2976_v0 = vpop.f32.mrb[75].mxu1 }
0x1ca9   :  { %v10349_v4 = vadd.f32 %v10340_v30, %v3114_v37  ;;  %v10366_v37 = vld [vmem:[%s11858_s1 + $0x4] ss:$0 sm:$0xff] }
0x1caa   :  { %7230 = vtanh.f32 %v3020_v57 }
0x1cb4   :  { %v10351_v11 = vpop.eup %7230 }
0x1cb5   :  { %v3030_v54 = vpack.c.bf16 %v10351_v11, %v10351_v11 }
0x1cb7   :  { %6556 = vmatmul.mubr.bf16.vlgmr.msra.gmra.mrb[76].mxu1 %v3030_v54 }
0x1cb8   :  { %6560 = vmatpush3.bf16.msra.mxu1 %v9609_v13  ;;  %6575 = vmatprep.mubr.msk.bf16.mxu1 %vm7706_vm0, %v12051_v40  ;;  %v3103_v13 = vmul.f32 %v10366_v37, %v2885_v10 }
0x1cb9   :  { %6561 = vmatprep.subr.bf16.mxu1 %v12051_v40 }
0x1cbc   :  { %6562 = vmatpush3.bf16.msra.mxu1 %v9620_v21 }
0x1cbd   :  { %6563 = vmatprep.subr.bf16.mxu1 %v12051_v40 }
0x1cc0   :  { %6564 = vmatpush3.bf16.msra.mxu1 %v9629_v26  ;;  %v10382_v26 = vld [vmem:[%s11858_s1 + $0x8] ss:$0 sm:$0xff] }
0x1cc1   :  { %6565 = vmatprep.subr.bf16.mxu1 %v12051_v40 }
0x1cc4   :  { %6566 = vmatpush3.bf16.msra.mxu1 %v9638_v52  ;;  %v3090_v52 = vmul.f32 %v10382_v26, %v9924_v50 }
0x1cc5   :  { %v3012_v12 = vpop.f32.mrb[76].mxu0  ;;  %6567 = vmatprep.subr.bf16.mxu1 %v12051_v40 }
0x1cc6   :  { %v3104_v57 = vadd.f32 %v3103_v13, %v3012_v12  ;;  %v6537_v21 = vpop.f32.mrb[77].mxu0 }
0x1cc7   :  { %v3015_v34 = vpop.f32.mrb[78].mxu0 }
0x1cc8   :  { %v6538_v5 = vpop.f32.mrb[79].mxu0  ;;  %6568 = vmatpush3.bf16.msra.mxu1 %v9647_v9  ;;  %v3091_v9 = vadd.f32 %v3090_v52, %v3089_v31 }
0x1cc9   :  { %6569 = vmatprep.subr.bf16.mxu1 %v12051_v40  ;;  %v10397_v5 = vld [vmem:[%s11858_s1 + $0x7] ss:$0 sm:$0xff] }
0x1ccc   :  { %6570 = vmatpush3.bf16.msra.mxu1 %v9656_v24  ;;  %v10389_v24 = vld [vmem:[%s11858_s1 + $0xc] ss:$0 sm:$0xff] }
0x1ccd   :  { %6571 = vmatprep.subr.bf16.mxu1 %v12051_v40 }
0x1cd0   :  { %6572 = vmatpush3.bf16.msra.mxu1 %v9665_v14  ;;  %v3092_v14 = vadd.f32 %v10389_v24, %v3091_v9 }
0x1cd1   :  { %6573 = vmatprep.subr.bf16.mxu1 %v12051_v40 }
0x1cd4   :  { %6574 = vmatpush3.bf16.msra.mxu1 %v9673_v22  ;;  %v3093_v22 = vadd.f32 %v10351_v11, %v3092_v14 }
0x1cd5   :  { %6599 = vmatprep.subr.bf16.mxu1 %v12051_v40 }
0x1cd6   :  { %v3094_v10 = vsub.f32 0.0, %v3093_v22  ;;  %v10405_v22 = vld [vmem:[%s11858_s1 + $0xb] ss:$0 sm:$0xff] }
0x1cd8   :  { %v3095_v3 = vmul.f32 1.442695, %v3094_v10 }
0x1cda   :  { %7232 = vpow2.f32 %v3095_v3 }
0x1ce4   :  { %v7233_v54 = vpop.eup %7232 }
0x1ce5   :  { %v3097_v13 = vadd.f32 1.0, %v7233_v54 }
0x1d8a   :  { %v3065_v39 = vpop.f32.mrb[76].mxu1 }
0x1d8b   :  { %v3071_v0 = vadd.f32 %v9914_v8, %v3065_v39  ;;  %v6557_v60 = vpop.f32.mrb[77].mxu1  ;;  %v3079_v8 = vmul.f32 %v10397_v5, %v9924_v50 }
0x1d8c   :  { %v3068_v28 = vpop.f32.mrb[78].mxu1 }
0x1d8d   :  { %v3072_v61 = vsub.f32 0.0, %v3071_v0  ;;  %v6558_v62 = vpop.f32.mrb[79].mxu1  ;;  %v3080_v14 = vadd.f32 %v3079_v8, %v10338_v59  ;;  %v10413_v59 = vld [vmem:[%s11858_s1 + $0xe] ss:$0 sm:$0xff] }
0x1d8f   :  { %v3073_v31 = vmul.f32 1.442695, %v3072_v61 }
0x1d91   :  { %7234 = vpow2.f32 %v3073_v31 }
0x1d92   :  { %7236 = vrcp.f32 %v3097_v13  ;;  %v3105_v13 = vadd.f32 %v10413_v59, %v3104_v57 }
0x1d9b   :  { %v7235_v12 = vpop.eup %7234 }
0x1d9c   :  { %v3075_v21 = vadd.f32 1.0, %v7235_v12  ;;  %v7237_v34 = vpop.eup %7236 }
0x1d9d   :  { %v3100_v52 = vsub.f32 1.0, %v7237_v34  ;;  %v3099_v3 = vmul.f32 %v7237_v34, %v9920_v42 }
0x1d9e   :  { %7238 = vrcp.f32 %v3075_v21 }
0x1da8   :  { %v7239_v9 = vpop.eup %7238 }
0x1da9   :  { %v3081_v10 = vmul.f32 %v10405_v22, %v7239_v9  ;;  %v3101_v39 = vmul.f32 %v7239_v9, %v3100_v52 }
0x1dab   :  { %v3082_v0 = vadd.f32 %v3081_v10, %v3080_v14  ;;  %v3102_v60 = vadd.f32 %v3101_v39, %v3099_v3  ;;  %v3116_v14 = vadd.f32 %v10349_v4, %v10195_v48  ;;  %v10424_v10 = vld [vmem:[%s11858_s1 + $0x9] ss:$0 sm:$0xff] }
0x1dad   :  { %v3083_v28 = vsub.f32 0.0, %v3082_v0  ;;  %v3107_v61 = vadd.f32 %v10340_v30, %v3102_v60 }
0x1daf   :  { %v3084_v62 = vmul.f32 1.442695, %v3083_v28  ;;  %v3108_v8 = vmul.f32 %v3107_v61, %v9924_v50 }
0x1db1   :  { %7240 = vpow2.f32 %v3084_v62 }
0x1dbb   :  { %v7241_v31 = vpop.eup %7240 }
0x1dbc   :  { %v3086_v54 = vadd.f32 1.0, %v7241_v31 }
0x1dbe   :  { %7242 = vrcp.f32 %v3086_v54 }
0x1dbf   :  { %7244 = vtanh.f32 %v3105_v13 }
0x1dc8   :  { %v7243_v42 = vpop.eup %7242 }
0x1dc9   :  { %v3109_v12 = vmul.f32 %v7243_v42, %v10351_v11  ;;  %v7245_v34 = vpop.eup %7244 }
0x1dcb   :  { %v3110_v21 = vmul.f32 %v10340_v30, %v3109_v12  ;;  %v10430_v30 = vld [vmem:[%s11858_s1 + $0xd] ss:$0 sm:$0xff] }
0x1dcd   :  { %v3111_v52 = vmul.f32 %v7245_v34, %v3110_v21 }
0x1dcf   :  { %v3112_v9 = vadd.f32 %v3111_v52, %v3108_v8 }
0x1dd1   :  { %v3117_v57 = vmul.f32 %v10424_v10, %v3112_v9  ;;  %v3125_v4 = vadd.f32 %v3112_v9, %v10195_v48  ;;  %v3149_v31 = vrot.slane %v3112_v9, 4  ;;  %v10459_v48 = vld [vmem:[%s11857_s0 + $0x54] sm:$0xf] }
0x1dd3   :  { %v3118_v3 = vadd.f32 %v3117_v57, %v3116_v14 }
0x1dd5   :  { %v3119_v50 = vadd.f32 %v10430_v30, %v3118_v3 }
0x1dd7   :  { %v3120_v11 = vsub.f32 0.0, %v3119_v50 }
0x1dd9   :  { %v3121_v39 = vmul.f32 1.442695, %v3120_v11 }
0x1ddb   :  { %7246 = vpow2.f32 %v3121_v39 }
0x1ddc   :  { %7248 = vtanh.f32 %v3125_v4 }
0x1de5   :  { %v7247_v0 = vpop.eup %7246 }
0x1de6   :  { %v3123_v60 = vadd.f32 1.0, %v7247_v0  ;;  %v7249_v28 = vpop.eup %7248 }
0x1de8   :  { %7250 = vrcp.f32 %v3123_v60 }
0x1df2   :  { %v7251_v61 = vpop.eup %7250 }
0x1df3   :  { %v10434_v62 = vmul.f32 %v7251_v61, %v7249_v28 }
0x1df5   :  { %12210 = vst [vmem:[#allocation32_spill] sm:$0xff] %v10434_v62  ;;  %v3151_v54 = vsel %vm431_vm1, %v10434_v62, %v3149_v31 }
0x1df6   :  { %v3152_v13 = vpack.c.bf16 %v3151_v54, %v3151_v54 }
0x1df8   :  { %3186 = vmatmul.mubr.bf16.vlgmr.msra.gmra.mrb[80].mxu0 %v3152_v13 }
0x1df9   :  { %6580 = vmatpush3.bf16.msra.mxu0 %v9851_v2  ;;  %6595 = vmatprep.mubr.msk.bf16.mxu0 %vm7706_vm0, %v12051_v40 }
0x1dfa   :  { %6581 = vmatprep.subr.bf16.mxu0 %v12051_v40 }
0x1dfd   :  { %6582 = vmatpush3.bf16.msra.mxu0 %v9860_v43 }
0x1dfe   :  { %6583 = vmatprep.subr.bf16.mxu0 %v12051_v40 }
0x1e01   :  { %6584 = vmatpush3.bf16.msra.mxu0 %v9867_v47 }
0x1e02   :  { %6585 = vmatprep.subr.bf16.mxu0 %v12051_v40 }
0x1e05   :  { %6586 = vmatpush3.bf16.msra.mxu0 %v9874_v6 }
0x1e06   :  { %6587 = vmatprep.subr.bf16.mxu0 %v12051_v40 }
0x1e09   :  { %6588 = vmatpush3.bf16.msra.mxu0 %v9881_v27 }
0x1e0a   :  { %6589 = vmatprep.subr.bf16.mxu0 %v12051_v40 }
0x1e0d   :  { %6590 = vmatpush3.bf16.msra.mxu0 %v9888_v17 }
0x1e0e   :  { %6591 = vmatprep.subr.bf16.mxu0 %v12051_v40 }
0x1e11   :  { %6592 = vmatpush3.bf16.msra.mxu0 %v9895_v15 }
0x1e12   :  { %6593 = vmatprep.subr.bf16.mxu0 %v12051_v40 }
0x1e15   :  { %6594 = vmatpush3.bf16.msra.mxu0 %v9902_v55 }
0x1e16   :  { %3376 = vmatprep.subr.bf16.mxu0 %v9908_v63  ;;  %v10465_v63 = vld [vmem:[%s11857_s0 + $0x14] sm:$0xf] }
0x1ecb   :  { %v3187_v42 = vpop.f32.mrb[80].mxu0 }
0x1ecc   :  { %v3194_v12 = vadd.f32 %v10459_v48, %v3187_v42  ;;  %v3189_v21 = vpop.f32.mrb[81].mxu0 }
0x1ecd   :  { %v3191_v34 = vpop.f32.mrb[82].mxu0 }
0x1ece   :  { %v3195_v8 = vsub.f32 0.0, %v3194_v12  ;;  %v3192_v52 = vpop.f32.mrb[83].mxu0 }
0x1ed0   :  { %v3196_v14 = vmul.f32 1.442695, %v3195_v8 }
0x1ed2   :  { %7252 = vpow2.f32 %v3196_v14 }
0x1edc   :  { %v7253_v57 = vpop.eup %7252 }
0x1edd   :  { %v3198_v3 = vadd.f32 1.0, %v7253_v57 }
0x1edf   :  { %7254 = vrcp.f32 %v3198_v3 }
0x1ee0   :  { %7256 = vtanh.f32 %v3189_v21 }
0x1ee9   :  { %v7255_v50 = vpop.eup %7254 }
0x1eea   :  { %v3201_v11 = vmul.f32 %v7255_v50, %v10465_v63  ;;  %v7257_v39 = vpop.eup %7256 }
0x1eeb   :  { %v3207_v60 = vrot.slane %v7257_v39, 4 }
0x1eec   :  { %v3203_v4 = vrot.slane %v3201_v11, 4 }
0x1eed   :  { %v3209_v61 = vsub.f32 %v3112_v9, %v3207_v60 }
0x1eee   :  { %v3205_v0 = vmul.f32 %v7257_v39, %v3203_v4 }
0x1ef0   :  { %v3210_v28 = vmul.f32 2.0, %v3205_v0 }
0x1ef2   :  { %v3212_v31 = vrot.slane %v3210_v28, 4 }
0x1ef4   :  { %v10468_v54 = vadd.f32 %v3212_v31, %v3209_v61 }
0x1ef6   :  { %v3215_v13 = vpack.c.bf16 %v10468_v54, %v10468_v54 }
0x1ef8   :  { %6576 = vmatmul.mubr.bf16.vlgmr.msra.gmra.mrb[80].mxu1 %v3215_v13  ;;  %v12221_v13 = vld [vmem:[#allocation23_spill] sm:$0xff] }
0x1ef9   :  { %6600 = vmatpush3.bf16.msra.mxu1 %v9851_v2  ;;  %6615 = vmatprep.mubr.msk.bf16.mxu1 %vm7706_vm0, %v12051_v40 }
0x1efa   :  { %6601 = vmatprep.subr.bf16.mxu1 %v12051_v40 }
0x1efd   :  { %6602 = vmatpush3.bf16.msra.mxu1 %v9860_v43 }
0x1efe   :  { %6603 = vmatprep.subr.bf16.mxu1 %v12051_v40 }
0x1f01   :  { %6604 = vmatpush3.bf16.msra.mxu1 %v9867_v47 }
0x1f02   :  { %6605 = vmatprep.subr.bf16.mxu1 %v12051_v40 }
0x1f05   :  { %6606 = vmatpush3.bf16.msra.mxu1 %v9874_v6 }
0x1f06   :  { %6607 = vmatprep.subr.bf16.mxu1 %v12051_v40 }
0x1f09   :  { %6608 = vmatpush3.bf16.msra.mxu1 %v9881_v27 }
0x1f0a   :  { %6609 = vmatprep.subr.bf16.mxu1 %v12051_v40 }
0x1f0d   :  { %6610 = vmatpush3.bf16.msra.mxu1 %v9888_v17 }
0x1f0e   :  { %6611 = vmatprep.subr.bf16.mxu1 %v12051_v40 }
0x1f11   :  { %6612 = vmatpush3.bf16.msra.mxu1 %v9895_v15  ;;  %v3262_v15 = vmul.f32 %v9955_v46, %v7255_v50  ;;  %v12211_v46 = vld [vmem:[#allocation42_spill] sm:$0xff] }
0x1f12   :  { %6613 = vmatprep.subr.bf16.mxu1 %v12051_v40 }
0x1f15   :  { %6614 = vmatpush3.bf16.msra.mxu1 %v9902_v55  ;;  %v3265_v55 = vmul.f32 %v9967_v44, %v7255_v50  ;;  %v12213_v44 = vld [vmem:[#allocation44_spill] sm:$0xff]  ;;  %v12220_v50 = vld [vmem:[#allocation22_spill] sm:$0xff] }
0x1f16   :  { %3417 = vmatprep.subr.bf16.mxu1 %v9948_v20 }
0x1fcb   :  { %v3250_v2 = vpop.f32.mrb[80].mxu1 }
0x1fcc   :  { %v3256_v43 = vadd.f32 %v10459_v48, %v3250_v2  ;;  %v6577_v47 = vpop.f32.mrb[81].mxu1  ;;  %v12222_v2 = vld [vmem:[#allocation26_spill] sm:$0xff] }
0x1fcd   :  { %v3253_v6 = vpop.f32.mrb[82].mxu1  ;;  %v12224_v47 = vld [vmem:[#allocation6_spill] sm:$0xff] }
0x1fce   :  { %v3257_v27 = vsub.f32 0.0, %v3256_v43  ;;  %v6578_v9 = vpop.f32.mrb[83].mxu1  ;;  %v12223_v43 = vld [vmem:[#allocation28_spill] sm:$0xff]  ;;  %v12225_v6 = vld [vmem:[#allocation5_spill] sm:$0xff] }
0x1fcf   :  { %v12227_v9 = vld [vmem:[#allocation8_spill] sm:$0xff] }
0x1fd0   :  { %v3258_v42 = vmul.f32 1.442695, %v3257_v27  ;;  %v12226_v27 = vld [vmem:[#allocation7_spill] sm:$0xff] }
0x1fd2   :  { %7258 = vpow2.f32 %v3258_v42  ;;  %v12228_v42 = vld [vmem:[#allocation9_spill] sm:$0xff] }
0x1fdc   :  { %v7259_v17 = vpop.eup %7258 }
0x1fdd   :  { %v3260_v12 = vadd.f32 1.0, %v7259_v17  ;;  %v12229_v17 = vld [vmem:[#allocation10_spill] sm:$0xff] }
0x1fdf   :  { %7260 = vrcp.f32 %v3260_v12  ;;  %v12230_v12 = vld [vmem:[#allocation11_spill] sm:$0xff] }
0x1fe9   :  { %v7261_v21 = vpop.eup %7260 }
0x1fea   :  { %v3263_v34 = vmul.f32 %v9961_v41, %v7261_v21  ;;  %v3266_v20 = vmul.f32 %v9973_v16, %v7261_v21  ;;  %v12212_v41 = vld [vmem:[#allocation43_spill] sm:$0xff]  ;;  %v12214_v16 = vld [vmem:[#allocation45_spill] sm:$0xff]  ;;  %v12231_v21 = vld [vmem:[#allocation12_spill] sm:$0xff] }
0x1fec   :  { %v3264_v8 = vadd.f32 %v3263_v34, %v3262_v15  ;;  %v3267_v52 = vadd.f32 %v3266_v20, %v3265_v55  ;;  %v12232_v15 = vld [vmem:[#allocation13_spill] sm:$0xff]  ;;  %v12233_v34 = vld [vmem:[#allocation16_spill] sm:$0xff] }
0x1fed   :  { %v12234_v55 = vld [vmem:[#allocation17_spill] sm:$0xff]  ;;  %v12235_v20 = vld [vmem:[#allocation20_spill] sm:$0xff] }
0x1fee   :  { %v3269_v14 = vrot.slane %v3267_v52, 4  ;;  %v5574_v52 = vld [vmem:[%s11857_s0 + $0xd4] sm:$0xf] }
0x1ff0   :  { %v3271_v57 = vsel %vm431_vm1, %v3264_v8, %v3269_v14  ;;  %v5573_v8 = vld [vmem:[%s11857_s0 + $0xb4] sm:$0xf] }
0x1ff1   :  { %v3272_v3 = vpack.c.bf16 %v3271_v57, %v3271_v57 }
0x1ff3   :  { %6596 = vmatmul.mubr.bf16.vlgmr.msra.gmra.mrb[84].mxu0 %v3272_v3 }
0x1ff4   :  { %3377 = vmatpush1.bf16.msra.mxu0 %v9980_v53  ;;  %3408 = vmatprep.mubr.bf16.mxu0 %v12060_v19  ;;  %v12215_v53 = vld [vmem:[#allocation40_spill] sm:$0xff] }
0x1ff5   :  { %3378 = vmatprep.subr.bf16.mxu0 %v9987_v45  ;;  %v12216_v45 = vld [vmem:[#allocation41_spill] sm:$0xff] }
0x1ff8   :  { %3379 = vmatpush1.bf16.msra.mxu0 %v9993_v1  ;;  %v12217_v1 = vld [vmem:[#allocation15_spill] sm:$0xff] }
0x1ff9   :  { %3380 = vmatprep.subr.bf16.mxu0 %v9999_v33  ;;  %v12218_v33 = vld [vmem:[#allocation18_spill] sm:$0xff] }
0x1ffc   :  { %3381 = vmatpush1.bf16.msra.mxu0 %v10005_v56 }
0x1ffd   :  { %3382 = vmatprep.subr.bf16.mxu0 %v10011_v51  ;;  %v12219_v51 = vld [vmem:[#allocation19_spill] sm:$0xff] }
0x2000   :  { %3383 = vmatpush1.bf16.msra.mxu0 %v10017_v7 }
0x2001   :  { %3384 = vmatprep.subr.bf16.mxu0 %v12211_v46 }
0x2004   :  { %3385 = vmatpush1.bf16.msra.mxu0 %v12212_v41 }
0x2005   :  { %3386 = vmatprep.subr.bf16.mxu0 %v12213_v44 }
0x2008   :  { %3387 = vmatpush1.bf16.msra.mxu0 %v12214_v16 }
0x2009   :  { %3388 = vmatprep.subr.bf16.mxu0 %v12215_v53 }
0x200c   :  { %3389 = vmatpush1.bf16.msra.mxu0 %v12216_v45 }
0x200d   :  { %3390 = vmatprep.subr.bf16.mxu0 %v12217_v1 }
0x2010   :  { %3391 = vmatpush1.bf16.msra.mxu0 %v12218_v33 }
0x2011   :  { %6619 = vmatprep.subr.bf16.mxu0 %v12051_v40 }
0x20c6   :  { %v3307_v56 = vpop.f32.mrb[84].mxu0 }
0x20c7   :  { %v3313_v7 = vadd.f32 %v12219_v51, %v3307_v56  ;;  %v3315_v11 = vadd.f32 %v12220_v50, %v3307_v56  ;;  %v6597_v39 = vpop.f32.mrb[85].mxu0 }
0x20c8   :  { %v3310_v4 = vpop.f32.mrb[86].mxu0  ;;  %v10632_v39 = vld [vmem:[%s11859_s2] ss:$8 sps:$4 sm:$0xff]  }
0x20c9   :  { %7262 = vtanh.f32 %v3313_v7  ;;  %v6598_v0 = vpop.f32.mrb[87].mxu0  ;;  %v10639_v4 = vld [vmem:[%s11859_s2 + $0x14] ss:$8 sps:$4 sm:$0xff]  }
0x20ca   :  { %7264 = vtanh.f32 %v3315_v11  ;;  %v10619_v11 = vld [vmem:[%s11859_s2 + $0x70] ss:$8 sps:$4 sm:$0xff]  }
0x20cb   :  { %v10645_v0 = vld [vmem:[%s11859_s2 + $0x10] ss:$8 sps:$4 sm:$0xff]  }
0x20d3   :  { %v7263_v60 = vpop.eup %7262 }
0x20d4   :  { %v7265_v28 = vpop.eup %7264 }
0x20d5   :  { %v3317_v61 = vsel %vm431_vm1, %v7263_v60, %v7265_v28  ;;  %v10651_v60 = vld [vmem:[%s11859_s2 + $0x24] ss:$8 sps:$4 sm:$0xff]   ;;  %v10657_v28 = vld [vmem:[%s11859_s2 + $0x20] ss:$8 sps:$4 sm:$0xff]  }
0x20d6   :  { %v3318_v31 = vpack.c.bf16 %v3317_v61, %v3317_v61  ;;  %v10663_v61 = vld [vmem:[%s11859_s2 + $0x34] ss:$8 sps:$4 sm:$0xff]  }
0x20d8   :  { %6616 = vmatmul.mubr.bf16.vlgmr.msra.gmra.mrb[84].mxu1 %v3318_v31  ;;  %v10669_v31 = vld [vmem:[%s11859_s2 + $0x30] ss:$8 sps:$4 sm:$0xff]  }
0x20d9   :  { %3418 = vmatpush1.bf16.msra.mxu1 %v12221_v13  ;;  %3449 = vmatprep.mubr.bf16.mxu1 %v12060_v19  ;;  %v10675_v13 = vld [vmem:[%s11859_s2 + $0x44] ss:$8 sps:$4 sm:$0xff]  }
0x20da   :  { %3419 = vmatprep.subr.bf16.mxu1 %v12222_v2  ;;  %v10681_v2 = vld [vmem:[%s11859_s2 + $0x40] ss:$8 sps:$4 sm:$0xff]  }
0x20dd   :  { %3420 = vmatpush1.bf16.msra.mxu1 %v12223_v43  ;;  %v10687_v43 = vld [vmem:[%s11859_s2 + $0x54] ss:$8 sps:$4 sm:$0xff]  }
0x20de   :  { %3421 = vmatprep.subr.bf16.mxu1 %v12224_v47  ;;  %v10693_v47 = vld [vmem:[%s11859_s2 + $0x50] ss:$8 sps:$4 sm:$0xff]  }
0x20e1   :  { %3422 = vmatpush1.bf16.msra.mxu1 %v12225_v6  ;;  %v10699_v6 = vld [vmem:[%s11859_s2 + $0x64] ss:$8 sps:$4 sm:$0xff]  }
0x20e2   :  { %3423 = vmatprep.subr.bf16.mxu1 %v12226_v27  ;;  %v10705_v27 = vld [vmem:[%s11859_s2 + $0x60] ss:$8 sps:$4 sm:$0xff]  }
0x20e5   :  { %3424 = vmatpush1.bf16.msra.mxu1 %v12227_v9  ;;  %v10711_v9 = vld [vmem:[%s11859_s2 + $0x74] ss:$8 sps:$4 sm:$0xff]  }
0x20e6   :  { %3425 = vmatprep.subr.bf16.mxu1 %v12228_v42  ;;  %v10717_v42 = vld [vmem:[%s11859_s2 + $0x70] ss:$8 sps:$4 sm:$0xff]  }
0x20e9   :  { %3426 = vmatpush1.bf16.msra.mxu1 %v12229_v17 }
0x20ea   :  { %3427 = vmatprep.subr.bf16.mxu1 %v12230_v12  ;;  %v5571_v12 = vld [vmem:[%s11857_s0 + $0x74] sm:$0xf] }
0x20ed   :  { %3428 = vmatpush1.bf16.msra.mxu1 %v12231_v21 }
0x20ee   :  { %3429 = vmatprep.subr.bf16.mxu1 %v12232_v15  ;;  %v5572_v15 = vld [vmem:[%s11857_s0 + $0x94] sm:$0xf] }
0x20f1   :  { %3430 = vmatpush1.bf16.msra.mxu1 %v12233_v34 }
0x20f2   :  { %3431 = vmatprep.subr.bf16.mxu1 %v12234_v55  ;;  %v12237_v55 = vld [vmem:[#allocation24_spill] sm:$0xff] }
0x20f5   :  { %3432 = vmatpush1.bf16.msra.mxu1 %v12235_v20 }
0x20f6   :  { %6639 = vmatprep.subr.bf16.mxu1 %v12051_v40 }
0x21ab   :  { %v10539_v14 = vpop.f32.mrb[84].mxu1 }
0x21ac   :  { %v3359_v57 = vmul.f32 %v5573_v8, %v10539_v14  ;;  %v6617_v3 = vpop.f32.mrb[85].mxu1  ;;  %v3362_v17 = vrot.slane %v10539_v14, 4  ;;  %v5569_v8 = vld [vmem:[%s11857_s0 + $0x34] sm:$0xf] }
0x21ad   :  { %v3356_v46 = vpop.f32.mrb[86].mxu1 }
0x21ae   :  { %v3360_v41 = vadd.f32 %v5574_v52, %v3359_v57  ;;  %v6618_v44 = vpop.f32.mrb[87].mxu1  ;;  %v3364_v21 = vmul.f32 %v5571_v12, %v3362_v17  ;;  %v12238_v57 = vld [vmem:[#allocation25_spill] sm:$0xff] }
0x21b0   :  { %v3366_v16 = vmul.f32 %v10186_v38, %v3360_v41  ;;  %v10566_v38 = vld [vmem:[%s11859_s2 + $0x10] ss:$8 sps:$4 sm:$0xff]   ;;  %v3365_v34 = vadd.f32 %v5572_v15, %v3364_v21 }
0x21b2   :  { %v3367_v53 = vadd.f32 %v10192_v29, %v3366_v16  ;;  %v10555_v29 = vld [vmem:[%s11859_s2] ss:$8 sps:$4 sm:$0xff]   ;;  %v3502_v20 = vmul.f32 %v12237_v55, %v3365_v34  ;;  %v12239_v16 = vld [vmem:[#allocation27_spill] sm:$0xff] }
0x21b4   :  { %v3369_v45 = vmin.f32 %v3367_v53, 0.0  ;;  %vm3368_vm7 = vcmp.gt.f32.partialorder %v3367_v53, 0.0  ;;  %v3503_v52 = vadd.f32 %v5569_v8, %v3502_v20 }
0x21b6   :  { %v3370_v1 = vmul.f32 1.442695, %v3369_v45  ;;  %v3504_v3 = vadd.f32 %v12238_v57, %v3503_v52  ;;  %v12240_v45 = vld [vmem:[#allocation29_spill] sm:$0xff] }
0x21b8   :  { %7266 = vpow2.f32 %v3370_v1  ;;  %v3505_v14 = vsub.f32 0.0, %v3504_v3  ;;  %v3568_v1 = vmul.f32 %v12240_v45, %v3365_v34 }
0x21ba   :  { %v3506_v46 = vmul.f32 1.442695, %v3505_v14 }
0x21bc   :  { %7268 = vpow2.f32 %v3506_v46 }
0x21c2   :  { %v7267_v33 = vpop.eup %7266 }
0x21c3   :  { %v5575_v56 = vadd.f32 -1.0, %v7267_v33 }
0x21c5   :  { %v10544_v51 = vsel %vm3368_vm7, %v3367_v53, %v5575_v56  ;;  %v3498_v53 = vmul.f32 %v12239_v16, %v3365_v34 }
0x21c6   :  { %v3374_v7 = vadd.f32 %v10544_v51, %v10434_v62  ;;  %v7269_v41 = vpop.eup %7268 }
0x21c7   :  { %v3508_v44 = vadd.f32 1.0, %v7269_v41 }
0x21c8   :  { %v3375_v50 = vpack.c.bf16 %v3374_v7, %v3374_v7  ;;  %v12241_v7 = vld [vmem:[#allocation30_spill] sm:$0xff] }
0x21c9   :  { %7270 = vrcp.f32 %v3508_v44 }
0x21ca   :  { %3409 = vmatmul.mubr.bf16.vlgmr.msra.gmra.mrb[88].mxu0 %v3375_v50  ;;  %3450 = vmatmul.mubr.bf16.vlgmr.msra.gmra.mrb[88].mxu1 %v3375_v50 }
0x21cb   :  { %6620 = vmatpush3.bf16.msra.mxu0 %v10202_v58  ;;  %6635 = vmatprep.mubr.msk.bf16.mxu0 %vm7706_vm0, %v12051_v40  ;;  %v10575_v58 = vld [vmem:[%s11859_s2 + $0x20] ss:$8 sps:$4 sm:$0xff]  }
0x21cc   :  { %6621 = vmatprep.subr.bf16.mxu0 %v12051_v40  ;;  %6640 = vmatpush3.bf16.msra.mxu1 %v10555_v29 }
0x21cd   :  { %6641 = vmatprep.subr.bf16.mxu1 %v12051_v40  ;;  %6655 = vmatprep.mubr.msk.bf16.mxu1 %vm7706_vm0, %v12051_v40 }
0x21cf   :  { %6622 = vmatpush3.bf16.msra.mxu0 %v10215_v35  ;;  %v10584_v35 = vld [vmem:[%s11859_s2 + $0x30] ss:$8 sps:$4 sm:$0xff]  }
0x21d0   :  { %6623 = vmatprep.subr.bf16.mxu0 %v12051_v40  ;;  %6642 = vmatpush3.bf16.msra.mxu1 %v10566_v38 }
0x21d1   :  { %6643 = vmatprep.subr.bf16.mxu1 %v12051_v40 }
0x21d3   :  { %6624 = vmatpush3.bf16.msra.mxu0 %v10224_v18  ;;  %v10593_v18 = vld [vmem:[%s11859_s2 + $0x40] ss:$8 sps:$4 sm:$0xff]   ;;  %v10737_v3 = vpop.eup %7270 }
0x21d4   :  { %6625 = vmatprep.subr.bf16.mxu0 %v12051_v40  ;;  %6644 = vmatpush3.bf16.msra.mxu1 %v10575_v58 }
0x21d5   :  { %6645 = vmatprep.subr.bf16.mxu1 %v12051_v40 }
0x21d7   :  { %6626 = vmatpush3.bf16.msra.mxu0 %v10233_v49  ;;  %v10602_v49 = vld [vmem:[%s11859_s2 + $0x50] ss:$8 sps:$4 sm:$0xff]  }
0x21d8   :  { %6627 = vmatprep.subr.bf16.mxu0 %v12051_v40  ;;  %6646 = vmatpush3.bf16.msra.mxu1 %v10584_v35 }
0x21d9   :  { %6647 = vmatprep.subr.bf16.mxu1 %v12051_v40 }
0x21db   :  { %6628 = vmatpush3.bf16.msra.mxu0 %v10242_v36  ;;  %v10611_v36 = vld [vmem:[%s11859_s2 + $0x60] ss:$8 sps:$4 sm:$0xff]  }
0x21dc   :  { %6629 = vmatprep.subr.bf16.mxu0 %v12051_v40  ;;  %6648 = vmatpush3.bf16.msra.mxu1 %v10593_v18 }
0x21dd   :  { %6649 = vmatprep.subr.bf16.mxu1 %v12051_v40 }
0x21df   :  { %6630 = vmatpush3.bf16.msra.mxu0 %v10251_v23  ;;  %v12236_v23 = vld [vmem:[#allocation21_spill] sm:$0xff] }
0x21e0   :  { %6631 = vmatprep.subr.bf16.mxu0 %v12051_v40  ;;  %6650 = vmatpush3.bf16.msra.mxu1 %v10602_v49 }
0x21e1   :  { %6651 = vmatprep.subr.bf16.mxu1 %v12051_v40 }
0x21e3   :  { %6632 = vmatpush3.bf16.msra.mxu0 %v10260_v32  ;;  %v10625_v32 = vld [vmem:[%s11859_s2 + $0x4] ss:$8 sps:$4 sm:$0xff]  }
0x21e4   :  { %6633 = vmatprep.subr.bf16.mxu0 %v12051_v40  ;;  %6652 = vmatpush3.bf16.msra.mxu1 %v10611_v36 }
0x21e5   :  { %6653 = vmatprep.subr.bf16.mxu1 %v12051_v40 }
0x21e7   :  { %6634 = vmatpush3.bf16.msra.mxu0 %v12236_v23  ;;  %v12242_v23 = vld [vmem:[#allocation31_spill] sm:$0xff] }
0x21e8   :  { %6654 = vmatpush3.bf16.msra.mxu1 %v10619_v11  ;;  %3633 = vmatprep.subr.bf16.mxu0 %v10625_v32  ;;  %v3593_v17 = vmul.f32 %v12242_v23, %v3365_v34 }
0x21e9   :  { %6659 = vmatprep.subr.bf16.mxu1 %v12051_v40 }
0x21ea   :  { %6636 = vmatmul.mubr.bf16.vlgmr.msra.gmra.mrb[92].mxu0 %v3375_v50  ;;  %v3557_v50 = vmul.f32 %v12241_v7, %v3365_v34 }
0x21eb   :  { %3634 = vmatpush1.bf16.msra.mxu0 %v10632_v39  ;;  %3665 = vmatprep.mubr.bf16.mxu0 %v12060_v19 }
0x21ec   :  { %3635 = vmatprep.subr.bf16.mxu0 %v10639_v4 }
0x21ef   :  { %3636 = vmatpush1.bf16.msra.mxu0 %v10645_v0 }
0x21f0   :  { %3637 = vmatprep.subr.bf16.mxu0 %v10651_v60 }
0x21f3   :  { %3638 = vmatpush1.bf16.msra.mxu0 %v10657_v28 }
0x21f4   :  { %3639 = vmatprep.subr.bf16.mxu0 %v10663_v61 }
0x21f7   :  { %3640 = vmatpush1.bf16.msra.mxu0 %v10669_v31 }
0x21f8   :  { %3641 = vmatprep.subr.bf16.mxu0 %v10675_v13 }
0x21fb   :  { %3642 = vmatpush1.bf16.msra.mxu0 %v10681_v2 }
0x21fc   :  { %3643 = vmatprep.subr.bf16.mxu0 %v10687_v43 }
0x21ff   :  { %3644 = vmatpush1.bf16.msra.mxu0 %v10693_v47 }
0x2200   :  { %3645 = vmatprep.subr.bf16.mxu0 %v10699_v6 }
0x2203   :  { %3646 = vmatpush1.bf16.msra.mxu0 %v10705_v27 }
0x2204   :  { %3647 = vmatprep.subr.bf16.mxu0 %v10711_v9 }
0x2207   :  { %3648 = vmatpush1.bf16.msra.mxu0 %v10717_v42 }
0x2208   :  { %6679 = vmatprep.subr.bf16.mxu0 %v12051_v40 }
0x229d   :  { %v3410_v33 = vpop.f32.mrb[88].mxu0  ;;  %v3451_v56 = vpop.f32.mrb[88].mxu1 }
0x229e   :  { %v3499_v12 = vadd.f32 %v3498_v53, %v3410_v33  ;;  %v3569_v21 = vadd.f32 %v3568_v1, %v3451_v56  ;;  %v3412_v15 = vpop.f32.mrb[89].mxu0  ;;  %v3453_v55 = vpop.f32.mrb[89].mxu1 }
0x229f   :  { %v3558_v20 = vadd.f32 %v3557_v50, %v3412_v15  ;;  %v3594_v8 = vadd.f32 %v3593_v17, %v3453_v55  ;;  %v3414_v52 = vpop.f32.mrb[90].mxu0  ;;  %v3455_v57 = vpop.f32.mrb[90].mxu1 }
0x22a0   :  { %v3500_v14 = vadd.f32 %v10345_v25, %v3499_v12  ;;  %v3415_v46 = vpop.f32.mrb[91].mxu0  ;;  %v3456_v41 = vpop.f32.mrb[91].mxu1  ;;  %v3583_v25 = vmul.f32 %v10366_v37, %v3365_v34  ;;  %v3570_v37 = vmul.f32 %v10382_v26, %v10468_v54 }
0x22a1   :  { %v10741_v44 = vadd.f32 %v10737_v3, %v3594_v8 }
0x22a2   :  { %7272 = vtanh.f32 %v3500_v14  ;;  %v3571_v34 = vadd.f32 %v3570_v37, %v3569_v21 }
0x22a4   :  { %v3572_v50 = vadd.f32 %v10389_v24, %v3571_v34 }
0x22ac   :  { %v10743_v16 = vpop.eup %7272 }
0x22ad   :  { %v3510_v53 = vpack.c.bf16 %v10743_v16, %v10743_v16  ;;  %v3573_v23 = vadd.f32 %v10743_v16, %v3572_v50 }
0x22af   :  { %6656 = vmatmul.mubr.bf16.vlgmr.msra.gmra.mrb[92].mxu1 %v3510_v53  ;;  %v3574_v17 = vsub.f32 0.0, %v3573_v23 }
0x22b0   :  { %6660 = vmatpush3.bf16.msra.mxu1 %v10555_v29  ;;  %6675 = vmatprep.mubr.msk.bf16.mxu1 %vm7706_vm0, %v12051_v40 }
0x22b1   :  { %6661 = vmatprep.subr.bf16.mxu1 %v12051_v40  ;;  %v3575_v12 = vmul.f32 1.442695, %v3574_v17 }
0x22b3   :  { %7274 = vpow2.f32 %v3575_v12 }
0x22b4   :  { %6662 = vmatpush3.bf16.msra.mxu1 %v10566_v38 }
0x22b5   :  { %6663 = vmatprep.subr.bf16.mxu1 %v12051_v40 }
0x22b8   :  { %6664 = vmatpush3.bf16.msra.mxu1 %v10575_v58 }
0x22b9   :  { %6665 = vmatprep.subr.bf16.mxu1 %v12051_v40 }
0x22bc   :  { %6666 = vmatpush3.bf16.msra.mxu1 %v10584_v35 }
0x22bd   :  { %v3492_v45 = vpop.f32.mrb[92].mxu0  ;;  %6667 = vmatprep.subr.bf16.mxu1 %v12051_v40  ;;  %v7275_v41 = vpop.eup %7274 }
0x22be   :  { %v3584_v1 = vadd.f32 %v3583_v25, %v3492_v45  ;;  %v6637_v33 = vpop.f32.mrb[93].mxu0  ;;  %v3577_v53 = vadd.f32 1.0, %v7275_v41  ;;  %v3559_v25 = vmul.f32 %v10397_v5, %v10468_v54 }
0x22bf   :  { %v3495_v56 = vpop.f32.mrb[94].mxu0 }
0x22c0   :  { %v6638_v7 = vpop.f32.mrb[95].mxu0  ;;  %6668 = vmatpush3.bf16.msra.mxu1 %v10593_v18  ;;  %v3560_v56 = vadd.f32 %v3559_v25, %v3558_v20 }
0x22c1   :  { %6669 = vmatprep.subr.bf16.mxu1 %v12051_v40 }
0x22c4   :  { %6670 = vmatpush3.bf16.msra.mxu1 %v10602_v49 }
0x22c5   :  { %6671 = vmatprep.subr.bf16.mxu1 %v12051_v40 }
0x22c8   :  { %6672 = vmatpush3.bf16.msra.mxu1 %v10611_v36 }
0x22c9   :  { %6673 = vmatprep.subr.bf16.mxu1 %v12051_v40 }
0x22cc   :  { %6674 = vmatpush3.bf16.msra.mxu1 %v10619_v11 }
0x22cd   :  { %6699 = vmatprep.subr.bf16.mxu1 %v12051_v40 }
0x2382   :  { %v3545_v15 = vpop.f32.mrb[92].mxu1 }
0x2383   :  { %v3551_v55 = vadd.f32 %v10459_v48, %v3545_v15  ;;  %v6657_v8 = vpop.f32.mrb[93].mxu1 }
0x2384   :  { %v3548_v52 = vpop.f32.mrb[94].mxu1  ;;  %v3585_v8 = vadd.f32 %v10413_v59, %v3584_v1 }
0x2385   :  { %v3552_v57 = vsub.f32 0.0, %v3551_v55  ;;  %v6658_v14 = vpop.f32.mrb[95].mxu1 }
0x2387   :  { %v3553_v46 = vmul.f32 1.442695, %v3552_v57 }
0x2389   :  { %7276 = vpow2.f32 %v3553_v46  ;;  %v3596_v46 = vadd.f32 %v10741_v44, %v10544_v51 }
0x238a   :  { %7278 = vrcp.f32 %v3577_v53 }
0x2393   :  { %v7277_v26 = vpop.eup %7276 }
0x2394   :  { %v3555_v21 = vadd.f32 1.0, %v7277_v26  ;;  %v7279_v24 = vpop.eup %7278 }
0x2395   :  { %v3580_v45 = vsub.f32 1.0, %v7279_v24  ;;  %v3579_v7 = vmul.f32 %v7279_v24, %v10465_v63 }
0x2396   :  { %7280 = vrcp.f32 %v3555_v21 }
0x23a0   :  { %v7281_v33 = vpop.eup %7280 }
0x23a1   :  { %v3561_v48 = vmul.f32 %v10405_v22, %v7281_v33  ;;  %v3581_v37 = vmul.f32 %v7281_v33, %v3580_v45  ;;  %v10797_v45 = vld [vmem:[%s11861_s4] sm:$0xff]   ;;  %v10813_v33 = vld [vmem:[%s11861_s4 + $0x10] sm:$0xff]  }
0x23a3   :  { %v3562_v34 = vadd.f32 %v3561_v48, %v3560_v56  ;;  %v3582_v50 = vadd.f32 %v3581_v37, %v3579_v7  ;;  %v10820_v56 = vld [vmem:[%s11861_s4 + $0x18] sm:$0xff]   ;;  %v10827_v48 = vld [vmem:[%s11861_s4 + $0x20] sm:$0xff]   ;;  %v10834_v7 = vld [vmem:[%s11861_s4 + $0x28] sm:$0xff]  }
0x23a4   :  { %v10841_v37 = vld [vmem:[%s11861_s4 + $0x30] sm:$0xff]  }
0x23a5   :  { %v3563_v23 = vsub.f32 0.0, %v3562_v34  ;;  %v3587_v17 = vadd.f32 %v10737_v3, %v3582_v50  ;;  %v10848_v34 = vld [vmem:[%s11861_s4 + $0x38] sm:$0xff]  }
0x23a6   :  { %v10854_v50 = vld [vmem:[%s11860_s3 + $0x4] ss:$20 sps:$4 sm:$0xff]  }
0x23a7   :  { %v3564_v12 = vmul.f32 1.442695, %v3563_v23  ;;  %v3588_v52 = vmul.f32 %v3587_v17, %v10468_v54  ;;  %v10860_v23 = vld [vmem:[%s11857_s0 + $0x58] sm:$0xf] }
0x23a9   :  { %7282 = vpow2.f32 %v3564_v12 }
0x23b3   :  { %v7283_v15 = vpop.eup %7282 }
0x23b4   :  { %v3566_v55 = vadd.f32 1.0, %v7283_v15 }
0x23b6   :  { %7284 = vrcp.f32 %v3566_v55 }
0x23b7   :  { %7286 = vtanh.f32 %v3585_v8 }
0x23c0   :  { %v7285_v5 = vpop.eup %7284 }
0x23c1   :  { %v3589_v20 = vmul.f32 %v7285_v5, %v10743_v16  ;;  %v7287_v63 = vpop.eup %7286 }
0x23c3   :  { %v3590_v22 = vmul.f32 %v10737_v3, %v3589_v20 }
0x23c5   :  { %v3591_v57 = vmul.f32 %v7287_v63, %v3590_v22 }
0x23c7   :  { %v10780_v14 = vadd.f32 %v3591_v57, %v3588_v52  ;;  %v10866_v52 = vld [vmem:[%s11857_s0 + $0x18] sm:$0xf] }
0x23c9   :  { %v3597_v41 = vmul.f32 %v10424_v10, %v10780_v14  ;;  %v3605_v3 = vadd.f32 %v10780_v14, %v10544_v51  ;;  %v3629_v44 = vrot.slane %v10780_v14, 4  ;;  %v10806_v51 = vld [vmem:[%s11861_s4 + $0x8] sm:$0xff]   ;;  %s7715_s4 = smov 124  }
0x23cb   :  { %v3598_v59 = vadd.f32 %v3597_v41, %v3596_v46 }
0x23cd   :  { %v3599_v1 = vadd.f32 %v10430_v30, %v3598_v59 }
0x23cf   :  { %v3600_v53 = vsub.f32 0.0, %v3599_v1 }
0x23d1   :  { %v3601_v26 = vmul.f32 1.442695, %v3600_v53 }
0x23d3   :  { %7288 = vpow2.f32 %v3601_v26 }
0x23d4   :  { %7290 = vtanh.f32 %v3605_v3 }
0x23dd   :  { %v7289_v16 = vpop.eup %7288 }
0x23de   :  { %v3603_v54 = vadd.f32 1.0, %v7289_v16  ;;  %v7291_v21 = vpop.eup %7290 }
0x23e0   :  { %7292 = vrcp.f32 %v3603_v54 }
0x23ea   :  { %v7293_v24 = vpop.eup %7292 }
0x23eb   :  { %v10789_v25 = vmul.f32 %v7293_v24, %v7291_v21 }
0x23ed   :  { %12243 = vst [vmem:[#allocation33_spill] sm:$0xff] %v10789_v25  ;;  %v3631_v10 = vsel %vm431_vm1, %v10789_v25, %v3629_v44 }
0x23ee   :  { %v3632_v30 = vpack.c.bf16 %v3631_v10, %v3631_v10 }
0x23f0   :  { %3666 = vmatmul.mubr.bf16.vlgmr.msra.gmra.mrb[96].mxu0 %v3632_v30 }
0x23f1   :  { %6680 = vmatpush3.bf16.msra.mxu0 %v10797_v45  ;;  %6695 = vmatprep.mubr.msk.bf16.mxu0 %vm7706_vm0, %v12051_v40 }
0x23f2   :  { %6681 = vmatprep.subr.bf16.mxu0 %v12051_v40 }
0x23f5   :  { %6682 = vmatpush3.bf16.msra.mxu0 %v10806_v51 }
0x23f6   :  { %6683 = vmatprep.subr.bf16.mxu0 %v12051_v40 }
0x23f9   :  { %6684 = vmatpush3.bf16.msra.mxu0 %v10813_v33 }
0x23fa   :  { %6685 = vmatprep.subr.bf16.mxu0 %v12051_v40 }
0x23fd   :  { %6686 = vmatpush3.bf16.msra.mxu0 %v10820_v56 }
0x23fe   :  { %6687 = vmatprep.subr.bf16.mxu0 %v12051_v40 }
0x2401   :  { %6688 = vmatpush3.bf16.msra.mxu0 %v10827_v48 }
0x2402   :  { %6689 = vmatprep.subr.bf16.mxu0 %v12051_v40 }
0x2405   :  { %6690 = vmatpush3.bf16.msra.mxu0 %v10834_v7 }
0x2406   :  { %6691 = vmatprep.subr.bf16.mxu0 %v12051_v40 }
0x2409   :  { %6692 = vmatpush3.bf16.msra.mxu0 %v10841_v37 }
0x240a   :  { %6693 = vmatprep.subr.bf16.mxu0 %v12051_v40 }
0x240d   :  { %6694 = vmatpush3.bf16.msra.mxu0 %v10848_v34 }
0x240e   :  { %3856 = vmatprep.subr.bf16.mxu0 %v10854_v50 }
0x24c3   :  { %v3667_v17 = vpop.f32.mrb[96].mxu0 }
0x24c4   :  { %v3674_v12 = vadd.f32 %v10860_v23, %v3667_v17  ;;  %v3669_v15 = vpop.f32.mrb[97].mxu0 }
0x24c5   :  { %v3671_v55 = vpop.f32.mrb[98].mxu0 }
0x24c6   :  { %v3675_v8 = vsub.f32 0.0, %v3674_v12  ;;  %v3672_v5 = vpop.f32.mrb[99].mxu0 }
0x24c8   :  { %v3676_v20 = vmul.f32 1.442695, %v3675_v8 }
0x24ca   :  { %7294 = vpow2.f32 %v3676_v20  ;;  %v10901_v20 = vld [vmem:[%s11858_s1 + $0x15] ss:$0 sm:$0xff] }
0x24d4   :  { %v7295_v22 = vpop.eup %7294 }
0x24d5   :  { %v3678_v63 = vadd.f32 1.0, %v7295_v22 }
0x24d7   :  { %7296 = vrcp.f32 %v3678_v63  ;;  %v10907_v63 = vld [vmem:[%s11858_s1 + $0x16] ss:$0 sm:$0xff] }
0x24d8   :  { %7298 = vtanh.f32 %v3669_v15 }
0x24e1   :  { %v7297_v57 = vpop.eup %7296 }
0x24e2   :  { %v3681_v46 = vmul.f32 %v7297_v57, %v10866_v52  ;;  %v7299_v41 = vpop.eup %7298  ;;  %v3742_v22 = vmul.f32 %v10901_v20, %v7297_v57 }
0x24e3   :  { %v3687_v53 = vrot.slane %v7299_v41, 4 }
0x24e4   :  { %v3683_v59 = vrot.slane %v3681_v46, 4 }
0x24e5   :  { %v3689_v3 = vsub.f32 %v10780_v14, %v3687_v53  ;;  %v10894_v14 = vld [vmem:[%s11860_s3 + $0xc] ss:$20 sps:$4 sm:$0xff]  }
0x24e6   :  { %v3685_v1 = vmul.f32 %v7299_v41, %v3683_v59  ;;  %v10913_v41 = vld [vmem:[%s11858_s1 + $0x13] ss:$0 sm:$0xff] }
0x24e7   :  { %v3745_v59 = vmul.f32 %v10913_v41, %v7297_v57  ;;  %v10933_v57 = vld [vmem:[%s11860_s3 + $0x2c] ss:$20 sps:$4 sm:$0xff]  }
0x24e8   :  { %v3690_v26 = vmul.f32 2.0, %v3685_v1  ;;  %v10919_v1 = vld [vmem:[%s11858_s1 + $0x14] ss:$0 sm:$0xff] }
0x24ea   :  { %v3692_v16 = vrot.slane %v3690_v26, 4 }
0x24ec   :  { %v10870_v54 = vadd.f32 %v3692_v16, %v3689_v3 }
0x24ee   :  { %v3695_v21 = vpack.c.bf16 %v10870_v54, %v10870_v54 }
0x24f0   :  { %6676 = vmatmul.mubr.bf16.vlgmr.msra.gmra.mrb[96].mxu1 %v3695_v21 }
0x24f1   :  { %6700 = vmatpush3.bf16.msra.mxu1 %v10797_v45  ;;  %6715 = vmatprep.mubr.msk.bf16.mxu1 %vm7706_vm0, %v12051_v40 }
0x24f2   :  { %6701 = vmatprep.subr.bf16.mxu1 %v12051_v40 }
0x24f5   :  { %6702 = vmatpush3.bf16.msra.mxu1 %v10806_v51 }
0x24f6   :  { %6703 = vmatprep.subr.bf16.mxu1 %v12051_v40 }
0x24f9   :  { %6704 = vmatpush3.bf16.msra.mxu1 %v10813_v33 }
0x24fa   :  { %6705 = vmatprep.subr.bf16.mxu1 %v12051_v40 }
0x24fd   :  { %6706 = vmatpush3.bf16.msra.mxu1 %v10820_v56 }
0x24fe   :  { %6707 = vmatprep.subr.bf16.mxu1 %v12051_v40 }
0x2501   :  { %6708 = vmatpush3.bf16.msra.mxu1 %v10827_v48 }
0x2502   :  { %6709 = vmatprep.subr.bf16.mxu1 %v12051_v40 }
0x2505   :  { %6710 = vmatpush3.bf16.msra.mxu1 %v10834_v7 }
0x2506   :  { %6711 = vmatprep.subr.bf16.mxu1 %v12051_v40 }
0x2509   :  { %6712 = vmatpush3.bf16.msra.mxu1 %v10841_v37 }
0x250a   :  { %6713 = vmatprep.subr.bf16.mxu1 %v12051_v40 }
0x250d   :  { %6714 = vmatpush3.bf16.msra.mxu1 %v10848_v34 }
0x250e   :  { %3897 = vmatprep.subr.bf16.mxu1 %v10894_v14 }
0x25c3   :  { %v3730_v24 = vpop.f32.mrb[96].mxu1 }
0x25c4   :  { %v3736_v44 = vadd.f32 %v10860_v23, %v3730_v24  ;;  %v6677_v10 = vpop.f32.mrb[97].mxu1 }
0x25c5   :  { %v3733_v30 = vpop.f32.mrb[98].mxu1  ;;  %v10939_v10 = vld [vmem:[%s11860_s3 + $0x28] ss:$20 sps:$4 sm:$0xff]  }
0x25c6   :  { %v3737_v17 = vsub.f32 0.0, %v3736_v44  ;;  %v6678_v12 = vpop.f32.mrb[99].mxu1  ;;  %v10926_v44 = vld [vmem:[%s11860_s3] ss:$20 sps:$4 sm:$0xff]  }
0x25c7   :  { %v10945_v30 = vld [vmem:[%s11860_s3 + $0x54] ss:$20 sps:$4 sm:$0xff]   ;;  %v10957_v12 = vld [vmem:[%s11860_s3 + $0x7c] ss:$20 sps:$4 sm:$0xff]  }
0x25c8   :  { %v3738_v15 = vmul.f32 1.442695, %v3737_v17  ;;  %v10951_v17 = vld [vmem:[%s11860_s3 + $0x50] ss:$20 sps:$4 sm:$0xff]  }
0x25ca   :  { %7300 = vpow2.f32 %v3738_v15  ;;  %v10963_v15 = vld [vmem:[%s11860_s3 + $0x78] ss:$20 sps:$4 sm:$0xff]  }
0x25d4   :  { %v7301_v55 = vpop.eup %7300 }
0x25d5   :  { %v3740_v8 = vadd.f32 1.0, %v7301_v55  ;;  %v10969_v55 = vld [vmem:[%s11860_s3 + $0xa4] ss:$20 sps:$4 sm:$0xff]  }
0x25d6   :  { %12244 = vst [vmem:[#allocation34_spill] sm:$0xff] %v10969_v55 }
0x25d7   :  { %7302 = vrcp.f32 %v3740_v8  ;;  %v10975_v8 = vld [vmem:[%s11860_s3 + $0xa0] ss:$20 sps:$4 sm:$0xff]  }
0x25d8   :  { %12245 = vst [vmem:[#allocation35_spill] sm:$0xff] %v10975_v8 }
0x25e1   :  { %v7303_v5 = vpop.eup %7302 }
0x25e2   :  { %v3743_v46 = vmul.f32 %v10907_v63, %v7303_v5  ;;  %v3746_v53 = vmul.f32 %v10919_v1, %v7303_v5  ;;  %v10981_v5 = vld [vmem:[%s11860_s3 + $0xcc] ss:$20 sps:$4 sm:$0xff]  }
0x25e3   :  { %12246 = vst [vmem:[#allocation36_spill] sm:$0xff] %v10981_v5 }
0x25e4   :  { %v3744_v26 = vadd.f32 %v3743_v46, %v3742_v22  ;;  %v3747_v3 = vadd.f32 %v3746_v53, %v3745_v59  ;;  %v10987_v22 = vld [vmem:[%s11860_s3 + $0xc8] ss:$20 sps:$4 sm:$0xff]   ;;  %v10999_v59 = vld [vmem:[%s11860_s3 + $0xf0] ss:$20 sps:$4 sm:$0xff]  }
0x25e5   :  { %12247 = vst [vmem:[#allocation37_spill] sm:$0xff] %v10987_v22  ;;  %v10993_v46 = vld [vmem:[%s11860_s3 + $0xf4] ss:$20 sps:$4 sm:$0xff]   ;;  %12249 = vst [vmem:[#allocation43_spill] sm:$0xff] %v10999_v59  ;;  %v11005_v53 = vld [vmem:[%s11860_s3 + $0x11c] ss:$20 sps:$4 sm:$0xff]  }
0x25e6   :  { %v3749_v16 = vrot.slane %v3747_v3, 4  ;;  %12248 = vst [vmem:[#allocation42_spill] sm:$0xff] %v10993_v46  ;;  %12250 = vst [vmem:[#allocation44_spill] sm:$0xff] %v11005_v53 }
0x25e8   :  { %v3751_v21 = vsel %vm431_vm1, %v3744_v26, %v3749_v16  ;;  %v11011_v26 = vld [vmem:[%s11860_s3 + $0x118] ss:$20 sps:$4 sm:$0xff]   ;;  %v11018_v16 = vld [vmem:[%s11858_s1 + $0x12] ss:$0 sm:$0xff] }
0x25e9   :  { %v3752_v24 = vpack.c.bf16 %v3751_v21, %v3751_v21  ;;  %12251 = vst [vmem:[#allocation45_spill] sm:$0xff] %v11011_v26  ;;  %12252 = vst [vmem:[#allocation40_spill] sm:$0xff] %v11018_v16 }
0x25eb   :  { %6696 = vmatmul.mubr.bf16.vlgmr.msra.gmra.mrb[100].mxu0 %v3752_v24  ;;  %v11024_v24 = vld [vmem:[%s11858_s1 + $0x11] ss:$0 sm:$0xff] }
0x25ec   :  { %3857 = vmatpush1.bf16.msra.mxu0 %v10926_v44  ;;  %3888 = vmatprep.mubr.bf16.mxu0 %v12060_v19  ;;  %12253 = vst [vmem:[#allocation41_spill] sm:$0xff] %v11024_v24 }
0x25ed   :  { %3858 = vmatprep.subr.bf16.mxu0 %v10933_v57 }
0x25f0   :  { %3859 = vmatpush1.bf16.msra.mxu0 %v10939_v10 }
0x25f1   :  { %3860 = vmatprep.subr.bf16.mxu0 %v10945_v30 }
0x25f4   :  { %3861 = vmatpush1.bf16.msra.mxu0 %v10951_v17 }
0x25f5   :  { %3862 = vmatprep.subr.bf16.mxu0 %v10957_v12 }
0x25f8   :  { %3863 = vmatpush1.bf16.msra.mxu0 %v10963_v15 }
0x25f9   :  { %3864 = vmatprep.subr.bf16.mxu0 %v10969_v55 }
0x25fc   :  { %3865 = vmatpush1.bf16.msra.mxu0 %v10975_v8 }
0x25fd   :  { %3866 = vmatprep.subr.bf16.mxu0 %v10981_v5 }
0x2600   :  { %3867 = vmatpush1.bf16.msra.mxu0 %v10987_v22 }
0x2601   :  { %3868 = vmatprep.subr.bf16.mxu0 %v10993_v46 }
0x2604   :  { %3869 = vmatpush1.bf16.msra.mxu0 %v10999_v59 }
0x2605   :  { %3870 = vmatprep.subr.bf16.mxu0 %v11005_v53 }
0x2608   :  { %3871 = vmatpush1.bf16.msra.mxu0 %v11011_v26 }
0x2609   :  { %6719 = vmatprep.subr.bf16.mxu0 %v12051_v40 }
0x26be   :  { %v3787_v3 = vpop.f32.mrb[100].mxu0 }
0x26bf   :  { %v3793_v21 = vadd.f32 %v11018_v16, %v3787_v3  ;;  %v3795_v62 = vadd.f32 %v11024_v24, %v3787_v3  ;;  %v6697_v53 = vpop.f32.mrb[101].mxu0  ;;  %v11031_v16 = vld [vmem:[%s11860_s3 + $0x8] ss:$20 sps:$4 sm:$0xff]  }
0x26c0   :  { %v3790_v59 = vpop.f32.mrb[102].mxu0  ;;  %12254 = vst [vmem:[#allocation15_spill] sm:$0xff] %v11031_v16  ;;  %v11074_v53 = vld [vmem:[%s11860_s3 + $0xac] ss:$20 sps:$4 sm:$0xff]   ;;  %v11086_v3 = vld [vmem:[%s11860_s3 + $0xd4] ss:$20 sps:$4 sm:$0xff]  }
0x26c1   :  { %7304 = vtanh.f32 %v3793_v21  ;;  %v6698_v26 = vpop.f32.mrb[103].mxu0  ;;  %v11038_v59 = vld [vmem:[%s11860_s3 + $0x34] ss:$20 sps:$4 sm:$0xff]   ;;  %12261 = vst [vmem:[#allocation6_spill] sm:$0xff] %v11074_v53  ;;  %12263 = vst [vmem:[#allocation7_spill] sm:$0xff] %v11086_v3 }
0x26c2   :  { %7306 = vtanh.f32 %v3795_v62  ;;  %12255 = vst [vmem:[#allocation18_spill] sm:$0xff] %v11038_v59  ;;  %v11044_v62 = vld [vmem:[%s11860_s3 + $0x30] ss:$20 sps:$4 sm:$0xff]   ;;  %v11080_v26 = vld [vmem:[%s11860_s3 + $0xa8] ss:$20 sps:$4 sm:$0xff]  }
0x26c3   :  { %12256 = vst [vmem:[#allocation19_spill] sm:$0xff] %v11044_v62  ;;  %12262 = vst [vmem:[#allocation5_spill] sm:$0xff] %v11080_v26  ;;  %v11092_v21 = vld [vmem:[%s11860_s3 + $0xd0] ss:$20 sps:$4 sm:$0xff]  }
0x26c4   :  { %12264 = vst [vmem:[#allocation8_spill] sm:$0xff] %v11092_v21 }
0x26cb   :  { %v7305_v46 = vpop.eup %7304 }
0x26cc   :  { %v7307_v22 = vpop.eup %7306 }
0x26cd   :  { %v3797_v5 = vsel %vm431_vm1, %v7305_v46, %v7307_v22  ;;  %v11062_v22 = vld [vmem:[%s11860_s3 + $0x84] ss:$20 sps:$4 sm:$0xff]   ;;  %v11068_v46 = vld [vmem:[%s11860_s3 + $0x80] ss:$20 sps:$4 sm:$0xff]  }
0x26ce   :  { %v3798_v8 = vpack.c.bf16 %v3797_v5, %v3797_v5  ;;  %v11056_v5 = vld [vmem:[%s11860_s3 + $0x58] ss:$20 sps:$4 sm:$0xff]   ;;  %12259 = vst [vmem:[#allocation26_spill] sm:$0xff] %v11062_v22  ;;  %12260 = vst [vmem:[#allocation28_spill] sm:$0xff] %v11068_v46 }
0x26cf   :  { %12258 = vst [vmem:[#allocation23_spill] sm:$0xff] %v11056_v5 }
0x26d0   :  { %6716 = vmatmul.mubr.bf16.vlgmr.msra.gmra.mrb[100].mxu1 %v3798_v8  ;;  %v11050_v8 = vld [vmem:[%s11860_s3 + $0x5c] ss:$20 sps:$4 sm:$0xff]  }
0x26d1   :  { %3898 = vmatpush1.bf16.msra.mxu1 %v11031_v16  ;;  %3929 = vmatprep.mubr.bf16.mxu1 %v12060_v19  ;;  %12257 = vst [vmem:[#allocation22_spill] sm:$0xff] %v11050_v8  ;;  %v11138_v16 = vld [vmem:[%s11858_s1 + $0xf] ss:$0 sm:$0xff] }
0x26d2   :  { %3899 = vmatprep.subr.bf16.mxu1 %v11038_v59 }
0x26d5   :  { %3900 = vmatpush1.bf16.msra.mxu1 %v11044_v62 }
0x26d6   :  { %3901 = vmatprep.subr.bf16.mxu1 %v11050_v8 }
0x26d9   :  { %3902 = vmatpush1.bf16.msra.mxu1 %v11056_v5 }
0x26da   :  { %3903 = vmatprep.subr.bf16.mxu1 %v11062_v22 }
0x26dd   :  { %3904 = vmatpush1.bf16.msra.mxu1 %v11068_v46 }
0x26de   :  { %3905 = vmatprep.subr.bf16.mxu1 %v11074_v53  ;;  %v11098_v53 = vld [vmem:[%s11860_s3 + $0xfc] ss:$20 sps:$4 sm:$0xff]  }
0x26df   :  { %12265 = vst [vmem:[#allocation9_spill] sm:$0xff] %v11098_v53 }
0x26e1   :  { %3906 = vmatpush1.bf16.msra.mxu1 %v11080_v26  ;;  %v11104_v26 = vld [vmem:[%s11860_s3 + $0xf8] ss:$20 sps:$4 sm:$0xff]  }
0x26e2   :  { %3907 = vmatprep.subr.bf16.mxu1 %v11086_v3  ;;  %12266 = vst [vmem:[#allocation10_spill] sm:$0xff] %v11104_v26  ;;  %v11110_v3 = vld [vmem:[%s11860_s3 + $0x124] ss:$20 sps:$4 sm:$0xff]  }
0x26e3   :  { %12267 = vst [vmem:[#allocation11_spill] sm:$0xff] %v11110_v3 }
0x26e5   :  { %3908 = vmatpush1.bf16.msra.mxu1 %v11092_v21  ;;  %v11116_v21 = vld [vmem:[%s11860_s3 + $0x120] ss:$20 sps:$4 sm:$0xff]  }
0x26e6   :  { %3909 = vmatprep.subr.bf16.mxu1 %v11098_v53  ;;  %12268 = vst [vmem:[#allocation12_spill] sm:$0xff] %v11116_v21  ;;  %v5582_v53 = vld [vmem:[%s11857_s0 + $0xd8] sm:$0xf] }
0x26e9   :  { %3910 = vmatpush1.bf16.msra.mxu1 %v11104_v26  ;;  %v5581_v26 = vld [vmem:[%s11857_s0 + $0xb8] sm:$0xf] }
0x26ea   :  { %3911 = vmatprep.subr.bf16.mxu1 %v11110_v3 }
0x26ed   :  { %3912 = vmatpush1.bf16.msra.mxu1 %v11116_v21  ;;  %v11132_v21 = vld [vmem:[%s11858_s1 + $0x5] ss:$0 sm:$0xff] }
0x26ee   :  { %6739 = vmatprep.subr.bf16.mxu1 %v12051_v40 }
0x27a3   :  { %v11126_v46 = vpop.f32.mrb[100].mxu1 }
0x27a4   :  { %v3839_v3 = vmul.f32 %v5581_v26, %v11126_v46  ;;  %v6717_v22 = vpop.f32.mrb[101].mxu1 }
0x27a5   :  { %v3836_v5 = vpop.f32.mrb[102].mxu1 }
0x27a6   :  { %v3840_v8 = vadd.f32 %v5582_v53, %v3839_v3  ;;  %v6718_v62 = vpop.f32.mrb[103].mxu1 }
0x27a8   :  { %v3846_v59 = vmul.f32 %v11132_v21, %v3840_v8  ;;  %v11148_v8 = vld [vmem:[%s11860_s3 + $0x10] ss:$20 sps:$4 sm:$0xff]  }
0x27aa   :  { %v3847_v24 = vadd.f32 %v11138_v16, %v3846_v59  ;;  %v11179_v59 = vld [vmem:[%s11860_s3 + $0x88] ss:$20 sps:$4 sm:$0xff]  }
0x27ac   :  { %v3849_v55 = vmin.f32 %v3847_v24, 0.0  ;;  %vm3848_vm8 = vcmp.gt.f32.partialorder %v3847_v24, 0.0 }
0x27ae   :  { %v3850_v26 = vmul.f32 1.442695, %v3849_v55  ;;  %v11161_v55 = vld [vmem:[%s11860_s3 + $0x38] ss:$20 sps:$4 sm:$0xff]  }
0x27b0   :  { %7308 = vpow2.f32 %v3850_v26  ;;  %v11188_v26 = vld [vmem:[%s11860_s3 + $0xb0] ss:$20 sps:$4 sm:$0xff]  }
0x27ba   :  { %v7309_v5 = vpop.eup %7308 }
0x27bb   :  { %v5583_v22 = vadd.f32 -1.0, %v7309_v5  ;;  %v11197_v5 = vld [vmem:[%s11860_s3 + $0xd8] ss:$20 sps:$4 sm:$0xff]  }
0x27bd   :  { %v11141_v62 = vsel %vm3848_vm8, %v3847_v24, %v5583_v22  ;;  %v11170_v24 = vld [vmem:[%s11860_s3 + $0x60] ss:$20 sps:$4 sm:$0xff]  }
0x27be   :  { %v3854_v53 = vadd.f32 %v11141_v62, %v10789_v25  ;;  %v11206_v22 = vld [vmem:[%s11860_s3 + $0x100] ss:$20 sps:$4 sm:$0xff]  }
0x27c0   :  { %v3855_v3 = vpack.c.bf16 %v3854_v53, %v3854_v53  ;;  %v11215_v53 = vld [vmem:[%s11860_s3 + $0x128] ss:$20 sps:$4 sm:$0xff]   ;;  %s7711_s3 = smov 24  }
0x27c1   :  { %12269 = vst [vmem:[#allocation13_spill] sm:$0xff] %v11215_v53 }
0x27c2   :  { %3889 = vmatmul.mubr.bf16.vlgmr.msra.gmra.mrb[104].mxu0 %v3855_v3  ;;  %3930 = vmatmul.mubr.bf16.vlgmr.msra.gmra.mrb[104].mxu1 %v3855_v3 }
0x27c3   :  { %6720 = vmatpush3.bf16.msra.mxu0 %v11148_v8  ;;  %6735 = vmatprep.mubr.msk.bf16.mxu0 %vm7706_vm0, %v12051_v40 }
0x27c4   :  { %6721 = vmatprep.subr.bf16.mxu0 %v12051_v40  ;;  %6740 = vmatpush3.bf16.msra.mxu1 %v10555_v29 }
0x27c5   :  { %6741 = vmatprep.subr.bf16.mxu1 %v12051_v40  ;;  %6755 = vmatprep.mubr.msk.bf16.mxu1 %vm7706_vm0, %v12051_v40 }
0x27c7   :  { %6722 = vmatpush3.bf16.msra.mxu0 %v11161_v55 }
0x27c8   :  { %6723 = vmatprep.subr.bf16.mxu0 %v12051_v40  ;;  %6742 = vmatpush3.bf16.msra.mxu1 %v10566_v38 }
0x27c9   :  { %6743 = vmatprep.subr.bf16.mxu1 %v12051_v40 }
0x27cb   :  { %6724 = vmatpush3.bf16.msra.mxu0 %v11170_v24 }
0x27cc   :  { %6725 = vmatprep.subr.bf16.mxu0 %v12051_v40  ;;  %6744 = vmatpush3.bf16.msra.mxu1 %v10575_v58 }
0x27cd   :  { %6745 = vmatprep.subr.bf16.mxu1 %v12051_v40 }
0x27cf   :  { %6726 = vmatpush3.bf16.msra.mxu0 %v11179_v59 }
0x27d0   :  { %6727 = vmatprep.subr.bf16.mxu0 %v12051_v40  ;;  %6746 = vmatpush3.bf16.msra.mxu1 %v10584_v35 }
0x27d1   :  { %6747 = vmatprep.subr.bf16.mxu1 %v12051_v40 }
0x27d3   :  { %6728 = vmatpush3.bf16.msra.mxu0 %v11188_v26 }
0x27d4   :  { %6729 = vmatprep.subr.bf16.mxu0 %v12051_v40  ;;  %6748 = vmatpush3.bf16.msra.mxu1 %v10593_v18 }
0x27d5   :  { %6749 = vmatprep.subr.bf16.mxu1 %v12051_v40 }
0x27d7   :  { %6730 = vmatpush3.bf16.msra.mxu0 %v11197_v5 }
0x27d8   :  { %6731 = vmatprep.subr.bf16.mxu0 %v12051_v40  ;;  %6750 = vmatpush3.bf16.msra.mxu1 %v10602_v49 }
0x27d9   :  { %6751 = vmatprep.subr.bf16.mxu1 %v12051_v40 }
0x27db   :  { %6732 = vmatpush3.bf16.msra.mxu0 %v11206_v22 }
0x27dc   :  { %6733 = vmatprep.subr.bf16.mxu0 %v12051_v40  ;;  %6752 = vmatpush3.bf16.msra.mxu1 %v10611_v36 }
0x27dd   :  { %6753 = vmatprep.subr.bf16.mxu1 %v12051_v40 }
0x27df   :  { %6734 = vmatpush3.bf16.msra.mxu0 %v11215_v53 }
0x27e0   :  { %6754 = vmatpush3.bf16.msra.mxu1 %v10619_v11  ;;  %4113 = vmatprep.subr.bf16.mxu0 %v10625_v32  ;;  %v3842_v32 = vrot.slane %v11126_v46, 4 }
0x27e1   :  { %6759 = vmatprep.subr.bf16.mxu1 %v12051_v40 }
0x27e2   :  { %6736 = vmatmul.mubr.bf16.vlgmr.msra.gmra.mrb[108].mxu0 %v3855_v3  ;;  %v11269_v3 = vld [vmem:[%s11858_s1 + $0x2] ss:$0 sm:$0xff] }
0x27e3   :  { %4114 = vmatpush1.bf16.msra.mxu0 %v10632_v39  ;;  %4145 = vmatprep.mubr.bf16.mxu0 %v12060_v19  ;;  %v5579_v39 = vld [vmem:[%s11857_s0 + $0x78] sm:$0xf]  ;;  %12273 = vst [vmem:[#allocation21_spill] sm:$0xff] %v11269_v3 }
0x27e4   :  { %4115 = vmatprep.subr.bf16.mxu0 %v10639_v4  ;;  %v3844_v4 = vmul.f32 %v5579_v39, %v3842_v32 }
0x27e7   :  { %4116 = vmatpush1.bf16.msra.mxu0 %v10645_v0  ;;  %v5580_v0 = vld [vmem:[%s11857_s0 + $0x98] sm:$0xf] }
0x27e8   :  { %4117 = vmatprep.subr.bf16.mxu0 %v10651_v60  ;;  %v3845_v60 = vadd.f32 %v5580_v0, %v3844_v4  ;;  %v11275_v0 = vld [vmem:[%s11858_s1 + $0x1] ss:$0 sm:$0xff] }
0x27e9   :  { %12274 = vst [vmem:[#allocation24_spill] sm:$0xff] %v11275_v0 }
0x27ea   :  { %v4048_v32 = vmul.f32 %v11269_v3, %v3845_v60 }
0x27eb   :  { %4118 = vmatpush1.bf16.msra.mxu0 %v10657_v28  ;;  %v11248_v28 = vld [vmem:[%s11858_s1 + $0x6] ss:$0 sm:$0xff] }
0x27ec   :  { %4119 = vmatprep.subr.bf16.mxu0 %v10663_v61  ;;  %12270 = vst [vmem:[#allocation16_spill] sm:$0xff] %v11248_v28  ;;  %v3982_v61 = vmul.f32 %v11248_v28, %v3845_v60 }
0x27ef   :  { %4120 = vmatpush1.bf16.msra.mxu0 %v10669_v31  ;;  %v5577_v31 = vld [vmem:[%s11857_s0 + $0x38] sm:$0xf] }
0x27f0   :  { %4121 = vmatprep.subr.bf16.mxu0 %v10675_v13  ;;  %v3983_v13 = vadd.f32 %v5577_v31, %v3982_v61  ;;  %v4037_v61 = vmul.f32 %v11275_v0, %v3845_v60  ;;  %v11281_v31 = vld [vmem:[%s11858_s1 + $0x3] ss:$0 sm:$0xff]  ;;  %v11291_v0 = vld [vmem:[%s11858_s1 + $0xa] ss:$0 sm:$0xff] }
0x27f1   :  { %12275 = vst [vmem:[#allocation25_spill] sm:$0xff] %v11281_v31 }
0x27f3   :  { %4122 = vmatpush1.bf16.msra.mxu0 %v10681_v2  ;;  %v11257_v2 = vld [vmem:[%s11858_s1 + $0x10] ss:$0 sm:$0xff] }
0x27f4   :  { %4123 = vmatprep.subr.bf16.mxu0 %v10687_v43  ;;  %12271 = vst [vmem:[#allocation17_spill] sm:$0xff] %v11257_v2  ;;  %v3984_v43 = vadd.f32 %v11257_v2, %v3983_v13  ;;  %v4073_v13 = vmul.f32 %v11281_v31, %v3845_v60 }
0x27f7   :  { %4124 = vmatpush1.bf16.msra.mxu0 %v10693_v47  ;;  %v3985_v47 = vsub.f32 0.0, %v3984_v43 }
0x27f8   :  { %4125 = vmatprep.subr.bf16.mxu0 %v10699_v6 }
0x27f9   :  { %v3986_v6 = vmul.f32 1.442695, %v3985_v47 }
0x27fb   :  { %4126 = vmatpush1.bf16.msra.mxu0 %v10705_v27  ;;  %7310 = vpow2.f32 %v3986_v6 }
0x27fc   :  { %4127 = vmatprep.subr.bf16.mxu0 %v10711_v9 }
0x27ff   :  { %4128 = vmatpush1.bf16.msra.mxu0 %v10717_v42  ;;  %v11263_v42 = vld [vmem:[%s11858_s1] ss:$0 sm:$0xff] }
0x2800   :  { %6779 = vmatprep.subr.bf16.mxu0 %v12051_v40  ;;  %12272 = vst [vmem:[#allocation20_spill] sm:$0xff] %v11263_v42  ;;  %v3978_v46 = vmul.f32 %v11263_v42, %v3845_v60 }
0x2805   :  { %v7311_v27 = vpop.eup %7310 }
0x2806   :  { %v3988_v9 = vadd.f32 1.0, %v7311_v27 }
0x2808   :  { %7312 = vrcp.f32 %v3988_v9 }
0x2812   :  { %v11286_v2 = vpop.eup %7312 }
0x2895   :  { %v3890_v39 = vpop.f32.mrb[104].mxu0  ;;  %v3931_v4 = vpop.f32.mrb[104].mxu1 }
0x2896   :  { %v3979_v43 = vadd.f32 %v3978_v46, %v3890_v39  ;;  %v4049_v47 = vadd.f32 %v4048_v32, %v3931_v4  ;;  %v3892_v6 = vpop.f32.mrb[105].mxu0  ;;  %v3933_v27 = vpop.f32.mrb[105].mxu1 }
0x2897   :  { %v11284_v9 = vadd.f32 %v4037_v61, %v3892_v6  ;;  %v4074_v25 = vadd.f32 %v4073_v13, %v3933_v27  ;;  %v3894_v3 = vpop.f32.mrb[106].mxu0  ;;  %v3935_v42 = vpop.f32.mrb[106].mxu1 }
0x2898   :  { %v3980_v28 = vadd.f32 %v11291_v0, %v3979_v43  ;;  %v3895_v53 = vpop.f32.mrb[107].mxu0  ;;  %v3936_v31 = vpop.f32.mrb[107].mxu1 }
0x2899   :  { %v11295_v46 = vadd.f32 %v11286_v2, %v4074_v25  ;;  %v11312_v25 = vld [vmem:[%s11858_s1 + $0x4] ss:$0 sm:$0xff] }
0x289a   :  { %7314 = vtanh.f32 %v3980_v28 }
0x28a4   :  { %v11297_v32 = vpop.eup %7314 }
0x28a5   :  { %v3990_v42 = vpack.c.bf16 %v11297_v32, %v11297_v32 }
0x28a7   :  { %6756 = vmatmul.mubr.bf16.vlgmr.msra.gmra.mrb[108].mxu1 %v3990_v42 }
0x28a8   :  { %6760 = vmatpush3.bf16.msra.mxu1 %v10555_v29  ;;  %6775 = vmatprep.mubr.msk.bf16.mxu1 %vm7706_vm0, %v12051_v40  ;;  %v4063_v29 = vmul.f32 %v11312_v25, %v3845_v60 }
0x28a9   :  { %6761 = vmatprep.subr.bf16.mxu1 %v12051_v40 }
0x28ac   :  { %6762 = vmatpush3.bf16.msra.mxu1 %v10566_v38 }
0x28ad   :  { %6763 = vmatprep.subr.bf16.mxu1 %v12051_v40 }
0x28b0   :  { %6764 = vmatpush3.bf16.msra.mxu1 %v10575_v58  ;;  %v11328_v58 = vld [vmem:[%s11858_s1 + $0x8] ss:$0 sm:$0xff] }
0x28b1   :  { %6765 = vmatprep.subr.bf16.mxu1 %v12051_v40 }
0x28b4   :  { %6766 = vmatpush3.bf16.msra.mxu1 %v10584_v35  ;;  %v4050_v35 = vmul.f32 %v11328_v58, %v10870_v54 }
0x28b5   :  { %v3972_v53 = vpop.f32.mrb[108].mxu0  ;;  %6767 = vmatprep.subr.bf16.mxu1 %v12051_v40 }
0x28b6   :  { %v4064_v28 = vadd.f32 %v4063_v29, %v3972_v53  ;;  %v6737_v38 = vpop.f32.mrb[109].mxu0 }
0x28b7   :  { %v3975_v3 = vpop.f32.mrb[110].mxu0 }
0x28b8   :  { %v6738_v39 = vpop.f32.mrb[111].mxu0  ;;  %6768 = vmatpush3.bf16.msra.mxu1 %v10593_v18  ;;  %v4051_v18 = vadd.f32 %v4050_v35, %v4049_v47 }
0x28b9   :  { %6769 = vmatprep.subr.bf16.mxu1 %v12051_v40  ;;  %v11343_v39 = vld [vmem:[%s11858_s1 + $0x7] ss:$0 sm:$0xff] }
0x28bc   :  { %6770 = vmatpush3.bf16.msra.mxu1 %v10602_v49  ;;  %v11335_v49 = vld [vmem:[%s11858_s1 + $0xc] ss:$0 sm:$0xff] }
0x28bd   :  { %6771 = vmatprep.subr.bf16.mxu1 %v12051_v40 }
0x28c0   :  { %6772 = vmatpush3.bf16.msra.mxu1 %v10611_v36  ;;  %v4052_v36 = vadd.f32 %v11335_v49, %v4051_v18 }
0x28c1   :  { %6773 = vmatprep.subr.bf16.mxu1 %v12051_v40 }
0x28c4   :  { %6774 = vmatpush3.bf16.msra.mxu1 %v10619_v11  ;;  %v4053_v11 = vadd.f32 %v11297_v32, %v4052_v36 }
0x28c5   :  { %6799 = vmatprep.subr.bf16.mxu1 %v12051_v40 }
0x28c6   :  { %v4054_v60 = vsub.f32 0.0, %v4053_v11  ;;  %v11351_v11 = vld [vmem:[%s11858_s1 + $0xb] ss:$0 sm:$0xff] }
0x28c8   :  { %v4055_v4 = vmul.f32 1.442695, %v4054_v60 }
0x28ca   :  { %7316 = vpow2.f32 %v4055_v4 }
0x28d4   :  { %v7317_v42 = vpop.eup %7316 }
0x28d5   :  { %v4057_v29 = vadd.f32 1.0, %v7317_v42 }
0x297a   :  { %v4025_v61 = vpop.f32.mrb[108].mxu1 }
0x297b   :  { %v4031_v31 = vadd.f32 %v10860_v23, %v4025_v61  ;;  %v6757_v13 = vpop.f32.mrb[109].mxu1  ;;  %v4039_v23 = vmul.f32 %v11343_v39, %v10870_v54 }
0x297c   :  { %v4028_v43 = vpop.f32.mrb[110].mxu1 }
0x297d   :  { %v4032_v6 = vsub.f32 0.0, %v4031_v31  ;;  %v6758_v27 = vpop.f32.mrb[111].mxu1  ;;  %v4040_v36 = vadd.f32 %v4039_v23, %v11284_v9  ;;  %v11359_v9 = vld [vmem:[%s11858_s1 + $0xe] ss:$0 sm:$0xff] }
0x297f   :  { %v4033_v47 = vmul.f32 1.442695, %v4032_v6 }
0x2981   :  { %7318 = vpow2.f32 %v4033_v47 }
0x2982   :  { %7320 = vrcp.f32 %v4057_v29  ;;  %v4065_v29 = vadd.f32 %v11359_v9, %v4064_v28 }
0x298b   :  { %v7319_v53 = vpop.eup %7318 }
0x298c   :  { %v4035_v38 = vadd.f32 1.0, %v7319_v53  ;;  %v7321_v3 = vpop.eup %7320 }
0x298d   :  { %v4060_v35 = vsub.f32 1.0, %v7321_v3  ;;  %v4059_v4 = vmul.f32 %v7321_v3, %v10866_v52 }
0x298e   :  { %7322 = vrcp.f32 %v4035_v38 }
0x2998   :  { %v7323_v18 = vpop.eup %7322 }
0x2999   :  { %v4041_v60 = vmul.f32 %v11351_v11, %v7323_v18  ;;  %v4061_v61 = vmul.f32 %v7323_v18, %v4060_v35 }
0x299b   :  { %v4042_v31 = vadd.f32 %v4041_v60, %v4040_v36  ;;  %v4062_v13 = vadd.f32 %v4061_v61, %v4059_v4  ;;  %v4076_v36 = vadd.f32 %v11295_v46, %v11141_v62  ;;  %v11370_v60 = vld [vmem:[%s11858_s1 + $0x9] ss:$0 sm:$0xff] }
0x299d   :  { %v4043_v43 = vsub.f32 0.0, %v4042_v31  ;;  %v4067_v6 = vadd.f32 %v11286_v2, %v4062_v13 }
0x299f   :  { %v4044_v27 = vmul.f32 1.442695, %v4043_v43  ;;  %v4068_v23 = vmul.f32 %v4067_v6, %v10870_v54 }
0x29a1   :  { %7324 = vpow2.f32 %v4044_v27 }
0x29ab   :  { %v7325_v47 = vpop.eup %7324 }
0x29ac   :  { %v4046_v42 = vadd.f32 1.0, %v7325_v47 }
0x29ae   :  { %7326 = vrcp.f32 %v4046_v42 }
0x29af   :  { %7328 = vtanh.f32 %v4065_v29 }
0x29b8   :  { %v7327_v52 = vpop.eup %7326 }
0x29b9   :  { %v4069_v53 = vmul.f32 %v7327_v52, %v11297_v32  ;;  %v7329_v3 = vpop.eup %7328 }
0x29bb   :  { %v4070_v38 = vmul.f32 %v11286_v2, %v4069_v53  ;;  %v11376_v2 = vld [vmem:[%s11858_s1 + $0xd] ss:$0 sm:$0xff] }
0x29bd   :  { %v4071_v35 = vmul.f32 %v7329_v3, %v4070_v38 }
0x29bf   :  { %v4072_v18 = vadd.f32 %v4071_v35, %v4068_v23 }
0x29c1   :  { %v4077_v28 = vmul.f32 %v11370_v60, %v4072_v18  ;;  %v4085_v46 = vadd.f32 %v4072_v18, %v11141_v62  ;;  %v4109_v47 = vrot.slane %v4072_v18, 4  ;;  %v11405_v62 = vld [vmem:[%s11857_s0 + $0x5c] sm:$0xf] }
0x29c3   :  { %v4078_v4 = vadd.f32 %v4077_v28, %v4076_v36 }
0x29c5   :  { %v4079_v54 = vadd.f32 %v11376_v2, %v4078_v4 }
0x29c7   :  { %v4080_v32 = vsub.f32 0.0, %v4079_v54 }
0x29c9   :  { %v4081_v61 = vmul.f32 1.442695, %v4080_v32 }
0x29cb   :  { %7330 = vpow2.f32 %v4081_v61 }
0x29cc   :  { %7332 = vtanh.f32 %v4085_v46 }
0x29d5   :  { %v7331_v31 = vpop.eup %7330 }
0x29d6   :  { %v4083_v13 = vadd.f32 1.0, %v7331_v31  ;;  %v7333_v43 = vpop.eup %7332 }
0x29d8   :  { %7334 = vrcp.f32 %v4083_v13 }
0x29e2   :  { %v7335_v6 = vpop.eup %7334 }
0x29e3   :  { %v11380_v27 = vmul.f32 %v7335_v6, %v7333_v43 }
0x29e5   :  { %v4111_v42 = vsel %vm431_vm1, %v11380_v27, %v4109_v47 }
0x29e6   :  { %v4112_v29 = vpack.c.bf16 %v4111_v42, %v4111_v42 }
0x29e8   :  { %4146 = vmatmul.mubr.bf16.vlgmr.msra.gmra.mrb[112].mxu0 %v4112_v29 }
0x29e9   :  { %6780 = vmatpush3.bf16.msra.mxu0 %v10797_v45  ;;  %6795 = vmatprep.mubr.msk.bf16.mxu0 %vm7706_vm0, %v12051_v40 }
0x29ea   :  { %6781 = vmatprep.subr.bf16.mxu0 %v12051_v40 }
0x29ed   :  { %6782 = vmatpush3.bf16.msra.mxu0 %v10806_v51 }
0x29ee   :  { %6783 = vmatprep.subr.bf16.mxu0 %v12051_v40 }
0x29f1   :  { %6784 = vmatpush3.bf16.msra.mxu0 %v10813_v33 }
0x29f2   :  { %6785 = vmatprep.subr.bf16.mxu0 %v12051_v40 }
0x29f5   :  { %6786 = vmatpush3.bf16.msra.mxu0 %v10820_v56 }
0x29f6   :  { %6787 = vmatprep.subr.bf16.mxu0 %v12051_v40 }
0x29f9   :  { %6788 = vmatpush3.bf16.msra.mxu0 %v10827_v48 }
0x29fa   :  { %6789 = vmatprep.subr.bf16.mxu0 %v12051_v40 }
0x29fd   :  { %6790 = vmatpush3.bf16.msra.mxu0 %v10834_v7 }
0x29fe   :  { %6791 = vmatprep.subr.bf16.mxu0 %v12051_v40 }
0x2a01   :  { %6792 = vmatpush3.bf16.msra.mxu0 %v10841_v37 }
0x2a02   :  { %6793 = vmatprep.subr.bf16.mxu0 %v12051_v40 }
0x2a05   :  { %6794 = vmatpush3.bf16.msra.mxu0 %v10848_v34 }
0x2a06   :  { %4336 = vmatprep.subr.bf16.mxu0 %v10854_v50  ;;  %v11411_v50 = vld [vmem:[%s11857_s0 + $0x1c] sm:$0xf] }
0x2abb   :  { %v4147_v52 = vpop.f32.mrb[112].mxu0 }
0x2abc   :  { %v4154_v53 = vadd.f32 %v11405_v62, %v4147_v52  ;;  %v4149_v38 = vpop.f32.mrb[113].mxu0 }
0x2abd   :  { %v4151_v3 = vpop.f32.mrb[114].mxu0 }
0x2abe   :  { %v4155_v23 = vsub.f32 0.0, %v4154_v53  ;;  %v4152_v35 = vpop.f32.mrb[115].mxu0 }
0x2ac0   :  { %v4156_v36 = vmul.f32 1.442695, %v4155_v23 }
0x2ac2   :  { %7336 = vpow2.f32 %v4156_v36 }
0x2acc   :  { %v7337_v28 = vpop.eup %7336 }
0x2acd   :  { %v4158_v4 = vadd.f32 1.0, %v7337_v28 }
0x2acf   :  { %7338 = vrcp.f32 %v4158_v4 }
0x2ad0   :  { %7340 = vtanh.f32 %v4149_v38 }
0x2ad9   :  { %v7339_v54 = vpop.eup %7338 }
0x2ada   :  { %v4161_v32 = vmul.f32 %v7339_v54, %v11411_v50  ;;  %v7341_v61 = vpop.eup %7340 }
0x2adb   :  { %v4167_v13 = vrot.slane %v7341_v61, 4 }
0x2adc   :  { %v4163_v46 = vrot.slane %v4161_v32, 4 }
0x2add   :  { %v4169_v6 = vsub.f32 %v4072_v18, %v4167_v13 }
0x2ade   :  { %v4165_v31 = vmul.f32 %v7341_v61, %v4163_v46 }
0x2ae0   :  { %v4170_v43 = vmul.f32 2.0, %v4165_v31 }
0x2ae2   :  { %v4172_v47 = vrot.slane %v4170_v43, 4 }
0x2ae4   :  { %v11414_v42 = vadd.f32 %v4172_v47, %v4169_v6 }
0x2ae6   :  { %v4175_v29 = vpack.c.bf16 %v11414_v42, %v11414_v42 }
0x2ae8   :  { %6776 = vmatmul.mubr.bf16.vlgmr.msra.gmra.mrb[112].mxu1 %v4175_v29  ;;  %v12286_v29 = vld [vmem:[#allocation15_spill] sm:$0xff] }
0x2ae9   :  { %6800 = vmatpush3.bf16.msra.mxu1 %v10797_v45  ;;  %6815 = vmatprep.mubr.msk.bf16.mxu1 %vm7706_vm0, %v12051_v40 }
0x2aea   :  { %6801 = vmatprep.subr.bf16.mxu1 %v12051_v40 }
0x2aed   :  { %6802 = vmatpush3.bf16.msra.mxu1 %v10806_v51 }
0x2aee   :  { %6803 = vmatprep.subr.bf16.mxu1 %v12051_v40 }
0x2af1   :  { %6804 = vmatpush3.bf16.msra.mxu1 %v10813_v33 }
0x2af2   :  { %6805 = vmatprep.subr.bf16.mxu1 %v12051_v40 }
0x2af5   :  { %6806 = vmatpush3.bf16.msra.mxu1 %v10820_v56 }
0x2af6   :  { %6807 = vmatprep.subr.bf16.mxu1 %v12051_v40 }
0x2af9   :  { %6808 = vmatpush3.bf16.msra.mxu1 %v10827_v48 }
0x2afa   :  { %6809 = vmatprep.subr.bf16.mxu1 %v12051_v40 }
0x2afd   :  { %6810 = vmatpush3.bf16.msra.mxu1 %v10834_v7 }
0x2afe   :  { %6811 = vmatprep.subr.bf16.mxu1 %v12051_v40 }
0x2b01   :  { %6812 = vmatpush3.bf16.msra.mxu1 %v10841_v37  ;;  %v4222_v37 = vmul.f32 %v10901_v20, %v7339_v54  ;;  %v12276_v20 = vld [vmem:[#allocation34_spill] sm:$0xff] }
0x2b02   :  { %6813 = vmatprep.subr.bf16.mxu1 %v12051_v40 }
0x2b05   :  { %6814 = vmatpush3.bf16.msra.mxu1 %v10848_v34  ;;  %v4225_v34 = vmul.f32 %v10913_v41, %v7339_v54  ;;  %v12278_v41 = vld [vmem:[#allocation36_spill] sm:$0xff]  ;;  %v12285_v54 = vld [vmem:[#allocation41_spill] sm:$0xff] }
0x2b06   :  { %4377 = vmatprep.subr.bf16.mxu1 %v10894_v14 }
0x2bbb   :  { %v4210_v45 = vpop.f32.mrb[112].mxu1 }
0x2bbc   :  { %v4216_v51 = vadd.f32 %v11405_v62, %v4210_v45  ;;  %v6777_v33 = vpop.f32.mrb[113].mxu1  ;;  %v12287_v45 = vld [vmem:[#allocation18_spill] sm:$0xff] }
0x2bbd   :  { %v4213_v56 = vpop.f32.mrb[114].mxu1  ;;  %v12289_v33 = vld [vmem:[#allocation22_spill] sm:$0xff] }
0x2bbe   :  { %v4217_v48 = vsub.f32 0.0, %v4216_v51  ;;  %v6778_v18 = vpop.f32.mrb[115].mxu1  ;;  %v12288_v51 = vld [vmem:[#allocation19_spill] sm:$0xff] }
0x2bbf   :  { %v12290_v56 = vld [vmem:[#allocation23_spill] sm:$0xff]  ;;  %v12292_v18 = vld [vmem:[#allocation28_spill] sm:$0xff] }
0x2bc0   :  { %v4218_v52 = vmul.f32 1.442695, %v4217_v48  ;;  %v12291_v48 = vld [vmem:[#allocation26_spill] sm:$0xff] }
0x2bc2   :  { %7342 = vpow2.f32 %v4218_v52  ;;  %v12293_v52 = vld [vmem:[#allocation6_spill] sm:$0xff] }
0x2bcc   :  { %v7343_v7 = vpop.eup %7342 }
0x2bcd   :  { %v4220_v53 = vadd.f32 1.0, %v7343_v7  ;;  %v12294_v7 = vld [vmem:[#allocation5_spill] sm:$0xff] }
0x2bcf   :  { %7344 = vrcp.f32 %v4220_v53  ;;  %v12295_v53 = vld [vmem:[#allocation7_spill] sm:$0xff] }
0x2bd9   :  { %v7345_v38 = vpop.eup %7344 }
0x2bda   :  { %v4223_v3 = vmul.f32 %v10907_v63, %v7345_v38  ;;  %v4226_v14 = vmul.f32 %v10919_v1, %v7345_v38  ;;  %v12277_v63 = vld [vmem:[#allocation35_spill] sm:$0xff]  ;;  %v12279_v1 = vld [vmem:[#allocation37_spill] sm:$0xff]  ;;  %v12296_v38 = vld [vmem:[#allocation8_spill] sm:$0xff] }
0x2bdc   :  { %v4224_v23 = vadd.f32 %v4223_v3, %v4222_v37  ;;  %v4227_v35 = vadd.f32 %v4226_v14, %v4225_v34  ;;  %v12297_v37 = vld [vmem:[#allocation9_spill] sm:$0xff]  ;;  %v12298_v3 = vld [vmem:[#allocation10_spill] sm:$0xff]  ;;  %v12299_v34 = vld [vmem:[#allocation11_spill] sm:$0xff] }
0x2bdd   :  { %v12300_v14 = vld [vmem:[#allocation12_spill] sm:$0xff] }
0x2bde   :  { %v4229_v36 = vrot.slane %v4227_v35, 4  ;;  %v5590_v35 = vld [vmem:[%s11857_s0 + $0xdc] sm:$0xf] }
0x2be0   :  { %v4231_v28 = vsel %vm431_vm1, %v4224_v23, %v4229_v36  ;;  %v5589_v23 = vld [vmem:[%s11857_s0 + $0xbc] sm:$0xf] }
0x2be1   :  { %v4232_v4 = vpack.c.bf16 %v4231_v28, %v4231_v28 }
0x2be3   :  { %6796 = vmatmul.mubr.bf16.vlgmr.msra.gmra.mrb[116].mxu0 %v4232_v4 }
0x2be4   :  { %4337 = vmatpush1.bf16.msra.mxu0 %v10926_v44  ;;  %4368 = vmatprep.mubr.bf16.mxu0 %v12060_v19  ;;  %v12280_v44 = vld [vmem:[#allocation42_spill] sm:$0xff] }
0x2be5   :  { %4338 = vmatprep.subr.bf16.mxu0 %v10933_v57  ;;  %v12281_v57 = vld [vmem:[#allocation43_spill] sm:$0xff] }
0x2be8   :  { %4339 = vmatpush1.bf16.msra.mxu0 %v10939_v10  ;;  %v12282_v10 = vld [vmem:[#allocation44_spill] sm:$0xff] }
0x2be9   :  { %4340 = vmatprep.subr.bf16.mxu0 %v10945_v30  ;;  %v12283_v30 = vld [vmem:[#allocation45_spill] sm:$0xff] }
0x2bec   :  { %4341 = vmatpush1.bf16.msra.mxu0 %v10951_v17 }
0x2bed   :  { %4342 = vmatprep.subr.bf16.mxu0 %v10957_v12  ;;  %v12284_v12 = vld [vmem:[#allocation40_spill] sm:$0xff] }
0x2bf0   :  { %4343 = vmatpush1.bf16.msra.mxu0 %v10963_v15 }
0x2bf1   :  { %4344 = vmatprep.subr.bf16.mxu0 %v12276_v20 }
0x2bf4   :  { %4345 = vmatpush1.bf16.msra.mxu0 %v12277_v63 }
0x2bf5   :  { %4346 = vmatprep.subr.bf16.mxu0 %v12278_v41 }
0x2bf8   :  { %4347 = vmatpush1.bf16.msra.mxu0 %v12279_v1 }
0x2bf9   :  { %4348 = vmatprep.subr.bf16.mxu0 %v12280_v44 }
0x2bfc   :  { %4349 = vmatpush1.bf16.msra.mxu0 %v12281_v57 }
0x2bfd   :  { %4350 = vmatprep.subr.bf16.mxu0 %v12282_v10 }
0x2c00   :  { %4351 = vmatpush1.bf16.msra.mxu0 %v12283_v30 }
0x2c01   :  { %6819 = vmatprep.subr.bf16.mxu0 %v12051_v40 }
0x2cb6   :  { %v4267_v17 = vpop.f32.mrb[116].mxu0 }
0x2cb7   :  { %v4273_v15 = vadd.f32 %v12284_v12, %v4267_v17  ;;  %v4275_v32 = vadd.f32 %v12285_v54, %v4267_v17  ;;  %v6797_v61 = vpop.f32.mrb[117].mxu0 }
0x2cb8   :  { %v4270_v46 = vpop.f32.mrb[118].mxu0  ;;  %v5587_v61 = vld [vmem:[%s11857_s0 + $0x7c] sm:$0xf] }
0x2cb9   :  { %7346 = vtanh.f32 %v4273_v15  ;;  %v6798_v31 = vpop.f32.mrb[119].mxu0 }
0x2cba   :  { %7348 = vtanh.f32 %v4275_v32  ;;  %v7678_v32 = vld [vmem:[%s11859_s2 + $0x70] ss:$8 sps:$4 sm:$0xff]   ;;  %v5588_v31 = vld [vmem:[%s11857_s0 + $0x9c] sm:$0xf] }
0x2cc3   :  { %v7347_v13 = vpop.eup %7346 }
0x2cc4   :  { %v7349_v43 = vpop.eup %7348 }
0x2cc5   :  { %v4277_v6 = vsel %vm431_vm1, %v7347_v13, %v7349_v43  ;;  %v12302_v43 = vld [vmem:[#allocation16_spill] sm:$0xff] }
0x2cc6   :  { %v4278_v47 = vpack.c.bf16 %v4277_v6, %v4277_v6 }
0x2cc8   :  { %6816 = vmatmul.mubr.bf16.vlgmr.msra.gmra.mrb[116].mxu1 %v4278_v47  ;;  %v5585_v47 = vld [vmem:[%s11857_s0 + $0x3c] sm:$0xf] }
0x2cc9   :  { %4378 = vmatpush1.bf16.msra.mxu1 %v12286_v29  ;;  %4409 = vmatprep.mubr.bf16.mxu1 %v12060_v19 }
0x2cca   :  { %4379 = vmatprep.subr.bf16.mxu1 %v12287_v45  ;;  %v12303_v45 = vld [vmem:[#allocation17_spill] sm:$0xff] }
0x2ccd   :  { %4380 = vmatpush1.bf16.msra.mxu1 %v12288_v51 }
0x2cce   :  { %4381 = vmatprep.subr.bf16.mxu1 %v12289_v33 }
0x2cd1   :  { %4382 = vmatpush1.bf16.msra.mxu1 %v12290_v56 }
0x2cd2   :  { %4383 = vmatprep.subr.bf16.mxu1 %v12291_v48 }
0x2cd5   :  { %4384 = vmatpush1.bf16.msra.mxu1 %v12292_v18 }
0x2cd6   :  { %4385 = vmatprep.subr.bf16.mxu1 %v12293_v52  ;;  %v12304_v52 = vld [vmem:[#allocation20_spill] sm:$0xff] }
0x2cd9   :  { %4386 = vmatpush1.bf16.msra.mxu1 %v12294_v7 }
0x2cda   :  { %4387 = vmatprep.subr.bf16.mxu1 %v12295_v53  ;;  %v12305_v53 = vld [vmem:[#allocation21_spill] sm:$0xff] }
0x2cdd   :  { %4388 = vmatpush1.bf16.msra.mxu1 %v12296_v38 }
0x2cde   :  { %4389 = vmatprep.subr.bf16.mxu1 %v12297_v37 }
0x2ce1   :  { %4390 = vmatpush1.bf16.msra.mxu1 %v12298_v3 }
0x2ce2   :  { %4391 = vmatprep.subr.bf16.mxu1 %v12299_v34  ;;  %v12306_v34 = vld [vmem:[#allocation24_spill] sm:$0xff] }
0x2ce5   :  { %4392 = vmatpush1.bf16.msra.mxu1 %v12300_v14 }
0x2ce6   :  { %6839 = vmatprep.subr.bf16.mxu1 %v12051_v40 }
0x2d9b   :  { %v11485_v36 = vpop.f32.mrb[116].mxu1 }
0x2d9c   :  { %v4319_v28 = vmul.f32 %v5589_v23, %v11485_v36  ;;  %v6817_v4 = vpop.f32.mrb[117].mxu1  ;;  %v12307_v23 = vld [vmem:[#allocation25_spill] sm:$0xff] }
0x2d9d   :  { %v4316_v20 = vpop.f32.mrb[118].mxu1 }
0x2d9e   :  { %v4320_v63 = vadd.f32 %v5590_v35, %v4319_v28  ;;  %v6818_v41 = vpop.f32.mrb[119].mxu1 }
0x2da0   :  { %v4326_v1 = vmul.f32 %v11132_v21, %v4320_v63  ;;  %v7672_v21 = vld [vmem:[%s11859_s2 + $0x10] ss:$8 sps:$4 sm:$0xff]  }
0x2da2   :  { %v4327_v44 = vadd.f32 %v11138_v16, %v4326_v1  ;;  %v7671_v16 = vld [vmem:[%s11859_s2] ss:$8 sps:$4 sm:$0xff]  }
0x2da4   :  { %v4329_v57 = vmin.f32 %v4327_v44, 0.0  ;;  %vm4328_vm9 = vcmp.gt.f32.partialorder %v4327_v44, 0.0 }
0x2da6   :  { %v4330_v10 = vmul.f32 1.442695, %v4329_v57 }
0x2da8   :  { %7350 = vpow2.f32 %v4330_v10 }
0x2db2   :  { %v7351_v30 = vpop.eup %7350 }
0x2db3   :  { %v5591_v17 = vadd.f32 -1.0, %v7351_v30 }
0x2db5   :  { %v11490_v12 = vsel %vm4328_vm9, %v4327_v44, %v5591_v17 }
0x2db6   :  { %v4334_v15 = vadd.f32 %v11490_v12, %v11380_v27 }
0x2db8   :  { %v4335_v54 = vpack.c.bf16 %v4334_v15, %v4334_v15 }
0x2dba   :  { %4369 = vmatmul.mubr.bf16.vlgmr.msra.gmra.mrb[120].mxu0 %v4335_v54  ;;  %4410 = vmatmul.mubr.bf16.vlgmr.msra.gmra.mrb[120].mxu1 %v4335_v54 }
0x2dbb   :  { %6820 = vmatpush3.bf16.msra.mxu0 %v11148_v8  ;;  %6835 = vmatprep.mubr.msk.bf16.mxu0 %vm7706_vm0, %v12051_v40  ;;  %v7673_v8 = vld [vmem:[%s11859_s2 + $0x20] ss:$8 sps:$4 sm:$0xff]  }
0x2dbc   :  { %6821 = vmatprep.subr.bf16.mxu0 %v12051_v40  ;;  %6840 = vmatpush3.bf16.msra.mxu1 %v7671_v16 }
0x2dbd   :  { %6841 = vmatprep.subr.bf16.mxu1 %v12051_v40  ;;  %6855 = vmatprep.mubr.msk.bf16.mxu1 %vm7706_vm0, %v12051_v40 }
0x2dbf   :  { %6822 = vmatpush3.bf16.msra.mxu0 %v11161_v55  ;;  %v7674_v55 = vld [vmem:[%s11859_s2 + $0x30] ss:$8 sps:$4 sm:$0xff]  }
0x2dc0   :  { %6823 = vmatprep.subr.bf16.mxu0 %v12051_v40  ;;  %6842 = vmatpush3.bf16.msra.mxu1 %v7672_v21 }
0x2dc1   :  { %6843 = vmatprep.subr.bf16.mxu1 %v12051_v40 }
0x2dc3   :  { %6824 = vmatpush3.bf16.msra.mxu0 %v11170_v24  ;;  %v7675_v24 = vld [vmem:[%s11859_s2 + $0x40] ss:$8 sps:$4 sm:$0xff]  }
0x2dc4   :  { %6825 = vmatprep.subr.bf16.mxu0 %v12051_v40  ;;  %6844 = vmatpush3.bf16.msra.mxu1 %v7673_v8 }
0x2dc5   :  { %6845 = vmatprep.subr.bf16.mxu1 %v12051_v40 }
0x2dc7   :  { %6826 = vmatpush3.bf16.msra.mxu0 %v11179_v59  ;;  %v7676_v59 = vld [vmem:[%s11859_s2 + $0x50] ss:$8 sps:$4 sm:$0xff]  }
0x2dc8   :  { %6827 = vmatprep.subr.bf16.mxu0 %v12051_v40  ;;  %6846 = vmatpush3.bf16.msra.mxu1 %v7674_v55 }
0x2dc9   :  { %6847 = vmatprep.subr.bf16.mxu1 %v12051_v40 }
0x2dcb   :  { %6828 = vmatpush3.bf16.msra.mxu0 %v11188_v26  ;;  %v7677_v26 = vld [vmem:[%s11859_s2 + $0x60] ss:$8 sps:$4 sm:$0xff]  }
0x2dcc   :  { %6829 = vmatprep.subr.bf16.mxu0 %v12051_v40  ;;  %6848 = vmatpush3.bf16.msra.mxu1 %v7675_v24 }
0x2dcd   :  { %6849 = vmatprep.subr.bf16.mxu1 %v12051_v40 }
0x2dcf   :  { %6830 = vmatpush3.bf16.msra.mxu0 %v11197_v5  ;;  %v12301_v5 = vld [vmem:[#allocation13_spill] sm:$0xff] }
0x2dd0   :  { %6831 = vmatprep.subr.bf16.mxu0 %v12051_v40  ;;  %6850 = vmatpush3.bf16.msra.mxu1 %v7676_v59 }
0x2dd1   :  { %6851 = vmatprep.subr.bf16.mxu1 %v12051_v40 }
0x2dd3   :  { %6832 = vmatpush3.bf16.msra.mxu0 %v11206_v22  ;;  %v4322_v22 = vrot.slane %v11485_v36, 4 }
0x2dd4   :  { %6833 = vmatprep.subr.bf16.mxu0 %v12051_v40  ;;  %6852 = vmatpush3.bf16.msra.mxu1 %v7677_v26  ;;  %v6990_v26 = vld [vmem:[%s11862_s5] sm:$0xff]  }
0x2dd5   :  { %6853 = vmatprep.subr.bf16.mxu1 %v12051_v40  ;;  %v4324_v46 = vmul.f32 %v5587_v61, %v4322_v22  ;;  %v6994_v22 = vld [vmem:[%s11862_s5 + $0x20] sm:$0xff]   ;;  %v6995_v61 = vld [vmem:[%s11862_s5 + $0x28] sm:$0xff]  }
0x2dd7   :  { %6834 = vmatpush3.bf16.msra.mxu0 %v12301_v5  ;;  %v4325_v13 = vadd.f32 %v5588_v31, %v4324_v46  ;;  %v6991_v5 = vld [vmem:[%s11862_s5 + $0x8] sm:$0xff]   ;;  %v6996_v46 = vld [vmem:[%s11862_s5 + $0x30] sm:$0xff]   ;;  %v6997_v31 = vld [vmem:[%s11862_s5 + $0x38] sm:$0xff]  }
0x2dd8   :  { %6854 = vmatpush3.bf16.msra.mxu1 %v7678_v32  ;;  %6859 = vmatprep.subr.bf16.mxu0 %v12051_v40  ;;  %v6993_v32 = vld [vmem:[%s11862_s5 + $0x18] sm:$0xff]  }
0x2dd9   :  { %v4462_v6 = vmul.f32 %v12302_v43, %v4325_v13  ;;  %v4458_v7 = vmul.f32 %v12304_v52, %v4325_v13  ;;  %v4528_v38 = vmul.f32 %v12305_v53, %v4325_v13  ;;  %v4517_v14 = vmul.f32 %v12306_v34, %v4325_v13 }
0x2dda   :  { %6836 = vmatmul.mubr.bf16.vlgmr.msra.gmra.mrb[124].mxu0 %v4335_v54  ;;  %v4553_v35 = vmul.f32 %v12307_v23, %v4325_v13  ;;  %v4543_v21 = vmul.f32 %v11312_v25, %v4325_v13  ;;  %v6992_v25 = vld [vmem:[%s11862_s5 + $0x10] sm:$0xff]   ;;  %v4530_v13 = vmul.f32 %v11328_v58, %v11414_v42 }
0x2ddb   :  { %6875 = vmatprep.mubr.msk.bf16.mxu0 %vm7706_vm0, %v12051_v40  ;;  %v4463_v29 = vadd.f32 %v5585_v47, %v4462_v6  ;;  %6860 = vmatpush3.bf16.msra.mxu0 %v6990_v26  ;;  %v12308_v26 = vld [vmem:[#allocation14_spill] sm:$0xff]  ;;  %vm4751_vm0 = vcmask 162816  }
0x2ddc   :  { %6861 = vmatprep.subr.bf16.mxu0 %v12051_v40 }
0x2ddd   :  { %v4464_v51 = vadd.f32 %v12303_v45, %v4463_v29 }
0x2ddf   :  { %v4465_v33 = vsub.f32 0.0, %v4464_v51  ;;  %6862 = vmatpush3.bf16.msra.mxu0 %v6991_v5  ;;  %v12309_v5 = vld [vmem:[#allocation33_spill] sm:$0xff] }
0x2de0   :  { %6863 = vmatprep.subr.bf16.mxu0 %v12051_v40 }
0x2de1   :  { %v4466_v56 = vmul.f32 1.442695, %v4465_v33 }
0x2de3   :  { %7352 = vpow2.f32 %v4466_v56  ;;  %6864 = vmatpush3.bf16.msra.mxu0 %v6992_v25  ;;  %v12310_v25 = vld [vmem:[#allocation38_spill] sm:$0xff] }
0x2de4   :  { %6865 = vmatprep.subr.bf16.mxu0 %v12051_v40 }
0x2de7   :  { %6866 = vmatpush3.bf16.msra.mxu0 %v6993_v32 }
0x2de8   :  { %6867 = vmatprep.subr.bf16.mxu0 %v12051_v40 }
0x2deb   :  { %6868 = vmatpush3.bf16.msra.mxu0 %v6994_v22  ;;  %v12311_v22 = vld [vmem:[#allocation39_spill] sm:$0xff] }
0x2dec   :  { %6869 = vmatprep.subr.bf16.mxu0 %v12051_v40 }
0x2ded   :  { %v7353_v48 = vpop.eup %7352 }
0x2dee   :  { %v4468_v18 = vadd.f32 1.0, %v7353_v48 }
0x2def   :  { %6870 = vmatpush3.bf16.msra.mxu0 %v6995_v61 }
0x2df0   :  { %7354 = vrcp.f32 %v4468_v18  ;;  %6871 = vmatprep.subr.bf16.mxu0 %v12051_v40 }
0x2df3   :  { %6872 = vmatpush3.bf16.msra.mxu0 %v6996_v46 }
0x2df4   :  { %6873 = vmatprep.subr.bf16.mxu0 %v12051_v40 }
0x2df7   :  { %6874 = vmatpush3.bf16.msra.mxu0 %v6997_v31 }
0x2dfa   :  { %v11565_v57 = vpop.eup %7354 }
0x2e8d   :  { %v4370_v37 = vpop.f32.mrb[120].mxu0  ;;  %v4411_v3 = vpop.f32.mrb[120].mxu1 }
0x2e8e   :  { %v4459_v36 = vadd.f32 %v4458_v7, %v4370_v37  ;;  %v4529_v28 = vadd.f32 %v4528_v38, %v4411_v3  ;;  %v4372_v4 = vpop.f32.mrb[121].mxu0  ;;  %v4413_v20 = vpop.f32.mrb[121].mxu1  ;;  %v4519_v37 = vmul.f32 %v11343_v39, %v11414_v42 }
0x2e8f   :  { %v11563_v63 = vadd.f32 %v4517_v14, %v4372_v4  ;;  %v4554_v41 = vadd.f32 %v4553_v35, %v4413_v20  ;;  %v4374_v1 = vpop.f32.mrb[122].mxu0  ;;  %v4415_v44 = vpop.f32.mrb[122].mxu1 }
0x2e90   :  { %v4460_v10 = vadd.f32 %v11291_v0, %v4459_v36  ;;  %v4375_v30 = vpop.f32.mrb[123].mxu0  ;;  %v4416_v17 = vpop.f32.mrb[123].mxu1  ;;  %v4531_v43 = vadd.f32 %v4530_v13, %v4529_v28 }
0x2e91   :  { %v11569_v15 = vadd.f32 %v11565_v57, %v4554_v41 }
0x2e92   :  { %7356 = vtanh.f32 %v4460_v10  ;;  %v4532_v6 = vadd.f32 %v11335_v49, %v4531_v43 }
0x2e9c   :  { %v11571_v54 = vpop.eup %7356 }
0x2e9d   :  { %v4470_v16 = vpack.c.bf16 %v11571_v54, %v11571_v54  ;;  %v4533_v47 = vadd.f32 %v11571_v54, %v4532_v6 }
0x2e9f   :  { %6856 = vmatmul.mubr.bf16.vlgmr.msra.gmra.mrb[124].mxu1 %v4470_v16  ;;  %v4534_v29 = vsub.f32 0.0, %v4533_v47 }
0x2ea0   :  { %4895 = vmatprep.mubr.bf16.mxu1 %v12060_v19 }
0x2ea1   :  { %v4535_v45 = vmul.f32 1.442695, %v4534_v29  ;;  %v12312_v29 = vld [vmem:[#allocation46_spill] sm:$0xff] }
0x2ea3   :  { %7358 = vpow2.f32 %v4535_v45 }
0x2ead   :  { %v4452_v8 = vpop.f32.mrb[124].mxu0  ;;  %v7359_v7 = vpop.eup %7358 }
0x2eae   :  { %v11577_v55 = vadd.f32 %v4543_v21, %v4452_v8  ;;  %v6837_v0 = vpop.f32.mrb[125].mxu0  ;;  %v4537_v58 = vadd.f32 1.0, %v7359_v7  ;;  %v4556_v21 = vadd.f32 %v11569_v15, %v11490_v12 }
0x2eaf   :  { %v4455_v24 = vpop.f32.mrb[126].mxu0 }
0x2eb0   :  { %v6838_v59 = vpop.f32.mrb[127].mxu0  ;;  %v4545_v39 = vadd.f32 %v11359_v9, %v11577_v55 }
0x2f72   :  { %v4505_v51 = vpop.f32.mrb[124].mxu1 }
0x2f73   :  { %v4511_v33 = vadd.f32 %v11405_v62, %v4505_v51  ;;  %v6857_v56 = vpop.f32.mrb[125].mxu1  ;;  %v4520_v62 = vadd.f32 %v4519_v37, %v11563_v63 }
0x2f74   :  { %v4508_v48 = vpop.f32.mrb[126].mxu1 }
0x2f75   :  { %v4512_v18 = vsub.f32 0.0, %v4511_v33  ;;  %v6858_v52 = vpop.f32.mrb[127].mxu1  ;;  %v12313_v33 = vld [vmem:[#allocation32_spill] sm:$0xff] }
0x2f77   :  { %v4513_v40 = vmul.f32 1.442695, %v4512_v18 }
0x2f79   :  { %7360 = vpow2.f32 %v4513_v40 }
0x2f7a   :  { %7362 = vrcp.f32 %v4537_v58 }
0x2f83   :  { %v7361_v53 = vpop.eup %7360 }
0x2f84   :  { %v4515_v38 = vadd.f32 1.0, %v7361_v53  ;;  %v7363_v49 = vpop.eup %7362 }
0x2f85   :  { %v4540_v3 = vsub.f32 1.0, %v7363_v49  ;;  %v4539_v23 = vmul.f32 %v7363_v49, %v11411_v50 }
0x2f86   :  { %7364 = vrcp.f32 %v4515_v38 }
0x2f90   :  { %v7365_v34 = vpop.eup %7364 }
0x2f91   :  { %v4521_v14 = vmul.f32 %v11351_v11, %v7365_v34  ;;  %v4541_v35 = vmul.f32 %v7365_v34, %v4540_v3 }
0x2f93   :  { %v4522_v36 = vadd.f32 %v4521_v14, %v4520_v62  ;;  %v4542_v28 = vadd.f32 %v4541_v35, %v4539_v23 }
0x2f95   :  { %v4523_v4 = vsub.f32 0.0, %v4522_v36  ;;  %v4547_v20 = vadd.f32 %v11565_v57, %v4542_v28 }
0x2f97   :  { %v4524_v41 = vmul.f32 1.442695, %v4523_v4  ;;  %v4548_v30 = vmul.f32 %v4547_v20, %v11414_v42  ;;  %v5535_v42 = vld [vmem:[%s11858_s1 + $0x18] ss:$0 sm:$0xff] }
0x2f98   :  { %v1689_v15 = vmul.f32 %v5535_v42, %v12308_v26  ;;  %v2169_v32 = vmul.f32 %v5535_v42, %v12310_v25  ;;  %v2649_v61 = vmul.f32 %v5535_v42, %v12311_v22  ;;  %v1209_v45 = vmul.f32 %v5535_v42, %v12312_v29 }
0x2f99   :  { %7366 = vpow2.f32 %v4524_v41  ;;  %v3129_v56 = vmul.f32 %v5535_v42, %v12313_v33 }
0x2f9a   :  { %v1691_v46 = vrot.slane %v1689_v15, 2  ;;  %v2171_v43 = vrot.slane %v2169_v32, 2  ;;  %v2651_v51 = vrot.slane %v2649_v61, 2  ;;  %v1211_v3 = vrot.slane %v1209_v45, 2 }
0x2f9b   :  { %v3131_v62 = vrot.slane %v3129_v56, 2 }
0x2fa3   :  { %v7367_v1 = vpop.eup %7366 }
0x2fa4   :  { %v4526_v44 = vadd.f32 1.0, %v7367_v1 }
0x2fa6   :  { %7368 = vrcp.f32 %v4526_v44 }
0x2fa7   :  { %7370 = vtanh.f32 %v4545_v39 }
0x2fb0   :  { %v7369_v63 = vpop.eup %7368 }
0x2fb1   :  { %v4549_v11 = vmul.f32 %v7369_v63, %v11571_v54  ;;  %v7371_v10 = vpop.eup %7370 }
0x2fb3   :  { %v4550_v50 = vmul.f32 %v11565_v57, %v4549_v11 }
0x2fb5   :  { %v4551_v17 = vmul.f32 %v7371_v10, %v4550_v50 }
0x2fb7   :  { %v4552_v16 = vadd.f32 %v4551_v17, %v4548_v30 }
0x2fb9   :  { %v4557_v8 = vmul.f32 %v11370_v60, %v4552_v16  ;;  %v4565_v54 = vadd.f32 %v4552_v16, %v11490_v12  ;;  %v3609_v60 = vmul.f32 %v5535_v42, %v12309_v5  ;;  %v5534_v12 = vld [vmem:[%s11858_s1 + $0x17] ss:$0 sm:$0xff]  ;;  %s7716_s1 = smov 116  }
0x2fba   :  { %v1688_v13 = vmul.f32 %v5534_v12, %v12308_v26  ;;  %v3608_v48 = vmul.f32 %v5534_v12, %v12309_v5  ;;  %v2168_v40 = vmul.f32 %v5534_v12, %v12310_v25  ;;  %v4088_v7 = vmul.f32 %v5534_v12, %v11380_v27 }
0x2fbb   :  { %v4558_v0 = vadd.f32 %v4557_v8, %v4556_v21  ;;  %v3611_v31 = vrot.slane %v3609_v60, 2  ;;  %v2648_v58 = vmul.f32 %v5534_v12, %v12311_v22  ;;  %v1202_v23 = vmul.f32 %v5534_v12, %v12312_v29 }
0x2fbc   :  { %v1693_v52 = vadd.f32 %v1691_v46, %v1688_v13  ;;  %v2173_v49 = vadd.f32 %v2171_v43, %v2168_v40  ;;  %v3128_v36 = vmul.f32 %v5534_v12, %v12313_v33 }
0x2fbd   :  { %v4559_v9 = vadd.f32 %v11376_v2, %v4558_v0  ;;  %v4089_v2 = vmul.f32 %v5535_v42, %v11380_v27  ;;  %v3613_v53 = vadd.f32 %v3611_v31, %v3608_v48  ;;  %v2653_v34 = vadd.f32 %v2651_v51, %v2648_v58  ;;  %v5592_v0 = vld [vmem:[%s11863_s6] ss:$0 sm:$0xff]  ;;  %s7710_s6 = smov 16  }
0x2fbe   :  { %v4575_v35 = vrot.slane %v1693_v52, 6  ;;  %v4578_v41 = vrot.slane %v2173_v49, 4  ;;  %v1213_v1 = vadd.f32 %v1211_v3, %v1202_v23  ;;  %v3133_v44 = vadd.f32 %v3131_v62, %v3128_v36  ;;  %v7003_v49 = vld [vmem:[%s11866_s9 + $0x24] ss:$16 sps:$4 sm:$0xff]   ;;  %v7006_v3 = vld [vmem:[%s11866_s9 + $0xc] ss:$16 sps:$4 sm:$0xff]  }
0x2fbf   :  { %v4560_v55 = vsub.f32 0.0, %v4559_v9  ;;  %v4091_v6 = vrot.slane %v4089_v2, 2  ;;  %v4584_v20 = vrot.slane %v3613_v53, 6  ;;  %v4581_v63 = vrot.slane %v2653_v34, 2  ;;  %v7000_v53 = vld [vmem:[%s11866_s9 + $0x4] ss:$16 sps:$4 sm:$0xff]  }
0x2fc0   :  { %v4593_v50 = vsel %vm4592_vm10, %v1213_v1, %v4575_v35  ;;  %4863 = vmatprep.subr.bf16.mxu1 %v7000_v53  ;;  %v5601_v35 = vld [vmem:[%s11864_s7] ss:$0 sm:$0xff]  ;;  %v7009_v1 = vld [vmem:[%s11866_s9 + $0x2c] ss:$16 sps:$4 sm:$0xff]  }
0x2fc1   :  { %v4561_v24 = vmul.f32 1.442695, %v4560_v55  ;;  %v4093_v37 = vadd.f32 %v4091_v6, %v4088_v7  ;;  %v4597_v10 = vsel %vm4592_vm10, %v3133_v44, %v4584_v20  ;;  %v4594_v30 = vsel %vm431_vm1, %v4593_v50, %v4578_v41  ;;  %v7004_v41 = vld [vmem:[%s11866_s9 + $0x8] ss:$16 sps:$4 sm:$0xff]  }
0x2fc2   :  { %v4596_v16 = vsel %vm4595_vm11, %v4594_v30, %v4581_v63  ;;  %v7007_v44 = vld [vmem:[%s11866_s9 + $0x28] ss:$16 sps:$4 sm:$0xff]  }
0x2fc3   :  { %7372 = vpow2.f32 %v4561_v24  ;;  %v4587_v27 = vrot.slane %v4093_v37, 4  ;;  %v7001_v37 = vld [vmem:[%s11866_s9 + $0x20] ss:$16 sps:$4 sm:$0xff]  }
0x2fc4   :  { %7374 = vtanh.f32 %v4565_v54 }
0x2fc5   :  { %v4598_v17 = vsel %vm431_vm1, %v4597_v10, %v4587_v27  ;;  %vm4753_vm1 = vcmask 195584   ;;  %v4797_v10 = vld [vmem:[%s11867_s10] sm:$0xf] }
0x2fcd   :  { %v7373_v59 = vpop.eup %7372 }
0x2fce   :  { %v4563_v57 = vadd.f32 1.0, %v7373_v59  ;;  %v7375_v47 = vpop.eup %7374 }
0x2fd0   :  { %7376 = vrcp.f32 %v4563_v57 }
0x2fda   :  { %v7377_v18 = vpop.eup %7376 }
0x2fdb   :  { %v4567_v38 = vmul.f32 %v7377_v18, %v7375_v47 }
0x2fdd   :  { %v4569_v14 = vmul.f32 %v5535_v42, %v4567_v38  ;;  %v4568_v28 = vmul.f32 %v5534_v12, %v4567_v38  ;;  %v6998_v38 = vld [vmem:[%s11866_s9] ss:$16 sps:$4 sm:$0xff]  }
0x2fde   :  { %4864 = vmatpush1.bf16.msra.mxu1 %v6998_v38 }
0x2fdf   :  { %v4571_v4 = vrot.slane %v4569_v14, 2  ;;  %4865 = vmatprep.subr.bf16.mxu1 %v7003_v49 }
0x2fe1   :  { %v4573_v39 = vadd.f32 %v4571_v4, %v4568_v28  ;;  %v5602_v28 = vld [vmem:[%s11865_s8] ss:$0 sm:$0xff] }
0x2fe2   :  { %4866 = vmatpush1.bf16.msra.mxu1 %v7001_v37 }
0x2fe3   :  { %v4590_v11 = vrot.slane %v4573_v39, 2  ;;  %4904 = vmatprep.subr.bf16.mxu1 %v7006_v3  ;;  %v4799_v39 = vlaneseq }
0x2fe5   :  { %v4599_v21 = vsel %vm4595_vm11, %v4598_v17, %v4590_v11  ;;  %v4800_v63 = vshrl.u32 %v4799_v39, 7  ;;  %v7027_v39 = vld [vmem:[%s11870_s13 + $0xe0] sm:$0xff]  }
0x2fe6   :  { %v4616_v8 = vpack.c.bf16 %v4599_v21, %v4596_v16 }
0x2fe7   :  { %v11689_v11 = vsub.s32 0, %v4800_v63  ;;  %v11691_v50 = vsub.s32 1, %v4800_v63 }
0x2fe8   :  { %6876 = vmatmul.mubr.bf16.vlgmr.msra.gmra.mrb[128].mxu0 %v4616_v8 }
0x2fe9   :  { %v4802_v30 = vrot.slane %v4797_v10, %v11689_v11  ;;  %v4806_v17 = vrot.slane %v4797_v10, %v11691_v50 }
0x30bb   :  { %v4705_v9 = vpop.f32.mrb[128].mxu0 }
0x30bc   :  { %v4706_v55 = vadd.f32 %v5592_v0, %v4705_v9  ;;  %v6877_v24 = vpop.f32.mrb[129].mxu0 }
0x30bd   :  { %v4708_v54 = vpop.f32.mrb[130].mxu0 }
0x30be   :  { %7378 = vtanh.f32 %v4706_v55  ;;  %v6878_v59 = vpop.f32.mrb[131].mxu0  ;;  %v4709_v57 = vadd.f32 %v5592_v0, %v4708_v54  ;;  %v11700_v0 = vsub.s32 3, %v4800_v63 }
0x30c0   :  { %7380 = vtanh.f32 %v4709_v57  ;;  %v4814_v59 = vrot.slane %v4797_v10, %v11700_v0 }
0x30c8   :  { %v7379_v42 = vpop.eup %7378 }
0x30c9   :  { %v4723_v26 = vrot.slane %v7379_v42, 6  ;;  %v4715_v15 = vrot.slane %v7379_v42, 2  ;;  %v4719_v5 = vrot.slane %v7379_v42, 4 }
0x30ca   :  { %v7381_v60 = vpop.eup %7380 }
0x30cb   :  { %4724 = vrot.lane.b32.xlu1 %v4723_v26, %s7707_s20  ;;  %4716 = vrot.lane.b32.xlu0 %v4715_v15, %s7708_s21  ;;  %v4735_v25 = vrot.slane %v7381_v60, 4  ;;  %v4731_v32 = vrot.slane %v7381_v60, 2  ;;  %v4739_v2 = vrot.slane %v7381_v60, 6 }
0x30cf   :  { %4720 = vrot.lane.b32.xlu0 %v4719_v5, %s7709_s22  ;;  %4728 = vrot.lane.b32.xlu1 %v7381_v60, %s7710_s6 }
0x30d3   :  { %4736 = vrot.lane.b32.xlu1 %v4735_v25, %s7711_s3  ;;  %4732 = vrot.lane.b32.xlu0 %v4731_v32, %s7712_s23 }
0x30d7   :  { %4740 = vrot.lane.b32.xlu0 %v4739_v2, %s7713_s24 }
0x313d   :  { %v4725_v22 = vpop.permute.xlu1 %4724  ;;  %v4717_v61 = vpop.permute.xlu0 %4716 }
0x313e   :  { %v4744_v46 = vsel %vm4743_vm12, %v7379_v42, %v4717_v61 }
0x3141   :  { %v4721_v12 = vpop.permute.xlu0 %4720  ;;  %v4729_v31 = vpop.permute.xlu1 %4728 }
0x3142   :  { %v4746_v13 = vsel %vm4745_vm13, %v4744_v46, %v4721_v12 }
0x3143   :  { %v4748_v43 = vsel %vm4747_vm14, %v4746_v13, %v4725_v22  ;;  %v7011_v13 = vld [vmem:[%s11870_s13 + $0xc0] sm:$0xff]  }
0x3144   :  { %v4750_v6 = vsel %vm4749_vm15, %v4748_v43, %v4729_v31  ;;  %v7010_v31 = vld [vmem:[%s11870_s13 + $0x40] sm:$0xff]   ;;  %6037 = vmatprep.subr.bf16.mxu0 %v7011_v13 }
0x3145   :  { %v4733_v47 = vpop.permute.xlu0 %4732  ;;  %v4737_v29 = vpop.permute.xlu1 %4736  ;;  %v7012_v43 = vld [vmem:[%s11870_s13] sm:$0xff]  }
0x3146   :  { %v4752_v45 = vsel %vm4751_vm0, %v4750_v6, %v4733_v47  ;;  %v7013_v6 = vld [vmem:[%s11870_s13 + $0x80] sm:$0xff]   ;;  %v7014_v47 = vld [vmem:[%s11870_s13 + $0x48] sm:$0xff]  }
0x3147   :  { %v4754_v33 = vsel %vm4753_vm1, %v4752_v45, %v4737_v29  ;;  %v7015_v29 = vld [vmem:[%s11870_s13 + $0xc8] sm:$0xff]   ;;  %6038 = vmatpush3.bf16.msra.mxu0 %v7013_v6 }
0x3148   :  { %v7016_v45 = vld [vmem:[%s11870_s13 + $0x8] sm:$0xff]   ;;  %6039 = vmatprep.subr.bf16.mxu0 %v7015_v29 }
0x3149   :  { %v4741_v51 = vpop.permute.xlu0 %4740 }
0x314a   :  { %v4756_v56 = vsel %vm4755_vm2, %v4754_v33, %v4741_v51  ;;  %v7017_v51 = vld [vmem:[%s11870_s13 + $0x88] sm:$0xff]  }
0x314b   :  { %v4758_v48 = vsel %vm4757_vm3, %v4756_v56, 0.0  ;;  %6040 = vmatpush3.bf16.msra.mxu0 %v7017_v51 }
0x314c   :  { %4759 = vadd.xlane.f32.xlu1 %v4758_v48 }
0x31d9   :  { %v4760_v18 = vpop.xlane.xlu1 %4759 }
0x31da   :  { %v4762_v52 = vmul.f32 0.03125, %v4760_v18 }
0x31dc   :  { %v4763_v40 = vsub.f32 %v4756_v56, %v4762_v52 }
0x31de   :  { %v4764_v7 = vmul.f32 %v4763_v40, %v4763_v40 }
0x31e0   :  { %v4765_v58 = vsel %vm4757_vm3, %v4764_v7, 0.0 }
0x31e1   :  { %4766 = vadd.xlane.f32.xlu0 %v4765_v58 }
0x326e   :  { %v4767_v34 = vpop.xlane.xlu0 %4766 }
0x326f   :  { %v4768_v62 = vmul.f32 0.03125, %v4767_v34 }
0x3271   :  { %v4769_v14 = vadd.f32 1e-05, %v4768_v62 }
0x3273   :  { %7382 = vrsqrt.f32 %v4769_v14 }
0x327d   :  { %v7383_v23 = vpop.eup %7382 }
0x327e   :  { %v4771_v36 = vmul.f32 %v7383_v23, %v4763_v40 }
0x3280   :  { %v4779_v4 = vmul.f32 %v5601_v35, %v4771_v36  ;;  %v7018_v35 = vld [vmem:[%s11870_s13 + $0x50] sm:$0xff]  }
0x3281   :  { %v7019_v36 = vld [vmem:[%s11870_s13 + $0xd0] sm:$0xff]  }
0x3282   :  { %v4787_v20 = vadd.f32 %v5602_v28, %v4779_v4  ;;  %v7020_v28 = vld [vmem:[%s11870_s13 + $0x10] sm:$0xff]   ;;  %6041 = vmatprep.subr.bf16.mxu0 %v7019_v36 }
0x3283   :  { %v7021_v4 = vld [vmem:[%s11870_s13 + $0x90] sm:$0xff]  }
0x3284   :  { %v4796_v27 = vpack.c.bf16 %v4787_v20, %v4787_v20  ;;  %6042 = vmatpush3.bf16.msra.mxu0 %v7021_v4  ;;  %v7022_v20 = vld [vmem:[%s11870_s13 + $0x58] sm:$0xff]  }
0x3286   :  { %5611 = vmatmul.mubr.msk.bf16.vlgmr.msra.gmra.mrb[128].mxu1 %vm4859_vm4, %v4796_v27 }
0x3287   :  { %4905 = vmatpush1.bf16.msra.mxu1 %v7004_v41  ;;  %4936 = vmatprep.mubr.bf16.mxu1 %v12060_v19  ;;  %v11698_v19 = vsub.s32 2, %v4800_v63  ;;  %v7023_v41 = vld [vmem:[%s11870_s13 + $0xd8] sm:$0xff]   ;;  %v7028_v63 = vld [vmem:[%s11870_s13 + $0x20] sm:$0xff]  }
0x3288   :  { %4906 = vmatprep.subr.bf16.mxu1 %v7009_v1  ;;  %v7025_v1 = vld [vmem:[%s11870_s13 + $0x98] sm:$0xff]   ;;  %6043 = vmatprep.subr.bf16.mxu0 %v7023_v41 }
0x3289   :  { %v4810_v54 = vrot.slane %v4797_v10, %v11698_v19  ;;  %6044 = vmatpush3.bf16.msra.mxu0 %v7025_v1  ;;  %v7029_v10 = vld [vmem:[%s11870_s13 + $0xa0] sm:$0xff]  }
0x328a   :  { %6045 = vmatprep.subr.bf16.mxu0 %v7027_v39 }
0x328b   :  { %4907 = vmatpush1.bf16.msra.mxu1 %v7007_v44  ;;  %v7026_v44 = vld [vmem:[%s11870_s13 + $0x60] sm:$0xff]  }
0x328c   :  { %6015 = vmatprep.subr.bf16.mxu1 %v7010_v31 }
0x328d   :  { %6046 = vmatpush3.bf16.msra.mxu0 %v7029_v10 }
0x328e   :  { %5612 = vmatmul.mubr.msk.bf16.vlgmr.msra.gmra.mrb[132].mxu1 %vm4859_vm4, %v4796_v27  ;;  %v7024_v27 = vld [vmem:[%s11870_s13 + $0x18] sm:$0xff]  }
0x328f   :  { %6016 = vmatpush3.bf16.msra.mxu1 %v7012_v43 }
0x3290   :  { %6017 = vmatprep.subr.bf16.mxu1 %v7014_v47 }
0x3293   :  { %6018 = vmatpush3.bf16.msra.mxu1 %v7016_v45 }
0x3294   :  { %6019 = vmatprep.subr.bf16.mxu1 %v7018_v35 }
0x3297   :  { %6020 = vmatpush3.bf16.msra.mxu1 %v7020_v28 }
0x3298   :  { %6021 = vmatprep.subr.bf16.mxu1 %v7022_v20 }
0x329b   :  { %6022 = vmatpush3.bf16.msra.mxu1 %v7024_v27 }
0x329c   :  { %6023 = vmatprep.subr.bf16.mxu1 %v7026_v44 }
0x329f   :  { %6024 = vmatpush3.bf16.msra.mxu1 %v7028_v63 }
0x3359   :  { %v4897_v16 = vpop.f32.mrb[128].mxu1 }
0x335a   :  { %v4899_v21 = vpop.f32.mrb[129].mxu1  ;;  %v4898_v9 = vadd.f32 %v4897_v16, %v4802_v30  ;;  %v7030_v30 = vld [vmem:[%s11870_s13 + $0x68] sm:$0xff]  }
0x335b   :  { %v4901_v8 = vpop.f32.mrb[130].mxu1  ;;  %v4900_v55 = vadd.f32 %v4899_v21, %v4806_v17  ;;  %v7031_v17 = vld [vmem:[%s11870_s13 + $0xe8] sm:$0xff]   ;;  %6025 = vmatprep.subr.bf16.mxu1 %v7030_v30 }
0x335c   :  { %v4902_v24 = vpop.f32.mrb[131].mxu1  ;;  %v4945_v57 = vsel %vm4592_vm10, %v4898_v9, 0.0  ;;  %v7032_v16 = vld [vmem:[%s11870_s13 + $0x28] sm:$0xff]   ;;  %6047 = vmatprep.subr.bf16.mxu0 %v7031_v17  ;;  %v7034_v8 = vld [vmem:[%s11870_s13 + $0x70] sm:$0xff]  }
0x335d   :  { %v4946_v42 = vsel %vm4592_vm10, %v4900_v55, 0.0  ;;  %v7033_v21 = vld [vmem:[%s11870_s13 + $0xa8] sm:$0xff]   ;;  %6026 = vmatpush3.bf16.msra.mxu1 %v7032_v16  ;;  %v7037_v24 = vld [vmem:[%s11870_s13 + $0xb0] sm:$0xff]  }
0x335e   :  { %v4947_v60 = vadd.f32 %v4946_v42, %v4945_v57  ;;  %6048 = vmatpush3.bf16.msra.mxu0 %v7033_v21  ;;  %6027 = vmatprep.subr.bf16.mxu1 %v7034_v8  ;;  %v7040_v57 = vld [vmem:[%s11870_s13 + $0x38] sm:$0xff]  }
0x335f   :  { %v7041_v42 = vld [vmem:[%s11870_s13 + $0xb8] sm:$0xff]  }
0x3361   :  { %v4938_v26 = vpop.f32.mrb[132].mxu1 }
0x3362   :  { %v4939_v15 = vadd.f32 %v4938_v26, %v4810_v54  ;;  %v4940_v5 = vpop.f32.mrb[133].mxu1  ;;  %v7038_v54 = vld [vmem:[%s11870_s13 + $0x78] sm:$0xff]  }
0x3363   :  { %v4941_v25 = vadd.f32 %v4940_v5, %v4814_v59  ;;  %v4942_v32 = vpop.f32.mrb[134].mxu1  ;;  %v7039_v59 = vld [vmem:[%s11870_s13 + $0xf8] sm:$0xff]  }
0x3364   :  { %v4948_v2 = vsel %vm4592_vm10, %v4939_v15, 0.0  ;;  %v4943_v22 = vpop.f32.mrb[135].mxu1 }
0x3365   :  { %v4949_v61 = vadd.f32 %v4948_v2, %v4947_v60  ;;  %v4950_v46 = vsel %vm4592_vm10, %v4941_v25, 0.0  ;;  %v4980_v60 = vld [vmem:[%s11868_s11] sm:$0xf] }
0x3366   :  { %v4985_v32 = vrot.slane %v4980_v60, %v11689_v11  ;;  %v4993_v2 = vrot.slane %v4980_v60, %v11698_v19  ;;  %v4989_v22 = vrot.slane %v4980_v60, %v11691_v50 }
0x3367   :  { %v4951_v12 = vadd.f32 %v4950_v46, %v4949_v61  ;;  %v4997_v61 = vrot.slane %v4980_v60, %v11700_v0 }
0x3369   :  { %4952 = vadd.xlane.f32.xlu0 %v4951_v12 }
0x33f6   :  { %v4953_v33 = vpop.xlane.xlu0 %4952 }
0x33f7   :  { %v4955_v56 = vmul.f32 0.001953125, %v4953_v33 }
0x33f9   :  { %v11732_v48 = vsub.f32 %v4898_v9, %v4955_v56  ;;  %v11734_v18 = vsub.f32 %v4900_v55, %v4955_v56  ;;  %v11736_v52 = vsub.f32 %v4939_v15, %v4955_v56  ;;  %v11738_v40 = vsub.f32 %v4941_v25, %v4955_v56  ;;  %v7035_v9 = vld [vmem:[%s11870_s13 + $0xf0] sm:$0xff]   ;;  %v5006_v25 = vld [vmem:[%s11869_s12] sm:$0xf] }
0x33fa   :  { %v7036_v55 = vld [vmem:[%s11870_s13 + $0x30] sm:$0xff]   ;;  %6049 = vmatprep.subr.bf16.mxu0 %v7035_v9  ;;  %v5015_v12 = vrot.slane %v5006_v25, %v11691_v50  ;;  %v5023_v31 = vrot.slane %v5006_v25, %v11700_v0  ;;  %v5011_v13 = vrot.slane %v5006_v25, %v11689_v11  ;;  %v5019_v43 = vrot.slane %v5006_v25, %v11698_v19  ;;  %s7714_s13 = smov 120  }
0x33fb   :  { %v4960_v7 = vmul.f32 %v11732_v48, %v11732_v48  ;;  %v4961_v58 = vmul.f32 %v11734_v18, %v11734_v18  ;;  %v4962_v53 = vmul.f32 %v11736_v52, %v11736_v52  ;;  %v4963_v38 = vmul.f32 %v11738_v40, %v11738_v40  ;;  %6028 = vmatpush3.bf16.msra.mxu1 %v7036_v55 }
0x33fc   :  { %6050 = vmatpush3.bf16.msra.mxu0 %v7037_v24  ;;  %6029 = vmatprep.subr.bf16.mxu1 %v7038_v54 }
0x33fd   :  { %v4964_v49 = vsel %vm4592_vm10, %v4960_v7, 0.0  ;;  %v4965_v37 = vsel %vm4592_vm10, %v4961_v58, 0.0  ;;  %v4967_v34 = vsel %vm4592_vm10, %v4962_v53, 0.0  ;;  %v4969_v14 = vsel %vm4592_vm10, %v4963_v38, 0.0  ;;  %6051 = vmatprep.subr.bf16.mxu0 %v7039_v59 }
0x33fe   :  { %v4966_v3 = vadd.f32 %v4965_v37, %v4964_v49 }
0x33ff   :  { %6030 = vmatpush3.bf16.msra.mxu1 %v7040_v57 }
0x3400   :  { %v4968_v62 = vadd.f32 %v4967_v34, %v4966_v3  ;;  %6052 = vmatpush3.bf16.msra.mxu0 %v7041_v42 }
0x3402   :  { %v4970_v23 = vadd.f32 %v4969_v14, %v4968_v62 }
0x3404   :  { %4971 = vadd.xlane.f32.xlu1 %v4970_v23 }
0x3491   :  { %v4972_v26 = vpop.xlane.xlu1 %4971 }
0x3492   :  { %v4973_v15 = vmul.f32 0.001953125, %v4972_v26 }
0x3494   :  { %v4974_v5 = vadd.f32 1e-05, %v4973_v15 }
0x3496   :  { %7384 = vrsqrt.f32 %v4974_v5 }
0x34a0   :  { %v7385_v46 = vpop.eup %7384 }
0x34a1   :  { %v4977_v6 = vmul.f32 %v7385_v46, %v11734_v18  ;;  %v4979_v47 = vmul.f32 %v7385_v46, %v11738_v40  ;;  %v4976_v29 = vmul.f32 %v7385_v46, %v11732_v48  ;;  %v4978_v45 = vmul.f32 %v7385_v46, %v11736_v52  ;;  %v5613_v52 = vld [vmem:[%s11871_s14] ss:$0 sm:$0xff]  ;;  %s7717_s14 = smov [#allocation2]  }
0x34a2   :  { %s5400_s0 = sshll.u32 %s7717_s14, 4  ;;  %s5401_s0 = int_to_ptr.vmem [resolvable:$true] %s5400_s0 }
0x34a3   :  { %v5003_v51 = vmul.f32 %v4989_v22, %v4977_v6  ;;  %v5005_v33 = vmul.f32 %v4997_v61, %v4979_v47  ;;  %v5002_v56 = vmul.f32 %v4985_v32, %v4976_v29  ;;  %v5004_v7 = vmul.f32 %v4993_v2, %v4978_v45  ;;  %s7679_s20 = scalar_lea.vmem %s5401_s0, 32  ;;  %p7684_p1 = scmp.lt.s32.totalorder %s5401_s0, %s5401_s0 }
0x34a4   :  { %p7680_p0 = scmp.ne.s32.totalorder %s5401_s0, %s7679_s20  ;;  %p7685_p2 = scmp.lt.s32.totalorder %s7679_s20, %s7679_s20 }
0x34a5   :  { %v5029_v58 = vadd.f32 %v5015_v12, %v5003_v51  ;;  %v5031_v50 = vadd.f32 %v5023_v31, %v5005_v33  ;;  %v5028_v53 = vadd.f32 %v5011_v13, %v5002_v56  ;;  %v5030_v0 = vadd.f32 %v5019_v43, %v5004_v7 }
0x34a6   :  { %p7686_p3 = por %p7685_p2, %p7684_p1 }
0x34a7   :  { %v5097_v38 = vpack.c.bf16 %v5029_v58, %v5029_v58  ;;  %v5099_v11 = vpack.c.bf16 %v5031_v50, %v5031_v50  ;;  %v5096_v49 = vpack.c.bf16 %v5028_v53, %v5028_v53  ;;  %v5098_v19 = vpack.c.bf16 %v5030_v0, %v5030_v0 }
0x34a8   :  { %p7687_p4 = pnand %p7686_p3, %p7680_p0 }
0x34a9   :  { %5331 = vmatprep.mubr.bf16.mxu1 %v5097_v38  ;;  %5371 = vmatprep.mubr.bf16.mxu0 %v5099_v11 }
0x34aa   :  { %5332 = vmatmul.mubr.bf16.vlgmr.msra.gmra.mrb[136].mxu1 %v5096_v49  ;;  %5372 = vmatmul.mubr.bf16.vlgmr.msra.gmra.mrb[132].mxu0 %v5098_v19 }
0x357d   :  { %v6031_v18 = vpop.f32.mrb[136].mxu1  ;;  %v6053_v48 = vpop.f32.mrb[132].mxu0 }
0x357e   :  { %v6032_v40 = vpop.f32.mrb[137].mxu1  ;;  %v6054_v37 = vpop.f32.mrb[133].mxu0 }
0x357f   :  { %v6033_v3 = vadd.f32 %v6032_v40, %v6031_v18  ;;  %v6055_v34 = vadd.f32 %v6054_v37, %v6053_v48  ;;  %v6034_v62 = vpop.f32.mrb[138].mxu1  ;;  %v6056_v14 = vpop.f32.mrb[134].mxu0 }
0x3580   :  { %v6035_v23 = vpop.f32.mrb[139].mxu1  ;;  %v6057_v35 = vpop.f32.mrb[135].mxu0 }
0x3581   :  { %v5334_v36 = vadd.f32 %v6033_v3, %v5613_v52 }
0x3583   :  { %v5374_v28 = vadd.f32 %v6055_v34, %v5334_v36 }
0x3585   :  { %5384 = vrot.lane.b32.xlu1 %v5374_v28, %s7714_s13  ;;  %5380 = vrot.lane.b32.xlu0 %v5374_v28, %s7715_s4 }
0x3589   :  { %5388 = vrot.lane.b32.xlu1 %v5374_v28, %s7716_s1 }
0x35f7   :  { %v5385_v4 = vpop.permute.xlu1 %5384  ;;  %v5381_v20 = vpop.permute.xlu0 %5380 }
0x35f8   :  { %v5383_v41 = vmax.f32 %v5374_v28, %v5381_v20 }
0x35fa   :  { %v5387_v27 = vmax.f32 %v5383_v41, %v5385_v4 }
0x35fb   :  { %v5389_v1 = vpop.permute.xlu1 %5388 }
0x35fc   :  { %v5391_v44 = vmax.f32 %v5387_v27, %v5389_v1 }
0x35fe   :  { %5393 = vst.msk [vmem:[#allocation2] sm:$0x3] %vm5392_vm5, %v5391_v44 }
0x35ff   :  { %7690 = shalt.err (!%p7687_p4)
}
0x3600   :  { %s7691_s7 = scalar_lea.hbm %s11872_s15, 32 }
0x3601   :  { %p7692_p5 = scmp.ne.s32.totalorder %s11872_s15, %s7691_s7  ;;  %p7695_p6 = scmp.lt.u32.totalorder %s7691_s7, %s11872_s15 }
0x3603   :  { %p7697_p7 = pnand %p7695_p6, %p7692_p5 }
0x3605   :  { %7700 = shalt.err (!%p7697_p7)
}
0x3606   :  { %5403 = dma.vmem_to_hbm [thread:$0]  %s5401_s0, 32, %s11872_s15, [#allocation3]  }
0x3607   :  { %7701 = dma.done.wait [#allocation3], 32  }
0x3608   :  { %7702 = vsyncadd [#allocation3], 4294967264 }
0x3609   :  { %5407 = vsyncpa [#allocation3], 1 }

</bundles_post_ra>
